<compile_context>
chip_gen: v7x
topology: tpu7x:2x2x1
jax: 0.10.0
libtpu: 0.0.40
codegen_flags: <defaults>
</compile_context>

<pallas_src>
import functools

import numpy as np
import jax
import jax.numpy as jnp
from jax.experimental import pallas as pl
from jax.experimental.pallas import tpu as pltpu

LANE = 128   # time axis padded to a multiple of the lane width
PAD = 128    # lane-aligned zero border on each side of the conv staging buffer


def _wn_kernel(*refs, n_in, n_channels, n_layers, ksize, end_ksize,
               dilations, T_valid, T_pad):
    """Whole WN forward for one batch element.

    refs layout:
      [0]                 x_ref      (1, n_in, T_pad)           VMEM
      [1], [2]            start w/b  (nc, n_in), (nc, 1)
      [3 + 4*i .. +3]     layer i:   in_w (2nc, nc*K), in_b (2nc, 1),
                                     rs_w (rs_ch, nc), rs_b (rs_ch, 1)
      [3 + 4*L], [4+4*L]  end w/b    (n_out, nc*endK), (n_out, 1)
      [5 + 4*L]           out_ref    (1, n_out, T_pad)
      [6 + 4*L]           buf_ref    (max(n_in, nc), PAD + T_pad + PAD) scratch
    """
    nc = n_channels
    x_ref = refs[0]
    sw_ref, sb_ref = refs[1], refs[2]
    layer_refs = refs[3:3 + 4 * n_layers]
    ew_ref, eb_ref = refs[3 + 4 * n_layers], refs[4 + 4 * n_layers]
    out_ref = refs[5 + 4 * n_layers]
    buf_ref = refs[6 + 4 * n_layers]

    # Zero the staging buffer; only its interior [PAD, PAD+T_pad) is ever
    # rewritten, so the borders stay zero and implement the conv zero-padding
    # at the ends of the (lane-padded) time axis.
    buf_ref[...] = jnp.zeros_like(buf_ref)

    # Valid-time mask (time was zero-padded from T_valid up to T_pad in the
    # wrapper; keeping activations zero beyond T_valid reproduces PyTorch's
    # zero-padding at the true sequence end).
    mask = (jax.lax.broadcasted_iota(jnp.int32, (1, T_pad), 1)
            < T_valid).astype(jnp.float32)

    def conv(x_val, c_in, w_ref, b_ref, k, dil):
        """'same'-padded 1-D conv as VPU shift-and-MAC (f32 accumulation).

        x_val: (c_in, T_pad); w_ref: (c_out, c_in*k) with column ci*k + kk;
        b_ref: (c_out, 1).  Returns (c_out, T_pad) f32.
        """
        c_out = w_ref.shape[0]
        w = w_ref[...]                                            # tiny, once
        acc = jnp.broadcast_to(b_ref[...], (c_out, T_pad)).astype(jnp.float32)

        if k == 1:  # pointwise conv: no staging / shifting needed
            for ci in range(c_in):
                acc = acc + w[:, ci:ci + 1] * x_val[ci:ci + 1, :]
            return acc

        # stage activation into the zero-bordered buffer (lane-aligned store)
        buf_ref[0:c_in, PAD:PAD + T_pad] = x_val
        half = ((k - 1) // 2) * dil
        for kk in range(k):
            s = kk * dil - half
            # contiguous shifted tap: xs[:, t] = x[:, t + s], zero-filled
            xs = buf_ref[0:c_in, PAD + s:PAD + s + T_pad]
            for ci in range(c_in):
                col = ci * k + kk
                acc = acc + w[:, col:col + 1] * xs[ci:ci + 1, :]
        return acc

    x_in = x_ref[0]                                               # (n_in, T_pad)
    audio = conv(x_in, n_in, sw_ref, sb_ref, 1, 1) * mask         # start (1x1)

    output = None
    for i in range(n_layers):
        iw_ref, ib_ref, rw_ref, rb_ref = layer_refs[4 * i:4 * i + 4]
        z = conv(audio, nc, iw_ref, ib_ref, ksize, dilations[i])  # (2nc, T_pad)
        acts = jnp.tanh(z[0:nc, :]) * jax.nn.sigmoid(z[nc:2 * nc, :])   # GTU
        rs = conv(acts, nc, rw_ref, rb_ref, 1, 1)                 # res/skip 1x1
        if i < n_layers - 1:
            audio = (audio + rs[0:nc, :]) * mask
            skip = rs[nc:2 * nc, :]
        else:
            skip = rs                                             # nc channels
        output = skip if output is None else output + skip

    output = output * mask
    out = conv(output, nc, ew_ref, eb_ref, end_ksize, 1)          # end conv
    out_ref[0] = out.astype(out_ref.dtype)


def wn_forward(audio, params, *, n_layers, n_channels, ksize=3, end_ksize=5,
               dilations=None):
    """audio: (B, n_in_channels, T) float32 (PyTorch NCW). Returns (B, n_out, T)."""
    B, n_in, T = audio.shape
    nc = n_channels
    if dilations is None:
        dilations = tuple(2 ** i for i in range(n_layers))
    n_out = params['end_w'].shape[0]

    T_pad = max(LANE, ((T + LANE - 1) // LANE) * LANE)
    x = jnp.pad(audio.astype(jnp.float32), ((0, 0), (0, 0), (0, T_pad - T)))

    def w2(w):   # (c_out, c_in, k) -> (c_out, c_in*k), column index = ci*k + kk
        w = jnp.asarray(w, jnp.float32)
        return w.reshape(w.shape[0], -1)

    def b2(b):   # (c_out,) -> (c_out, 1) so it broadcasts along lanes in-kernel
        return jnp.asarray(b, jnp.float32).reshape(-1, 1)

    flat = [w2(params['start_w']), b2(params['start_b'])]
    for i in range(n_layers):
        flat += [w2(params['in_w'][i]), b2(params['in_b'][i]),
                 w2(params['rs_w'][i]), b2(params['rs_b'][i])]
    flat += [w2(params['end_w']), b2(params['end_b'])]

    kernel = functools.partial(
        _wn_kernel, n_in=n_in, n_channels=nc, n_layers=n_layers,
        ksize=ksize, end_ksize=end_ksize, dilations=tuple(dilations),
        T_valid=T, T_pad=T_pad)

    in_specs = [pl.BlockSpec((1, n_in, T_pad), lambda b: (b, 0, 0))]
    in_specs += [pl.BlockSpec(p.shape, lambda b: (0, 0)) for p in flat]

    c_buf = max(n_in, nc)
    out = pl.pallas_call(
        kernel,
        out_shape=jax.ShapeDtypeStruct((B, n_out, T_pad), jnp.float32),
        grid=(B,),
        in_specs=in_specs,
        out_specs=pl.BlockSpec((1, n_out, T_pad), lambda b: (b, 0, 0)),
        scratch_shapes=[pltpu.VMEM((c_buf, PAD + T_pad + PAD), jnp.float32)],
        compiler_params=pltpu.CompilerParams(
            dimension_semantics=("parallel",)),
    )(x, *flat)
    return out[:, :, :T]


def wn_ref(audio, params, *, n_layers, n_channels, ksize=3, end_ksize=5,
           dilations=None):
    """Pure-JAX reference mirroring the PyTorch WN.forward (NCW layout)."""
    if dilations is None:
        dilations = tuple(2 ** i for i in range(n_layers))
    nc = n_channels

    def conv(x, w, b, dil=1, pad=0):
        y = jax.lax.conv_general_dilated(
            x, jnp.asarray(w, jnp.float32), window_strides=(1,),
            padding=[(pad, pad)], rhs_dilation=(dil,),
            dimension_numbers=('NCH', 'OIH', 'NCH'))
        return y + jnp.asarray(b, jnp.float32)[None, :, None]

    x = conv(audio.astype(jnp.float32), params['start_w'], params['start_b'])
    output = None
    for i in range(n_layers):
        d = dilations[i]
        p = (ksize * d - d) // 2
        z = conv(x, params['in_w'][i], params['in_b'][i], dil=d, pad=p)
        acts = jnp.tanh(z[:, :nc, :]) * jax.nn.sigmoid(z[:, nc:, :])   # GTU
        rs = conv(acts, params['rs_w'][i], params['rs_b'][i])
        if i < n_layers - 1:
            x = x + rs[:, :nc, :]
            skip = rs[:, nc:, :]
        else:
            skip = rs
        output = skip if output is None else output + skip
    return conv(output, params['end_w'], params['end_b'],
                pad=(end_ksize - 1) // 2)


def init_params(key, *, n_in, n_out, n_layers, n_channels, ksize=3,
                end_ksize=5):
    """Deterministic synthetic params with weight_norm folded into weights."""
    nc = n_channels

    def wn_conv(k, c_out, c_in, ks):
        k1, k2, k3 = jax.random.split(k, 3)
        v = jax.random.normal(k1, (c_out, c_in, ks), jnp.float32)
        g = jax.random.uniform(k2, (c_out,), jnp.float32, 0.5, 1.5)
        norm = jnp.sqrt(jnp.sum(v * v, axis=(1, 2), keepdims=True)) + 1e-8
        w = g[:, None, None] * v / norm           # weight_norm effective weight
        b = jax.random.normal(k3, (c_out,), jnp.float32) * 0.1
        return w, b

    keys = jax.random.split(key, 2 + 2 * n_layers)
    p = {'in_w': [], 'in_b': [], 'rs_w': [], 'rs_b': []}
    p['start_w'], p['start_b'] = wn_conv(keys[0], nc, n_in, 1)
    for i in range(n_layers):
        iw, ib = wn_conv(keys[1 + 2 * i], 2 * nc, nc, ksize)
        rs_ch = 2 * nc if i < n_layers - 1 else nc
        rw, rb = wn_conv(keys[2 + 2 * i], rs_ch, nc, 1)
        p['in_w'].append(iw); p['in_b'].append(ib)
        p['rs_w'].append(rw); p['rs_b'].append(rb)
    p['end_w'], p['end_b'] = wn_conv(keys[1 + 2 * n_layers], n_out, nc,
                                     end_ksize)
    return p


if __name__ == "__main__":
    B, T = 2, 200
    n_in, n_out = 2, 1
    n_layers, n_channels = 3, 8
    ksize, end_ksize = 3, 5

    key = jax.random.PRNGKey(0)
    key, ka, kp = jax.random.split(key, 3)
    audio = jax.random.normal(ka, (B, n_in, T), jnp.float32)   # PyTorch NCW
    params = init_params(kp, n_in=n_in, n_out=n_out, n_layers=n_layers,
                         n_channels=n_channels, ksize=ksize,
                         end_ksize=end_ksize)

    out = jax.block_until_ready(
        wn_forward(audio, params, n_layers=n_layers, n_channels=n_channels,
                   ksize=ksize, end_ksize=end_ksize))
    ref = jax.block_until_ready(
        wn_ref(audio, params, n_layers=n_layers, n_channels=n_channels,
               ksize=ksize, end_ksize=end_ksize))

    np.testing.assert_allclose(np.asarray(out), np.asarray(ref),
                               rtol=2e-4, atol=2e-4)
    print("KERNEL_OK")
</pallas_src>

<mosaic_0001>
module attributes {stable_mosaic.version = 11 : i64} {
  func.func @_wn_kernel(%arg0: i32, %arg1: memref<1x2x256xf32, #tpu.memory_space<vmem>>, %arg2: memref<8x2xf32, #tpu.memory_space<vmem>>, %arg3: memref<8x1xf32, #tpu.memory_space<vmem>>, %arg4: memref<16x24xf32, #tpu.memory_space<vmem>>, %arg5: memref<16x1xf32, #tpu.memory_space<vmem>>, %arg6: memref<16x8xf32, #tpu.memory_space<vmem>>, %arg7: memref<16x1xf32, #tpu.memory_space<vmem>>, %arg8: memref<16x24xf32, #tpu.memory_space<vmem>>, %arg9: memref<16x1xf32, #tpu.memory_space<vmem>>, %arg10: memref<16x8xf32, #tpu.memory_space<vmem>>, %arg11: memref<16x1xf32, #tpu.memory_space<vmem>>, %arg12: memref<16x24xf32, #tpu.memory_space<vmem>>, %arg13: memref<16x1xf32, #tpu.memory_space<vmem>>, %arg14: memref<8x8xf32, #tpu.memory_space<vmem>>, %arg15: memref<8x1xf32, #tpu.memory_space<vmem>>, %arg16: memref<1x40xf32, #tpu.memory_space<vmem>>, %arg17: memref<1x1xf32, #tpu.memory_space<vmem>>, %arg18: memref<1x1x256xf32, #tpu.memory_space<vmem>>, %arg19: memref<8x512xf32, #tpu.memory_space<vmem>>) attributes {dimension_semantics = [#tpu.dimension_semantics<parallel>], iteration_bounds = array<i64: 2>, scalar_prefetch = 0 : i64, scratch_operands = 1 : i64, tpu.core_type = #tpu.core_type<tc>, window_params = [{transform_indices = @transform_0, window_bounds = array<i64: 1, 2, 256>}, {pipeline_mode = #tpu.pipeline_mode<synchronous>, transform_indices = @transform_1, window_bounds = array<i64: 8, 2>}, {pipeline_mode = #tpu.pipeline_mode<synchronous>, transform_indices = @transform_2, window_bounds = array<i64: 8, 1>}, {pipeline_mode = #tpu.pipeline_mode<synchronous>, transform_indices = @transform_3, window_bounds = array<i64: 16, 24>}, {pipeline_mode = #tpu.pipeline_mode<synchronous>, transform_indices = @transform_4, window_bounds = array<i64: 16, 1>}, {pipeline_mode = #tpu.pipeline_mode<synchronous>, transform_indices = @transform_5, window_bounds = array<i64: 16, 8>}, {pipeline_mode = #tpu.pipeline_mode<synchronous>, transform_indices = @transform_6, window_bounds = array<i64: 16, 1>}, {pipeline_mode = #tpu.pipeline_mode<synchronous>, transform_indices = @transform_7, window_bounds = array<i64: 16, 24>}, {pipeline_mode = #tpu.pipeline_mode<synchronous>, transform_indices = @transform_8, window_bounds = array<i64: 16, 1>}, {pipeline_mode = #tpu.pipeline_mode<synchronous>, transform_indices = @transform_9, window_bounds = array<i64: 16, 8>}, {pipeline_mode = #tpu.pipeline_mode<synchronous>, transform_indices = @transform_10, window_bounds = array<i64: 16, 1>}, {pipeline_mode = #tpu.pipeline_mode<synchronous>, transform_indices = @transform_11, window_bounds = array<i64: 16, 24>}, {pipeline_mode = #tpu.pipeline_mode<synchronous>, transform_indices = @transform_12, window_bounds = array<i64: 16, 1>}, {pipeline_mode = #tpu.pipeline_mode<synchronous>, transform_indices = @transform_13, window_bounds = array<i64: 8, 8>}, {pipeline_mode = #tpu.pipeline_mode<synchronous>, transform_indices = @transform_14, window_bounds = array<i64: 8, 1>}, {pipeline_mode = #tpu.pipeline_mode<synchronous>, transform_indices = @transform_15, window_bounds = array<i64: 1, 40>}, {pipeline_mode = #tpu.pipeline_mode<synchronous>, transform_indices = @transform_16, window_bounds = array<i64: 1, 1>}, {transform_indices = @transform_17, window_bounds = array<i64: 1, 1, 256>}]} {
    %cst = arith.constant 0.000000e+00 : f32
    %0 = vector.broadcast %cst : f32 to vector<8x512xf32>
    %c0 = arith.constant 0 : index
    %c0_0 = arith.constant 0 : index
    %1 = vector.load %arg19[%c0, %c0_0] : memref<8x512xf32, #tpu.memory_space<vmem>>, vector<8x512xf32>
    tpu.vector_store %arg19[%c0, %c0_0], %0 {strides = array<i32>} : memref<8x512xf32, #tpu.memory_space<vmem>>, vector<8x512xf32>,
    %2 = tpu.iota {dimensions = array<i32: 1>} : vector<1x256xi32>
    %c200_i32 = arith.constant 200 : i32
    %3 = vector.broadcast %c200_i32 : i32 to vector<1x256xi32>
    %4 = arith.cmpi slt, %2, %3 : vector<1x256xi32>
    %5 = arith.extui %4 : vector<1x256xi1> to vector<1x256xi32>
    %6 = arith.sitofp %5 : vector<1x256xi32> to vector<1x256xf32>
    %c0_1 = arith.constant 0 : index
    %c0_2 = arith.constant 0 : index
    %c0_3 = arith.constant 0 : index
    %7 = vector.load %arg1[%c0_1, %c0_2, %c0_3] : memref<1x2x256xf32, #tpu.memory_space<vmem>>, vector<1x2x256xf32>
    %8 = vector.shape_cast %7 : vector<1x2x256xf32> to vector<2x256xf32>
    %c0_4 = arith.constant 0 : index
    %c0_5 = arith.constant 0 : index
    %9 = vector.load %arg2[%c0_4, %c0_5] : memref<8x2xf32, #tpu.memory_space<vmem>>, vector<8x2xf32>
    %c0_6 = arith.constant 0 : index
    %c0_7 = arith.constant 0 : index
    %10 = vector.load %arg3[%c0_6, %c0_7] : memref<8x1xf32, #tpu.memory_space<vmem>>, vector<8x1xf32>
    %11 = vector.shape_cast %10 : vector<8x1xf32> to vector<8x1xf32>
    %12 = vector.broadcast %11 : vector<8x1xf32> to vector<8x256xf32>
    %13 = vector.extract_strided_slice %9 {offsets = [0, 0], sizes = [8, 1], strides = [1, 1]} : vector<8x2xf32> to vector<8x1xf32>
    %14 = vector.extract_strided_slice %8 {offsets = [0, 0], sizes = [1, 256], strides = [1, 1]} : vector<2x256xf32> to vector<1x256xf32>
    %15 = vector.broadcast %13 : vector<8x1xf32> to vector<8x256xf32>
    %16 = vector.broadcast %14 : vector<1x256xf32> to vector<8x256xf32>
    %17 = arith.mulf %15, %16 : vector<8x256xf32>
    %18 = arith.addf %12, %17 : vector<8x256xf32>
    %19 = vector.extract_strided_slice %9 {offsets = [0, 1], sizes = [8, 1], strides = [1, 1]} : vector<8x2xf32> to vector<8x1xf32>
    %20 = vector.extract_strided_slice %8 {offsets = [1, 0], sizes = [1, 256], strides = [1, 1]} : vector<2x256xf32> to vector<1x256xf32>
    %21 = vector.broadcast %19 : vector<8x1xf32> to vector<8x256xf32>
    %22 = vector.broadcast %20 : vector<1x256xf32> to vector<8x256xf32>
    %23 = arith.mulf %21, %22 : vector<8x256xf32>
    %24 = arith.addf %18, %23 : vector<8x256xf32>
    %25 = vector.broadcast %6 : vector<1x256xf32> to vector<8x256xf32>
    %26 = arith.mulf %24, %25 : vector<8x256xf32>
    %c0_8 = arith.constant 0 : index
    %c0_9 = arith.constant 0 : index
    %27 = vector.load %arg4[%c0_8, %c0_9] : memref<16x24xf32, #tpu.memory_space<vmem>>, vector<16x24xf32>
    %c0_10 = arith.constant 0 : index
    %c0_11 = arith.constant 0 : index
    %28 = vector.load %arg5[%c0_10, %c0_11] : memref<16x1xf32, #tpu.memory_space<vmem>>, vector<16x1xf32>
    %29 = vector.shape_cast %28 : vector<16x1xf32> to vector<16x1xf32>
    %30 = vector.broadcast %29 : vector<16x1xf32> to vector<16x256xf32>
    %c0_12 = arith.constant 0 : index
    %c128 = arith.constant 128 : index
    %31 = vector.load %arg19[%c0_12, %c128] : memref<8x512xf32, #tpu.memory_space<vmem>>, vector<8x256xf32>
    tpu.vector_store %arg19[%c0_12, %c128], %26 {strides = array<i32>} : memref<8x512xf32, #tpu.memory_space<vmem>>, vector<8x256xf32>,
    %c0_13 = arith.constant 0 : index
    %c127 = arith.constant 127 : index
    %32 = vector.load %arg19[%c0_13, %c127] : memref<8x512xf32, #tpu.memory_space<vmem>>, vector<8x256xf32>
    %33 = vector.extract_strided_slice %27 {offsets = [0, 0], sizes = [16, 1], strides = [1, 1]} : vector<16x24xf32> to vector<16x1xf32>
    %34 = vector.extract_strided_slice %32 {offsets = [0, 0], sizes = [1, 256], strides = [1, 1]} : vector<8x256xf32> to vector<1x256xf32>
    %35 = vector.broadcast %33 : vector<16x1xf32> to vector<16x256xf32>
    %36 = vector.broadcast %34 : vector<1x256xf32> to vector<16x256xf32>
    %37 = arith.mulf %35, %36 : vector<16x256xf32>
    %38 = arith.addf %30, %37 : vector<16x256xf32>
    %39 = vector.extract_strided_slice %27 {offsets = [0, 3], sizes = [16, 1], strides = [1, 1]} : vector<16x24xf32> to vector<16x1xf32>
    %40 = vector.extract_strided_slice %32 {offsets = [1, 0], sizes = [1, 256], strides = [1, 1]} : vector<8x256xf32> to vector<1x256xf32>
    %41 = vector.broadcast %39 : vector<16x1xf32> to vector<16x256xf32>
    %42 = vector.broadcast %40 : vector<1x256xf32> to vector<16x256xf32>
    %43 = arith.mulf %41, %42 : vector<16x256xf32>
    %44 = arith.addf %38, %43 : vector<16x256xf32>
    %45 = vector.extract_strided_slice %27 {offsets = [0, 6], sizes = [16, 1], strides = [1, 1]} : vector<16x24xf32> to vector<16x1xf32>
    %46 = vector.extract_strided_slice %32 {offsets = [2, 0], sizes = [1, 256], strides = [1, 1]} : vector<8x256xf32> to vector<1x256xf32>
    %47 = vector.broadcast %45 : vector<16x1xf32> to vector<16x256xf32>
    %48 = vector.broadcast %46 : vector<1x256xf32> to vector<16x256xf32>
    %49 = arith.mulf %47, %48 : vector<16x256xf32>
    %50 = arith.addf %44, %49 : vector<16x256xf32>
    %51 = vector.extract_strided_slice %27 {offsets = [0, 9], sizes = [16, 1], strides = [1, 1]} : vector<16x24xf32> to vector<16x1xf32>
    %52 = vector.extract_strided_slice %32 {offsets = [3, 0], sizes = [1, 256], strides = [1, 1]} : vector<8x256xf32> to vector<1x256xf32>
    %53 = vector.broadcast %51 : vector<16x1xf32> to vector<16x256xf32>
    %54 = vector.broadcast %52 : vector<1x256xf32> to vector<16x256xf32>
    %55 = arith.mulf %53, %54 : vector<16x256xf32>
    %56 = arith.addf %50, %55 : vector<16x256xf32>
    %57 = vector.extract_strided_slice %27 {offsets = [0, 12], sizes = [16, 1], strides = [1, 1]} : vector<16x24xf32> to vector<16x1xf32>
    %58 = vector.extract_strided_slice %32 {offsets = [4, 0], sizes = [1, 256], strides = [1, 1]} : vector<8x256xf32> to vector<1x256xf32>
    %59 = vector.broadcast %57 : vector<16x1xf32> to vector<16x256xf32>
    %60 = vector.broadcast %58 : vector<1x256xf32> to vector<16x256xf32>
    %61 = arith.mulf %59, %60 : vector<16x256xf32>
    %62 = arith.addf %56, %61 : vector<16x256xf32>
    %63 = vector.extract_strided_slice %27 {offsets = [0, 15], sizes = [16, 1], strides = [1, 1]} : vector<16x24xf32> to vector<16x1xf32>
    %64 = vector.extract_strided_slice %32 {offsets = [5, 0], sizes = [1, 256], strides = [1, 1]} : vector<8x256xf32> to vector<1x256xf32>
    %65 = vector.broadcast %63 : vector<16x1xf32> to vector<16x256xf32>
    %66 = vector.broadcast %64 : vector<1x256xf32> to vector<16x256xf32>
    %67 = arith.mulf %65, %66 : vector<16x256xf32>
    %68 = arith.addf %62, %67 : vector<16x256xf32>
    %69 = vector.extract_strided_slice %27 {offsets = [0, 18], sizes = [16, 1], strides = [1, 1]} : vector<16x24xf32> to vector<16x1xf32>
    %70 = vector.extract_strided_slice %32 {offsets = [6, 0], sizes = [1, 256], strides = [1, 1]} : vector<8x256xf32> to vector<1x256xf32>
    %71 = vector.broadcast %69 : vector<16x1xf32> to vector<16x256xf32>
    %72 = vector.broadcast %70 : vector<1x256xf32> to vector<16x256xf32>
    %73 = arith.mulf %71, %72 : vector<16x256xf32>
    %74 = arith.addf %68, %73 : vector<16x256xf32>
    %75 = vector.extract_strided_slice %27 {offsets = [0, 21], sizes = [16, 1], strides = [1, 1]} : vector<16x24xf32> to vector<16x1xf32>
    %76 = vector.extract_strided_slice %32 {offsets = [7, 0], sizes = [1, 256], strides = [1, 1]} : vector<8x256xf32> to vector<1x256xf32>
    %77 = vector.broadcast %75 : vector<16x1xf32> to vector<16x256xf32>
    %78 = vector.broadcast %76 : vector<1x256xf32> to vector<16x256xf32>
    %79 = arith.mulf %77, %78 : vector<16x256xf32>
    %80 = arith.addf %74, %79 : vector<16x256xf32>
    %c0_14 = arith.constant 0 : index
    %c128_15 = arith.constant 128 : index
    %81 = vector.load %arg19[%c0_14, %c128_15] : memref<8x512xf32, #tpu.memory_space<vmem>>, vector<8x256xf32>
    %82 = vector.extract_strided_slice %27 {offsets = [0, 1], sizes = [16, 1], strides = [1, 1]} : vector<16x24xf32> to vector<16x1xf32>
    %83 = vector.extract_strided_slice %81 {offsets = [0, 0], sizes = [1, 256], strides = [1, 1]} : vector<8x256xf32> to vector<1x256xf32>
    %84 = vector.broadcast %82 : vector<16x1xf32> to vector<16x256xf32>
    %85 = vector.broadcast %83 : vector<1x256xf32> to vector<16x256xf32>
    %86 = arith.mulf %84, %85 : vector<16x256xf32>
    %87 = arith.addf %80, %86 : vector<16x256xf32>
    %88 = vector.extract_strided_slice %27 {offsets = [0, 4], sizes = [16, 1], strides = [1, 1]} : vector<16x24xf32> to vector<16x1xf32>
    %89 = vector.extract_strided_slice %81 {offsets = [1, 0], sizes = [1, 256], strides = [1, 1]} : vector<8x256xf32> to vector<1x256xf32>
    %90 = vector.broadcast %88 : vector<16x1xf32> to vector<16x256xf32>
    %91 = vector.broadcast %89 : vector<1x256xf32> to vector<16x256xf32>
    %92 = arith.mulf %90, %91 : vector<16x256xf32>
    %93 = arith.addf %87, %92 : vector<16x256xf32>
    %94 = vector.extract_strided_slice %27 {offsets = [0, 7], sizes = [16, 1], strides = [1, 1]} : vector<16x24xf32> to vector<16x1xf32>
    %95 = vector.extract_strided_slice %81 {offsets = [2, 0], sizes = [1, 256], strides = [1, 1]} : vector<8x256xf32> to vector<1x256xf32>
    %96 = vector.broadcast %94 : vector<16x1xf32> to vector<16x256xf32>
    %97 = vector.broadcast %95 : vector<1x256xf32> to vector<16x256xf32>
    %98 = arith.mulf %96, %97 : vector<16x256xf32>
    %99 = arith.addf %93, %98 : vector<16x256xf32>
    %100 = vector.extract_strided_slice %27 {offsets = [0, 10], sizes = [16, 1], strides = [1, 1]} : vector<16x24xf32> to vector<16x1xf32>
    %101 = vector.extract_strided_slice %81 {offsets = [3, 0], sizes = [1, 256], strides = [1, 1]} : vector<8x256xf32> to vector<1x256xf32>
    %102 = vector.broadcast %100 : vector<16x1xf32> to vector<16x256xf32>
    %103 = vector.broadcast %101 : vector<1x256xf32> to vector<16x256xf32>
    %104 = arith.mulf %102, %103 : vector<16x256xf32>
    %105 = arith.addf %99, %104 : vector<16x256xf32>
    %106 = vector.extract_strided_slice %27 {offsets = [0, 13], sizes = [16, 1], strides = [1, 1]} : vector<16x24xf32> to vector<16x1xf32>
    %107 = vector.extract_strided_slice %81 {offsets = [4, 0], sizes = [1, 256], strides = [1, 1]} : vector<8x256xf32> to vector<1x256xf32>
    %108 = vector.broadcast %106 : vector<16x1xf32> to vector<16x256xf32>
    %109 = vector.broadcast %107 : vector<1x256xf32> to vector<16x256xf32>
    %110 = arith.mulf %108, %109 : vector<16x256xf32>
    %111 = arith.addf %105, %110 : vector<16x256xf32>
    %112 = vector.extract_strided_slice %27 {offsets = [0, 16], sizes = [16, 1], strides = [1, 1]} : vector<16x24xf32> to vector<16x1xf32>
    %113 = vector.extract_strided_slice %81 {offsets = [5, 0], sizes = [1, 256], strides = [1, 1]} : vector<8x256xf32> to vector<1x256xf32>
    %114 = vector.broadcast %112 : vector<16x1xf32> to vector<16x256xf32>
    %115 = vector.broadcast %113 : vector<1x256xf32> to vector<16x256xf32>
    %116 = arith.mulf %114, %115 : vector<16x256xf32>
    %117 = arith.addf %111, %116 : vector<16x256xf32>
    %118 = vector.extract_strided_slice %27 {offsets = [0, 19], sizes = [16, 1], strides = [1, 1]} : vector<16x24xf32> to vector<16x1xf32>
    %119 = vector.extract_strided_slice %81 {offsets = [6, 0], sizes = [1, 256], strides = [1, 1]} : vector<8x256xf32> to vector<1x256xf32>
    %120 = vector.broadcast %118 : vector<16x1xf32> to vector<16x256xf32>
    %121 = vector.broadcast %119 : vector<1x256xf32> to vector<16x256xf32>
    %122 = arith.mulf %120, %121 : vector<16x256xf32>
    %123 = arith.addf %117, %122 : vector<16x256xf32>
    %124 = vector.extract_strided_slice %27 {offsets = [0, 22], sizes = [16, 1], strides = [1, 1]} : vector<16x24xf32> to vector<16x1xf32>
    %125 = vector.extract_strided_slice %81 {offsets = [7, 0], sizes = [1, 256], strides = [1, 1]} : vector<8x256xf32> to vector<1x256xf32>
    %126 = vector.broadcast %124 : vector<16x1xf32> to vector<16x256xf32>
    %127 = vector.broadcast %125 : vector<1x256xf32> to vector<16x256xf32>
    %128 = arith.mulf %126, %127 : vector<16x256xf32>
    %129 = arith.addf %123, %128 : vector<16x256xf32>
    %c0_16 = arith.constant 0 : index
    %c129 = arith.constant 129 : index
    %130 = vector.load %arg19[%c0_16, %c129] : memref<8x512xf32, #tpu.memory_space<vmem>>, vector<8x256xf32>
    %131 = vector.extract_strided_slice %27 {offsets = [0, 2], sizes = [16, 1], strides = [1, 1]} : vector<16x24xf32> to vector<16x1xf32>
    %132 = vector.extract_strided_slice %130 {offsets = [0, 0], sizes = [1, 256], strides = [1, 1]} : vector<8x256xf32> to vector<1x256xf32>
    %133 = vector.broadcast %131 : vector<16x1xf32> to vector<16x256xf32>
    %134 = vector.broadcast %132 : vector<1x256xf32> to vector<16x256xf32>
    %135 = arith.mulf %133, %134 : vector<16x256xf32>
    %136 = arith.addf %129, %135 : vector<16x256xf32>
    %137 = vector.extract_strided_slice %27 {offsets = [0, 5], sizes = [16, 1], strides = [1, 1]} : vector<16x24xf32> to vector<16x1xf32>
    %138 = vector.extract_strided_slice %130 {offsets = [1, 0], sizes = [1, 256], strides = [1, 1]} : vector<8x256xf32> to vector<1x256xf32>
    %139 = vector.broadcast %137 : vector<16x1xf32> to vector<16x256xf32>
    %140 = vector.broadcast %138 : vector<1x256xf32> to vector<16x256xf32>
    %141 = arith.mulf %139, %140 : vector<16x256xf32>
    %142 = arith.addf %136, %141 : vector<16x256xf32>
    %143 = vector.extract_strided_slice %27 {offsets = [0, 8], sizes = [16, 1], strides = [1, 1]} : vector<16x24xf32> to vector<16x1xf32>
    %144 = vector.extract_strided_slice %130 {offsets = [2, 0], sizes = [1, 256], strides = [1, 1]} : vector<8x256xf32> to vector<1x256xf32>
    %145 = vector.broadcast %143 : vector<16x1xf32> to vector<16x256xf32>
    %146 = vector.broadcast %144 : vector<1x256xf32> to vector<16x256xf32>
    %147 = arith.mulf %145, %146 : vector<16x256xf32>
    %148 = arith.addf %142, %147 : vector<16x256xf32>
    %149 = vector.extract_strided_slice %27 {offsets = [0, 11], sizes = [16, 1], strides = [1, 1]} : vector<16x24xf32> to vector<16x1xf32>
    %150 = vector.extract_strided_slice %130 {offsets = [3, 0], sizes = [1, 256], strides = [1, 1]} : vector<8x256xf32> to vector<1x256xf32>
    %151 = vector.broadcast %149 : vector<16x1xf32> to vector<16x256xf32>
    %152 = vector.broadcast %150 : vector<1x256xf32> to vector<16x256xf32>
    %153 = arith.mulf %151, %152 : vector<16x256xf32>
    %154 = arith.addf %148, %153 : vector<16x256xf32>
    %155 = vector.extract_strided_slice %27 {offsets = [0, 14], sizes = [16, 1], strides = [1, 1]} : vector<16x24xf32> to vector<16x1xf32>
    %156 = vector.extract_strided_slice %130 {offsets = [4, 0], sizes = [1, 256], strides = [1, 1]} : vector<8x256xf32> to vector<1x256xf32>
    %157 = vector.broadcast %155 : vector<16x1xf32> to vector<16x256xf32>
    %158 = vector.broadcast %156 : vector<1x256xf32> to vector<16x256xf32>
    %159 = arith.mulf %157, %158 : vector<16x256xf32>
    %160 = arith.addf %154, %159 : vector<16x256xf32>
    %161 = vector.extract_strided_slice %27 {offsets = [0, 17], sizes = [16, 1], strides = [1, 1]} : vector<16x24xf32> to vector<16x1xf32>
    %162 = vector.extract_strided_slice %130 {offsets = [5, 0], sizes = [1, 256], strides = [1, 1]} : vector<8x256xf32> to vector<1x256xf32>
    %163 = vector.broadcast %161 : vector<16x1xf32> to vector<16x256xf32>
    %164 = vector.broadcast %162 : vector<1x256xf32> to vector<16x256xf32>
    %165 = arith.mulf %163, %164 : vector<16x256xf32>
    %166 = arith.addf %160, %165 : vector<16x256xf32>
    %167 = vector.extract_strided_slice %27 {offsets = [0, 20], sizes = [16, 1], strides = [1, 1]} : vector<16x24xf32> to vector<16x1xf32>
    %168 = vector.extract_strided_slice %130 {offsets = [6, 0], sizes = [1, 256], strides = [1, 1]} : vector<8x256xf32> to vector<1x256xf32>
    %169 = vector.broadcast %167 : vector<16x1xf32> to vector<16x256xf32>
    %170 = vector.broadcast %168 : vector<1x256xf32> to vector<16x256xf32>
    %171 = arith.mulf %169, %170 : vector<16x256xf32>
    %172 = arith.addf %166, %171 : vector<16x256xf32>
    %173 = vector.extract_strided_slice %27 {offsets = [0, 23], sizes = [16, 1], strides = [1, 1]} : vector<16x24xf32> to vector<16x1xf32>
    %174 = vector.extract_strided_slice %130 {offsets = [7, 0], sizes = [1, 256], strides = [1, 1]} : vector<8x256xf32> to vector<1x256xf32>
    %175 = vector.broadcast %173 : vector<16x1xf32> to vector<16x256xf32>
    %176 = vector.broadcast %174 : vector<1x256xf32> to vector<16x256xf32>
    %177 = arith.mulf %175, %176 : vector<16x256xf32>
    %178 = arith.addf %172, %177 : vector<16x256xf32>
    %179 = vector.extract_strided_slice %178 {offsets = [0, 0], sizes = [8, 256], strides = [1, 1]} : vector<16x256xf32> to vector<8x256xf32>
    %180 = math.tanh %179 : vector<8x256xf32>
    %181 = vector.extract_strided_slice %178 {offsets = [8, 0], sizes = [8, 256], strides = [1, 1]} : vector<16x256xf32> to vector<8x256xf32>
    %182 = arith.negf %181 : vector<8x256xf32>
    %183 = math.exp %182 : vector<8x256xf32>
    %cst_17 = arith.constant 1.000000e+00 : f32
    %184 = vector.broadcast %cst_17 : f32 to vector<8x256xf32>
    %185 = arith.addf %184, %183 : vector<8x256xf32>
    %186 = arith.divf %184, %185 : vector<8x256xf32>
    %187 = arith.mulf %180, %186 : vector<8x256xf32>
    %c0_18 = arith.constant 0 : index
    %c0_19 = arith.constant 0 : index
    %188 = vector.load %arg6[%c0_18, %c0_19] : memref<16x8xf32, #tpu.memory_space<vmem>>, vector<16x8xf32>
    %c0_20 = arith.constant 0 : index
    %c0_21 = arith.constant 0 : index
    %189 = vector.load %arg7[%c0_20, %c0_21] : memref<16x1xf32, #tpu.memory_space<vmem>>, vector<16x1xf32>
    %190 = vector.shape_cast %189 : vector<16x1xf32> to vector<16x1xf32>
    %191 = vector.broadcast %190 : vector<16x1xf32> to vector<16x256xf32>
    %192 = vector.extract_strided_slice %188 {offsets = [0, 0], sizes = [16, 1], strides = [1, 1]} : vector<16x8xf32> to vector<16x1xf32>
    %193 = vector.extract_strided_slice %187 {offsets = [0, 0], sizes = [1, 256], strides = [1, 1]} : vector<8x256xf32> to vector<1x256xf32>
    %194 = vector.broadcast %192 : vector<16x1xf32> to vector<16x256xf32>
    %195 = vector.broadcast %193 : vector<1x256xf32> to vector<16x256xf32>
    %196 = arith.mulf %194, %195 : vector<16x256xf32>
    %197 = arith.addf %191, %196 : vector<16x256xf32>
    %198 = vector.extract_strided_slice %188 {offsets = [0, 1], sizes = [16, 1], strides = [1, 1]} : vector<16x8xf32> to vector<16x1xf32>
    %199 = vector.extract_strided_slice %187 {offsets = [1, 0], sizes = [1, 256], strides = [1, 1]} : vector<8x256xf32> to vector<1x256xf32>
    %200 = vector.broadcast %198 : vector<16x1xf32> to vector<16x256xf32>
    %201 = vector.broadcast %199 : vector<1x256xf32> to vector<16x256xf32>
    %202 = arith.mulf %200, %201 : vector<16x256xf32>
    %203 = arith.addf %197, %202 : vector<16x256xf32>
    %204 = vector.extract_strided_slice %188 {offsets = [0, 2], sizes = [16, 1], strides = [1, 1]} : vector<16x8xf32> to vector<16x1xf32>
    %205 = vector.extract_strided_slice %187 {offsets = [2, 0], sizes = [1, 256], strides = [1, 1]} : vector<8x256xf32> to vector<1x256xf32>
    %206 = vector.broadcast %204 : vector<16x1xf32> to vector<16x256xf32>
    %207 = vector.broadcast %205 : vector<1x256xf32> to vector<16x256xf32>
    %208 = arith.mulf %206, %207 : vector<16x256xf32>
    %209 = arith.addf %203, %208 : vector<16x256xf32>
    %210 = vector.extract_strided_slice %188 {offsets = [0, 3], sizes = [16, 1], strides = [1, 1]} : vector<16x8xf32> to vector<16x1xf32>
    %211 = vector.extract_strided_slice %187 {offsets = [3, 0], sizes = [1, 256], strides = [1, 1]} : vector<8x256xf32> to vector<1x256xf32>
    %212 = vector.broadcast %210 : vector<16x1xf32> to vector<16x256xf32>
    %213 = vector.broadcast %211 : vector<1x256xf32> to vector<16x256xf32>
    %214 = arith.mulf %212, %213 : vector<16x256xf32>
    %215 = arith.addf %209, %214 : vector<16x256xf32>
    %216 = vector.extract_strided_slice %188 {offsets = [0, 4], sizes = [16, 1], strides = [1, 1]} : vector<16x8xf32> to vector<16x1xf32>
    %217 = vector.extract_strided_slice %187 {offsets = [4, 0], sizes = [1, 256], strides = [1, 1]} : vector<8x256xf32> to vector<1x256xf32>
    %218 = vector.broadcast %216 : vector<16x1xf32> to vector<16x256xf32>
    %219 = vector.broadcast %217 : vector<1x256xf32> to vector<16x256xf32>
    %220 = arith.mulf %218, %219 : vector<16x256xf32>
    %221 = arith.addf %215, %220 : vector<16x256xf32>
    %222 = vector.extract_strided_slice %188 {offsets = [0, 5], sizes = [16, 1], strides = [1, 1]} : vector<16x8xf32> to vector<16x1xf32>
    %223 = vector.extract_strided_slice %187 {offsets = [5, 0], sizes = [1, 256], strides = [1, 1]} : vector<8x256xf32> to vector<1x256xf32>
    %224 = vector.broadcast %222 : vector<16x1xf32> to vector<16x256xf32>
    %225 = vector.broadcast %223 : vector<1x256xf32> to vector<16x256xf32>
    %226 = arith.mulf %224, %225 : vector<16x256xf32>
    %227 = arith.addf %221, %226 : vector<16x256xf32>
    %228 = vector.extract_strided_slice %188 {offsets = [0, 6], sizes = [16, 1], strides = [1, 1]} : vector<16x8xf32> to vector<16x1xf32>
    %229 = vector.extract_strided_slice %187 {offsets = [6, 0], sizes = [1, 256], strides = [1, 1]} : vector<8x256xf32> to vector<1x256xf32>
    %230 = vector.broadcast %228 : vector<16x1xf32> to vector<16x256xf32>
    %231 = vector.broadcast %229 : vector<1x256xf32> to vector<16x256xf32>
    %232 = arith.mulf %230, %231 : vector<16x256xf32>
    %233 = arith.addf %227, %232 : vector<16x256xf32>
    %234 = vector.extract_strided_slice %188 {offsets = [0, 7], sizes = [16, 1], strides = [1, 1]} : vector<16x8xf32> to vector<16x1xf32>
    %235 = vector.extract_strided_slice %187 {offsets = [7, 0], sizes = [1, 256], strides = [1, 1]} : vector<8x256xf32> to vector<1x256xf32>
    %236 = vector.broadcast %234 : vector<16x1xf32> to vector<16x256xf32>
    %237 = vector.broadcast %235 : vector<1x256xf32> to vector<16x256xf32>
    %238 = arith.mulf %236, %237 : vector<16x256xf32>
    %239 = arith.addf %233, %238 : vector<16x256xf32>
    %240 = vector.extract_strided_slice %239 {offsets = [0, 0], sizes = [8, 256], strides = [1, 1]} : vector<16x256xf32> to vector<8x256xf32>
    %241 = arith.addf %26, %240 : vector<8x256xf32>
    %242 = vector.broadcast %6 : vector<1x256xf32> to vector<8x256xf32>
    %243 = arith.mulf %241, %242 : vector<8x256xf32>
    %244 = vector.extract_strided_slice %239 {offsets = [8, 0], sizes = [8, 256], strides = [1, 1]} : vector<16x256xf32> to vector<8x256xf32>
    %c0_22 = arith.constant 0 : index
    %c0_23 = arith.constant 0 : index
    %245 = vector.load %arg8[%c0_22, %c0_23] : memref<16x24xf32, #tpu.memory_space<vmem>>, vector<16x24xf32>
    %c0_24 = arith.constant 0 : index
    %c0_25 = arith.constant 0 : index
    %246 = vector.load %arg9[%c0_24, %c0_25] : memref<16x1xf32, #tpu.memory_space<vmem>>, vector<16x1xf32>
    %247 = vector.shape_cast %246 : vector<16x1xf32> to vector<16x1xf32>
    %248 = vector.broadcast %247 : vector<16x1xf32> to vector<16x256xf32>
    %c0_26 = arith.constant 0 : index
    %c128_27 = arith.constant 128 : index
    %249 = vector.load %arg19[%c0_26, %c128_27] : memref<8x512xf32, #tpu.memory_space<vmem>>, vector<8x256xf32>
    tpu.vector_store %arg19[%c0_26, %c128_27], %243 {strides = array<i32>} : memref<8x512xf32, #tpu.memory_space<vmem>>, vector<8x256xf32>,
    %c0_28 = arith.constant 0 : index
    %c126 = arith.constant 126 : index
    %250 = vector.load %arg19[%c0_28, %c126] : memref<8x512xf32, #tpu.memory_space<vmem>>, vector<8x256xf32>
    %251 = vector.extract_strided_slice %245 {offsets = [0, 0], sizes = [16, 1], strides = [1, 1]} : vector<16x24xf32> to vector<16x1xf32>
    %252 = vector.extract_strided_slice %250 {offsets = [0, 0], sizes = [1, 256], strides = [1, 1]} : vector<8x256xf32> to vector<1x256xf32>
    %253 = vector.broadcast %251 : vector<16x1xf32> to vector<16x256xf32>
    %254 = vector.broadcast %252 : vector<1x256xf32> to vector<16x256xf32>
    %255 = arith.mulf %253, %254 : vector<16x256xf32>
    %256 = arith.addf %248, %255 : vector<16x256xf32>
    %257 = vector.extract_strided_slice %245 {offsets = [0, 3], sizes = [16, 1], strides = [1, 1]} : vector<16x24xf32> to vector<16x1xf32>
    %258 = vector.extract_strided_slice %250 {offsets = [1, 0], sizes = [1, 256], strides = [1, 1]} : vector<8x256xf32> to vector<1x256xf32>
    %259 = vector.broadcast %257 : vector<16x1xf32> to vector<16x256xf32>
    %260 = vector.broadcast %258 : vector<1x256xf32> to vector<16x256xf32>
    %261 = arith.mulf %259, %260 : vector<16x256xf32>
    %262 = arith.addf %256, %261 : vector<16x256xf32>
    %263 = vector.extract_strided_slice %245 {offsets = [0, 6], sizes = [16, 1], strides = [1, 1]} : vector<16x24xf32> to vector<16x1xf32>
    %264 = vector.extract_strided_slice %250 {offsets = [2, 0], sizes = [1, 256], strides = [1, 1]} : vector<8x256xf32> to vector<1x256xf32>
    %265 = vector.broadcast %263 : vector<16x1xf32> to vector<16x256xf32>
    %266 = vector.broadcast %264 : vector<1x256xf32> to vector<16x256xf32>
    %267 = arith.mulf %265, %266 : vector<16x256xf32>
    %268 = arith.addf %262, %267 : vector<16x256xf32>
    %269 = vector.extract_strided_slice %245 {offsets = [0, 9], sizes = [16, 1], strides = [1, 1]} : vector<16x24xf32> to vector<16x1xf32>
    %270 = vector.extract_strided_slice %250 {offsets = [3, 0], sizes = [1, 256], strides = [1, 1]} : vector<8x256xf32> to vector<1x256xf32>
    %271 = vector.broadcast %269 : vector<16x1xf32> to vector<16x256xf32>
    %272 = vector.broadcast %270 : vector<1x256xf32> to vector<16x256xf32>
    %273 = arith.mulf %271, %272 : vector<16x256xf32>
    %274 = arith.addf %268, %273 : vector<16x256xf32>
    %275 = vector.extract_strided_slice %245 {offsets = [0, 12], sizes = [16, 1], strides = [1, 1]} : vector<16x24xf32> to vector<16x1xf32>
    %276 = vector.extract_strided_slice %250 {offsets = [4, 0], sizes = [1, 256], strides = [1, 1]} : vector<8x256xf32> to vector<1x256xf32>
    %277 = vector.broadcast %275 : vector<16x1xf32> to vector<16x256xf32>
    %278 = vector.broadcast %276 : vector<1x256xf32> to vector<16x256xf32>
    %279 = arith.mulf %277, %278 : vector<16x256xf32>
    %280 = arith.addf %274, %279 : vector<16x256xf32>
    %281 = vector.extract_strided_slice %245 {offsets = [0, 15], sizes = [16, 1], strides = [1, 1]} : vector<16x24xf32> to vector<16x1xf32>
    %282 = vector.extract_strided_slice %250 {offsets = [5, 0], sizes = [1, 256], strides = [1, 1]} : vector<8x256xf32> to vector<1x256xf32>
    %283 = vector.broadcast %281 : vector<16x1xf32> to vector<16x256xf32>
    %284 = vector.broadcast %282 : vector<1x256xf32> to vector<16x256xf32>
    %285 = arith.mulf %283, %284 : vector<16x256xf32>
    %286 = arith.addf %280, %285 : vector<16x256xf32>
    %287 = vector.extract_strided_slice %245 {offsets = [0, 18], sizes = [16, 1], strides = [1, 1]} : vector<16x24xf32> to vector<16x1xf32>
    %288 = vector.extract_strided_slice %250 {offsets = [6, 0], sizes = [1, 256], strides = [1, 1]} : vector<8x256xf32> to vector<1x256xf32>
    %289 = vector.broadcast %287 : vector<16x1xf32> to vector<16x256xf32>
    %290 = vector.broadcast %288 : vector<1x256xf32> to vector<16x256xf32>
    %291 = arith.mulf %289, %290 : vector<16x256xf32>
    %292 = arith.addf %286, %291 : vector<16x256xf32>
    %293 = vector.extract_strided_slice %245 {offsets = [0, 21], sizes = [16, 1], strides = [1, 1]} : vector<16x24xf32> to vector<16x1xf32>
    %294 = vector.extract_strided_slice %250 {offsets = [7, 0], sizes = [1, 256], strides = [1, 1]} : vector<8x256xf32> to vector<1x256xf32>
    %295 = vector.broadcast %293 : vector<16x1xf32> to vector<16x256xf32>
    %296 = vector.broadcast %294 : vector<1x256xf32> to vector<16x256xf32>
    %297 = arith.mulf %295, %296 : vector<16x256xf32>
    %298 = arith.addf %292, %297 : vector<16x256xf32>
    %c0_29 = arith.constant 0 : index
    %c128_30 = arith.constant 128 : index
    %299 = vector.load %arg19[%c0_29, %c128_30] : memref<8x512xf32, #tpu.memory_space<vmem>>, vector<8x256xf32>
    %300 = vector.extract_strided_slice %245 {offsets = [0, 1], sizes = [16, 1], strides = [1, 1]} : vector<16x24xf32> to vector<16x1xf32>
    %301 = vector.extract_strided_slice %299 {offsets = [0, 0], sizes = [1, 256], strides = [1, 1]} : vector<8x256xf32> to vector<1x256xf32>
    %302 = vector.broadcast %300 : vector<16x1xf32> to vector<16x256xf32>
    %303 = vector.broadcast %301 : vector<1x256xf32> to vector<16x256xf32>
    %304 = arith.mulf %302, %303 : vector<16x256xf32>
    %305 = arith.addf %298, %304 : vector<16x256xf32>
    %306 = vector.extract_strided_slice %245 {offsets = [0, 4], sizes = [16, 1], strides = [1, 1]} : vector<16x24xf32> to vector<16x1xf32>
    %307 = vector.extract_strided_slice %299 {offsets = [1, 0], sizes = [1, 256], strides = [1, 1]} : vector<8x256xf32> to vector<1x256xf32>
    %308 = vector.broadcast %306 : vector<16x1xf32> to vector<16x256xf32>
    %309 = vector.broadcast %307 : vector<1x256xf32> to vector<16x256xf32>
    %310 = arith.mulf %308, %309 : vector<16x256xf32>
    %311 = arith.addf %305, %310 : vector<16x256xf32>
    %312 = vector.extract_strided_slice %245 {offsets = [0, 7], sizes = [16, 1], strides = [1, 1]} : vector<16x24xf32> to vector<16x1xf32>
    %313 = vector.extract_strided_slice %299 {offsets = [2, 0], sizes = [1, 256], strides = [1, 1]} : vector<8x256xf32> to vector<1x256xf32>
    %314 = vector.broadcast %312 : vector<16x1xf32> to vector<16x256xf32>
    %315 = vector.broadcast %313 : vector<1x256xf32> to vector<16x256xf32>
    %316 = arith.mulf %314, %315 : vector<16x256xf32>
    %317 = arith.addf %311, %316 : vector<16x256xf32>
    %318 = vector.extract_strided_slice %245 {offsets = [0, 10], sizes = [16, 1], strides = [1, 1]} : vector<16x24xf32> to vector<16x1xf32>
    %319 = vector.extract_strided_slice %299 {offsets = [3, 0], sizes = [1, 256], strides = [1, 1]} : vector<8x256xf32> to vector<1x256xf32>
    %320 = vector.broadcast %318 : vector<16x1xf32> to vector<16x256xf32>
    %321 = vector.broadcast %319 : vector<1x256xf32> to vector<16x256xf32>
    %322 = arith.mulf %320, %321 : vector<16x256xf32>
    %323 = arith.addf %317, %322 : vector<16x256xf32>
    %324 = vector.extract_strided_slice %245 {offsets = [0, 13], sizes = [16, 1], strides = [1, 1]} : vector<16x24xf32> to vector<16x1xf32>
    %325 = vector.extract_strided_slice %299 {offsets = [4, 0], sizes = [1, 256], strides = [1, 1]} : vector<8x256xf32> to vector<1x256xf32>
    %326 = vector.broadcast %324 : vector<16x1xf32> to vector<16x256xf32>
    %327 = vector.broadcast %325 : vector<1x256xf32> to vector<16x256xf32>
    %328 = arith.mulf %326, %327 : vector<16x256xf32>
    %329 = arith.addf %323, %328 : vector<16x256xf32>
    %330 = vector.extract_strided_slice %245 {offsets = [0, 16], sizes = [16, 1], strides = [1, 1]} : vector<16x24xf32> to vector<16x1xf32>
    %331 = vector.extract_strided_slice %299 {offsets = [5, 0], sizes = [1, 256], strides = [1, 1]} : vector<8x256xf32> to vector<1x256xf32>
    %332 = vector.broadcast %330 : vector<16x1xf32> to vector<16x256xf32>
    %333 = vector.broadcast %331 : vector<1x256xf32> to vector<16x256xf32>
    %334 = arith.mulf %332, %333 : vector<16x256xf32>
    %335 = arith.addf %329, %334 : vector<16x256xf32>
    %336 = vector.extract_strided_slice %245 {offsets = [0, 19], sizes = [16, 1], strides = [1, 1]} : vector<16x24xf32> to vector<16x1xf32>
    %337 = vector.extract_strided_slice %299 {offsets = [6, 0], sizes = [1, 256], strides = [1, 1]} : vector<8x256xf32> to vector<1x256xf32>
    %338 = vector.broadcast %336 : vector<16x1xf32> to vector<16x256xf32>
    %339 = vector.broadcast %337 : vector<1x256xf32> to vector<16x256xf32>
    %340 = arith.mulf %338, %339 : vector<16x256xf32>
    %341 = arith.addf %335, %340 : vector<16x256xf32>
    %342 = vector.extract_strided_slice %245 {offsets = [0, 22], sizes = [16, 1], strides = [1, 1]} : vector<16x24xf32> to vector<16x1xf32>
    %343 = vector.extract_strided_slice %299 {offsets = [7, 0], sizes = [1, 256], strides = [1, 1]} : vector<8x256xf32> to vector<1x256xf32>
    %344 = vector.broadcast %342 : vector<16x1xf32> to vector<16x256xf32>
    %345 = vector.broadcast %343 : vector<1x256xf32> to vector<16x256xf32>
    %346 = arith.mulf %344, %345 : vector<16x256xf32>
    %347 = arith.addf %341, %346 : vector<16x256xf32>
    %c0_31 = arith.constant 0 : index
    %c130 = arith.constant 130 : index
    %348 = vector.load %arg19[%c0_31, %c130] : memref<8x512xf32, #tpu.memory_space<vmem>>, vector<8x256xf32>
    %349 = vector.extract_strided_slice %245 {offsets = [0, 2], sizes = [16, 1], strides = [1, 1]} : vector<16x24xf32> to vector<16x1xf32>
    %350 = vector.extract_strided_slice %348 {offsets = [0, 0], sizes = [1, 256], strides = [1, 1]} : vector<8x256xf32> to vector<1x256xf32>
    %351 = vector.broadcast %349 : vector<16x1xf32> to vector<16x256xf32>
    %352 = vector.broadcast %350 : vector<1x256xf32> to vector<16x256xf32>
    %353 = arith.mulf %351, %352 : vector<16x256xf32>
    %354 = arith.addf %347, %353 : vector<16x256xf32>
    %355 = vector.extract_strided_slice %245 {offsets = [0, 5], sizes = [16, 1], strides = [1, 1]} : vector<16x24xf32> to vector<16x1xf32>
    %356 = vector.extract_strided_slice %348 {offsets = [1, 0], sizes = [1, 256], strides = [1, 1]} : vector<8x256xf32> to vector<1x256xf32>
    %357 = vector.broadcast %355 : vector<16x1xf32> to vector<16x256xf32>
    %358 = vector.broadcast %356 : vector<1x256xf32> to vector<16x256xf32>
    %359 = arith.mulf %357, %358 : vector<16x256xf32>
    %360 = arith.addf %354, %359 : vector<16x256xf32>
    %361 = vector.extract_strided_slice %245 {offsets = [0, 8], sizes = [16, 1], strides = [1, 1]} : vector<16x24xf32> to vector<16x1xf32>
    %362 = vector.extract_strided_slice %348 {offsets = [2, 0], sizes = [1, 256], strides = [1, 1]} : vector<8x256xf32> to vector<1x256xf32>
    %363 = vector.broadcast %361 : vector<16x1xf32> to vector<16x256xf32>
    %364 = vector.broadcast %362 : vector<1x256xf32> to vector<16x256xf32>
    %365 = arith.mulf %363, %364 : vector<16x256xf32>
    %366 = arith.addf %360, %365 : vector<16x256xf32>
    %367 = vector.extract_strided_slice %245 {offsets = [0, 11], sizes = [16, 1], strides = [1, 1]} : vector<16x24xf32> to vector<16x1xf32>
    %368 = vector.extract_strided_slice %348 {offsets = [3, 0], sizes = [1, 256], strides = [1, 1]} : vector<8x256xf32> to vector<1x256xf32>
    %369 = vector.broadcast %367 : vector<16x1xf32> to vector<16x256xf32>
    %370 = vector.broadcast %368 : vector<1x256xf32> to vector<16x256xf32>
    %371 = arith.mulf %369, %370 : vector<16x256xf32>
    %372 = arith.addf %366, %371 : vector<16x256xf32>
    %373 = vector.extract_strided_slice %245 {offsets = [0, 14], sizes = [16, 1], strides = [1, 1]} : vector<16x24xf32> to vector<16x1xf32>
    %374 = vector.extract_strided_slice %348 {offsets = [4, 0], sizes = [1, 256], strides = [1, 1]} : vector<8x256xf32> to vector<1x256xf32>
    %375 = vector.broadcast %373 : vector<16x1xf32> to vector<16x256xf32>
    %376 = vector.broadcast %374 : vector<1x256xf32> to vector<16x256xf32>
    %377 = arith.mulf %375, %376 : vector<16x256xf32>
    %378 = arith.addf %372, %377 : vector<16x256xf32>
    %379 = vector.extract_strided_slice %245 {offsets = [0, 17], sizes = [16, 1], strides = [1, 1]} : vector<16x24xf32> to vector<16x1xf32>
    %380 = vector.extract_strided_slice %348 {offsets = [5, 0], sizes = [1, 256], strides = [1, 1]} : vector<8x256xf32> to vector<1x256xf32>
    %381 = vector.broadcast %379 : vector<16x1xf32> to vector<16x256xf32>
    %382 = vector.broadcast %380 : vector<1x256xf32> to vector<16x256xf32>
    %383 = arith.mulf %381, %382 : vector<16x256xf32>
    %384 = arith.addf %378, %383 : vector<16x256xf32>
    %385 = vector.extract_strided_slice %245 {offsets = [0, 20], sizes = [16, 1], strides = [1, 1]} : vector<16x24xf32> to vector<16x1xf32>
    %386 = vector.extract_strided_slice %348 {offsets = [6, 0], sizes = [1, 256], strides = [1, 1]} : vector<8x256xf32> to vector<1x256xf32>
    %387 = vector.broadcast %385 : vector<16x1xf32> to vector<16x256xf32>
    %388 = vector.broadcast %386 : vector<1x256xf32> to vector<16x256xf32>
    %389 = arith.mulf %387, %388 : vector<16x256xf32>
    %390 = arith.addf %384, %389 : vector<16x256xf32>
    %391 = vector.extract_strided_slice %245 {offsets = [0, 23], sizes = [16, 1], strides = [1, 1]} : vector<16x24xf32> to vector<16x1xf32>
    %392 = vector.extract_strided_slice %348 {offsets = [7, 0], sizes = [1, 256], strides = [1, 1]} : vector<8x256xf32> to vector<1x256xf32>
    %393 = vector.broadcast %391 : vector<16x1xf32> to vector<16x256xf32>
    %394 = vector.broadcast %392 : vector<1x256xf32> to vector<16x256xf32>
    %395 = arith.mulf %393, %394 : vector<16x256xf32>
    %396 = arith.addf %390, %395 : vector<16x256xf32>
    %397 = vector.extract_strided_slice %396 {offsets = [0, 0], sizes = [8, 256], strides = [1, 1]} : vector<16x256xf32> to vector<8x256xf32>
    %398 = math.tanh %397 : vector<8x256xf32>
    %399 = vector.extract_strided_slice %396 {offsets = [8, 0], sizes = [8, 256], strides = [1, 1]} : vector<16x256xf32> to vector<8x256xf32>
    %400 = arith.negf %399 : vector<8x256xf32>
    %401 = math.exp %400 : vector<8x256xf32>
    %cst_32 = arith.constant 1.000000e+00 : f32
    %402 = vector.broadcast %cst_32 : f32 to vector<8x256xf32>
    %403 = arith.addf %402, %401 : vector<8x256xf32>
    %404 = arith.divf %402, %403 : vector<8x256xf32>
    %405 = arith.mulf %398, %404 : vector<8x256xf32>
    %c0_33 = arith.constant 0 : index
    %c0_34 = arith.constant 0 : index
    %406 = vector.load %arg10[%c0_33, %c0_34] : memref<16x8xf32, #tpu.memory_space<vmem>>, vector<16x8xf32>
    %c0_35 = arith.constant 0 : index
    %c0_36 = arith.constant 0 : index
    %407 = vector.load %arg11[%c0_35, %c0_36] : memref<16x1xf32, #tpu.memory_space<vmem>>, vector<16x1xf32>
    %408 = vector.shape_cast %407 : vector<16x1xf32> to vector<16x1xf32>
    %409 = vector.broadcast %408 : vector<16x1xf32> to vector<16x256xf32>
    %410 = vector.extract_strided_slice %406 {offsets = [0, 0], sizes = [16, 1], strides = [1, 1]} : vector<16x8xf32> to vector<16x1xf32>
    %411 = vector.extract_strided_slice %405 {offsets = [0, 0], sizes = [1, 256], strides = [1, 1]} : vector<8x256xf32> to vector<1x256xf32>
    %412 = vector.broadcast %410 : vector<16x1xf32> to vector<16x256xf32>
    %413 = vector.broadcast %411 : vector<1x256xf32> to vector<16x256xf32>
    %414 = arith.mulf %412, %413 : vector<16x256xf32>
    %415 = arith.addf %409, %414 : vector<16x256xf32>
    %416 = vector.extract_strided_slice %406 {offsets = [0, 1], sizes = [16, 1], strides = [1, 1]} : vector<16x8xf32> to vector<16x1xf32>
    %417 = vector.extract_strided_slice %405 {offsets = [1, 0], sizes = [1, 256], strides = [1, 1]} : vector<8x256xf32> to vector<1x256xf32>
    %418 = vector.broadcast %416 : vector<16x1xf32> to vector<16x256xf32>
    %419 = vector.broadcast %417 : vector<1x256xf32> to vector<16x256xf32>
    %420 = arith.mulf %418, %419 : vector<16x256xf32>
    %421 = arith.addf %415, %420 : vector<16x256xf32>
    %422 = vector.extract_strided_slice %406 {offsets = [0, 2], sizes = [16, 1], strides = [1, 1]} : vector<16x8xf32> to vector<16x1xf32>
    %423 = vector.extract_strided_slice %405 {offsets = [2, 0], sizes = [1, 256], strides = [1, 1]} : vector<8x256xf32> to vector<1x256xf32>
    %424 = vector.broadcast %422 : vector<16x1xf32> to vector<16x256xf32>
    %425 = vector.broadcast %423 : vector<1x256xf32> to vector<16x256xf32>
    %426 = arith.mulf %424, %425 : vector<16x256xf32>
    %427 = arith.addf %421, %426 : vector<16x256xf32>
    %428 = vector.extract_strided_slice %406 {offsets = [0, 3], sizes = [16, 1], strides = [1, 1]} : vector<16x8xf32> to vector<16x1xf32>
    %429 = vector.extract_strided_slice %405 {offsets = [3, 0], sizes = [1, 256], strides = [1, 1]} : vector<8x256xf32> to vector<1x256xf32>
    %430 = vector.broadcast %428 : vector<16x1xf32> to vector<16x256xf32>
    %431 = vector.broadcast %429 : vector<1x256xf32> to vector<16x256xf32>
    %432 = arith.mulf %430, %431 : vector<16x256xf32>
    %433 = arith.addf %427, %432 : vector<16x256xf32>
    %434 = vector.extract_strided_slice %406 {offsets = [0, 4], sizes = [16, 1], strides = [1, 1]} : vector<16x8xf32> to vector<16x1xf32>
    %435 = vector.extract_strided_slice %405 {offsets = [4, 0], sizes = [1, 256], strides = [1, 1]} : vector<8x256xf32> to vector<1x256xf32>
    %436 = vector.broadcast %434 : vector<16x1xf32> to vector<16x256xf32>
    %437 = vector.broadcast %435 : vector<1x256xf32> to vector<16x256xf32>
    %438 = arith.mulf %436, %437 : vector<16x256xf32>
    %439 = arith.addf %433, %438 : vector<16x256xf32>
    %440 = vector.extract_strided_slice %406 {offsets = [0, 5], sizes = [16, 1], strides = [1, 1]} : vector<16x8xf32> to vector<16x1xf32>
    %441 = vector.extract_strided_slice %405 {offsets = [5, 0], sizes = [1, 256], strides = [1, 1]} : vector<8x256xf32> to vector<1x256xf32>
    %442 = vector.broadcast %440 : vector<16x1xf32> to vector<16x256xf32>
    %443 = vector.broadcast %441 : vector<1x256xf32> to vector<16x256xf32>
    %444 = arith.mulf %442, %443 : vector<16x256xf32>
    %445 = arith.addf %439, %444 : vector<16x256xf32>
    %446 = vector.extract_strided_slice %406 {offsets = [0, 6], sizes = [16, 1], strides = [1, 1]} : vector<16x8xf32> to vector<16x1xf32>
    %447 = vector.extract_strided_slice %405 {offsets = [6, 0], sizes = [1, 256], strides = [1, 1]} : vector<8x256xf32> to vector<1x256xf32>
    %448 = vector.broadcast %446 : vector<16x1xf32> to vector<16x256xf32>
    %449 = vector.broadcast %447 : vector<1x256xf32> to vector<16x256xf32>
    %450 = arith.mulf %448, %449 : vector<16x256xf32>
    %451 = arith.addf %445, %450 : vector<16x256xf32>
    %452 = vector.extract_strided_slice %406 {offsets = [0, 7], sizes = [16, 1], strides = [1, 1]} : vector<16x8xf32> to vector<16x1xf32>
    %453 = vector.extract_strided_slice %405 {offsets = [7, 0], sizes = [1, 256], strides = [1, 1]} : vector<8x256xf32> to vector<1x256xf32>
    %454 = vector.broadcast %452 : vector<16x1xf32> to vector<16x256xf32>
    %455 = vector.broadcast %453 : vector<1x256xf32> to vector<16x256xf32>
    %456 = arith.mulf %454, %455 : vector<16x256xf32>
    %457 = arith.addf %451, %456 : vector<16x256xf32>
    %458 = vector.extract_strided_slice %457 {offsets = [0, 0], sizes = [8, 256], strides = [1, 1]} : vector<16x256xf32> to vector<8x256xf32>
    %459 = arith.addf %243, %458 : vector<8x256xf32>
    %460 = vector.broadcast %6 : vector<1x256xf32> to vector<8x256xf32>
    %461 = arith.mulf %459, %460 : vector<8x256xf32>
    %462 = vector.extract_strided_slice %457 {offsets = [8, 0], sizes = [8, 256], strides = [1, 1]} : vector<16x256xf32> to vector<8x256xf32>
    %463 = arith.addf %244, %462 : vector<8x256xf32>
    %c0_37 = arith.constant 0 : index
    %c0_38 = arith.constant 0 : index
    %464 = vector.load %arg12[%c0_37, %c0_38] : memref<16x24xf32, #tpu.memory_space<vmem>>, vector<16x24xf32>
    %c0_39 = arith.constant 0 : index
    %c0_40 = arith.constant 0 : index
    %465 = vector.load %arg13[%c0_39, %c0_40] : memref<16x1xf32, #tpu.memory_space<vmem>>, vector<16x1xf32>
    %466 = vector.shape_cast %465 : vector<16x1xf32> to vector<16x1xf32>
    %467 = vector.broadcast %466 : vector<16x1xf32> to vector<16x256xf32>
    %c0_41 = arith.constant 0 : index
    %c128_42 = arith.constant 128 : index
    %468 = vector.load %arg19[%c0_41, %c128_42] : memref<8x512xf32, #tpu.memory_space<vmem>>, vector<8x256xf32>
    tpu.vector_store %arg19[%c0_41, %c128_42], %461 {strides = array<i32>} : memref<8x512xf32, #tpu.memory_space<vmem>>, vector<8x256xf32>,
    %c0_43 = arith.constant 0 : index
    %c124 = arith.constant 124 : index
    %469 = vector.load %arg19[%c0_43, %c124] : memref<8x512xf32, #tpu.memory_space<vmem>>, vector<8x256xf32>
    %470 = vector.extract_strided_slice %464 {offsets = [0, 0], sizes = [16, 1], strides = [1, 1]} : vector<16x24xf32> to vector<16x1xf32>
    %471 = vector.extract_strided_slice %469 {offsets = [0, 0], sizes = [1, 256], strides = [1, 1]} : vector<8x256xf32> to vector<1x256xf32>
    %472 = vector.broadcast %470 : vector<16x1xf32> to vector<16x256xf32>
    %473 = vector.broadcast %471 : vector<1x256xf32> to vector<16x256xf32>
    %474 = arith.mulf %472, %473 : vector<16x256xf32>
    %475 = arith.addf %467, %474 : vector<16x256xf32>
    %476 = vector.extract_strided_slice %464 {offsets = [0, 3], sizes = [16, 1], strides = [1, 1]} : vector<16x24xf32> to vector<16x1xf32>
    %477 = vector.extract_strided_slice %469 {offsets = [1, 0], sizes = [1, 256], strides = [1, 1]} : vector<8x256xf32> to vector<1x256xf32>
    %478 = vector.broadcast %476 : vector<16x1xf32> to vector<16x256xf32>
    %479 = vector.broadcast %477 : vector<1x256xf32> to vector<16x256xf32>
    %480 = arith.mulf %478, %479 : vector<16x256xf32>
    %481 = arith.addf %475, %480 : vector<16x256xf32>
    %482 = vector.extract_strided_slice %464 {offsets = [0, 6], sizes = [16, 1], strides = [1, 1]} : vector<16x24xf32> to vector<16x1xf32>
    %483 = vector.extract_strided_slice %469 {offsets = [2, 0], sizes = [1, 256], strides = [1, 1]} : vector<8x256xf32> to vector<1x256xf32>
    %484 = vector.broadcast %482 : vector<16x1xf32> to vector<16x256xf32>
    %485 = vector.broadcast %483 : vector<1x256xf32> to vector<16x256xf32>
    %486 = arith.mulf %484, %485 : vector<16x256xf32>
    %487 = arith.addf %481, %486 : vector<16x256xf32>
    %488 = vector.extract_strided_slice %464 {offsets = [0, 9], sizes = [16, 1], strides = [1, 1]} : vector<16x24xf32> to vector<16x1xf32>
    %489 = vector.extract_strided_slice %469 {offsets = [3, 0], sizes = [1, 256], strides = [1, 1]} : vector<8x256xf32> to vector<1x256xf32>
    %490 = vector.broadcast %488 : vector<16x1xf32> to vector<16x256xf32>
    %491 = vector.broadcast %489 : vector<1x256xf32> to vector<16x256xf32>
    %492 = arith.mulf %490, %491 : vector<16x256xf32>
    %493 = arith.addf %487, %492 : vector<16x256xf32>
    %494 = vector.extract_strided_slice %464 {offsets = [0, 12], sizes = [16, 1], strides = [1, 1]} : vector<16x24xf32> to vector<16x1xf32>
    %495 = vector.extract_strided_slice %469 {offsets = [4, 0], sizes = [1, 256], strides = [1, 1]} : vector<8x256xf32> to vector<1x256xf32>
    %496 = vector.broadcast %494 : vector<16x1xf32> to vector<16x256xf32>
    %497 = vector.broadcast %495 : vector<1x256xf32> to vector<16x256xf32>
    %498 = arith.mulf %496, %497 : vector<16x256xf32>
    %499 = arith.addf %493, %498 : vector<16x256xf32>
    %500 = vector.extract_strided_slice %464 {offsets = [0, 15], sizes = [16, 1], strides = [1, 1]} : vector<16x24xf32> to vector<16x1xf32>
    %501 = vector.extract_strided_slice %469 {offsets = [5, 0], sizes = [1, 256], strides = [1, 1]} : vector<8x256xf32> to vector<1x256xf32>
    %502 = vector.broadcast %500 : vector<16x1xf32> to vector<16x256xf32>
    %503 = vector.broadcast %501 : vector<1x256xf32> to vector<16x256xf32>
    %504 = arith.mulf %502, %503 : vector<16x256xf32>
    %505 = arith.addf %499, %504 : vector<16x256xf32>
    %506 = vector.extract_strided_slice %464 {offsets = [0, 18], sizes = [16, 1], strides = [1, 1]} : vector<16x24xf32> to vector<16x1xf32>
    %507 = vector.extract_strided_slice %469 {offsets = [6, 0], sizes = [1, 256], strides = [1, 1]} : vector<8x256xf32> to vector<1x256xf32>
    %508 = vector.broadcast %506 : vector<16x1xf32> to vector<16x256xf32>
    %509 = vector.broadcast %507 : vector<1x256xf32> to vector<16x256xf32>
    %510 = arith.mulf %508, %509 : vector<16x256xf32>
    %511 = arith.addf %505, %510 : vector<16x256xf32>
    %512 = vector.extract_strided_slice %464 {offsets = [0, 21], sizes = [16, 1], strides = [1, 1]} : vector<16x24xf32> to vector<16x1xf32>
    %513 = vector.extract_strided_slice %469 {offsets = [7, 0], sizes = [1, 256], strides = [1, 1]} : vector<8x256xf32> to vector<1x256xf32>
    %514 = vector.broadcast %512 : vector<16x1xf32> to vector<16x256xf32>
    %515 = vector.broadcast %513 : vector<1x256xf32> to vector<16x256xf32>
    %516 = arith.mulf %514, %515 : vector<16x256xf32>
    %517 = arith.addf %511, %516 : vector<16x256xf32>
    %c0_44 = arith.constant 0 : index
    %c128_45 = arith.constant 128 : index
    %518 = vector.load %arg19[%c0_44, %c128_45] : memref<8x512xf32, #tpu.memory_space<vmem>>, vector<8x256xf32>
    %519 = vector.extract_strided_slice %464 {offsets = [0, 1], sizes = [16, 1], strides = [1, 1]} : vector<16x24xf32> to vector<16x1xf32>
    %520 = vector.extract_strided_slice %518 {offsets = [0, 0], sizes = [1, 256], strides = [1, 1]} : vector<8x256xf32> to vector<1x256xf32>
    %521 = vector.broadcast %519 : vector<16x1xf32> to vector<16x256xf32>
    %522 = vector.broadcast %520 : vector<1x256xf32> to vector<16x256xf32>
    %523 = arith.mulf %521, %522 : vector<16x256xf32>
    %524 = arith.addf %517, %523 : vector<16x256xf32>
    %525 = vector.extract_strided_slice %464 {offsets = [0, 4], sizes = [16, 1], strides = [1, 1]} : vector<16x24xf32> to vector<16x1xf32>
    %526 = vector.extract_strided_slice %518 {offsets = [1, 0], sizes = [1, 256], strides = [1, 1]} : vector<8x256xf32> to vector<1x256xf32>
    %527 = vector.broadcast %525 : vector<16x1xf32> to vector<16x256xf32>
    %528 = vector.broadcast %526 : vector<1x256xf32> to vector<16x256xf32>
    %529 = arith.mulf %527, %528 : vector<16x256xf32>
    %530 = arith.addf %524, %529 : vector<16x256xf32>
    %531 = vector.extract_strided_slice %464 {offsets = [0, 7], sizes = [16, 1], strides = [1, 1]} : vector<16x24xf32> to vector<16x1xf32>
    %532 = vector.extract_strided_slice %518 {offsets = [2, 0], sizes = [1, 256], strides = [1, 1]} : vector<8x256xf32> to vector<1x256xf32>
    %533 = vector.broadcast %531 : vector<16x1xf32> to vector<16x256xf32>
    %534 = vector.broadcast %532 : vector<1x256xf32> to vector<16x256xf32>
    %535 = arith.mulf %533, %534 : vector<16x256xf32>
    %536 = arith.addf %530, %535 : vector<16x256xf32>
    %537 = vector.extract_strided_slice %464 {offsets = [0, 10], sizes = [16, 1], strides = [1, 1]} : vector<16x24xf32> to vector<16x1xf32>
    %538 = vector.extract_strided_slice %518 {offsets = [3, 0], sizes = [1, 256], strides = [1, 1]} : vector<8x256xf32> to vector<1x256xf32>
    %539 = vector.broadcast %537 : vector<16x1xf32> to vector<16x256xf32>
    %540 = vector.broadcast %538 : vector<1x256xf32> to vector<16x256xf32>
    %541 = arith.mulf %539, %540 : vector<16x256xf32>
    %542 = arith.addf %536, %541 : vector<16x256xf32>
    %543 = vector.extract_strided_slice %464 {offsets = [0, 13], sizes = [16, 1], strides = [1, 1]} : vector<16x24xf32> to vector<16x1xf32>
    %544 = vector.extract_strided_slice %518 {offsets = [4, 0], sizes = [1, 256], strides = [1, 1]} : vector<8x256xf32> to vector<1x256xf32>
    %545 = vector.broadcast %543 : vector<16x1xf32> to vector<16x256xf32>
    %546 = vector.broadcast %544 : vector<1x256xf32> to vector<16x256xf32>
    %547 = arith.mulf %545, %546 : vector<16x256xf32>
    %548 = arith.addf %542, %547 : vector<16x256xf32>
    %549 = vector.extract_strided_slice %464 {offsets = [0, 16], sizes = [16, 1], strides = [1, 1]} : vector<16x24xf32> to vector<16x1xf32>
    %550 = vector.extract_strided_slice %518 {offsets = [5, 0], sizes = [1, 256], strides = [1, 1]} : vector<8x256xf32> to vector<1x256xf32>
    %551 = vector.broadcast %549 : vector<16x1xf32> to vector<16x256xf32>
    %552 = vector.broadcast %550 : vector<1x256xf32> to vector<16x256xf32>
    %553 = arith.mulf %551, %552 : vector<16x256xf32>
    %554 = arith.addf %548, %553 : vector<16x256xf32>
    %555 = vector.extract_strided_slice %464 {offsets = [0, 19], sizes = [16, 1], strides = [1, 1]} : vector<16x24xf32> to vector<16x1xf32>
    %556 = vector.extract_strided_slice %518 {offsets = [6, 0], sizes = [1, 256], strides = [1, 1]} : vector<8x256xf32> to vector<1x256xf32>
    %557 = vector.broadcast %555 : vector<16x1xf32> to vector<16x256xf32>
    %558 = vector.broadcast %556 : vector<1x256xf32> to vector<16x256xf32>
    %559 = arith.mulf %557, %558 : vector<16x256xf32>
    %560 = arith.addf %554, %559 : vector<16x256xf32>
    %561 = vector.extract_strided_slice %464 {offsets = [0, 22], sizes = [16, 1], strides = [1, 1]} : vector<16x24xf32> to vector<16x1xf32>
    %562 = vector.extract_strided_slice %518 {offsets = [7, 0], sizes = [1, 256], strides = [1, 1]} : vector<8x256xf32> to vector<1x256xf32>
    %563 = vector.broadcast %561 : vector<16x1xf32> to vector<16x256xf32>
    %564 = vector.broadcast %562 : vector<1x256xf32> to vector<16x256xf32>
    %565 = arith.mulf %563, %564 : vector<16x256xf32>
    %566 = arith.addf %560, %565 : vector<16x256xf32>
    %c0_46 = arith.constant 0 : index
    %c132 = arith.constant 132 : index
    %567 = vector.load %arg19[%c0_46, %c132] : memref<8x512xf32, #tpu.memory_space<vmem>>, vector<8x256xf32>
    %568 = vector.extract_strided_slice %464 {offsets = [0, 2], sizes = [16, 1], strides = [1, 1]} : vector<16x24xf32> to vector<16x1xf32>
    %569 = vector.extract_strided_slice %567 {offsets = [0, 0], sizes = [1, 256], strides = [1, 1]} : vector<8x256xf32> to vector<1x256xf32>
    %570 = vector.broadcast %568 : vector<16x1xf32> to vector<16x256xf32>
    %571 = vector.broadcast %569 : vector<1x256xf32> to vector<16x256xf32>
    %572 = arith.mulf %570, %571 : vector<16x256xf32>
    %573 = arith.addf %566, %572 : vector<16x256xf32>
    %574 = vector.extract_strided_slice %464 {offsets = [0, 5], sizes = [16, 1], strides = [1, 1]} : vector<16x24xf32> to vector<16x1xf32>
    %575 = vector.extract_strided_slice %567 {offsets = [1, 0], sizes = [1, 256], strides = [1, 1]} : vector<8x256xf32> to vector<1x256xf32>
    %576 = vector.broadcast %574 : vector<16x1xf32> to vector<16x256xf32>
    %577 = vector.broadcast %575 : vector<1x256xf32> to vector<16x256xf32>
    %578 = arith.mulf %576, %577 : vector<16x256xf32>
    %579 = arith.addf %573, %578 : vector<16x256xf32>
    %580 = vector.extract_strided_slice %464 {offsets = [0, 8], sizes = [16, 1], strides = [1, 1]} : vector<16x24xf32> to vector<16x1xf32>
    %581 = vector.extract_strided_slice %567 {offsets = [2, 0], sizes = [1, 256], strides = [1, 1]} : vector<8x256xf32> to vector<1x256xf32>
    %582 = vector.broadcast %580 : vector<16x1xf32> to vector<16x256xf32>
    %583 = vector.broadcast %581 : vector<1x256xf32> to vector<16x256xf32>
    %584 = arith.mulf %582, %583 : vector<16x256xf32>
    %585 = arith.addf %579, %584 : vector<16x256xf32>
    %586 = vector.extract_strided_slice %464 {offsets = [0, 11], sizes = [16, 1], strides = [1, 1]} : vector<16x24xf32> to vector<16x1xf32>
    %587 = vector.extract_strided_slice %567 {offsets = [3, 0], sizes = [1, 256], strides = [1, 1]} : vector<8x256xf32> to vector<1x256xf32>
    %588 = vector.broadcast %586 : vector<16x1xf32> to vector<16x256xf32>
    %589 = vector.broadcast %587 : vector<1x256xf32> to vector<16x256xf32>
    %590 = arith.mulf %588, %589 : vector<16x256xf32>
    %591 = arith.addf %585, %590 : vector<16x256xf32>
    %592 = vector.extract_strided_slice %464 {offsets = [0, 14], sizes = [16, 1], strides = [1, 1]} : vector<16x24xf32> to vector<16x1xf32>
    %593 = vector.extract_strided_slice %567 {offsets = [4, 0], sizes = [1, 256], strides = [1, 1]} : vector<8x256xf32> to vector<1x256xf32>
    %594 = vector.broadcast %592 : vector<16x1xf32> to vector<16x256xf32>
    %595 = vector.broadcast %593 : vector<1x256xf32> to vector<16x256xf32>
    %596 = arith.mulf %594, %595 : vector<16x256xf32>
    %597 = arith.addf %591, %596 : vector<16x256xf32>
    %598 = vector.extract_strided_slice %464 {offsets = [0, 17], sizes = [16, 1], strides = [1, 1]} : vector<16x24xf32> to vector<16x1xf32>
    %599 = vector.extract_strided_slice %567 {offsets = [5, 0], sizes = [1, 256], strides = [1, 1]} : vector<8x256xf32> to vector<1x256xf32>
    %600 = vector.broadcast %598 : vector<16x1xf32> to vector<16x256xf32>
    %601 = vector.broadcast %599 : vector<1x256xf32> to vector<16x256xf32>
    %602 = arith.mulf %600, %601 : vector<16x256xf32>
    %603 = arith.addf %597, %602 : vector<16x256xf32>
    %604 = vector.extract_strided_slice %464 {offsets = [0, 20], sizes = [16, 1], strides = [1, 1]} : vector<16x24xf32> to vector<16x1xf32>
    %605 = vector.extract_strided_slice %567 {offsets = [6, 0], sizes = [1, 256], strides = [1, 1]} : vector<8x256xf32> to vector<1x256xf32>
    %606 = vector.broadcast %604 : vector<16x1xf32> to vector<16x256xf32>
    %607 = vector.broadcast %605 : vector<1x256xf32> to vector<16x256xf32>
    %608 = arith.mulf %606, %607 : vector<16x256xf32>
    %609 = arith.addf %603, %608 : vector<16x256xf32>
    %610 = vector.extract_strided_slice %464 {offsets = [0, 23], sizes = [16, 1], strides = [1, 1]} : vector<16x24xf32> to vector<16x1xf32>
    %611 = vector.extract_strided_slice %567 {offsets = [7, 0], sizes = [1, 256], strides = [1, 1]} : vector<8x256xf32> to vector<1x256xf32>
    %612 = vector.broadcast %610 : vector<16x1xf32> to vector<16x256xf32>
    %613 = vector.broadcast %611 : vector<1x256xf32> to vector<16x256xf32>
    %614 = arith.mulf %612, %613 : vector<16x256xf32>
    %615 = arith.addf %609, %614 : vector<16x256xf32>
    %616 = vector.extract_strided_slice %615 {offsets = [0, 0], sizes = [8, 256], strides = [1, 1]} : vector<16x256xf32> to vector<8x256xf32>
    %617 = math.tanh %616 : vector<8x256xf32>
    %618 = vector.extract_strided_slice %615 {offsets = [8, 0], sizes = [8, 256], strides = [1, 1]} : vector<16x256xf32> to vector<8x256xf32>
    %619 = arith.negf %618 : vector<8x256xf32>
    %620 = math.exp %619 : vector<8x256xf32>
    %cst_47 = arith.constant 1.000000e+00 : f32
    %621 = vector.broadcast %cst_47 : f32 to vector<8x256xf32>
    %622 = arith.addf %621, %620 : vector<8x256xf32>
    %623 = arith.divf %621, %622 : vector<8x256xf32>
    %624 = arith.mulf %617, %623 : vector<8x256xf32>
    %c0_48 = arith.constant 0 : index
    %c0_49 = arith.constant 0 : index
    %625 = vector.load %arg14[%c0_48, %c0_49] : memref<8x8xf32, #tpu.memory_space<vmem>>, vector<8x8xf32>
    %c0_50 = arith.constant 0 : index
    %c0_51 = arith.constant 0 : index
    %626 = vector.load %arg15[%c0_50, %c0_51] : memref<8x1xf32, #tpu.memory_space<vmem>>, vector<8x1xf32>
    %627 = vector.shape_cast %626 : vector<8x1xf32> to vector<8x1xf32>
    %628 = vector.broadcast %627 : vector<8x1xf32> to vector<8x256xf32>
    %629 = vector.extract_strided_slice %625 {offsets = [0, 0], sizes = [8, 1], strides = [1, 1]} : vector<8x8xf32> to vector<8x1xf32>
    %630 = vector.extract_strided_slice %624 {offsets = [0, 0], sizes = [1, 256], strides = [1, 1]} : vector<8x256xf32> to vector<1x256xf32>
    %631 = vector.broadcast %629 : vector<8x1xf32> to vector<8x256xf32>
    %632 = vector.broadcast %630 : vector<1x256xf32> to vector<8x256xf32>
    %633 = arith.mulf %631, %632 : vector<8x256xf32>
    %634 = arith.addf %628, %633 : vector<8x256xf32>
    %635 = vector.extract_strided_slice %625 {offsets = [0, 1], sizes = [8, 1], strides = [1, 1]} : vector<8x8xf32> to vector<8x1xf32>
    %636 = vector.extract_strided_slice %624 {offsets = [1, 0], sizes = [1, 256], strides = [1, 1]} : vector<8x256xf32> to vector<1x256xf32>
    %637 = vector.broadcast %635 : vector<8x1xf32> to vector<8x256xf32>
    %638 = vector.broadcast %636 : vector<1x256xf32> to vector<8x256xf32>
    %639 = arith.mulf %637, %638 : vector<8x256xf32>
    %640 = arith.addf %634, %639 : vector<8x256xf32>
    %641 = vector.extract_strided_slice %625 {offsets = [0, 2], sizes = [8, 1], strides = [1, 1]} : vector<8x8xf32> to vector<8x1xf32>
    %642 = vector.extract_strided_slice %624 {offsets = [2, 0], sizes = [1, 256], strides = [1, 1]} : vector<8x256xf32> to vector<1x256xf32>
    %643 = vector.broadcast %641 : vector<8x1xf32> to vector<8x256xf32>
    %644 = vector.broadcast %642 : vector<1x256xf32> to vector<8x256xf32>
    %645 = arith.mulf %643, %644 : vector<8x256xf32>
    %646 = arith.addf %640, %645 : vector<8x256xf32>
    %647 = vector.extract_strided_slice %625 {offsets = [0, 3], sizes = [8, 1], strides = [1, 1]} : vector<8x8xf32> to vector<8x1xf32>
    %648 = vector.extract_strided_slice %624 {offsets = [3, 0], sizes = [1, 256], strides = [1, 1]} : vector<8x256xf32> to vector<1x256xf32>
    %649 = vector.broadcast %647 : vector<8x1xf32> to vector<8x256xf32>
    %650 = vector.broadcast %648 : vector<1x256xf32> to vector<8x256xf32>
    %651 = arith.mulf %649, %650 : vector<8x256xf32>
    %652 = arith.addf %646, %651 : vector<8x256xf32>
    %653 = vector.extract_strided_slice %625 {offsets = [0, 4], sizes = [8, 1], strides = [1, 1]} : vector<8x8xf32> to vector<8x1xf32>
    %654 = vector.extract_strided_slice %624 {offsets = [4, 0], sizes = [1, 256], strides = [1, 1]} : vector<8x256xf32> to vector<1x256xf32>
    %655 = vector.broadcast %653 : vector<8x1xf32> to vector<8x256xf32>
    %656 = vector.broadcast %654 : vector<1x256xf32> to vector<8x256xf32>
    %657 = arith.mulf %655, %656 : vector<8x256xf32>
    %658 = arith.addf %652, %657 : vector<8x256xf32>
    %659 = vector.extract_strided_slice %625 {offsets = [0, 5], sizes = [8, 1], strides = [1, 1]} : vector<8x8xf32> to vector<8x1xf32>
    %660 = vector.extract_strided_slice %624 {offsets = [5, 0], sizes = [1, 256], strides = [1, 1]} : vector<8x256xf32> to vector<1x256xf32>
    %661 = vector.broadcast %659 : vector<8x1xf32> to vector<8x256xf32>
    %662 = vector.broadcast %660 : vector<1x256xf32> to vector<8x256xf32>
    %663 = arith.mulf %661, %662 : vector<8x256xf32>
    %664 = arith.addf %658, %663 : vector<8x256xf32>
    %665 = vector.extract_strided_slice %625 {offsets = [0, 6], sizes = [8, 1], strides = [1, 1]} : vector<8x8xf32> to vector<8x1xf32>
    %666 = vector.extract_strided_slice %624 {offsets = [6, 0], sizes = [1, 256], strides = [1, 1]} : vector<8x256xf32> to vector<1x256xf32>
    %667 = vector.broadcast %665 : vector<8x1xf32> to vector<8x256xf32>
    %668 = vector.broadcast %666 : vector<1x256xf32> to vector<8x256xf32>
    %669 = arith.mulf %667, %668 : vector<8x256xf32>
    %670 = arith.addf %664, %669 : vector<8x256xf32>
    %671 = vector.extract_strided_slice %625 {offsets = [0, 7], sizes = [8, 1], strides = [1, 1]} : vector<8x8xf32> to vector<8x1xf32>
    %672 = vector.extract_strided_slice %624 {offsets = [7, 0], sizes = [1, 256], strides = [1, 1]} : vector<8x256xf32> to vector<1x256xf32>
    %673 = vector.broadcast %671 : vector<8x1xf32> to vector<8x256xf32>
    %674 = vector.broadcast %672 : vector<1x256xf32> to vector<8x256xf32>
    %675 = arith.mulf %673, %674 : vector<8x256xf32>
    %676 = arith.addf %670, %675 : vector<8x256xf32>
    %677 = arith.addf %463, %676 : vector<8x256xf32>
    %678 = vector.broadcast %6 : vector<1x256xf32> to vector<8x256xf32>
    %679 = arith.mulf %677, %678 : vector<8x256xf32>
    %c0_52 = arith.constant 0 : index
    %c0_53 = arith.constant 0 : index
    %680 = vector.load %arg16[%c0_52, %c0_53] : memref<1x40xf32, #tpu.memory_space<vmem>>, vector<1x40xf32>
    %c0_54 = arith.constant 0 : index
    %c0_55 = arith.constant 0 : index
    %681 = vector.load %arg17[%c0_54, %c0_55] : memref<1x1xf32, #tpu.memory_space<vmem>>, vector<1x1xf32>
    %682 = vector.shape_cast %681 : vector<1x1xf32> to vector<1x1xf32>
    %683 = vector.broadcast %682 : vector<1x1xf32> to vector<1x256xf32>
    %c0_56 = arith.constant 0 : index
    %c128_57 = arith.constant 128 : index
    %684 = vector.load %arg19[%c0_56, %c128_57] : memref<8x512xf32, #tpu.memory_space<vmem>>, vector<8x256xf32>
    tpu.vector_store %arg19[%c0_56, %c128_57], %679 {strides = array<i32>} : memref<8x512xf32, #tpu.memory_space<vmem>>, vector<8x256xf32>,
    %c0_58 = arith.constant 0 : index
    %c126_59 = arith.constant 126 : index
    %685 = vector.load %arg19[%c0_58, %c126_59] : memref<8x512xf32, #tpu.memory_space<vmem>>, vector<8x256xf32>
    %686 = vector.extract_strided_slice %680 {offsets = [0, 0], sizes = [1, 1], strides = [1, 1]} : vector<1x40xf32> to vector<1x1xf32>
    %687 = vector.extract_strided_slice %685 {offsets = [0, 0], sizes = [1, 256], strides = [1, 1]} : vector<8x256xf32> to vector<1x256xf32>
    %688 = vector.broadcast %686 : vector<1x1xf32> to vector<1x256xf32>
    %689 = arith.mulf %688, %687 : vector<1x256xf32>
    %690 = arith.addf %683, %689 : vector<1x256xf32>
    %691 = vector.extract_strided_slice %680 {offsets = [0, 5], sizes = [1, 1], strides = [1, 1]} : vector<1x40xf32> to vector<1x1xf32>
    %692 = vector.extract_strided_slice %685 {offsets = [1, 0], sizes = [1, 256], strides = [1, 1]} : vector<8x256xf32> to vector<1x256xf32>
    %693 = vector.broadcast %691 : vector<1x1xf32> to vector<1x256xf32>
    %694 = arith.mulf %693, %692 : vector<1x256xf32>
    %695 = arith.addf %690, %694 : vector<1x256xf32>
    %696 = vector.extract_strided_slice %680 {offsets = [0, 10], sizes = [1, 1], strides = [1, 1]} : vector<1x40xf32> to vector<1x1xf32>
    %697 = vector.extract_strided_slice %685 {offsets = [2, 0], sizes = [1, 256], strides = [1, 1]} : vector<8x256xf32> to vector<1x256xf32>
    %698 = vector.broadcast %696 : vector<1x1xf32> to vector<1x256xf32>
    %699 = arith.mulf %698, %697 : vector<1x256xf32>
    %700 = arith.addf %695, %699 : vector<1x256xf32>
    %701 = vector.extract_strided_slice %680 {offsets = [0, 15], sizes = [1, 1], strides = [1, 1]} : vector<1x40xf32> to vector<1x1xf32>
    %702 = vector.extract_strided_slice %685 {offsets = [3, 0], sizes = [1, 256], strides = [1, 1]} : vector<8x256xf32> to vector<1x256xf32>
    %703 = vector.broadcast %701 : vector<1x1xf32> to vector<1x256xf32>
    %704 = arith.mulf %703, %702 : vector<1x256xf32>
    %705 = arith.addf %700, %704 : vector<1x256xf32>
    %706 = vector.extract_strided_slice %680 {offsets = [0, 20], sizes = [1, 1], strides = [1, 1]} : vector<1x40xf32> to vector<1x1xf32>
    %707 = vector.extract_strided_slice %685 {offsets = [4, 0], sizes = [1, 256], strides = [1, 1]} : vector<8x256xf32> to vector<1x256xf32>
    %708 = vector.broadcast %706 : vector<1x1xf32> to vector<1x256xf32>
    %709 = arith.mulf %708, %707 : vector<1x256xf32>
    %710 = arith.addf %705, %709 : vector<1x256xf32>
    %711 = vector.extract_strided_slice %680 {offsets = [0, 25], sizes = [1, 1], strides = [1, 1]} : vector<1x40xf32> to vector<1x1xf32>
    %712 = vector.extract_strided_slice %685 {offsets = [5, 0], sizes = [1, 256], strides = [1, 1]} : vector<8x256xf32> to vector<1x256xf32>
    %713 = vector.broadcast %711 : vector<1x1xf32> to vector<1x256xf32>
    %714 = arith.mulf %713, %712 : vector<1x256xf32>
    %715 = arith.addf %710, %714 : vector<1x256xf32>
    %716 = vector.extract_strided_slice %680 {offsets = [0, 30], sizes = [1, 1], strides = [1, 1]} : vector<1x40xf32> to vector<1x1xf32>
    %717 = vector.extract_strided_slice %685 {offsets = [6, 0], sizes = [1, 256], strides = [1, 1]} : vector<8x256xf32> to vector<1x256xf32>
    %718 = vector.broadcast %716 : vector<1x1xf32> to vector<1x256xf32>
    %719 = arith.mulf %718, %717 : vector<1x256xf32>
    %720 = arith.addf %715, %719 : vector<1x256xf32>
    %721 = vector.extract_strided_slice %680 {offsets = [0, 35], sizes = [1, 1], strides = [1, 1]} : vector<1x40xf32> to vector<1x1xf32>
    %722 = vector.extract_strided_slice %685 {offsets = [7, 0], sizes = [1, 256], strides = [1, 1]} : vector<8x256xf32> to vector<1x256xf32>
    %723 = vector.broadcast %721 : vector<1x1xf32> to vector<1x256xf32>
    %724 = arith.mulf %723, %722 : vector<1x256xf32>
    %725 = arith.addf %720, %724 : vector<1x256xf32>
    %c0_60 = arith.constant 0 : index
    %c127_61 = arith.constant 127 : index
    %726 = vector.load %arg19[%c0_60, %c127_61] : memref<8x512xf32, #tpu.memory_space<vmem>>, vector<8x256xf32>
    %727 = vector.extract_strided_slice %680 {offsets = [0, 1], sizes = [1, 1], strides = [1, 1]} : vector<1x40xf32> to vector<1x1xf32>
    %728 = vector.extract_strided_slice %726 {offsets = [0, 0], sizes = [1, 256], strides = [1, 1]} : vector<8x256xf32> to vector<1x256xf32>
    %729 = vector.broadcast %727 : vector<1x1xf32> to vector<1x256xf32>
    %730 = arith.mulf %729, %728 : vector<1x256xf32>
    %731 = arith.addf %725, %730 : vector<1x256xf32>
    %732 = vector.extract_strided_slice %680 {offsets = [0, 6], sizes = [1, 1], strides = [1, 1]} : vector<1x40xf32> to vector<1x1xf32>
    %733 = vector.extract_strided_slice %726 {offsets = [1, 0], sizes = [1, 256], strides = [1, 1]} : vector<8x256xf32> to vector<1x256xf32>
    %734 = vector.broadcast %732 : vector<1x1xf32> to vector<1x256xf32>
    %735 = arith.mulf %734, %733 : vector<1x256xf32>
    %736 = arith.addf %731, %735 : vector<1x256xf32>
    %737 = vector.extract_strided_slice %680 {offsets = [0, 11], sizes = [1, 1], strides = [1, 1]} : vector<1x40xf32> to vector<1x1xf32>
    %738 = vector.extract_strided_slice %726 {offsets = [2, 0], sizes = [1, 256], strides = [1, 1]} : vector<8x256xf32> to vector<1x256xf32>
    %739 = vector.broadcast %737 : vector<1x1xf32> to vector<1x256xf32>
    %740 = arith.mulf %739, %738 : vector<1x256xf32>
    %741 = arith.addf %736, %740 : vector<1x256xf32>
    %742 = vector.extract_strided_slice %680 {offsets = [0, 16], sizes = [1, 1], strides = [1, 1]} : vector<1x40xf32> to vector<1x1xf32>
    %743 = vector.extract_strided_slice %726 {offsets = [3, 0], sizes = [1, 256], strides = [1, 1]} : vector<8x256xf32> to vector<1x256xf32>
    %744 = vector.broadcast %742 : vector<1x1xf32> to vector<1x256xf32>
    %745 = arith.mulf %744, %743 : vector<1x256xf32>
    %746 = arith.addf %741, %745 : vector<1x256xf32>
    %747 = vector.extract_strided_slice %680 {offsets = [0, 21], sizes = [1, 1], strides = [1, 1]} : vector<1x40xf32> to vector<1x1xf32>
    %748 = vector.extract_strided_slice %726 {offsets = [4, 0], sizes = [1, 256], strides = [1, 1]} : vector<8x256xf32> to vector<1x256xf32>
    %749 = vector.broadcast %747 : vector<1x1xf32> to vector<1x256xf32>
    %750 = arith.mulf %749, %748 : vector<1x256xf32>
    %751 = arith.addf %746, %750 : vector<1x256xf32>
    %752 = vector.extract_strided_slice %680 {offsets = [0, 26], sizes = [1, 1], strides = [1, 1]} : vector<1x40xf32> to vector<1x1xf32>
    %753 = vector.extract_strided_slice %726 {offsets = [5, 0], sizes = [1, 256], strides = [1, 1]} : vector<8x256xf32> to vector<1x256xf32>
    %754 = vector.broadcast %752 : vector<1x1xf32> to vector<1x256xf32>
    %755 = arith.mulf %754, %753 : vector<1x256xf32>
    %756 = arith.addf %751, %755 : vector<1x256xf32>
    %757 = vector.extract_strided_slice %680 {offsets = [0, 31], sizes = [1, 1], strides = [1, 1]} : vector<1x40xf32> to vector<1x1xf32>
    %758 = vector.extract_strided_slice %726 {offsets = [6, 0], sizes = [1, 256], strides = [1, 1]} : vector<8x256xf32> to vector<1x256xf32>
    %759 = vector.broadcast %757 : vector<1x1xf32> to vector<1x256xf32>
    %760 = arith.mulf %759, %758 : vector<1x256xf32>
    %761 = arith.addf %756, %760 : vector<1x256xf32>
    %762 = vector.extract_strided_slice %680 {offsets = [0, 36], sizes = [1, 1], strides = [1, 1]} : vector<1x40xf32> to vector<1x1xf32>
    %763 = vector.extract_strided_slice %726 {offsets = [7, 0], sizes = [1, 256], strides = [1, 1]} : vector<8x256xf32> to vector<1x256xf32>
    %764 = vector.broadcast %762 : vector<1x1xf32> to vector<1x256xf32>
    %765 = arith.mulf %764, %763 : vector<1x256xf32>
    %766 = arith.addf %761, %765 : vector<1x256xf32>
    %c0_62 = arith.constant 0 : index
    %c128_63 = arith.constant 128 : index
    %767 = vector.load %arg19[%c0_62, %c128_63] : memref<8x512xf32, #tpu.memory_space<vmem>>, vector<8x256xf32>
    %768 = vector.extract_strided_slice %680 {offsets = [0, 2], sizes = [1, 1], strides = [1, 1]} : vector<1x40xf32> to vector<1x1xf32>
    %769 = vector.extract_strided_slice %767 {offsets = [0, 0], sizes = [1, 256], strides = [1, 1]} : vector<8x256xf32> to vector<1x256xf32>
    %770 = vector.broadcast %768 : vector<1x1xf32> to vector<1x256xf32>
    %771 = arith.mulf %770, %769 : vector<1x256xf32>
    %772 = arith.addf %766, %771 : vector<1x256xf32>
    %773 = vector.extract_strided_slice %680 {offsets = [0, 7], sizes = [1, 1], strides = [1, 1]} : vector<1x40xf32> to vector<1x1xf32>
    %774 = vector.extract_strided_slice %767 {offsets = [1, 0], sizes = [1, 256], strides = [1, 1]} : vector<8x256xf32> to vector<1x256xf32>
    %775 = vector.broadcast %773 : vector<1x1xf32> to vector<1x256xf32>
    %776 = arith.mulf %775, %774 : vector<1x256xf32>
    %777 = arith.addf %772, %776 : vector<1x256xf32>
    %778 = vector.extract_strided_slice %680 {offsets = [0, 12], sizes = [1, 1], strides = [1, 1]} : vector<1x40xf32> to vector<1x1xf32>
    %779 = vector.extract_strided_slice %767 {offsets = [2, 0], sizes = [1, 256], strides = [1, 1]} : vector<8x256xf32> to vector<1x256xf32>
    %780 = vector.broadcast %778 : vector<1x1xf32> to vector<1x256xf32>
    %781 = arith.mulf %780, %779 : vector<1x256xf32>
    %782 = arith.addf %777, %781 : vector<1x256xf32>
    %783 = vector.extract_strided_slice %680 {offsets = [0, 17], sizes = [1, 1], strides = [1, 1]} : vector<1x40xf32> to vector<1x1xf32>
    %784 = vector.extract_strided_slice %767 {offsets = [3, 0], sizes = [1, 256], strides = [1, 1]} : vector<8x256xf32> to vector<1x256xf32>
    %785 = vector.broadcast %783 : vector<1x1xf32> to vector<1x256xf32>
    %786 = arith.mulf %785, %784 : vector<1x256xf32>
    %787 = arith.addf %782, %786 : vector<1x256xf32>
    %788 = vector.extract_strided_slice %680 {offsets = [0, 22], sizes = [1, 1], strides = [1, 1]} : vector<1x40xf32> to vector<1x1xf32>
    %789 = vector.extract_strided_slice %767 {offsets = [4, 0], sizes = [1, 256], strides = [1, 1]} : vector<8x256xf32> to vector<1x256xf32>
    %790 = vector.broadcast %788 : vector<1x1xf32> to vector<1x256xf32>
    %791 = arith.mulf %790, %789 : vector<1x256xf32>
    %792 = arith.addf %787, %791 : vector<1x256xf32>
    %793 = vector.extract_strided_slice %680 {offsets = [0, 27], sizes = [1, 1], strides = [1, 1]} : vector<1x40xf32> to vector<1x1xf32>
    %794 = vector.extract_strided_slice %767 {offsets = [5, 0], sizes = [1, 256], strides = [1, 1]} : vector<8x256xf32> to vector<1x256xf32>
    %795 = vector.broadcast %793 : vector<1x1xf32> to vector<1x256xf32>
    %796 = arith.mulf %795, %794 : vector<1x256xf32>
    %797 = arith.addf %792, %796 : vector<1x256xf32>
    %798 = vector.extract_strided_slice %680 {offsets = [0, 32], sizes = [1, 1], strides = [1, 1]} : vector<1x40xf32> to vector<1x1xf32>
    %799 = vector.extract_strided_slice %767 {offsets = [6, 0], sizes = [1, 256], strides = [1, 1]} : vector<8x256xf32> to vector<1x256xf32>
    %800 = vector.broadcast %798 : vector<1x1xf32> to vector<1x256xf32>
    %801 = arith.mulf %800, %799 : vector<1x256xf32>
    %802 = arith.addf %797, %801 : vector<1x256xf32>
    %803 = vector.extract_strided_slice %680 {offsets = [0, 37], sizes = [1, 1], strides = [1, 1]} : vector<1x40xf32> to vector<1x1xf32>
    %804 = vector.extract_strided_slice %767 {offsets = [7, 0], sizes = [1, 256], strides = [1, 1]} : vector<8x256xf32> to vector<1x256xf32>
    %805 = vector.broadcast %803 : vector<1x1xf32> to vector<1x256xf32>
    %806 = arith.mulf %805, %804 : vector<1x256xf32>
    %807 = arith.addf %802, %806 : vector<1x256xf32>
    %c0_64 = arith.constant 0 : index
    %c129_65 = arith.constant 129 : index
    %808 = vector.load %arg19[%c0_64, %c129_65] : memref<8x512xf32, #tpu.memory_space<vmem>>, vector<8x256xf32>
    %809 = vector.extract_strided_slice %680 {offsets = [0, 3], sizes = [1, 1], strides = [1, 1]} : vector<1x40xf32> to vector<1x1xf32>
    %810 = vector.extract_strided_slice %808 {offsets = [0, 0], sizes = [1, 256], strides = [1, 1]} : vector<8x256xf32> to vector<1x256xf32>
    %811 = vector.broadcast %809 : vector<1x1xf32> to vector<1x256xf32>
    %812 = arith.mulf %811, %810 : vector<1x256xf32>
    %813 = arith.addf %807, %812 : vector<1x256xf32>
    %814 = vector.extract_strided_slice %680 {offsets = [0, 8], sizes = [1, 1], strides = [1, 1]} : vector<1x40xf32> to vector<1x1xf32>
    %815 = vector.extract_strided_slice %808 {offsets = [1, 0], sizes = [1, 256], strides = [1, 1]} : vector<8x256xf32> to vector<1x256xf32>
    %816 = vector.broadcast %814 : vector<1x1xf32> to vector<1x256xf32>
    %817 = arith.mulf %816, %815 : vector<1x256xf32>
    %818 = arith.addf %813, %817 : vector<1x256xf32>
    %819 = vector.extract_strided_slice %680 {offsets = [0, 13], sizes = [1, 1], strides = [1, 1]} : vector<1x40xf32> to vector<1x1xf32>
    %820 = vector.extract_strided_slice %808 {offsets = [2, 0], sizes = [1, 256], strides = [1, 1]} : vector<8x256xf32> to vector<1x256xf32>
    %821 = vector.broadcast %819 : vector<1x1xf32> to vector<1x256xf32>
    %822 = arith.mulf %821, %820 : vector<1x256xf32>
    %823 = arith.addf %818, %822 : vector<1x256xf32>
    %824 = vector.extract_strided_slice %680 {offsets = [0, 18], sizes = [1, 1], strides = [1, 1]} : vector<1x40xf32> to vector<1x1xf32>
    %825 = vector.extract_strided_slice %808 {offsets = [3, 0], sizes = [1, 256], strides = [1, 1]} : vector<8x256xf32> to vector<1x256xf32>
    %826 = vector.broadcast %824 : vector<1x1xf32> to vector<1x256xf32>
    %827 = arith.mulf %826, %825 : vector<1x256xf32>
    %828 = arith.addf %823, %827 : vector<1x256xf32>
    %829 = vector.extract_strided_slice %680 {offsets = [0, 23], sizes = [1, 1], strides = [1, 1]} : vector<1x40xf32> to vector<1x1xf32>
    %830 = vector.extract_strided_slice %808 {offsets = [4, 0], sizes = [1, 256], strides = [1, 1]} : vector<8x256xf32> to vector<1x256xf32>
    %831 = vector.broadcast %829 : vector<1x1xf32> to vector<1x256xf32>
    %832 = arith.mulf %831, %830 : vector<1x256xf32>
    %833 = arith.addf %828, %832 : vector<1x256xf32>
    %834 = vector.extract_strided_slice %680 {offsets = [0, 28], sizes = [1, 1], strides = [1, 1]} : vector<1x40xf32> to vector<1x1xf32>
    %835 = vector.extract_strided_slice %808 {offsets = [5, 0], sizes = [1, 256], strides = [1, 1]} : vector<8x256xf32> to vector<1x256xf32>
    %836 = vector.broadcast %834 : vector<1x1xf32> to vector<1x256xf32>
    %837 = arith.mulf %836, %835 : vector<1x256xf32>
    %838 = arith.addf %833, %837 : vector<1x256xf32>
    %839 = vector.extract_strided_slice %680 {offsets = [0, 33], sizes = [1, 1], strides = [1, 1]} : vector<1x40xf32> to vector<1x1xf32>
    %840 = vector.extract_strided_slice %808 {offsets = [6, 0], sizes = [1, 256], strides = [1, 1]} : vector<8x256xf32> to vector<1x256xf32>
    %841 = vector.broadcast %839 : vector<1x1xf32> to vector<1x256xf32>
    %842 = arith.mulf %841, %840 : vector<1x256xf32>
    %843 = arith.addf %838, %842 : vector<1x256xf32>
    %844 = vector.extract_strided_slice %680 {offsets = [0, 38], sizes = [1, 1], strides = [1, 1]} : vector<1x40xf32> to vector<1x1xf32>
    %845 = vector.extract_strided_slice %808 {offsets = [7, 0], sizes = [1, 256], strides = [1, 1]} : vector<8x256xf32> to vector<1x256xf32>
    %846 = vector.broadcast %844 : vector<1x1xf32> to vector<1x256xf32>
    %847 = arith.mulf %846, %845 : vector<1x256xf32>
    %848 = arith.addf %843, %847 : vector<1x256xf32>
    %c0_66 = arith.constant 0 : index
    %c130_67 = arith.constant 130 : index
    %849 = vector.load %arg19[%c0_66, %c130_67] : memref<8x512xf32, #tpu.memory_space<vmem>>, vector<8x256xf32>
    %850 = vector.extract_strided_slice %680 {offsets = [0, 4], sizes = [1, 1], strides = [1, 1]} : vector<1x40xf32> to vector<1x1xf32>
    %851 = vector.extract_strided_slice %849 {offsets = [0, 0], sizes = [1, 256], strides = [1, 1]} : vector<8x256xf32> to vector<1x256xf32>
    %852 = vector.broadcast %850 : vector<1x1xf32> to vector<1x256xf32>
    %853 = arith.mulf %852, %851 : vector<1x256xf32>
    %854 = arith.addf %848, %853 : vector<1x256xf32>
    %855 = vector.extract_strided_slice %680 {offsets = [0, 9], sizes = [1, 1], strides = [1, 1]} : vector<1x40xf32> to vector<1x1xf32>
    %856 = vector.extract_strided_slice %849 {offsets = [1, 0], sizes = [1, 256], strides = [1, 1]} : vector<8x256xf32> to vector<1x256xf32>
    %857 = vector.broadcast %855 : vector<1x1xf32> to vector<1x256xf32>
    %858 = arith.mulf %857, %856 : vector<1x256xf32>
    %859 = arith.addf %854, %858 : vector<1x256xf32>
    %860 = vector.extract_strided_slice %680 {offsets = [0, 14], sizes = [1, 1], strides = [1, 1]} : vector<1x40xf32> to vector<1x1xf32>
    %861 = vector.extract_strided_slice %849 {offsets = [2, 0], sizes = [1, 256], strides = [1, 1]} : vector<8x256xf32> to vector<1x256xf32>
    %862 = vector.broadcast %860 : vector<1x1xf32> to vector<1x256xf32>
    %863 = arith.mulf %862, %861 : vector<1x256xf32>
    %864 = arith.addf %859, %863 : vector<1x256xf32>
    %865 = vector.extract_strided_slice %680 {offsets = [0, 19], sizes = [1, 1], strides = [1, 1]} : vector<1x40xf32> to vector<1x1xf32>
    %866 = vector.extract_strided_slice %849 {offsets = [3, 0], sizes = [1, 256], strides = [1, 1]} : vector<8x256xf32> to vector<1x256xf32>
    %867 = vector.broadcast %865 : vector<1x1xf32> to vector<1x256xf32>
    %868 = arith.mulf %867, %866 : vector<1x256xf32>
    %869 = arith.addf %864, %868 : vector<1x256xf32>
    %870 = vector.extract_strided_slice %680 {offsets = [0, 24], sizes = [1, 1], strides = [1, 1]} : vector<1x40xf32> to vector<1x1xf32>
    %871 = vector.extract_strided_slice %849 {offsets = [4, 0], sizes = [1, 256], strides = [1, 1]} : vector<8x256xf32> to vector<1x256xf32>
    %872 = vector.broadcast %870 : vector<1x1xf32> to vector<1x256xf32>
    %873 = arith.mulf %872, %871 : vector<1x256xf32>
    %874 = arith.addf %869, %873 : vector<1x256xf32>
    %875 = vector.extract_strided_slice %680 {offsets = [0, 29], sizes = [1, 1], strides = [1, 1]} : vector<1x40xf32> to vector<1x1xf32>
    %876 = vector.extract_strided_slice %849 {offsets = [5, 0], sizes = [1, 256], strides = [1, 1]} : vector<8x256xf32> to vector<1x256xf32>
    %877 = vector.broadcast %875 : vector<1x1xf32> to vector<1x256xf32>
    %878 = arith.mulf %877, %876 : vector<1x256xf32>
    %879 = arith.addf %874, %878 : vector<1x256xf32>
    %880 = vector.extract_strided_slice %680 {offsets = [0, 34], sizes = [1, 1], strides = [1, 1]} : vector<1x40xf32> to vector<1x1xf32>
    %881 = vector.extract_strided_slice %849 {offsets = [6, 0], sizes = [1, 256], strides = [1, 1]} : vector<8x256xf32> to vector<1x256xf32>
    %882 = vector.broadcast %880 : vector<1x1xf32> to vector<1x256xf32>
    %883 = arith.mulf %882, %881 : vector<1x256xf32>
    %884 = arith.addf %879, %883 : vector<1x256xf32>
    %885 = vector.extract_strided_slice %680 {offsets = [0, 39], sizes = [1, 1], strides = [1, 1]} : vector<1x40xf32> to vector<1x1xf32>
    %886 = vector.extract_strided_slice %849 {offsets = [7, 0], sizes = [1, 256], strides = [1, 1]} : vector<8x256xf32> to vector<1x256xf32>
    %887 = vector.broadcast %885 : vector<1x1xf32> to vector<1x256xf32>
    %888 = arith.mulf %887, %886 : vector<1x256xf32>
    %889 = arith.addf %884, %888 : vector<1x256xf32>
    %c0_68 = arith.constant 0 : index
    %c0_69 = arith.constant 0 : index
    %c0_70 = arith.constant 0 : index
    %890 = vector.load %arg18[%c0_68, %c0_69, %c0_70] : memref<1x1x256xf32, #tpu.memory_space<vmem>>, vector<1x1x256xf32>
    %891 = vector.shape_cast %890 : vector<1x1x256xf32> to vector<1x256xf32>
    %892 = vector.shape_cast %889 : vector<1x256xf32> to vector<1x1x256xf32>
    tpu.vector_store %arg18[%c0_68, %c0_69, %c0_70], %892 {strides = array<i32>} : memref<1x1x256xf32, #tpu.memory_space<vmem>>, vector<1x1x256xf32>,
    return
  }
  func.func @transform_0(%arg0: i32) -> (i32, i32, i32) {
    %c0_i32 = arith.constant 0 : i32
    %c0_i32_0 = arith.constant 0 : i32
    %c0_i32_1 = arith.constant 0 : i32
    return %arg0, %c0_i32, %c0_i32_0 : i32, i32, i32
  }
  func.func @transform_1(%arg0: i32) -> (i32, i32) {
    %c0_i32 = arith.constant 0 : i32
    %c0_i32_0 = arith.constant 0 : i32
    %c0_i32_1 = arith.constant 0 : i32
    return %c0_i32, %c0_i32_0 : i32, i32
  }
  func.func @transform_2(%arg0: i32) -> (i32, i32) {
    %c0_i32 = arith.constant 0 : i32
    %c0_i32_0 = arith.constant 0 : i32
    %c0_i32_1 = arith.constant 0 : i32
    return %c0_i32, %c0_i32_0 : i32, i32
  }
  func.func @transform_3(%arg0: i32) -> (i32, i32) {
    %c0_i32 = arith.constant 0 : i32
    %c0_i32_0 = arith.constant 0 : i32
    %c0_i32_1 = arith.constant 0 : i32
    return %c0_i32, %c0_i32_0 : i32, i32
  }
  func.func @transform_4(%arg0: i32) -> (i32, i32) {
    %c0_i32 = arith.constant 0 : i32
    %c0_i32_0 = arith.constant 0 : i32
    %c0_i32_1 = arith.constant 0 : i32
    return %c0_i32, %c0_i32_0 : i32, i32
  }
  func.func @transform_5(%arg0: i32) -> (i32, i32) {
    %c0_i32 = arith.constant 0 : i32
    %c0_i32_0 = arith.constant 0 : i32
    %c0_i32_1 = arith.constant 0 : i32
    return %c0_i32, %c0_i32_0 : i32, i32
  }
  func.func @transform_6(%arg0: i32) -> (i32, i32) {
    %c0_i32 = arith.constant 0 : i32
    %c0_i32_0 = arith.constant 0 : i32
    %c0_i32_1 = arith.constant 0 : i32
    return %c0_i32, %c0_i32_0 : i32, i32
  }
  func.func @transform_7(%arg0: i32) -> (i32, i32) {
    %c0_i32 = arith.constant 0 : i32
    %c0_i32_0 = arith.constant 0 : i32
    %c0_i32_1 = arith.constant 0 : i32
    return %c0_i32, %c0_i32_0 : i32, i32
  }
  func.func @transform_8(%arg0: i32) -> (i32, i32) {
    %c0_i32 = arith.constant 0 : i32
    %c0_i32_0 = arith.constant 0 : i32
    %c0_i32_1 = arith.constant 0 : i32
    return %c0_i32, %c0_i32_0 : i32, i32
  }
  func.func @transform_9(%arg0: i32) -> (i32, i32) {
    %c0_i32 = arith.constant 0 : i32
    %c0_i32_0 = arith.constant 0 : i32
    %c0_i32_1 = arith.constant 0 : i32
    return %c0_i32, %c0_i32_0 : i32, i32
  }
  func.func @transform_10(%arg0: i32) -> (i32, i32) {
    %c0_i32 = arith.constant 0 : i32
    %c0_i32_0 = arith.constant 0 : i32
    %c0_i32_1 = arith.constant 0 : i32
    return %c0_i32, %c0_i32_0 : i32, i32
  }
  func.func @transform_11(%arg0: i32) -> (i32, i32) {
    %c0_i32 = arith.constant 0 : i32
    %c0_i32_0 = arith.constant 0 : i32
    %c0_i32_1 = arith.constant 0 : i32
    return %c0_i32, %c0_i32_0 : i32, i32
  }
  func.func @transform_12(%arg0: i32) -> (i32, i32) {
    %c0_i32 = arith.constant 0 : i32
    %c0_i32_0 = arith.constant 0 : i32
    %c0_i32_1 = arith.constant 0 : i32
    return %c0_i32, %c0_i32_0 : i32, i32
  }
  func.func @transform_13(%arg0: i32) -> (i32, i32) {
    %c0_i32 = arith.constant 0 : i32
    %c0_i32_0 = arith.constant 0 : i32
    %c0_i32_1 = arith.constant 0 : i32
    return %c0_i32, %c0_i32_0 : i32, i32
  }
  func.func @transform_14(%arg0: i32) -> (i32, i32) {
    %c0_i32 = arith.constant 0 : i32
    %c0_i32_0 = arith.constant 0 : i32
    %c0_i32_1 = arith.constant 0 : i32
    return %c0_i32, %c0_i32_0 : i32, i32
  }
  func.func @transform_15(%arg0: i32) -> (i32, i32) {
    %c0_i32 = arith.constant 0 : i32
    %c0_i32_0 = arith.constant 0 : i32
    %c0_i32_1 = arith.constant 0 : i32
    return %c0_i32, %c0_i32_0 : i32, i32
  }
  func.func @transform_16(%arg0: i32) -> (i32, i32) {
    %c0_i32 = arith.constant 0 : i32
    %c0_i32_0 = arith.constant 0 : i32
    %c0_i32_1 = arith.constant 0 : i32
    return %c0_i32, %c0_i32_0 : i32, i32
  }
  func.func @transform_17(%arg0: i32) -> (i32, i32, i32) {
    %c0_i32 = arith.constant 0 : i32
    %c0_i32_0 = arith.constant 0 : i32
    %c0_i32_1 = arith.constant 0 : i32
    return %arg0, %c0_i32, %c0_i32_0 : i32, i32, i32
  }
}

</mosaic_0001>

<bundles_post_ra>
// kernel: tpu_custom_call.1
= control target key start
LH: loop header
LB: loop body
LE: loop exit
PB: predicated region body
PF: predicated region fallthrough
CT: control target
= control target key end

     0   :  { %s10249_s0 = inlined_call_operand.vmem [shape: f32[2,2,256], index: 0, kind: input, shape index: {}]   ;;  %s10250_s1 = inlined_call_operand.vmem [shape: f32[8,2], index: 1, kind: input, shape index: {}]   ;;  %s10251_s2 = inlined_call_operand.vmem [shape: f32[8,1], index: 2, kind: input, shape index: {}]   ;;  %s10252_s3 = inlined_call_operand.vmem [shape: f32[16,24], index: 3, kind: input, shape index: {}]   ;;  %s10253_s4 = inlined_call_operand.vmem [shape: f32[16,1], index: 4, kind: input, shape index: {}]   ;;  %s10254_s5 = inlined_call_operand.vmem [shape: f32[16,8], index: 5, kind: input, shape index: {}]   ;;  %s10255_s6 = inlined_call_operand.vmem [shape: f32[16,1], index: 6, kind: input, shape index: {}]   ;;  %s10256_s7 = inlined_call_operand.vmem [shape: f32[16,24], index: 7, kind: input, shape index: {}]   ;;  %s10257_s8 = inlined_call_operand.vmem [shape: f32[16,1], index: 8, kind: input, shape index: {}]   ;;  %s10258_s9 = inlined_call_operand.vmem [shape: f32[16,8], index: 9, kind: input, shape index: {}]   ;;  %s10259_s10 = inlined_call_operand.vmem [shape: f32[16,1], index: 10, kind: input, shape index: {}]   ;;  %s10260_s11 = inlined_call_operand.vmem [shape: f32[16,24], index: 11, kind: input, shape index: {}]   ;;  %s10261_s12 = inlined_call_operand.vmem [shape: f32[16,1], index: 12, kind: input, shape index: {}]   ;;  %s10262_s13 = inlined_call_operand.vmem [shape: f32[8,8], index: 13, kind: input, shape index: {}]   ;;  %s10263_s14 = inlined_call_operand.vmem [shape: f32[8,1], index: 14, kind: input, shape index: {}]   ;;  %s10264_s15 = inlined_call_operand.vmem [shape: f32[1,40], index: 15, kind: input, shape index: {}]   ;;  %s10265_s16 = inlined_call_operand.<no memory space> [shape: f32[1,1], index: 16, kind: input, shape index: {}]   ;;  %s10266_s17 = inlined_call_operand.hbm [shape: f32[2,1,256], index: 17, kind: output, shape index: {}]  }
   0x1   :  { %10581 = sst [smem:[#allocation116_spill]] %s10249_s0  ;;  %v22_v0 = vstv %s10265_s16 }
   0x2   :  { %10582 = sst [smem:[#allocation117_spill]] %s10250_s1  ;;  %23 = vst [vmem:[#allocation3] sm:$0x1] %v22_v0 }
   0x3   :  { %10583 = sst [smem:[#allocation118_spill]] %s10251_s2 }
   0x4   :  { %10584 = sst [smem:[#allocation119_spill]] %s10252_s3 }
   0x5   :  { %10585 = sst [smem:[#allocation120_spill]] %s10253_s4 }
   0x6   :  { %24 = vsyncpa [#allocation5], 0 }
   0x7   :  { %26 = vsyncpa [#allocation5 + $0x1], 0  ;;  %s6549_s26 = smov 0   ;;  %s6551_s27 = smov 0  }
   0x8   :  { %s6553_s28 = smov 0   ;;  %s6555_s29 = smov 0  }
   0x9 LB: > { %s6570_s16 = sadd.s32 4294967295, %s6402_s29   ;;  %s5958_s0 = sadd.s32 4294967294, %s6402_s29   ;;  %s6402_s29 = sphi %s6555_s29, %s11148_s29   ;;  %s6398_s28 = sphi %s6553_s28, %s11147_s28   ;;  %s6394_s27 = sphi %s6551_s27, %s11146_s27   ;;  %s6390_s26 = sphi %s6549_s26, %s11145_s26  }
   0xa   : > { %s6574_s30 = sadd.s32 1, %s6402_s29   ;;  %s401_s18 = sadd.s32 1, %s6398_s28 }
   0xb   : > { %s398_s19 = ssub.s32 %s6402_s29, %s6574_s30  ;;  %p411_p0 = scmp.ne.s32.totalorder %s6398_s28, %s6394_s27 }
   0xc   : > { %p399_p1 = scmp.eq.s32.totalorder %s398_s19, 0  ;;  %p412_p2 = scmp.eq.s32.totalorder %s6570_s16, 1 }
   0xd   : > { %p417_p3 = scmp.ne.s32.totalorder %s6394_s27, %s6390_s26  ;;  %p418_p4 = scmp.eq.s32.totalorder %s5958_s0, 1 }
   0xe   : > { %s6585_s1 = scalar_select %p399_p1, %s6398_s28, %s401_s18  }
   0xf   : > { %p6587_p5 = por %p412_p2, %p411_p0  ;;  %p6591_p6 = por %p418_p4, %p417_p3 }
  0x10   : > { %p5961_p7 = scmp.ge.s32.totalorder %s6402_s29, 1  ;;  %p492_p8 = scmp.lt.s32.totalorder %s6402_s29, 3 }
  0x12   : > { %p493_p9 = pnand %p5961_p7, %p492_p8 }
  0x14   : > { %496 = sbr.rel (%p493_p9) target bundleno = 6649 (0x19f9), region = 88 }
  0x1b   : > { %s10588_s2 = sld [smem:[#allocation118_spill]]  ;;  %s10589_s0 = sld [smem:[#allocation117_spill]]  ;;  %v10300_v3 = vmov 1   ;;  %v10298_v4 = vmov 0   ;;  %v10288_v9 = vmov 3   ;;  %v10286_v10 = vmov 6  }
  0x1c   : > { %6073 = vset.pattern.permute.xlu1 %v10300_v3  ;;  %6072 = vset.pattern.permute.xlu0 %v10298_v4  ;;  %s10590_s4 = sld [smem:[#allocation120_spill]]  ;;  %s10591_s3 = sld [smem:[#allocation119_spill]]  ;;  %v10284_v11 = vmov 12   ;;  %v10282_v12 = vmov 18   ;;  %v10290_v13 = vmov 9   ;;  %v10280_v14 = vmov 21  }
  0x1d   : > { %v10296_v15 = vmov 4   ;;  %v10274_v16 = vmov 15   ;;  %v10294_v17 = vmov 7   ;;  %v10278_v18 = vmov 10   ;;  %p544_p10 = scmp.lt.s32.totalorder %s6570_s16, 1  ;;  %s10593_s23 = sld [smem:[#allocation116_spill]] }
  0x1e   : > { %v10276_v19 = vmov 13   ;;  %v10272_v20 = vmov 16   ;;  %v10270_v21 = vmov 19   ;;  %v10268_v22 = vmov 22   ;;  %s10398_s25 = smov 127   ;;  %s6432_s19 = smov 124  }
  0x1f   : > { %v10267_v27 = vlaneseq  ;;  %vm927_vm1 = vcmask 1039360   ;;  %vm1255_vm2 = vcmask 1031168   ;;  %vm1997_vm3 = vcmask 7168  }
  0x20   : > { %vm2634_vm4 = vcmask 1014784   ;;  %vm3376_vm5 = vcmask 15360   ;;  %vm4030_vm6 = vcmask 982016   ;;  %vm4684_vm7 = vcmask 23552  }
  0x21   : > { %v564_v1 = vld [vmem:[%s10588_s2] sm:$0xff]  ;;  %s545_s2 = scalar_select %p544_p10, %s6570_s16, 1  ;;  %v6688_v30 = vshrl.u32 %v10267_v27, 7  ;;  %vm5377_vm8 = vcmask 1022976  }
  0x22   : > { %v563_v2 = vld [vmem:[%s10589_s0] sm:$0xff]  ;;  %567 = vperm.xlu0 %6072, %v564_v1   ;;  %v629_v6 = vld [vmem:[%s10590_s4 + $0x8] sm:$0xff]  ;;  %s10513_s0 = smov 126  }
  0x23   : > { %599 = vperm.xlu1 %6073, %v563_v2   ;;  %v628_v5 = vld [vmem:[%s10590_s4] sm:$0xff]  ;;  %v6621_v8 = vld [vmem:[%s10591_s3 + $0x8] sm:$0xff]  ;;  %s5980_s18 = sshll.u32 %s545_s2, 2  ;;  %10592 = vst [vmem:[#allocation7_spill] sm:$0xff] %v6688_v30  ;;  %v6694_v31 = vsub.s32 0, %v6688_v30  ;;  %v6704_v37 = vsub.s32 1, %v6688_v30 }
  0x24   : > { %v6615_v7 = vld [vmem:[%s10591_s3] sm:$0xff]  ;;  %s548_s24 = scalar_lea.vmem %s10593_s23, %s5980_s18  ;;  %v6741_v59 = vsub.s32 2, %v6688_v30  ;;  %v6747_v63 = vsub.s32 3, %v6688_v30  ;;  %s6431_s2 = smov 1  }
  0x25   : > { %10594 = vst [vmem:[#allocation8_spill] sm:$0xff] %v6694_v31  ;;  %v562_v34 = vld [vmem:[%s548_s24] sm:$0xf]  ;;  %10595 = vst [vmem:[#allocation9_spill] sm:$0xff] %v6704_v37  ;;  %s10512_s24 = smov 2   ;;  %s6453_s23 = smov 125  }
  0x26   : > { %572 = vperm.xlu0 %6072, %v563_v2   ;;  %v579_v35 = vrot.slane %v562_v34, %v6694_v31  ;;  %v605_v40 = vrot.slane %v562_v34, %v6704_v37  ;;  %10600 = vst [vmem:[#allocation14_spill] sm:$0xff] %v6741_v59  ;;  %v583_v60 = vrot.slane %v562_v34, %v6741_v59  ;;  %10602 = vst [vmem:[#allocation16_spill] sm:$0xff] %v6747_v63 }
  0x27   : > { %6074 = vset.pattern.permute.xlu1 %v10298_v4 }
  0x28   : > { %632 = vperm.xlu1 %6074, %v628_v5   ;;  %v589_v39 = vrot.slane %v579_v35, %v6694_v31  ;;  %v615_v44 = vrot.slane %v605_v40, %v6704_v37  ;;  %v593_v0 = vrot.slane %v583_v60, %v6694_v31  ;;  %v609_v5 = vrot.slane %v562_v34, %v6747_v63 }
  0x29   : > { %v6769_v34 = vsub.s32 4, %v6688_v30 }
  0x2a   : > { %637 = vperm.xlu0 %6072, %v629_v6   ;;  %v554_v6 = vand.u32 127, %v10267_v27 }
  0x2b   : > { %10603 = vst [vmem:[#allocation17_spill] sm:$0xff] %v6769_v34 }
  0x2c   : > { %647 = vperm.xlu1 %6074, %v6615_v7  }
  0x2e   : > { %652 = vperm.xlu0 %6072, %v6621_v8  }
  0x30   : > { %6075 = vset.pattern.permute.xlu1 %v10288_v9 }
  0x31   : > { %680 = vperm.xlu1 %6075, %v6615_v7  }
  0x32   : > { %6076 = vset.pattern.permute.xlu0 %v10288_v9 }
  0x33   : > { %684 = vperm.xlu0 %6076, %v6621_v8  }
  0x35   : > { %6077 = vset.pattern.permute.xlu1 %v10286_v10 }
  0x36   : > { %712 = vperm.xlu1 %6077, %v6615_v7  }
  0x37   : > { %6080 = vset.pattern.permute.xlu0 %v10284_v11 }
  0x38   : > { %780 = vperm.xlu0 %6080, %v6621_v8  }
  0x3a   : > { %716 = vperm.xlu1 %6077, %v6621_v8  }
  0x3c   : > { %6082 = vset.pattern.permute.xlu0 %v10282_v12 }
  0x3d   : > { %840 = vperm.xlu0 %6082, %v6615_v7  }
  0x3e   : > { %6078 = vset.pattern.permute.xlu1 %v10290_v13 }
  0x3f   : > { %748 = vperm.xlu1 %6078, %v6621_v8  }
  0x41   : > { %6085 = vset.pattern.permute.xlu0 %v10280_v14 }
  0x42   : > { %876 = vperm.xlu0 %6085, %v6621_v8  }
  0x43   : > { %6079 = vset.pattern.permute.xlu1 %v10284_v11 }
  0x44   : > { %776 = vperm.xlu1 %6079, %v6615_v7  }
  0x46   : > { %6087 = vset.pattern.permute.xlu0 %v10296_v15 }
  0x47   : > { %943 = vperm.xlu0 %6087, %v6615_v7  }
  0x48   : > { %6081 = vset.pattern.permute.xlu1 %v10274_v16 }
  0x49   : > { %808 = vperm.xlu1 %6081, %v6615_v7  }
  0x4b   : > { %6090 = vset.pattern.permute.xlu0 %v10294_v17 }
  0x4c   : > { %985 = vperm.xlu0 %6090, %v6621_v8  }
  0x4d   : > { %812 = vperm.xlu1 %6081, %v6621_v8  }
  0x50   : > { %6091 = vset.pattern.permute.xlu0 %v10278_v18 }
  0x51   : > { %6083 = vset.pattern.permute.xlu1 %v10282_v12  ;;  %1019 = vperm.xlu0 %6091, %v6615_v7  }
  0x52   : > { %844 = vperm.xlu1 %6083, %v6621_v8  }
  0x55   : > { %6094 = vset.pattern.permute.xlu0 %v10276_v19 }
  0x56   : > { %6084 = vset.pattern.permute.xlu1 %v10280_v14  ;;  %1061 = vperm.xlu0 %6094, %v6621_v8  }
  0x57   : > { %872 = vperm.xlu1 %6084, %v6615_v7  }
  0x5a   : > { %6095 = vset.pattern.permute.xlu0 %v10272_v20 }
  0x5b   : > { %6086 = vset.pattern.permute.xlu1 %v10300_v3  ;;  %1095 = vperm.xlu0 %6095, %v6615_v7  }
  0x5c   : > { %904 = vperm.xlu1 %6086, %v6615_v7  }
  0x5f   : > { %6098 = vset.pattern.permute.xlu0 %v10270_v21 }
  0x60   : > { %908 = vperm.xlu1 %6086, %v6621_v8   ;;  %1137 = vperm.xlu0 %6098, %v6621_v8  }
  0x64   : > { %6088 = vset.pattern.permute.xlu1 %v10296_v15  ;;  %6099 = vset.pattern.permute.xlu0 %v10268_v22 }
  0x65   : > { %947 = vperm.xlu1 %6088, %v6621_v8  }
  0x69   : > { %6089 = vset.pattern.permute.xlu1 %v10294_v17 }
  0x6a   : > { %981 = vperm.xlu1 %6089, %v6615_v7  }
  0x6e   : > { %6092 = vset.pattern.permute.xlu1 %v10278_v18 }
  0x6f   : > { %1023 = vperm.xlu1 %6092, %v6621_v8  }
  0x73   : > { %6093 = vset.pattern.permute.xlu1 %v10276_v19 }
  0x74   : > { %1057 = vperm.xlu1 %6093, %v6615_v7  }
  0x78   : > { %6096 = vset.pattern.permute.xlu1 %v10272_v20 }
  0x79   : > { %1099 = vperm.xlu1 %6096, %v6621_v8  }
  0x7d   : > { %6097 = vset.pattern.permute.xlu1 %v10270_v21 }
  0x7e   : > { %1133 = vperm.xlu1 %6097, %v6615_v7  }
  0x82   : > { %6100 = vset.pattern.permute.xlu1 %v10268_v22 }
  0xa1   : > { %v568_v23 = vpop.permute.xlu0 %567 }
  0xa2   : > { %v6677_v24 = vpop.permute.xlu1 %599 }
  0xa3   : > { %v620_v48 = vmul.f32 %v615_v44, %v6677_v24  ;;  %v619_v44 = vrot.slane %v609_v5, %v6704_v37 }
  0xa5   : > { %v573_v25 = vpop.permute.xlu0 %572 }
  0xa6   : > { %v594_v43 = vmul.f32 %v589_v39, %v573_v25  ;;  %v595_v40 = vmul.f32 %v593_v0, %v573_v25  ;;  %v621_v0 = vmul.f32 %v619_v44, %v6677_v24 }
  0xa7   : > { %v6681_v26 = vpop.permute.xlu1 %632 }
  0xa8   : > { %v596_v46 = vadd.f32 %v594_v43, %v568_v23 }
  0xa9   : > { %v6683_v28 = vpop.permute.xlu0 %637 }
  0xaa   : > { %v6720_v49 = vadd.f32 %v620_v48, %v596_v46  ;;  %v555_v46 = vadd.s32 128, %v554_v6 }
  0xab   : > { %v6685_v29 = vpop.permute.xlu1 %647 }
  0xac   : > { %10597 = vst [vmem:[#allocation11_spill] sm:$0xff] %v6720_v49  ;;  %v6728_v52 = vrot.slane %v6720_v49, %v6704_v37  ;;  %v6752_v1 = vrot.slane %v6720_v49, %v6694_v31  ;;  %v6773_v60 = vrot.slane %v6720_v49, %v6741_v59  ;;  %vm557_vm0 = vcmp.lt.s32.totalorder %v555_v46, 200 }
  0xad   : > { %v6696_v32 = vpop.permute.xlu0 %652  ;;  %v6785_v27 = vrot.slane %v6720_v49, %v6769_v34  ;;  %v6805_v21 = vrot.slane %v6720_v49, %v6747_v63 }
  0xb0   : > { %v6698_v33 = vpop.permute.xlu1 %680 }
  0xb2   : > { %v6701_v36 = vpop.permute.xlu0 %684 }
  0xb5   : > { %v6706_v38 = vpop.permute.xlu1 %712 }
  0xb7   : > { %v6710_v41 = vpop.permute.xlu0 %780 }
  0xb9   : > { %v6712_v42 = vpop.permute.xlu1 %716 }
  0xbc   : > { %v6715_v45 = vpop.permute.xlu0 %840 }
  0xbd   : > { %10596 = vst [vmem:[#allocation10_spill] sm:$0xff] %v6715_v45 }
  0xbe   : > { %v6717_v47 = vpop.permute.xlu1 %748 }
  0xc1   : > { %v6722_v50 = vpop.permute.xlu0 %876 }
  0xc3   : > { %v6724_v51 = vpop.permute.xlu1 %776 }
  0xc4   : > { %10598 = vst [vmem:[#allocation12_spill] sm:$0xff] %v6724_v51 }
  0xc6   : > { %v944_v53 = vpop.permute.xlu0 %943 }
  0xc7   : > { %v950_v54 = vmul.f32 %v944_v53, %v6728_v52 }
  0xc8   : > { %v6731_v55 = vpop.permute.xlu1 %808 }
  0xc9   : > { %10599 = vst [vmem:[#allocation13_spill] sm:$0xff] %v6731_v55  ;;  %958 = vrot.lane.b32.xlu1 %v950_v54, %s10398_s25  ;;  %v597_v54 = vadd.f32 %v595_v40, %v568_v23  ;;  %v6781_v40 = vsub.s32 6, %v6688_v30 }
  0xcb   : > { %v6736_v57 = vpop.permute.xlu0 %985  ;;  %v623_v23 = vadd.f32 %v621_v0, %v597_v54  ;;  %10604 = vst [vmem:[#allocation18_spill] sm:$0xff] %v6781_v40  ;;  %v6799_v22 = vrot.slane %v6720_v49, %v6781_v40 }
  0xcc   : > { %v6734_v56 = vpop.permute.xlu1 %812  ;;  %v990_v5 = vmul.f32 %v6736_v57, %v6773_v60 }
  0xd0   : > { %v1020_v62 = vpop.permute.xlu0 %1019 }
  0xd1   : > { %v6738_v58 = vpop.permute.xlu1 %844  ;;  %v1026_v20 = vmul.f32 %v1020_v62, %v6805_v21 }
  0xd5   : > { %v6760_v39 = vpop.permute.xlu0 %1061 }
  0xd6   : > { %v6744_v61 = vpop.permute.xlu1 %872  ;;  %v1066_v44 = vmul.f32 %v6760_v39, %v6785_v27 }
  0xd7   : > { %10601 = vst [vmem:[#allocation15_spill] sm:$0xff] %v6744_v61 }
  0xda   : > { %v1096_v25 = vpop.permute.xlu0 %1095 }
  0xdb   : > { %v6754_v2 = vpop.permute.xlu1 %904 }
  0xdc   : > { %v911_v35 = vmul.f32 %v6754_v2, %v6752_v1 }
  0xde   : > { %919 = vrot.lane.b32.xlu0 %v911_v35, %s10398_s25 }
  0xdf   : > { %v6763_v43 = vpop.permute.xlu1 %908  ;;  %v1138_v46 = vpop.permute.xlu0 %1137 }
  0xe0   : > { %v913_v48 = vmul.f32 %v6763_v43, %v6752_v1 }
  0xe2   : > { %923 = vrot.lane.b32.xlu0 %v913_v48, %s10398_s25  ;;  %v10302_v48 = vmov 0.0  }
  0xe3   : > { %v6789_v24 = vsel %vm557_vm0, 1.0, %v10302_v48 }
  0xe4   : > { %v948_v6 = vpop.permute.xlu1 %947  ;;  %10605 = vst [vmem:[#allocation19_spill] sm:$0xff] %v6789_v24  ;;  %v6795_v0 = vmul.f32 %v6789_v24, %v623_v23 }
  0xe5   : > { %v952_v35 = vmul.f32 %v948_v6, %v6728_v52 }
  0xe6   : > { %1000 = vrot.lane.b32.xlu0 %v990_v5, %s10398_s25  ;;  %10606 = vst [vmem:[#allocation20_spill] sm:$0xff] %v6795_v0  ;;  %v6811_v23 = vrot.slane %v6795_v0, %v6704_v37  ;;  %v6826_v12 = vrot.slane %v6795_v0, %v6747_v63 }
  0xe7   : > { %962 = vrot.lane.b32.xlu1 %v952_v35, %s10398_s25  ;;  %v1142_v35 = vmul.f32 %v1138_v46, %v6799_v22 }
  0xe8   : > { %v951_v19 = vmul.f32 %v944_v53, %v6811_v23  ;;  %v953_v14 = vmul.f32 %v948_v6, %v6811_v23 }
  0xe9   : > { %v982_v54 = vpop.permute.xlu1 %981 }
  0xea   : > { %v988_v5 = vmul.f32 %v982_v54, %v6773_v60  ;;  %1076 = vrot.lane.b32.xlu0 %v1066_v44, %s10398_s25 }
  0xec   : > { %996 = vrot.lane.b32.xlu1 %v988_v5, %s10398_s25  ;;  %v6820_v5 = vsub.s32 5, %v6688_v30 }
  0xee   : > { %v1024_v16 = vpop.permute.xlu1 %1023  ;;  %1152 = vrot.lane.b32.xlu0 %v1142_v35, %s10398_s25  ;;  %10607 = vst [vmem:[#allocation21_spill] sm:$0xff] %v6820_v5 }
  0xef   : > { %v1028_v44 = vmul.f32 %v1024_v16, %v6805_v21 }
  0xf0   : > { %1034 = vrot.lane.b32.xlu1 %v1026_v20, %s10398_s25  ;;  %v6832_v20 = vrot.slane %v6720_v49, %v6820_v5 }
  0xf2   : > { %960 = vrot.lane.b32.xlu0 %v951_v19, %s10398_s25  ;;  %v1027_v19 = vmul.f32 %v1020_v62, %v6826_v12  ;;  %v1102_v6 = vmul.f32 %v1096_v25, %v6832_v20 }
  0xf3   : > { %v1058_v18 = vpop.permute.xlu1 %1057 }
  0xf4   : > { %1038 = vrot.lane.b32.xlu1 %v1028_v44, %s10398_s25  ;;  %v1064_v53 = vmul.f32 %v1058_v18, %v6785_v27  ;;  %v1029_v44 = vmul.f32 %v1024_v16, %v6826_v12  ;;  %v6852_v16 = vrot.slane %v6795_v0, %v6694_v31 }
  0xf6   : > { %964 = vrot.lane.b32.xlu0 %v953_v14, %s10398_s25  ;;  %v6842_v14 = vrot.slane %v6795_v0, %v6820_v5 }
  0xf8   : > { %1072 = vrot.lane.b32.xlu1 %v1064_v53, %s10398_s25  ;;  %v1100_v35 = vpop.permute.xlu1 %1099  ;;  %v1103_v53 = vmul.f32 %v1096_v25, %v6842_v14  ;;  %v6865_v25 = vrot.slane %v6795_v0, %v6741_v59 }
  0xf9   : > { %v1104_v11 = vmul.f32 %v1100_v35, %v6832_v20 }
  0xfa   : > { %1036 = vrot.lane.b32.xlu0 %v1027_v19, %s10398_s25  ;;  %v1105_v19 = vmul.f32 %v1100_v35, %v6842_v14  ;;  %v6874_v35 = vrot.slane %v6795_v0, %v6769_v34 }
  0xfc   : > { %1110 = vrot.lane.b32.xlu1 %v1102_v6, %s10398_s25  ;;  %v912_v6 = vmul.f32 %v6754_v2, %v6852_v16  ;;  %v991_v2 = vmul.f32 %v6736_v57, %v6865_v25 }
  0xfd   : > { %v1134_v62 = vpop.permute.xlu1 %1133 }
  0xfe   : > { %1040 = vrot.lane.b32.xlu0 %v1029_v44, %s10398_s25  ;;  %v1140_v10 = vmul.f32 %v1134_v62, %v6799_v22  ;;  %v1067_v44 = vmul.f32 %v6760_v39, %v6874_v35 }
 0x100   : > { %1114 = vrot.lane.b32.xlu1 %v1104_v11, %s10398_s25  ;;  %v914_v11 = vmul.f32 %v6763_v43, %v6852_v16  ;;  %v1065_v43 = vmul.f32 %v1058_v18, %v6874_v35  ;;  %v10292_v18 = vmov 2  }
 0x102   : > { %1112 = vrot.lane.b32.xlu0 %v1103_v53, %s10398_s25 }
 0x104   : > { %1148 = vrot.lane.b32.xlu1 %v1140_v10, %s10398_s25  ;;  %v989_v10 = vmul.f32 %v982_v54, %v6865_v25  ;;  %v6883_v54 = vrot.slane %v6795_v0, %v6781_v40 }
 0x106   : > { %1116 = vrot.lane.b32.xlu0 %v1105_v19, %s10398_s25  ;;  %v1141_v57 = vmul.f32 %v1134_v62, %v6883_v54  ;;  %v1143_v53 = vmul.f32 %v1138_v46, %v6883_v54 }
 0x108   : > { %921 = vrot.lane.b32.xlu1 %v912_v6, %s10398_s25 }
 0x10a   : > { %1171 = vperm.xlu0 %6099, %v6615_v7  }
 0x10c   : > { %925 = vrot.lane.b32.xlu1 %v914_v11, %s10398_s25 }
 0x10e   : > { %6102 = vset.pattern.permute.xlu0 %v10292_v18 }
 0x110   : > { %998 = vrot.lane.b32.xlu1 %v989_v10, %s10398_s25 }
 0x114   : > { %1002 = vrot.lane.b32.xlu1 %v991_v2, %s10398_s25 }
 0x118   : > { %1074 = vrot.lane.b32.xlu1 %v1065_v43, %s10398_s25 }
 0x11c   : > { %1078 = vrot.lane.b32.xlu1 %v1067_v44, %s10398_s25 }
 0x120   : > { %1150 = vrot.lane.b32.xlu1 %v1141_v57, %s10398_s25 }
 0x124   : > { %1154 = vrot.lane.b32.xlu1 %v1143_v53, %s10398_s25 }
 0x128   : > { %1175 = vperm.xlu1 %6100, %v6621_v8  }
 0x12c   : > { %6101 = vset.pattern.permute.xlu1 %v10292_v18 }
 0x13b   : > { %v6897_v6 = vpop.permute.xlu1 %958 }
 0x13c   : > { %10609 = vst [vmem:[#allocation23_spill] sm:$0xff] %v6897_v6 }
 0x150   : > { %v6893_v39 = vpop.permute.xlu0 %919 }
 0x151   : > { %10608 = vst [vmem:[#allocation22_spill] sm:$0xff] %v6893_v39 }
 0x154   : > { %v6895_v19 = vpop.permute.xlu0 %923 }
 0x158   : > { %v6899_v62 = vpop.permute.xlu0 %1000 }
 0x159   : > { %v6901_v11 = vpop.permute.xlu1 %962 }
 0x15c   : > { %v6903_v46 = vpop.permute.xlu0 %1076 }
 0x15e   : > { %v6905_v10 = vpop.permute.xlu1 %996 }
 0x15f   : > { %10610 = vst [vmem:[#allocation24_spill] sm:$0xff] %v6905_v10 }
 0x160   : > { %v6907_v2 = vpop.permute.xlu0 %1152 }
 0x161   : > { %10611 = vst [vmem:[#allocation25_spill] sm:$0xff] %v6907_v2 }
 0x162   : > { %v6909_v43 = vpop.permute.xlu1 %1034 }
 0x163   : > { %10612 = vst [vmem:[#allocation26_spill] sm:$0xff] %v6909_v43 }
 0x164   : > { %v6913_v57 = vpop.permute.xlu0 %960 }
 0x165   : > { %10613 = vst [vmem:[#allocation27_spill] sm:$0xff] %v6913_v57 }
 0x166   : > { %v6911_v44 = vpop.permute.xlu1 %1038 }
 0x168   : > { %v6917_v9 = vpop.permute.xlu0 %964 }
 0x16a   : > { %v6915_v53 = vpop.permute.xlu1 %1072 }
 0x16b   : > { %10614 = vst [vmem:[#allocation28_spill] sm:$0xff] %v6915_v53  ;;  %v6936_v53 = vsub.s32 7, %v6688_v30 }
 0x16c   : > { %v6923_v17 = vpop.permute.xlu0 %1036 }
 0x16d   : > { %10616 = vst [vmem:[#allocation30_spill] sm:$0xff] %v6923_v17  ;;  %10620 = vst [vmem:[#allocation34_spill] sm:$0xff] %v6936_v53  ;;  %v6944_v17 = vrot.slane %v6720_v49, %v6936_v53 }
 0x16e   : > { %v6919_v13 = vpop.permute.xlu1 %1110 }
 0x16f   : > { %10615 = vst [vmem:[#allocation29_spill] sm:$0xff] %v6919_v13 }
 0x170   : > { %v6927_v4 = vpop.permute.xlu0 %1040 }
 0x172   : > { %v6921_v18 = vpop.permute.xlu1 %1114 }
 0x174   : > { %v6931_v48 = vpop.permute.xlu0 %1112 }
 0x175   : > { %10619 = vst [vmem:[#allocation33_spill] sm:$0xff] %v6931_v48 }
 0x176   : > { %v6925_v15 = vpop.permute.xlu1 %1148 }
 0x177   : > { %10617 = vst [vmem:[#allocation31_spill] sm:$0xff] %v6925_v15  ;;  %v6948_v15 = vrot.slane %v6795_v0, %v6936_v53 }
 0x178   : > { %v6938_v43 = vpop.permute.xlu0 %1116 }
 0x179   : > { %10621 = vst [vmem:[#allocation35_spill] sm:$0xff] %v6938_v43 }
 0x17a   : > { %v6929_v3 = vpop.permute.xlu1 %921 }
 0x17b   : > { %10618 = vst [vmem:[#allocation32_spill] sm:$0xff] %v6929_v3 }
 0x17e   : > { %v6933_v24 = vpop.permute.xlu1 %925 }
 0x182   : > { %v6940_v13 = vpop.permute.xlu1 %998 }
 0x183   : > { %10622 = vst [vmem:[#allocation36_spill] sm:$0xff] %v6940_v13 }
 0x186   : > { %v6952_v57 = vpop.permute.xlu1 %1002 }
 0x189   : > { %v1172_v10 = vpop.permute.xlu0 %1171 }
 0x18a   : > { %v1178_v48 = vmul.f32 %v1172_v10, %v6944_v17  ;;  %v1179_v6 = vmul.f32 %v1172_v10, %v6948_v15  ;;  %v6956_v30 = vpop.permute.xlu1 %1074 }
 0x18b   : > { %10623 = vst [vmem:[#allocation37_spill] sm:$0xff] %v6956_v30 }
 0x18c   : > { %1188 = vrot.lane.b32.xlu0 %v1179_v6, %s10398_s25  ;;  %1186 = vrot.lane.b32.xlu1 %v1178_v48, %s10398_s25  ;;  %v10327_v48 = vmov 5  }
 0x18e   : > { %v6958_v13 = vpop.permute.xlu1 %1078 }
 0x192   : > { %v6960_v49 = vpop.permute.xlu1 %1150 }
 0x193   : > { %10624 = vst [vmem:[#allocation38_spill] sm:$0xff] %v6960_v49 }
 0x196   : > { %v6962_v39 = vpop.permute.xlu1 %1154 }
 0x197   : > { %10625 = vst [vmem:[#allocation39_spill] sm:$0xff] %v6962_v39 }
 0x1a7   : > { %v1176_v0 = vpop.permute.xlu1 %1175 }
 0x1a8   : > { %v1180_v3 = vmul.f32 %v1176_v0, %v6944_v17  ;;  %v1181_v2 = vmul.f32 %v1176_v0, %v6948_v15 }
 0x1aa   : > { %1192 = vrot.lane.b32.xlu0 %v1181_v2, %s10398_s25  ;;  %1190 = vrot.lane.b32.xlu1 %v1180_v3, %s10398_s25  ;;  %v10630_v2 = vmov 0.0   ;;  %s11115_s25 = smov 127  }
 0x1ab   : > { %v6982_v3 = vrot.slane %v10630_v2, %v6694_v31 }
 0x1ae   : > { %1216 = vperm.xlu0 %6102, %v6621_v8   ;;  %1212 = vperm.xlu1 %6101, %v6615_v7  }
 0x1b2   : > { %6103 = vset.pattern.permute.xlu0 %v10327_v48  ;;  %6104 = vset.pattern.permute.xlu1 %v10327_v48 }
 0x1fe   : > { %v6972_v6 = vpop.permute.xlu1 %1186  ;;  %v6974_v10 = vpop.permute.xlu0 %1188 }
 0x1ff   : > { %10626 = vst [vmem:[#allocation40_spill] sm:$0xff] %v6972_v6  ;;  %10627 = vst [vmem:[#allocation41_spill] sm:$0xff] %v6974_v10 }
 0x21c   : > { %v6976_v49 = vpop.permute.xlu1 %1190  ;;  %v6978_v0 = vpop.permute.xlu0 %1192 }
 0x21d   : > { %10628 = vst [vmem:[#allocation42_spill] sm:$0xff] %v6976_v49  ;;  %10629 = vst [vmem:[#allocation43_spill] sm:$0xff] %v6978_v0  ;;  %v7014_v0 = vrot.slane %v10630_v2, %v6704_v37 }
 0x22d   : > { %v1213_v30 = vpop.permute.xlu1 %1212  ;;  %v1217_v61 = vpop.permute.xlu0 %1216 }
 0x22e   : > { %v1233_v39 = vmul.f32 %v1213_v30, %v6982_v3  ;;  %v1231_v43 = vmul.f32 %v1213_v30, %v6752_v1  ;;  %v1235_v48 = vmul.f32 %v1217_v61, %v6852_v16  ;;  %v1232_v6 = vmul.f32 %v1213_v30, %v6852_v16 }
 0x22f   : > { %v1234_v31 = vmul.f32 %v1217_v61, %v6752_v1  ;;  %v1236_v10 = vmul.f32 %v1217_v61, %v6982_v3 }
 0x230   : > { %1247 = vrot.lane.b32.xlu0 %v1233_v39, %s10513_s0  ;;  %1243 = vrot.lane.b32.xlu1 %v1231_v43, %s10513_s0  ;;  %v10335_v39 = vmov 8  }
 0x234   : > { %1251 = vrot.lane.b32.xlu0 %v1235_v48, %s10513_s0  ;;  %1245 = vrot.lane.b32.xlu1 %v1232_v6, %s10513_s0 }
 0x238   : > { %1273 = vperm.xlu0 %6103, %v6615_v7   ;;  %1249 = vrot.lane.b32.xlu1 %v1234_v31, %s10513_s0 }
 0x23c   : > { %1253 = vrot.lane.b32.xlu1 %v1236_v10, %s10513_s0  ;;  %6106 = vset.pattern.permute.xlu0 %v10335_v39 }
 0x240   : > { %1277 = vperm.xlu1 %6104, %v6621_v8  }
 0x244   : > { %6105 = vset.pattern.permute.xlu1 %v10335_v39 }
 0x2a2   : > { %v7000_v30 = vpop.permute.xlu1 %1243  ;;  %v7002_v43 = vpop.permute.xlu0 %1247 }
 0x2a3   : > { %10631 = vst [vmem:[#allocation44_spill] sm:$0xff] %v7000_v30  ;;  %10632 = vst [vmem:[#allocation45_spill] sm:$0xff] %v7002_v43 }
 0x2a6   : > { %v7004_v48 = vpop.permute.xlu1 %1245  ;;  %v7006_v6 = vpop.permute.xlu0 %1251 }
 0x2a7   : > { %10633 = vst [vmem:[#allocation46_spill] sm:$0xff] %v7004_v48  ;;  %10634 = vst [vmem:[#allocation47_spill] sm:$0xff] %v7006_v6 }
 0x2aa   : > { %v7008_v31 = vpop.permute.xlu1 %1249 }
 0x2ab   : > { %10635 = vst [vmem:[#allocation48_spill] sm:$0xff] %v7008_v31 }
 0x2ae   : > { %v7018_v39 = vpop.permute.xlu1 %1253 }
 0x2af   : > { %10636 = vst [vmem:[#allocation49_spill] sm:$0xff] %v7018_v39 }
 0x2b7   : > { %v1274_v61 = vpop.permute.xlu0 %1273 }
 0x2b8   : > { %v1293_v10 = vmul.f32 %v1274_v61, %v6811_v23  ;;  %v1292_v49 = vmul.f32 %v1274_v61, %v6728_v52  ;;  %v1294_v43 = vmul.f32 %v1274_v61, %v7014_v0 }
 0x2ba   : > { %1306 = vrot.lane.b32.xlu0 %v1293_v10, %s10513_s0  ;;  %1304 = vrot.lane.b32.xlu1 %v1292_v49, %s10513_s0  ;;  %v10343_v49 = vmov 11  }
 0x2be   : > { %1308 = vrot.lane.b32.xlu1 %v1294_v43, %s10513_s0 }
 0x2bf   : > { %v1278_v30 = vpop.permute.xlu1 %1277 }
 0x2c0   : > { %v1296_v48 = vmul.f32 %v1278_v30, %v6811_v23  ;;  %v1295_v31 = vmul.f32 %v1278_v30, %v6728_v52  ;;  %v1297_v37 = vmul.f32 %v1278_v30, %v7014_v0 }
 0x2c2   : > { %1312 = vrot.lane.b32.xlu1 %v1296_v48, %s10513_s0  ;;  %1310 = vrot.lane.b32.xlu0 %v1295_v31, %s10513_s0 }
 0x2c6   : > { %1333 = vperm.xlu1 %6105, %v6615_v7   ;;  %1314 = vrot.lane.b32.xlu0 %v1297_v37, %s10513_s0  ;;  %v7044_v37 = vrot.slane %v10630_v2, %v6741_v59 }
 0x2ca   : > { %1337 = vperm.xlu0 %6106, %v6621_v8   ;;  %6108 = vset.pattern.permute.xlu1 %v10343_v49 }
 0x2ce   : > { %6107 = vset.pattern.permute.xlu0 %v10343_v49 }
 0x32c   : > { %v7032_v43 = vpop.permute.xlu1 %1304  ;;  %v7034_v61 = vpop.permute.xlu0 %1306 }
 0x32d   : > { %10637 = vst [vmem:[#allocation50_spill] sm:$0xff] %v7032_v43  ;;  %10638 = vst [vmem:[#allocation51_spill] sm:$0xff] %v7034_v61 }
 0x330   : > { %v7036_v48 = vpop.permute.xlu1 %1308 }
 0x331   : > { %10639 = vst [vmem:[#allocation52_spill] sm:$0xff] %v7036_v48 }
 0x334   : > { %v7038_v31 = vpop.permute.xlu0 %1310  ;;  %v7040_v30 = vpop.permute.xlu1 %1312 }
 0x335   : > { %10640 = vst [vmem:[#allocation53_spill] sm:$0xff] %v7038_v31  ;;  %10641 = vst [vmem:[#allocation54_spill] sm:$0xff] %v7040_v30  ;;  %v7078_v30 = vrot.slane %v10630_v2, %v6747_v63 }
 0x337   : > { %10648 = vst [vmem:[#allocation61_spill] sm:$0xff] %v7078_v30 }
 0x338   : > { %v7046_v10 = vpop.permute.xlu0 %1314 }
 0x339   : > { %10642 = vst [vmem:[#allocation55_spill] sm:$0xff] %v7046_v10 }
 0x345   : > { %v1334_v39 = vpop.permute.xlu1 %1333 }
 0x346   : > { %v1352_v6 = vmul.f32 %v1334_v39, %v6773_v60  ;;  %v1354_v49 = vmul.f32 %v1334_v39, %v7044_v37  ;;  %v1353_v43 = vmul.f32 %v1334_v39, %v6865_v25 }
 0x348   : > { %1368 = vrot.lane.b32.xlu0 %v1354_v49, %s10513_s0  ;;  %1364 = vrot.lane.b32.xlu1 %v1352_v6, %s10513_s0  ;;  %v10351_v6 = vmov 14  }
 0x349   : > { %v1338_v48 = vpop.permute.xlu0 %1337 }
 0x34a   : > { %v1356_v61 = vmul.f32 %v1338_v48, %v6865_v25  ;;  %v1355_v59 = vmul.f32 %v1338_v48, %v6773_v60  ;;  %v1357_v10 = vmul.f32 %v1338_v48, %v7044_v37 }
 0x34c   : > { %1372 = vrot.lane.b32.xlu0 %v1356_v61, %s10513_s0  ;;  %1366 = vrot.lane.b32.xlu1 %v1353_v43, %s10513_s0 }
 0x350   : > { %1393 = vperm.xlu0 %6107, %v6615_v7   ;;  %1370 = vrot.lane.b32.xlu1 %v1355_v59, %s10513_s0 }
 0x354   : > { %1374 = vrot.lane.b32.xlu1 %v1357_v10, %s10513_s0  ;;  %6110 = vset.pattern.permute.xlu0 %v10351_v6 }
 0x358   : > { %1397 = vperm.xlu1 %6108, %v6621_v8  }
 0x35c   : > { %6109 = vset.pattern.permute.xlu1 %v10351_v6 }
 0x3ba   : > { %v7064_v39 = vpop.permute.xlu1 %1364  ;;  %v7066_v49 = vpop.permute.xlu0 %1368 }
 0x3bb   : > { %10643 = vst [vmem:[#allocation56_spill] sm:$0xff] %v7064_v39  ;;  %10644 = vst [vmem:[#allocation57_spill] sm:$0xff] %v7066_v49 }
 0x3be   : > { %v7068_v43 = vpop.permute.xlu1 %1366  ;;  %v7070_v61 = vpop.permute.xlu0 %1372 }
 0x3bf   : > { %10645 = vst [vmem:[#allocation58_spill] sm:$0xff] %v7068_v43  ;;  %10646 = vst [vmem:[#allocation59_spill] sm:$0xff] %v7070_v61 }
 0x3c2   : > { %v7072_v59 = vpop.permute.xlu1 %1370 }
 0x3c3   : > { %10647 = vst [vmem:[#allocation60_spill] sm:$0xff] %v7072_v59 }
 0x3c6   : > { %v7082_v6 = vpop.permute.xlu1 %1374 }
 0x3c7   : > { %10649 = vst [vmem:[#allocation62_spill] sm:$0xff] %v7082_v6 }
 0x3cf   : > { %v1394_v48 = vpop.permute.xlu0 %1393 }
 0x3d0   : > { %v1412_v10 = vmul.f32 %v1394_v48, %v6805_v21  ;;  %v1413_v31 = vmul.f32 %v1394_v48, %v6826_v12  ;;  %v1414_v49 = vmul.f32 %v1394_v48, %v7078_v30 }
 0x3d2   : > { %1426 = vrot.lane.b32.xlu0 %v1413_v31, %s10513_s0  ;;  %1424 = vrot.lane.b32.xlu1 %v1412_v10, %s10513_s0  ;;  %v10359_v31 = vmov 17  }
 0x3d6   : > { %1428 = vrot.lane.b32.xlu1 %v1414_v49, %s10513_s0 }
 0x3d7   : > { %v1398_v39 = vpop.permute.xlu1 %1397 }
 0x3d8   : > { %v1416_v43 = vmul.f32 %v1398_v39, %v6826_v12  ;;  %v1415_v59 = vmul.f32 %v1398_v39, %v6805_v21  ;;  %v1417_v63 = vmul.f32 %v1398_v39, %v7078_v30 }
 0x3da   : > { %1432 = vrot.lane.b32.xlu1 %v1416_v43, %s10513_s0  ;;  %1430 = vrot.lane.b32.xlu0 %v1415_v59, %s10513_s0 }
 0x3de   : > { %1453 = vperm.xlu1 %6109, %v6615_v7   ;;  %1434 = vrot.lane.b32.xlu0 %v1417_v63, %s10513_s0  ;;  %v7108_v63 = vrot.slane %v10630_v2, %v6769_v34 }
 0x3e2   : > { %1457 = vperm.xlu0 %6110, %v6621_v8   ;;  %6112 = vset.pattern.permute.xlu1 %v10359_v31 }
 0x3e6   : > { %6111 = vset.pattern.permute.xlu0 %v10359_v31 }
 0x444   : > { %v7096_v49 = vpop.permute.xlu1 %1424  ;;  %v7098_v48 = vpop.permute.xlu0 %1426 }
 0x445   : > { %10650 = vst [vmem:[#allocation63_spill] sm:$0xff] %v7096_v49  ;;  %10651 = vst [vmem:[#allocation64_spill] sm:$0xff] %v7098_v48 }
 0x448   : > { %v7100_v43 = vpop.permute.xlu1 %1428 }
 0x449   : > { %10652 = vst [vmem:[#allocation65_spill] sm:$0xff] %v7100_v43 }
 0x44c   : > { %v7102_v59 = vpop.permute.xlu0 %1430  ;;  %v7104_v39 = vpop.permute.xlu1 %1432 }
 0x44d   : > { %10653 = vst [vmem:[#allocation66_spill] sm:$0xff] %v7102_v59  ;;  %10654 = vst [vmem:[#allocation67_spill] sm:$0xff] %v7104_v39  ;;  %v7142_v39 = vrot.slane %v10630_v2, %v6820_v5 }
 0x450   : > { %v7110_v10 = vpop.permute.xlu0 %1434 }
 0x451   : > { %10655 = vst [vmem:[#allocation68_spill] sm:$0xff] %v7110_v10 }
 0x45d   : > { %v1454_v6 = vpop.permute.xlu1 %1453 }
 0x45e   : > { %v1472_v61 = vmul.f32 %v1454_v6, %v6785_v27  ;;  %v1474_v31 = vmul.f32 %v1454_v6, %v7108_v63  ;;  %v1473_v49 = vmul.f32 %v1454_v6, %v6874_v35 }
 0x460   : > { %1488 = vrot.lane.b32.xlu0 %v1474_v31, %s10513_s0  ;;  %1484 = vrot.lane.b32.xlu1 %v1472_v61, %s10513_s0  ;;  %v10367_v61 = vmov 20  }
 0x461   : > { %v1458_v43 = vpop.permute.xlu0 %1457 }
 0x462   : > { %v1476_v48 = vmul.f32 %v1458_v43, %v6874_v35  ;;  %v1475_v34 = vmul.f32 %v1458_v43, %v6785_v27  ;;  %v1477_v10 = vmul.f32 %v1458_v43, %v7108_v63 }
 0x464   : > { %1492 = vrot.lane.b32.xlu0 %v1476_v48, %s10513_s0  ;;  %1486 = vrot.lane.b32.xlu1 %v1473_v49, %s10513_s0 }
 0x468   : > { %1513 = vperm.xlu0 %6111, %v6615_v7   ;;  %1490 = vrot.lane.b32.xlu1 %v1475_v34, %s10513_s0 }
 0x46c   : > { %1494 = vrot.lane.b32.xlu1 %v1477_v10, %s10513_s0  ;;  %6114 = vset.pattern.permute.xlu0 %v10367_v61 }
 0x470   : > { %1517 = vperm.xlu1 %6112, %v6621_v8  }
 0x474   : > { %6113 = vset.pattern.permute.xlu1 %v10367_v61 }
 0x4d2   : > { %v7128_v6 = vpop.permute.xlu1 %1484  ;;  %v7130_v31 = vpop.permute.xlu0 %1488 }
 0x4d3   : > { %10656 = vst [vmem:[#allocation69_spill] sm:$0xff] %v7128_v6  ;;  %10657 = vst [vmem:[#allocation70_spill] sm:$0xff] %v7130_v31 }
 0x4d6   : > { %v7132_v49 = vpop.permute.xlu1 %1486  ;;  %v7134_v48 = vpop.permute.xlu0 %1492 }
 0x4d7   : > { %10658 = vst [vmem:[#allocation71_spill] sm:$0xff] %v7132_v49  ;;  %10659 = vst [vmem:[#allocation72_spill] sm:$0xff] %v7134_v48 }
 0x4da   : > { %v7136_v34 = vpop.permute.xlu1 %1490 }
 0x4db   : > { %10660 = vst [vmem:[#allocation73_spill] sm:$0xff] %v7136_v34 }
 0x4de   : > { %v7146_v61 = vpop.permute.xlu1 %1494 }
 0x4df   : > { %10661 = vst [vmem:[#allocation74_spill] sm:$0xff] %v7146_v61 }
 0x4e7   : > { %v1514_v43 = vpop.permute.xlu0 %1513 }
 0x4e8   : > { %v1532_v10 = vmul.f32 %v1514_v43, %v6832_v20  ;;  %v1533_v59 = vmul.f32 %v1514_v43, %v6842_v14  ;;  %v1534_v31 = vmul.f32 %v1514_v43, %v7142_v39 }
 0x4ea   : > { %1546 = vrot.lane.b32.xlu0 %v1533_v59, %s10513_s0  ;;  %1544 = vrot.lane.b32.xlu1 %v1532_v10, %s10513_s0  ;;  %v10375_v59 = vmov 23  }
 0x4ee   : > { %1548 = vrot.lane.b32.xlu1 %v1534_v31, %s10513_s0 }
 0x4ef   : > { %v1518_v6 = vpop.permute.xlu1 %1517 }
 0x4f0   : > { %v1536_v49 = vmul.f32 %v1518_v6, %v6842_v14  ;;  %v1535_v34 = vmul.f32 %v1518_v6, %v6832_v20  ;;  %v1537_v5 = vmul.f32 %v1518_v6, %v7142_v39 }
 0x4f2   : > { %1552 = vrot.lane.b32.xlu1 %v1536_v49, %s10513_s0  ;;  %1550 = vrot.lane.b32.xlu0 %v1535_v34, %s10513_s0 }
 0x4f6   : > { %1573 = vperm.xlu1 %6113, %v6615_v7   ;;  %1554 = vrot.lane.b32.xlu0 %v1537_v5, %s10513_s0  ;;  %v7172_v5 = vrot.slane %v10630_v2, %v6781_v40 }
 0x4fa   : > { %1577 = vperm.xlu0 %6114, %v6621_v8   ;;  %6116 = vset.pattern.permute.xlu1 %v10375_v59 }
 0x4fe   : > { %6115 = vset.pattern.permute.xlu0 %v10375_v59 }
 0x55c   : > { %v7160_v31 = vpop.permute.xlu1 %1544  ;;  %v7162_v43 = vpop.permute.xlu0 %1546 }
 0x55d   : > { %10662 = vst [vmem:[#allocation75_spill] sm:$0xff] %v7160_v31  ;;  %10663 = vst [vmem:[#allocation76_spill] sm:$0xff] %v7162_v43 }
 0x560   : > { %v7164_v49 = vpop.permute.xlu1 %1548 }
 0x561   : > { %10664 = vst [vmem:[#allocation77_spill] sm:$0xff] %v7164_v49 }
 0x564   : > { %v7166_v34 = vpop.permute.xlu0 %1550  ;;  %v7168_v6 = vpop.permute.xlu1 %1552 }
 0x565   : > { %10665 = vst [vmem:[#allocation78_spill] sm:$0xff] %v7166_v34  ;;  %10666 = vst [vmem:[#allocation79_spill] sm:$0xff] %v7168_v6 }
 0x568   : > { %v7174_v10 = vpop.permute.xlu0 %1554 }
 0x569   : > { %10667 = vst [vmem:[#allocation80_spill] sm:$0xff] %v7174_v10 }
 0x575   : > { %v1574_v61 = vpop.permute.xlu1 %1573 }
 0x576   : > { %v1592_v48 = vmul.f32 %v1574_v61, %v6799_v22  ;;  %v1594_v59 = vmul.f32 %v1574_v61, %v7172_v5  ;;  %v1593_v31 = vmul.f32 %v1574_v61, %v6883_v54  ;;  %v10669_v61 = vmov 0  }
 0x578   : > { %1608 = vrot.lane.b32.xlu0 %v1594_v59, %s10513_s0  ;;  %1604 = vrot.lane.b32.xlu1 %v1592_v48, %s10513_s0  ;;  %v10668_v48 = vmov 1  }
 0x579   : > { %v1578_v49 = vpop.permute.xlu0 %1577 }
 0x57a   : > { %v1596_v43 = vmul.f32 %v1578_v49, %v6883_v54  ;;  %v1595_v40 = vmul.f32 %v1578_v49, %v6799_v22  ;;  %v1597_v10 = vmul.f32 %v1578_v49, %v7172_v5  ;;  %v7204_v49 = vrot.slane %v10630_v2, %v6936_v53 }
 0x57b   : > { %v10681_v53 = vmov 5  }
 0x57c   : > { %1612 = vrot.lane.b32.xlu0 %v1596_v43, %s10513_s0  ;;  %1606 = vrot.lane.b32.xlu1 %v1593_v31, %s10513_s0 }
 0x580   : > { %1633 = vperm.xlu0 %6115, %v6615_v7   ;;  %1610 = vrot.lane.b32.xlu1 %v1595_v40, %s10513_s0 }
 0x584   : > { %1614 = vrot.lane.b32.xlu1 %v1597_v10, %s10513_s0  ;;  %6118 = vset.pattern.permute.xlu0 %v10668_v48 }
 0x588   : > { %1637 = vperm.xlu1 %6116, %v6621_v8  }
 0x58c   : > { %6117 = vset.pattern.permute.xlu1 %v10669_v61 }
 0x5ea   : > { %v7192_v59 = vpop.permute.xlu1 %1604  ;;  %v7194_v43 = vpop.permute.xlu0 %1608 }
 0x5eb   : > { %10670 = vst [vmem:[#allocation81_spill] sm:$0xff] %v7192_v59  ;;  %10671 = vst [vmem:[#allocation82_spill] sm:$0xff] %v7194_v43 }
 0x5ee   : > { %v7196_v31 = vpop.permute.xlu1 %1606  ;;  %v7198_v34 = vpop.permute.xlu0 %1612 }
 0x5ef   : > { %10672 = vst [vmem:[#allocation83_spill] sm:$0xff] %v7196_v31  ;;  %10673 = vst [vmem:[#allocation84_spill] sm:$0xff] %v7198_v34 }
 0x5f2   : > { %v7200_v6 = vpop.permute.xlu1 %1610 }
 0x5f3   : > { %10674 = vst [vmem:[#allocation85_spill] sm:$0xff] %v7200_v6 }
 0x5f6   : > { %v7211_v43 = vpop.permute.xlu1 %1614 }
 0x5f7   : > { %10675 = vst [vmem:[#allocation86_spill] sm:$0xff] %v7211_v43  ;;  %v766_v43 = vmul.f32 %v7078_v30, %v6717_v47  ;;  %v830_v30 = vmul.f32 %v7142_v39, %v6734_v56 }
 0x5ff   : > { %v1634_v40 = vpop.permute.xlu0 %1633 }
 0x600   : > { %v1652_v10 = vmul.f32 %v1634_v40, %v6944_v17  ;;  %v1653_v8 = vmul.f32 %v1634_v40, %v6948_v15  ;;  %v1654_v55 = vmul.f32 %v1634_v40, %v7204_v49  ;;  %v1718_v40 = vld [vmem:[%s10255_s6] sm:$0xff] }
 0x602   : > { %1666 = vrot.lane.b32.xlu0 %v1653_v8, %s10513_s0  ;;  %1664 = vrot.lane.b32.xlu1 %v1652_v10, %s10513_s0  ;;  %v1717_v10 = vld [vmem:[%s10254_s5 + $0x8] sm:$0xff] }
 0x606   : > { %1668 = vrot.lane.b32.xlu1 %v1654_v55, %s10513_s0  ;;  %v1716_v55 = vld [vmem:[%s10254_s5] sm:$0xff] }
 0x607   : > { %v1638_v59 = vpop.permute.xlu1 %1637 }
 0x608   : > { %v1655_v31 = vmul.f32 %v1638_v59, %v6944_v17  ;;  %v1656_v2 = vmul.f32 %v1638_v59, %v6948_v15  ;;  %v1657_v8 = vmul.f32 %v1638_v59, %v7204_v49  ;;  %v10677_v59 = vmov 7  }
 0x60a   : > { %1672 = vrot.lane.b32.xlu1 %v1656_v2, %s10513_s0  ;;  %1670 = vrot.lane.b32.xlu0 %v1655_v31, %s10513_s0  ;;  %v10676_v31 = vmov 4   ;;  %v10678_v2 = vmov 2  }
 0x60e   : > { %1674 = vrot.lane.b32.xlu0 %v1657_v8, %s10513_s0  ;;  %1722 = vperm.xlu1 %6117, %v1718_v40   ;;  %v10679_v40 = vmov 9   ;;  %v10680_v8 = vmov 3  }
 0x612   : > { %1765 = vperm.xlu0 %6118, %v1716_v55   ;;  %1732 = vperm.xlu1 %6117, %v1716_v55  }
 0x616   : > { %6122 = vset.pattern.permute.xlu0 %v10676_v31  ;;  %1737 = vperm.xlu1 %6117, %v1717_v10  }
 0x617   : > { %1861 = vperm.xlu0 %6122, %v1716_v55  }
 0x61a   : > { %6119 = vset.pattern.permute.xlu1 %v10668_v48  ;;  %v10682_v48 = vmov 6  }
 0x61b   : > { %6126 = vset.pattern.permute.xlu0 %v10677_v59  ;;  %1769 = vperm.xlu1 %6119, %v1717_v10  }
 0x61c   : > { %1957 = vperm.xlu0 %6126, %v1716_v55  }
 0x61f   : > { %6120 = vset.pattern.permute.xlu1 %v10678_v2  ;;  %v672_v2 = vmul.f32 %v6852_v16, %v6696_v32 }
 0x620   : > { %6127 = vset.pattern.permute.xlu0 %v10679_v40  ;;  %1797 = vperm.xlu1 %6120, %v1716_v55  }
 0x621   : > { %744 = vperm.xlu0 %6127, %v6615_v7   ;;  %v670_v7 = vmul.f32 %v6982_v3, %v6696_v32 }
 0x623   : > { %v676_v40 = vadd.f32 %v670_v7, %v6683_v28 }
 0x624   : > { %6121 = vset.pattern.permute.xlu1 %v10680_v8  ;;  %v735_v8 = vmul.f32 %v6773_v60, %v6712_v42 }
 0x625   : > { %1829 = vperm.xlu1 %6121, %v1716_v55  }
 0x629   : > { %1833 = vperm.xlu1 %6121, %v1717_v10  }
 0x62d   : > { %6123 = vset.pattern.permute.xlu1 %v10676_v31 }
 0x62e   : > { %1865 = vperm.xlu1 %6123, %v1717_v10  }
 0x632   : > { %6124 = vset.pattern.permute.xlu1 %v10681_v53  ;;  %v702_v53 = vmul.f32 %v7014_v0, %v6701_v36 }
 0x633   : > { %1893 = vperm.xlu1 %6124, %v1716_v55  }
 0x634   : > { %v708_v31 = vadd.f32 %v702_v53, %v676_v40  ;;  %v768_v40 = vmul.f32 %v6826_v12, %v6717_v47 }
 0x637   : > { %6125 = vset.pattern.permute.xlu1 %v10682_v48  ;;  %v734_v48 = vmul.f32 %v7044_v37, %v6712_v42 }
 0x638   : > { %1925 = vperm.xlu1 %6125, %v1716_v55   ;;  %v671_v55 = vmul.f32 %v6752_v1, %v6696_v32  ;;  %v736_v32 = vmul.f32 %v6865_v25, %v6712_v42 }
 0x639   : > { %v740_v53 = vadd.f32 %v734_v48, %v708_v31  ;;  %v800_v48 = vmul.f32 %v6874_v35, %v6710_v41 }
 0x63a   : > { %v677_v7 = vadd.f32 %v671_v55, %v6683_v28 }
 0x63b   : > { %v772_v51 = vadd.f32 %v766_v43, %v740_v53 }
 0x63c   : > { %1929 = vperm.xlu1 %6125, %v1717_v10  }
 0x640   : > { %6128 = vset.pattern.permute.xlu1 %v10677_v59  ;;  %v703_v59 = vmul.f32 %v6728_v52, %v6701_v36 }
 0x641   : > { %1961 = vperm.xlu1 %6128, %v1717_v10   ;;  %v678_v10 = vadd.f32 %v672_v2, %v6683_v28  ;;  %v767_v2 = vmul.f32 %v6805_v21, %v6717_v47  ;;  %v798_v28 = vmul.f32 %v7108_v63, %v6710_v41  ;;  %v831_v47 = vmul.f32 %v6832_v20, %v6734_v56 }
 0x642   : > { %v709_v6 = vadd.f32 %v703_v59, %v677_v7  ;;  %v799_v59 = vmul.f32 %v6785_v27, %v6710_v41  ;;  %v863_v7 = vmul.f32 %v6799_v22, %v6738_v58  ;;  %v864_v41 = vmul.f32 %v6883_v54, %v6738_v58 }
 0x644   : > { %v741_v34 = vadd.f32 %v735_v8, %v709_v6  ;;  %v832_v6 = vmul.f32 %v6842_v14, %v6734_v56 }
 0x645   : > { %6129 = vset.pattern.permute.xlu1 %v10669_v61  ;;  %v704_v61 = vmul.f32 %v6811_v23, %v6701_v36 }
 0x646   : > { %v773_v45 = vadd.f32 %v767_v2, %v741_v34  ;;  %v862_v34 = vmul.f32 %v7172_v5, %v6738_v58  ;;  %v929_v58 = vsel %vm927_vm1, %v6895_v19, %v6933_v24 }
 0x647   : > { %v710_v36 = vadd.f32 %v704_v61, %v678_v10  ;;  %v804_v61 = vadd.f32 %v798_v28, %v772_v51  ;;  %v894_v51 = vmul.f32 %v7204_v49, %v6722_v50 }
 0x648   : > { %v805_v43 = vadd.f32 %v799_v59, %v773_v45 }
 0x649   : > { %v742_v55 = vadd.f32 %v736_v32, %v710_v36  ;;  %v836_v10 = vadd.f32 %v830_v30, %v804_v61  ;;  %v896_v30 = vmul.f32 %v6948_v15, %v6722_v50  ;;  %v669_v61 = vmul.f32 %v6852_v16, %v6685_v29 }
 0x64a   : > { %v837_v32 = vadd.f32 %v831_v47, %v805_v43  ;;  %v667_v43 = vmul.f32 %v6982_v3, %v6685_v29 }
 0x64b   : > { %v774_v42 = vadd.f32 %v768_v40, %v742_v55  ;;  %v868_v56 = vadd.f32 %v862_v34, %v836_v10  ;;  %v895_v40 = vmul.f32 %v6944_v17, %v6722_v50  ;;  %v668_v34 = vmul.f32 %v6752_v1, %v6685_v29 }
 0x64c   : > { %v869_v53 = vadd.f32 %v863_v7, %v837_v32  ;;  %v675_v10 = vadd.f32 %v669_v61, %v6681_v26  ;;  %v699_v29 = vmul.f32 %v7014_v0, %v6698_v33  ;;  %v10683_v61 = vld [vmem:[#allocation10_spill] sm:$0xff] }
 0x64d   : > { %v806_v8 = vadd.f32 %v800_v48, %v774_v42  ;;  %v900_v28 = vadd.f32 %v894_v51, %v868_v56  ;;  %v701_v51 = vmul.f32 %v6811_v23, %v6698_v33 }
 0x64e   : > { %v901_v59 = vadd.f32 %v895_v40, %v869_v53  ;;  %v732_v53 = vmul.f32 %v6773_v60, %v6706_v38 }
 0x64f   : > { %v838_v2 = vadd.f32 %v832_v6, %v806_v8  ;;  %v939_v55 = vadd.f32 %v6895_v19, %v900_v28  ;;  %v967_v19 = vsel %vm927_vm1, %v6901_v11, %v6917_v9  ;;  %v1005_v8 = vsel %vm927_vm1, %v6899_v62, %v6952_v57 }
 0x650   : > { %v940_v6 = vadd.f32 %v929_v58, %v901_v59 }
 0x651   : > { %v870_v45 = vadd.f32 %v864_v41, %v838_v2  ;;  %v977_v47 = vadd.f32 %v6901_v11, %v939_v55  ;;  %v674_v41 = vadd.f32 %v668_v34, %v6681_v26  ;;  %v700_v11 = vmul.f32 %v6728_v52, %v6698_v33 }
 0x652   : > { %v978_v7 = vadd.f32 %v967_v19, %v940_v6  ;;  %v733_v52 = vmul.f32 %v6865_v25, %v6706_v38  ;;  %v10684_v6 = vld [vmem:[#allocation12_spill] sm:$0xff] }
 0x653   : > { %v902_v42 = vadd.f32 %v896_v30, %v870_v45  ;;  %v707_v45 = vadd.f32 %v701_v51, %v675_v10  ;;  %v706_v23 = vadd.f32 %v700_v11, %v674_v41  ;;  %v796_v34 = vmul.f32 %v6785_v27, %v10684_v6  ;;  %v10688_v27 = vld [vmem:[#allocation39_spill] sm:$0xff]  ;;  %v10690_v51 = vld [vmem:[#allocation32_spill] sm:$0xff] }
 0x654   : > { %v1016_v2 = vadd.f32 %v1005_v8, %v978_v7  ;;  %v10686_v8 = vld [vmem:[#allocation15_spill] sm:$0xff] }
 0x655   : > { %v941_v50 = vadd.f32 %v6933_v24, %v902_v42  ;;  %v1015_v24 = vadd.f32 %v6899_v62, %v977_v47  ;;  %v673_v62 = vadd.f32 %v667_v43, %v6681_v26  ;;  %v1081_v26 = vsel %vm927_vm1, %v6903_v46, %v6958_v13  ;;  %v10685_v43 = vld [vmem:[#allocation13_spill] sm:$0xff] }
 0x656   : > { %v738_v55 = vadd.f32 %v732_v53, %v706_v23  ;;  %v860_v47 = vmul.f32 %v6799_v22, %v10683_v61  ;;  %v827_v19 = vmul.f32 %v7142_v39, %v10685_v43  ;;  %v828_v22 = vmul.f32 %v6832_v20, %v10685_v43 }
 0x657   : > { %v979_v1 = vadd.f32 %v6917_v9, %v941_v50  ;;  %v1053_v32 = vadd.f32 %v6911_v44, %v1015_v24  ;;  %v731_v9 = vmul.f32 %v7044_v37, %v6706_v38  ;;  %v705_v33 = vadd.f32 %v699_v29, %v673_v62  ;;  %v10687_v24 = vld [vmem:[#allocation35_spill] sm:$0xff] }
 0x658   : > { %v739_v38 = vadd.f32 %v733_v52, %v707_v45  ;;  %v891_v10 = vmul.f32 %v7204_v49, %v10686_v8  ;;  %v1119_v7 = vsel %vm927_vm1, %v6921_v18, %v10687_v24  ;;  %v892_v41 = vmul.f32 %v6944_v17, %v10686_v8  ;;  %v10694_v45 = vld [vmem:[#allocation47_spill] sm:$0xff]  ;;  %v10695_v52 = vld [vmem:[#allocation48_spill] sm:$0xff] }
 0x659   : > { %v1017_v56 = vadd.f32 %v6952_v57, %v979_v1  ;;  %v1043_v57 = vsel %vm927_vm1, %v6911_v44, %v6927_v4  ;;  %v1091_v30 = vadd.f32 %v6903_v46, %v1053_v32  ;;  %v737_v58 = vadd.f32 %v731_v9, %v705_v33  ;;  %v10689_v1 = vld [vmem:[#allocation25_spill] sm:$0xff]  ;;  %v10691_v32 = vld [vmem:[#allocation22_spill] sm:$0xff] }
 0x65a   : > { %v1054_v28 = vadd.f32 %v1043_v57, %v1016_v2  ;;  %v859_v44 = vmul.f32 %v7172_v5, %v10683_v61  ;;  %v861_v46 = vmul.f32 %v6883_v54, %v10683_v61  ;;  %v829_v54 = vmul.f32 %v6842_v14, %v10685_v43  ;;  %v10696_v57 = vld [vmem:[#allocation49_spill] sm:$0xff] }
 0x65b   : > { %v1055_v60 = vadd.f32 %v6927_v4, %v1017_v56  ;;  %v1129_v25 = vadd.f32 %v6921_v18, %v1091_v30  ;;  %v795_v4 = vmul.f32 %v7108_v63, %v10684_v6  ;;  %v893_v14 = vmul.f32 %v6948_v15, %v10686_v8  ;;  %v10692_v18 = vld [vmem:[#allocation43_spill] sm:$0xff]  ;;  %v10693_v56 = vld [vmem:[#allocation42_spill] sm:$0xff]  ;;  %v10697_v30 = vld [vmem:[#allocation61_spill] sm:$0xff] }
 0x65c   : > { %v1092_v42 = vadd.f32 %v1081_v26, %v1054_v28  ;;  %v928_v2 = vsel %vm927_vm1, %v10691_v32, %v10690_v51  ;;  %v1195_v62 = vsel %vm927_vm1, %v10693_v56, %v10692_v18  ;;  %v1258_v33 = vsel %vm1255_vm2, %v10695_v52, %v10694_v45  ;;  %v10699_v43 = vld [vmem:[#allocation53_spill] sm:$0xff] }
 0x65d   : > { %v1093_v59 = vadd.f32 %v6958_v13, %v1055_v60  ;;  %v797_v13 = vmul.f32 %v6874_v35, %v10684_v6  ;;  %v1157_v35 = vsel %vm927_vm1, %v10689_v1, %v10688_v27  ;;  %v1167_v11 = vadd.f32 %v10689_v1, %v1129_v25  ;;  %v10698_v6 = vld [vmem:[#allocation54_spill] sm:$0xff] }
 0x65e   : > { %v1130_v29 = vadd.f32 %v1119_v7, %v1092_v42  ;;  %v1259_v26 = vsel %vm1255_vm2, %v10694_v45, %v10696_v57  ;;  %v1318_v8 = vsel %vm1255_vm2, %v10699_v43, %v10698_v6  ;;  %v10706_v57 = vld [vmem:[#allocation68_spill] sm:$0xff] }
 0x65f   : > { %v1131_v20 = vadd.f32 %v10687_v24, %v1093_v59  ;;  %v1205_v53 = vadd.f32 %v10693_v56, %v1167_v11  ;;  %v10700_v24 = vld [vmem:[#allocation55_spill] sm:$0xff]  ;;  %v10702_v11 = vld [vmem:[#allocation60_spill] sm:$0xff]  ;;  %v10703_v56 = vld [vmem:[#allocation62_spill] sm:$0xff] }
 0x660   : > { %v1168_v9 = vadd.f32 %v1157_v35, %v1130_v29  ;;  %v1319_v7 = vsel %vm1255_vm2, %v10698_v6, %v10700_v24  ;;  %v10709_v6 = vld [vmem:[#allocation74_spill] sm:$0xff] }
 0x661   : > { %v1169_v17 = vadd.f32 %v10688_v27, %v1131_v20  ;;  %v1269_v61 = vadd.f32 %v10695_v52, %v1205_v53  ;;  %v10701_v20 = vld [vmem:[#allocation59_spill] sm:$0xff] }
 0x662   : > { %v1206_v59 = vadd.f32 %v1195_v62, %v1168_v9  ;;  %v1379_v62 = vsel %vm1255_vm2, %v10701_v20, %v10703_v56 }
 0x663   : > { %v1207_v42 = vadd.f32 %v10692_v18, %v1169_v17  ;;  %v1378_v18 = vsel %vm1255_vm2, %v10702_v11, %v10701_v20 }
 0x664   : > { %v1270_v29 = vadd.f32 %v1258_v33, %v1206_v59  ;;  %v10708_v59 = vld [vmem:[#allocation73_spill] sm:$0xff] }
 0x666   : > { %v1330_v45 = vadd.f32 %v1318_v8, %v1270_v29  ;;  %v10712_v29 = vld [vmem:[#allocation80_spill] sm:$0xff] }
 0x674   : > { %v7282_v31 = vpop.permute.xlu0 %1666  ;;  %v7394_v23 = vpop.permute.xlu1 %1664 }
 0x67c   : > { %v7290_v36 = vpop.permute.xlu0 %1670 }
 0x680   : > { %v7300_v48 = vpop.permute.xlu0 %1674 }
 0x691   : > { %v7316_v16 = vpop.permute.xlu0 %1765 }
 0x696   : > { %v7337_v40 = vpop.permute.xlu0 %1861 }
 0x69b   : > { %v7357_v50 = vpop.permute.xlu0 %1957 }
 0x6a0   : > { %v745_v15 = vpop.permute.xlu0 %744 }
 0x6a1   : > { %v763_v28 = vmul.f32 %v10697_v30, %v745_v15  ;;  %v764_v60 = vmul.f32 %v6805_v21, %v745_v15  ;;  %v765_v25 = vmul.f32 %v6826_v12, %v745_v15  ;;  %v1271_v21 = vadd.f32 %v1259_v26, %v1207_v42  ;;  %v7421_v15 = vpop.permute.xlu1 %1668  ;;  %v10707_v42 = vld [vmem:[#allocation72_spill] sm:$0xff] }
 0x6a2   : > { %v1329_v12 = vadd.f32 %v10699_v43, %v1269_v61  ;;  %v1498_v61 = vsel %vm1255_vm2, %v10708_v59, %v10707_v42  ;;  %v1499_v43 = vsel %vm1255_vm2, %v10707_v42, %v10709_v6  ;;  %v10720_v6 = vld [vmem:[#allocation30_spill] sm:$0xff] }
 0x6a3   : > { %v769_v27 = vadd.f32 %v763_v28, %v737_v58  ;;  %v770_v1 = vadd.f32 %v764_v60, %v738_v55  ;;  %v771_v35 = vadd.f32 %v765_v25, %v739_v38  ;;  %v1331_v52 = vadd.f32 %v1319_v7, %v1271_v21  ;;  %v10704_v55 = vld [vmem:[#allocation67_spill] sm:$0xff]  ;;  %v10705_v38 = vld [vmem:[#allocation66_spill] sm:$0xff] }
 0x6a4   : > { %v1389_v58 = vadd.f32 %v10702_v11, %v1329_v12  ;;  %v1438_v33 = vsel %vm1255_vm2, %v10705_v38, %v10704_v55  ;;  %v1439_v26 = vsel %vm1255_vm2, %v10704_v55, %v10706_v57 }
 0x6a5   : > { %v801_v9 = vadd.f32 %v795_v4, %v769_v27  ;;  %v802_v17 = vadd.f32 %v796_v34, %v770_v1  ;;  %v803_v53 = vadd.f32 %v797_v13, %v771_v35  ;;  %v1390_v4 = vadd.f32 %v1378_v18, %v1330_v45 }
 0x6a6   : > { %v1391_v34 = vadd.f32 %v1379_v62, %v1331_v52  ;;  %v1449_v13 = vadd.f32 %v10705_v38, %v1389_v58 }
 0x6a7   : > { %v833_v28 = vadd.f32 %v827_v19, %v801_v9  ;;  %v834_v60 = vadd.f32 %v828_v22, %v802_v17  ;;  %v835_v25 = vadd.f32 %v829_v54, %v803_v53  ;;  %v1450_v27 = vadd.f32 %v1438_v33, %v1390_v4  ;;  %v10710_v22 = vld [vmem:[#allocation79_spill] sm:$0xff]  ;;  %v10711_v54 = vld [vmem:[#allocation78_spill] sm:$0xff]  ;;  %v1673_v9 = vpop.permute.xlu1 %1672 }
 0x6a8   : > { %v1451_v1 = vadd.f32 %v1439_v26, %v1391_v34  ;;  %v1509_v19 = vadd.f32 %v10708_v59, %v1449_v13  ;;  %v1558_v35 = vsel %vm1255_vm2, %v10711_v54, %v10710_v22  ;;  %v1559_v21 = vsel %vm1255_vm2, %v10710_v22, %v10712_v29  ;;  %v10715_v17 = vld [vmem:[#allocation86_spill] sm:$0xff]  ;;  %v10722_v22 = vld [vmem:[#allocation37_spill] sm:$0xff] }
 0x6a9   : > { %v865_v8 = vadd.f32 %v859_v44, %v833_v28  ;;  %v866_v24 = vadd.f32 %v860_v47, %v834_v60  ;;  %v867_v7 = vadd.f32 %v861_v46, %v835_v25  ;;  %v1510_v18 = vadd.f32 %v1498_v61, %v1450_v27  ;;  %v10713_v47 = vld [vmem:[#allocation84_spill] sm:$0xff]  ;;  %v10714_v46 = vld [vmem:[#allocation85_spill] sm:$0xff] }
 0x6aa   : > { %v1511_v56 = vadd.f32 %v1499_v43, %v1451_v1  ;;  %v1569_v44 = vadd.f32 %v10711_v54, %v1509_v19  ;;  %v1618_v62 = vsel %vm1255_vm2, %v10714_v46, %v10713_v47  ;;  %v1619_v53 = vsel %vm1255_vm2, %v10713_v47, %v10715_v17  ;;  %v10721_v43 = vld [vmem:[#allocation26_spill] sm:$0xff]  ;;  %v10727_v17 = vld [vmem:[#allocation31_spill] sm:$0xff] }
 0x6ab   : > { %v897_v12 = vadd.f32 %v891_v10, %v865_v8  ;;  %v898_v20 = vadd.f32 %v892_v41, %v866_v24  ;;  %v899_v11 = vadd.f32 %v893_v14, %v867_v7  ;;  %v10716_v41 = vld [vmem:[#allocation27_spill] sm:$0xff]  ;;  %v1570_v55 = vadd.f32 %v1558_v35, %v1510_v18 }
 0x6ac   : > { %v10717_v14 = vld [vmem:[#allocation23_spill] sm:$0xff]  ;;  %v1571_v38 = vadd.f32 %v1559_v21, %v1511_v56  ;;  %v1629_v33 = vadd.f32 %v10714_v46, %v1569_v44  ;;  %v1678_v57 = vsel %vm1255_vm2, %v7290_v36, %v1673_v9  ;;  %v1679_v34 = vsel %vm1255_vm2, %v1673_v9, %v7300_v48  ;;  %v10723_v48 = vld [vmem:[#allocation28_spill] sm:$0xff]  ;;  %v10726_v9 = vld [vmem:[#allocation38_spill] sm:$0xff] }
 0x6ad   : > { %v936_v45 = vadd.f32 %v10691_v32, %v897_v12  ;;  %v937_v52 = vadd.f32 %v928_v2, %v898_v20  ;;  %v938_v10 = vadd.f32 %v10690_v51, %v899_v11  ;;  %v966_v58 = vsel %vm927_vm1, %v10717_v14, %v10716_v41  ;;  %v10718_v32 = vld [vmem:[#allocation36_spill] sm:$0xff]  ;;  %v7475_v12 = vpop.permute.xlu1 %1722  ;;  %v10724_v20 = vld [vmem:[#allocation33_spill] sm:$0xff] }
 0x6ae   : > { %v10719_v2 = vld [vmem:[#allocation24_spill] sm:$0xff]  ;;  %v1630_v25 = vadd.f32 %v1618_v62, %v1570_v55  ;;  %v1631_v4 = vadd.f32 %v1619_v53, %v1571_v38  ;;  %v1689_v13 = vadd.f32 %v7290_v36, %v1629_v33  ;;  %v1042_v8 = vsel %vm927_vm1, %v10721_v43, %v10720_v6  ;;  %v10725_v11 = vld [vmem:[#allocation29_spill] sm:$0xff] }
 0x6af   : > { %v974_v26 = vadd.f32 %v10717_v14, %v936_v45  ;;  %v975_v28 = vadd.f32 %v966_v58, %v937_v52  ;;  %v976_v60 = vadd.f32 %v10716_v41, %v938_v10  ;;  %v1004_v51 = vsel %vm927_vm1, %v10719_v2, %v10718_v32  ;;  %v10728_v41 = vld [vmem:[#allocation41_spill] sm:$0xff]  ;;  %v10729_v14 = vld [vmem:[#allocation40_spill] sm:$0xff] }
 0x6b0   : > { %v1690_v24 = vadd.f32 %v1678_v57, %v1630_v25  ;;  %v1691_v7 = vadd.f32 %v1679_v34, %v1631_v4  ;;  %v1080_v36 = vsel %vm927_vm1, %v10723_v48, %v10722_v22  ;;  %v5966_v54 = vmul.f32 -1.442695, %v1689_v13  ;;  %v10733_v34 = vld [vmem:[#allocation51_spill] sm:$0xff]  ;;  %v10734_v13 = vld [vmem:[#allocation50_spill] sm:$0xff] }
 0x6b1   : > { %v1012_v42 = vadd.f32 %v10719_v2, %v974_v26  ;;  %v1013_v59 = vadd.f32 %v1004_v51, %v975_v28  ;;  %v1014_v61 = vadd.f32 %v10718_v32, %v976_v60  ;;  %v1118_v18 = vsel %vm927_vm1, %v10725_v11, %v10724_v20  ;;  %v7492_v57 = vpop.permute.xlu1 %1732  ;;  %v10730_v26 = vld [vmem:[#allocation46_spill] sm:$0xff]  ;;  %v10731_v28 = vld [vmem:[#allocation44_spill] sm:$0xff]  ;;  %v10732_v32 = vld [vmem:[#allocation45_spill] sm:$0xff] }
 0x6b2   : > { %v5967_v56 = vmul.f32 -1.442695, %v1690_v24  ;;  %v5968_v44 = vmul.f32 -1.442695, %v1691_v7  ;;  %v1156_v53 = vsel %vm927_vm1, %v10727_v17, %v10726_v9  ;;  %6285 = vpow2.f32 %v5966_v54  ;;  %v10736_v24 = vld [vmem:[#allocation58_spill] sm:$0xff]  ;;  %v10737_v7 = vld [vmem:[#allocation56_spill] sm:$0xff] }
 0x6b3   : > { %v1050_v27 = vadd.f32 %v10721_v43, %v1012_v42  ;;  %v1051_v1 = vadd.f32 %v1042_v8, %v1013_v59  ;;  %v1052_v19 = vadd.f32 %v10720_v6, %v1014_v61  ;;  %v1194_v58 = vsel %vm927_vm1, %v10729_v14, %v10728_v41  ;;  %v10735_v59 = vld [vmem:[#allocation52_spill] sm:$0xff] }
 0x6b4   : > { %6287 = vpow2.f32 %v5967_v56  ;;  %v1256_v60 = vsel %vm1255_vm2, %v10731_v28, %v10730_v26  ;;  %v1257_v2 = vsel %vm1255_vm2, %v10730_v26, %v10732_v32  ;;  %v1316_v42 = vsel %vm1255_vm2, %v10734_v13, %v10733_v34 }
 0x6b5   : > { %v1088_v35 = vadd.f32 %v10723_v48, %v1050_v27  ;;  %v1089_v29 = vadd.f32 %v1080_v36, %v1051_v1  ;;  %v1090_v21 = vadd.f32 %v10722_v22, %v1052_v19  ;;  %6289 = vpow2.f32 %v5968_v44  ;;  %v10738_v1 = vld [vmem:[#allocation57_spill] sm:$0xff]  ;;  %v7515_v54 = vpop.permute.xlu1 %1737 }
 0x6b6   : > { %v1317_v61 = vsel %vm1255_vm2, %v10733_v34, %v10735_v59  ;;  %v1376_v27 = vsel %vm1255_vm2, %v10737_v7, %v10736_v24  ;;  %v1377_v19 = vsel %vm1255_vm2, %v10736_v24, %v10738_v1  ;;  %v10749_v34 = vld [vmem:[#allocation81_spill] sm:$0xff]  ;;  %v1676_v24 = vsel %vm1255_vm2, %v7394_v23, %v7282_v31 }
 0x6b7   : > { %v1126_v47 = vadd.f32 %v10725_v11, %v1088_v35  ;;  %v1127_v46 = vadd.f32 %v1118_v18, %v1089_v29  ;;  %v1128_v62 = vadd.f32 %v10724_v20, %v1090_v21  ;;  %v10739_v35 = vld [vmem:[#allocation64_spill] sm:$0xff]  ;;  %v10740_v29 = vld [vmem:[#allocation63_spill] sm:$0xff]  ;;  %v10741_v20 = vld [vmem:[#allocation65_spill] sm:$0xff] }
 0x6b8   : > { %v1436_v21 = vsel %vm1255_vm2, %v10740_v29, %v10739_v35  ;;  %v1437_v11 = vsel %vm1255_vm2, %v10739_v35, %v10741_v20 }
 0x6b9   : > { %v1164_v45 = vadd.f32 %v10727_v17, %v1126_v47  ;;  %v1165_v52 = vadd.f32 %v1156_v53, %v1127_v46  ;;  %v1166_v10 = vadd.f32 %v10726_v9, %v1128_v62  ;;  %v10742_v62 = vld [vmem:[#allocation71_spill] sm:$0xff]  ;;  %v10743_v9 = vld [vmem:[#allocation69_spill] sm:$0xff]  ;;  %v10744_v53 = vld [vmem:[#allocation70_spill] sm:$0xff] }
 0x6ba   : > { %v1496_v17 = vsel %vm1255_vm2, %v10743_v9, %v10742_v62 }
 0x6bb   : > { %v1202_v55 = vadd.f32 %v10729_v14, %v1164_v45  ;;  %v1203_v38 = vadd.f32 %v1194_v58, %v1165_v52  ;;  %v1204_v33 = vadd.f32 %v10728_v41, %v1166_v10  ;;  %v1497_v45 = vsel %vm1255_vm2, %v10742_v62, %v10744_v53  ;;  %v10745_v58 = vld [vmem:[#allocation76_spill] sm:$0xff] }
 0x6bc   : > { %v6286_v18 = vpop.eup %6285 }
 0x6bd   : > { %v1266_v51 = vadd.f32 %v10731_v28, %v1202_v55  ;;  %v1267_v25 = vadd.f32 %v1256_v60, %v1203_v38  ;;  %v1268_v4 = vadd.f32 %v1257_v2, %v1204_v33  ;;  %v10746_v55 = vld [vmem:[#allocation75_spill] sm:$0xff]  ;;  %v10747_v33 = vld [vmem:[#allocation77_spill] sm:$0xff]  ;;  %v1704_v28 = vadd.f32 1.0, %v6286_v18 }
 0x6be   : > { %v6288_v46 = vpop.eup %6287  ;;  %v1556_v38 = vsel %vm1255_vm2, %v10746_v55, %v10745_v58  ;;  %v1557_v26 = vsel %vm1255_vm2, %v10745_v58, %v10747_v33  ;;  %v10754_v33 = vld [vmem:[#allocation16_spill] sm:$0xff] }
 0x6bf   : > { %v1326_v6 = vadd.f32 %v10734_v13, %v1266_v51  ;;  %v1327_v43 = vadd.f32 %v1316_v42, %v1267_v25  ;;  %v1328_v8 = vadd.f32 %v1317_v61, %v1268_v4  ;;  %v6290_v52 = vpop.eup %6289  ;;  %v1705_v60 = vadd.f32 1.0, %v6288_v46  ;;  %v7538_v25 = vpop.permute.xlu1 %1769  ;;  %v10748_v4 = vld [vmem:[#allocation83_spill] sm:$0xff]  ;;  %v10750_v42 = vld [vmem:[#allocation82_spill] sm:$0xff] }
 0x6c0   : > { %v1616_v13 = vsel %vm1255_vm2, %v10749_v34, %v10748_v4  ;;  %v1617_v59 = vsel %vm1255_vm2, %v10748_v4, %v10750_v42  ;;  %v1706_v61 = vadd.f32 1.0, %v6290_v52  ;;  %6291 = vrcp.f32 %v1704_v28  ;;  %v10753_v52 = vld [vmem:[#allocation14_spill] sm:$0xff] }
 0x6c1   : > { %v1386_v22 = vadd.f32 %v10737_v7, %v1326_v6  ;;  %v1387_v48 = vadd.f32 %v1376_v27, %v1327_v43  ;;  %v1388_v36 = vadd.f32 %v1377_v19, %v1328_v8  ;;  %v1677_v7 = vsel %vm1255_vm2, %v7282_v31, %v7421_v15 }
 0x6c2   : > { %6293 = vrcp.f32 %v1705_v60 }
 0x6c3   : > { %v1446_v56 = vadd.f32 %v10740_v29, %v1386_v22  ;;  %v1447_v44 = vadd.f32 %v1436_v21, %v1387_v48  ;;  %v1448_v47 = vadd.f32 %v1437_v11, %v1388_v36  ;;  %6295 = vrcp.f32 %v1706_v61  ;;  %v1798_v22 = vpop.permute.xlu1 %1797 }
 0x6c5   : > { %v1506_v10 = vadd.f32 %v10743_v9, %v1446_v56  ;;  %v1507_v41 = vadd.f32 %v1496_v17, %v1447_v44  ;;  %v1508_v14 = vadd.f32 %v1497_v45, %v1448_v47  ;;  %v10751_v56 = vld [vmem:[#allocation8_spill] sm:$0xff]  ;;  %v10752_v47 = vld [vmem:[#allocation9_spill] sm:$0xff] }
 0x6c7   : > { %v1566_v32 = vadd.f32 %v10746_v55, %v1506_v10  ;;  %v1567_v2 = vadd.f32 %v1556_v38, %v1507_v41  ;;  %v1568_v51 = vadd.f32 %v1557_v26, %v1508_v14  ;;  %v1830_v48 = vpop.permute.xlu1 %1829 }
 0x6c9   : > { %v1626_v6 = vadd.f32 %v10749_v34, %v1566_v32  ;;  %v1627_v43 = vadd.f32 %v1616_v13, %v1567_v2  ;;  %v1628_v8 = vadd.f32 %v1617_v59, %v1568_v51 }
 0x6ca   : > { %v6292_v36 = vpop.eup %6291 }
 0x6cb   : > { %v1686_v27 = vadd.f32 %v7394_v23, %v1626_v6  ;;  %v1687_v1 = vadd.f32 %v1676_v24, %v1627_v43  ;;  %v1688_v19 = vadd.f32 %v1677_v7, %v1628_v8  ;;  %v7558_v18 = vpop.permute.xlu1 %1833 }
 0x6cc   : > { %v6294_v35 = vpop.eup %6293 }
 0x6cd   : > { %6297 = vtanh.f32 %v1686_v27  ;;  %v6296_v29 = vpop.eup %6295 }
 0x6ce   : > { %6299 = vtanh.f32 %v1687_v1 }
 0x6cf   : > { %6301 = vtanh.f32 %v1688_v19  ;;  %v7612_v2 = vpop.permute.xlu1 %1865 }
 0x6d7   : > { %v6298_v21 = vpop.eup %6297 }
 0x6d8   : > { %v6300_v20 = vpop.eup %6299  ;;  %v7554_v11 = vmul.f32 %v6298_v21, %v6292_v36  ;;  %v10755_v36 = vld [vmem:[#allocation17_spill] sm:$0xff]  ;;  %v1894_v21 = vpop.permute.xlu1 %1893 }
 0x6d9   : > { %v6302_v31 = vpop.eup %6301  ;;  %v7556_v15 = vmul.f32 %v6300_v20, %v6294_v35 }
 0x6da   : > { %v7560_v23 = vmul.f32 %v6302_v31, %v6296_v29  ;;  %v7564_v44 = vrot.slane %v7554_v11, %v10751_v56  ;;  %v7568_v46 = vrot.slane %v7554_v11, %v10752_v47  ;;  %v7590_v10 = vrot.slane %v7554_v11, %v10753_v52  ;;  %v10756_v31 = vld [vmem:[#allocation21_spill] sm:$0xff] }
 0x6db   : > { %v7572_v62 = vrot.slane %v7556_v15, %v10751_v56  ;;  %v7576_v9 = vrot.slane %v7556_v15, %v10752_v47  ;;  %v7596_v14 = vrot.slane %v7556_v15, %v10753_v52  ;;  %v7605_v26 = vrot.slane %v7554_v11, %v10754_v33 }
 0x6dc   : > { %v7580_v17 = vrot.slane %v7560_v23, %v10751_v56  ;;  %v1752_v53 = vmul.f32 %v7564_v44, %v7492_v57  ;;  %v7586_v45 = vrot.slane %v7560_v23, %v10752_v47  ;;  %v1784_v38 = vmul.f32 %v7568_v46, %v7316_v16 }
 0x6dd   : > { %v1753_v41 = vmul.f32 %v7572_v62, %v7492_v57  ;;  %v1785_v32 = vmul.f32 %v7576_v9, %v7316_v16  ;;  %v7617_v4 = vrot.slane %v7560_v23, %v10753_v52  ;;  %v1816_v34 = vmul.f32 %v7590_v10, %v1798_v22 }
 0x6de   : > { %v1754_v58 = vmul.f32 %v7580_v17, %v7492_v57  ;;  %v1758_v55 = vadd.f32 %v1752_v53, %v7475_v12  ;;  %v1786_v60 = vmul.f32 %v7586_v45, %v7316_v16  ;;  %v1817_v42 = vmul.f32 %v7596_v14, %v1798_v22 }
 0x6df   : > { %v1759_v28 = vadd.f32 %v1753_v41, %v7475_v12  ;;  %v7623_v59 = vrot.slane %v7560_v23, %v10754_v33  ;;  %v7627_v16 = vrot.slane %v7556_v15, %v10754_v33  ;;  %v1848_v43 = vmul.f32 %v7605_v26, %v1830_v48 }
 0x6e0   : > { %v1760_v57 = vadd.f32 %v1754_v58, %v7475_v12  ;;  %v1790_v51 = vadd.f32 %v1784_v38, %v1758_v55  ;;  %v1818_v12 = vmul.f32 %v7617_v4, %v1798_v22  ;;  %v7635_v35 = vrot.slane %v7554_v11, %v10755_v36 }
 0x6e1   : > { %v1791_v13 = vadd.f32 %v1785_v32, %v1759_v28  ;;  %v1849_v24 = vmul.f32 %v7627_v16, %v1830_v48  ;;  %v1850_v27 = vmul.f32 %v7623_v59, %v1830_v48  ;;  %v7639_v29 = vrot.slane %v7560_v23, %v10755_v36 }
 0x6e2   : > { %v1792_v61 = vadd.f32 %v1786_v60, %v1760_v57  ;;  %v1822_v6 = vadd.f32 %v1816_v34, %v1790_v51  ;;  %v7643_v22 = vrot.slane %v7556_v15, %v10755_v36  ;;  %v7647_v53 = vrot.slane %v7554_v11, %v10756_v31 }
 0x6e3   : > { %v1823_v8 = vadd.f32 %v1817_v42, %v1791_v13  ;;  %v7651_v48 = vrot.slane %v7560_v23, %v10756_v31  ;;  %v7655_v41 = vrot.slane %v7556_v15, %v10756_v31  ;;  %v1880_v58 = vmul.f32 %v7635_v35, %v7337_v40  ;;  %v10757_v13 = vld [vmem:[#allocation18_spill] sm:$0xff] }
 0x6e4   : > { %v1824_v7 = vadd.f32 %v1818_v12, %v1792_v61  ;;  %v1854_v1 = vadd.f32 %v1848_v43, %v1822_v6  ;;  %v1882_v55 = vmul.f32 %v7639_v29, %v7337_v40  ;;  %v1881_v38 = vmul.f32 %v7643_v22, %v7337_v40  ;;  %v1926_v43 = vpop.permute.xlu1 %1925 }
 0x6e5   : > { %v1855_v19 = vadd.f32 %v1849_v24, %v1823_v8  ;;  %v1912_v28 = vmul.f32 %v7647_v53, %v1894_v21  ;;  %v1913_v51 = vmul.f32 %v7655_v41, %v1894_v21  ;;  %v1914_v34 = vmul.f32 %v7651_v48, %v1894_v21  ;;  %v10760_v8 = vld [vmem:[#allocation34_spill] sm:$0xff] }
 0x6e6   : > { %v1856_v20 = vadd.f32 %v1850_v27, %v1824_v7  ;;  %v1886_v60 = vadd.f32 %v1880_v58, %v1854_v1  ;;  %v7668_v42 = vrot.slane %v7554_v11, %v10757_v13  ;;  %v7672_v61 = vrot.slane %v7556_v15, %v10757_v13 }
 0x6e7   : > { %v1887_v57 = vadd.f32 %v1881_v38, %v1855_v19  ;;  %v7676_v40 = vrot.slane %v7560_v23, %v10757_v13  ;;  %v7680_v24 = vrot.slane %v7554_v11, %v10760_v8  ;;  %v7686_v19 = vrot.slane %v7556_v15, %v10760_v8 }
 0x6e8   : > { %v1888_v32 = vadd.f32 %v1882_v55, %v1856_v20  ;;  %10758 = vst [vmem:[#allocation10_spill] sm:$0xff] %v7672_v61  ;;  %v1918_v12 = vadd.f32 %v1912_v28, %v1886_v60  ;;  %v1944_v7 = vmul.f32 %v7668_v42, %v1926_v43  ;;  %v1945_v27 = vmul.f32 %v7672_v61, %v1926_v43 }
 0x6e9   : > { %v1919_v6 = vadd.f32 %v1913_v51, %v1887_v57  ;;  %10759 = vst [vmem:[#allocation12_spill] sm:$0xff] %v7676_v40  ;;  %10761 = vst [vmem:[#allocation13_spill] sm:$0xff] %v7680_v24  ;;  %v1946_v58 = vmul.f32 %v7676_v40, %v1926_v43  ;;  %v7691_v55 = vrot.slane %v7560_v23, %v10760_v8  ;;  %v7704_v23 = vld [vmem:[%s10256_s7] sm:$0xff]  ;;  %v2009_v51 = vld [vmem:[%s10257_s8 + $0x8] sm:$0xff]  ;;  %v10767_v43 = vmov 21  }
 0x6ea   : > { %v1920_v1 = vadd.f32 %v1914_v34, %v1888_v32  ;;  %10762 = vst [vmem:[#allocation15_spill] sm:$0xff] %v7686_v19  ;;  %v1950_v21 = vadd.f32 %v1944_v7, %v1918_v12  ;;  %v1976_v11 = vmul.f32 %v7680_v24, %v7357_v50  ;;  %v1977_v38 = vmul.f32 %v7686_v19, %v7357_v50  ;;  %v7714_v34 = vld [vmem:[%s10256_s7 + $0x8] sm:$0xff] }
 0x6eb   : > { %v1951_v20 = vadd.f32 %v1945_v27, %v1919_v6  ;;  %10763 = vst [vmem:[#allocation35_spill] sm:$0xff] %v7691_v55  ;;  %v1978_v15 = vmul.f32 %v7691_v55, %v7357_v50  ;;  %v10764_v50 = vmov 12   ;;  %v10765_v12 = vmov 18  }
 0x6ec   : > { %v1952_v28 = vadd.f32 %v1946_v58, %v1920_v1  ;;  %v1982_v60 = vadd.f32 %v1976_v11, %v1950_v21  ;;  %v10766_v6 = vmov 3   ;;  %v10768_v7 = vmov 6  }
 0x6ed   : > { %v1983_v32 = vadd.f32 %v1977_v38, %v1951_v20  ;;  %v10769_v27 = vmov 4   ;;  %v10770_v1 = vmov 7   ;;  %v10771_v21 = vmov 9  }
 0x6ee   : > { %1991 = vrot.lane.b32.xlu1 %v1982_v60, %s6431_s2  ;;  %v1984_v57 = vadd.f32 %v1978_v15, %v1952_v28  ;;  %v10772_v20 = vmov 10   ;;  %v10773_v58 = vmov 13   ;;  %v10774_v11 = vmov 15   ;;  %v7760_v60 = vpop.permute.xlu1 %1929 }
 0x6ef   : > { %1993 = vrot.lane.b32.xlu0 %v1983_v32, %s6431_s2  ;;  %v10775_v38 = vmov 16   ;;  %v10776_v28 = vmov 1  }
 0x6f2   : > { %1995 = vrot.lane.b32.xlu1 %v1984_v57, %s6431_s2  ;;  %v7762_v32 = vpop.permute.xlu1 %1961 }
 0x6f3   : > { %2124 = vperm.xlu0 %6127, %v7704_v23  }
 0x6f6   : > { %2017 = vperm.xlu1 %6129, %v2009_v51  }
 0x6f7   : > { %6134 = vset.pattern.permute.xlu0 %v10764_v50 }
 0x6f8   : > { %2160 = vperm.xlu0 %6134, %v7714_v34  }
 0x6fa   : > { %2027 = vperm.xlu1 %6129, %v7704_v23  }
 0x6fc   : > { %6136 = vset.pattern.permute.xlu0 %v10765_v12 }
 0x6fd   : > { %2220 = vperm.xlu0 %6136, %v7704_v23  }
 0x6fe   : > { %6130 = vset.pattern.permute.xlu1 %v10766_v6 }
 0x6ff   : > { %2060 = vperm.xlu1 %6130, %v7704_v23  }
 0x701   : > { %6139 = vset.pattern.permute.xlu0 %v10767_v43 }
 0x702   : > { %2256 = vperm.xlu0 %6139, %v7714_v34  }
 0x703   : > { %6131 = vset.pattern.permute.xlu1 %v10768_v7 }
 0x704   : > { %2092 = vperm.xlu1 %6131, %v7704_v23  }
 0x706   : > { %6141 = vset.pattern.permute.xlu0 %v10769_v27 }
 0x707   : > { %2322 = vperm.xlu0 %6141, %v7704_v23  }
 0x708   : > { %2096 = vperm.xlu1 %6131, %v7714_v34  }
 0x70b   : > { %6144 = vset.pattern.permute.xlu0 %v10770_v1 }
 0x70c   : > { %2364 = vperm.xlu0 %6144, %v7714_v34   ;;  %6132 = vset.pattern.permute.xlu1 %v10771_v21 }
 0x70d   : > { %2128 = vperm.xlu1 %6132, %v7714_v34  }
 0x710   : > { %6145 = vset.pattern.permute.xlu0 %v10772_v20 }
 0x711   : > { %2398 = vperm.xlu0 %6145, %v7704_v23   ;;  %6133 = vset.pattern.permute.xlu1 %v10764_v50  ;;  %v10783_v50 = vld [vmem:[#allocation11_spill] sm:$0xff] }
 0x712   : > { %2156 = vperm.xlu1 %6133, %v7704_v23  }
 0x715   : > { %6148 = vset.pattern.permute.xlu0 %v10773_v58 }
 0x716   : > { %2440 = vperm.xlu0 %6148, %v7714_v34   ;;  %6135 = vset.pattern.permute.xlu1 %v10774_v11 }
 0x717   : > { %2188 = vperm.xlu1 %6135, %v7704_v23  }
 0x71a   : > { %6149 = vset.pattern.permute.xlu0 %v10775_v38 }
 0x71b   : > { %2192 = vperm.xlu1 %6135, %v7714_v34  }
 0x71f   : > { %6137 = vset.pattern.permute.xlu1 %v10765_v12 }
 0x720   : > { %2224 = vperm.xlu1 %6137, %v7714_v34  }
 0x724   : > { %6138 = vset.pattern.permute.xlu1 %v10767_v43 }
 0x725   : > { %2252 = vperm.xlu1 %6138, %v7704_v23  }
 0x729   : > { %6140 = vset.pattern.permute.xlu1 %v10776_v28 }
 0x72a   : > { %2284 = vperm.xlu1 %6140, %v7704_v23  }
 0x72e   : > { %2288 = vperm.xlu1 %6140, %v7714_v34  }
 0x732   : > { %6142 = vset.pattern.permute.xlu1 %v10769_v27 }
 0x733   : > { %2326 = vperm.xlu1 %6142, %v7714_v34  }
 0x737   : > { %6143 = vset.pattern.permute.xlu1 %v10770_v1 }
 0x738   : > { %2360 = vperm.xlu1 %6143, %v7704_v23  }
 0x73c   : > { %6146 = vset.pattern.permute.xlu1 %v10772_v20 }
 0x73d   : > { %2402 = vperm.xlu1 %6146, %v7714_v34  }
 0x741   : > { %6147 = vset.pattern.permute.xlu1 %v10773_v58 }
 0x742   : > { %2436 = vperm.xlu1 %6147, %v7704_v23  }
 0x746   : > { %6150 = vset.pattern.permute.xlu1 %v10775_v38 }
 0x760   : > { %v1992_v15 = vpop.permute.xlu1 %1991 }
 0x761   : > { %v1994_v57 = vpop.permute.xlu0 %1993 }
 0x762   : > { %v1998_v38 = vsel %vm1997_vm3, %v1992_v15, %v1994_v57 }
 0x763   : > { %v7778_v7 = vadd.f32 %v1998_v38, %v10783_v50 }
 0x764   : > { %v1996_v51 = vpop.permute.xlu1 %1995 }
 0x765   : > { %10784 = vst [vmem:[#allocation47_spill] sm:$0xff] %v7778_v7  ;;  %v7834_v19 = vrot.slane %v7778_v7, %v10754_v33  ;;  %v7945_v61 = vrot.slane %v7778_v7, %v10757_v13 }
 0x767   : > { %10820 = vst [vmem:[#allocation38_spill] sm:$0xff] %v7945_v61 }
 0x772   : > { %v7764_v12 = vpop.permute.xlu0 %2124 }
 0x773   : > { %10777 = vst [vmem:[#allocation39_spill] sm:$0xff] %v7764_v12 }
 0x775   : > { %v7766_v21 = vpop.permute.xlu1 %2017 }
 0x776   : > { %10778 = vst [vmem:[#allocation25_spill] sm:$0xff] %v7766_v21  ;;  %v7786_v21 = vrot.slane %v7778_v7, %v10752_v47 }
 0x777   : > { %v7768_v20 = vpop.permute.xlu0 %2160 }
 0x778   : > { %10779 = vst [vmem:[#allocation32_spill] sm:$0xff] %v7768_v20 }
 0x779   : > { %v7770_v43 = vpop.permute.xlu1 %2027 }
 0x77a   : > { %10780 = vst [vmem:[#allocation22_spill] sm:$0xff] %v7770_v43 }
 0x77c   : > { %v7772_v58 = vpop.permute.xlu0 %2220 }
 0x77d   : > { %10781 = vst [vmem:[#allocation43_spill] sm:$0xff] %v7772_v58 }
 0x77e   : > { %v7775_v11 = vpop.permute.xlu1 %2060 }
 0x77f   : > { %10782 = vst [vmem:[#allocation42_spill] sm:$0xff] %v7775_v11  ;;  %v7806_v11 = vrot.slane %v7778_v7, %v10751_v56 }
 0x781   : > { %v7780_v1 = vpop.permute.xlu0 %2256 }
 0x782   : > { %10785 = vst [vmem:[#allocation48_spill] sm:$0xff] %v7780_v1 }
 0x783   : > { %v7782_v6 = vpop.permute.xlu1 %2092 }
 0x784   : > { %10786 = vst [vmem:[#allocation49_spill] sm:$0xff] %v7782_v6 }
 0x786   : > { %v2323_v20 = vpop.permute.xlu0 %2322 }
 0x787   : > { %v2329_v12 = vmul.f32 %v2323_v20, %v7786_v21  ;;  %v7789_v43 = vpop.permute.xlu1 %2096 }
 0x788   : > { %10787 = vst [vmem:[#allocation61_spill] sm:$0xff] %v7789_v43  ;;  %v1999_v43 = vsel %vm1997_vm3, %v1994_v57, %v1996_v51 }
 0x789   : > { %2337 = vrot.lane.b32.xlu1 %v2329_v12, %s10513_s0 }
 0x78c   : > { %v7792_v15 = vpop.permute.xlu1 %2128 }
 0x78d   : > { %10788 = vst [vmem:[#allocation54_spill] sm:$0xff] %v7792_v15  ;;  %v10794_v15 = vld [vmem:[#allocation20_spill] sm:$0xff] }
 0x78e   : > { %v2003_v28 = vadd.f32 %v1999_v43, %v10794_v15 }
 0x791   : > { %v7794_v58 = vpop.permute.xlu1 %2156 }
 0x792   : > { %10789 = vst [vmem:[#allocation53_spill] sm:$0xff] %v7794_v58  ;;  %v2365_v58 = vpop.permute.xlu0 %2364 }
 0x796   : > { %v7796_v50 = vpop.permute.xlu1 %2188 }
 0x797   : > { %10790 = vst [vmem:[#allocation55_spill] sm:$0xff] %v7796_v50 }
 0x79a   : > { %v7798_v38 = vpop.permute.xlu1 %2192 }
 0x79b   : > { %10791 = vst [vmem:[#allocation59_spill] sm:$0xff] %v7798_v38 }
 0x79f   : > { %v7800_v1 = vpop.permute.xlu1 %2224 }
 0x7a0   : > { %10792 = vst [vmem:[#allocation60_spill] sm:$0xff] %v7800_v1  ;;  %v10795_v1 = vld [vmem:[#allocation19_spill] sm:$0xff] }
 0x7a1   : > { %v7814_v55 = vmul.f32 %v10795_v1, %v2003_v28 }
 0x7a3   : > { %10796 = vst [vmem:[#allocation67_spill] sm:$0xff] %v7814_v55  ;;  %v7825_v15 = vrot.slane %v7814_v55, %v10752_v47  ;;  %v7975_v24 = vrot.slane %v7814_v55, %v10760_v8 }
 0x7a4   : > { %v7802_v6 = vpop.permute.xlu1 %2252 }
 0x7a5   : > { %10793 = vst [vmem:[#allocation62_spill] sm:$0xff] %v7802_v6  ;;  %v7818_v6 = vrot.slane %v7778_v7, %v10753_v52  ;;  %10797 = vst [vmem:[#allocation66_spill] sm:$0xff] %v7825_v15  ;;  %v2330_v28 = vmul.f32 %v2323_v20, %v7825_v15 }
 0x7a7   : > { %v2369_v57 = vmul.f32 %v2365_v58, %v7818_v6 }
 0x7a9   : > { %v2285_v27 = vpop.permute.xlu1 %2284 }
 0x7aa   : > { %v2291_v12 = vmul.f32 %v2285_v27, %v7806_v11 }
 0x7ac   : > { %2299 = vrot.lane.b32.xlu0 %v2291_v12, %s10513_s0 }
 0x7ad   : > { %v2289_v50 = vpop.permute.xlu1 %2288 }
 0x7ae   : > { %v2293_v38 = vmul.f32 %v2289_v50, %v7806_v11 }
 0x7b0   : > { %2303 = vrot.lane.b32.xlu0 %v2293_v38, %s10513_s0  ;;  %v2399_v38 = vpop.permute.xlu0 %2398 }
 0x7b1   : > { %v2405_v20 = vmul.f32 %v2399_v38, %v7834_v19 }
 0x7b2   : > { %v2327_v51 = vpop.permute.xlu1 %2326 }
 0x7b3   : > { %v2331_v43 = vmul.f32 %v2327_v51, %v7786_v21  ;;  %v2332_v40 = vmul.f32 %v2327_v51, %v7825_v15 }
 0x7b4   : > { %2379 = vrot.lane.b32.xlu0 %v2369_v57, %s10513_s0  ;;  %v7840_v57 = vrot.slane %v7814_v55, %v10754_v33  ;;  %v2441_v33 = vpop.permute.xlu0 %2440 }
 0x7b5   : > { %2341 = vrot.lane.b32.xlu1 %v2331_v43, %s10513_s0 }
 0x7b7   : > { %v2361_v12 = vpop.permute.xlu1 %2360 }
 0x7b8   : > { %v2367_v1 = vmul.f32 %v2361_v12, %v7818_v6  ;;  %2339 = vrot.lane.b32.xlu0 %v2330_v28, %s10513_s0  ;;  %v2406_v28 = vmul.f32 %v2399_v38, %v7840_v57 }
 0x7ba   : > { %2375 = vrot.lane.b32.xlu1 %v2367_v1, %s10513_s0  ;;  %v7850_v1 = vrot.slane %v7814_v55, %v10751_v56 }
 0x7bc   : > { %2343 = vrot.lane.b32.xlu0 %v2332_v40, %s10513_s0  ;;  %v2403_v43 = vpop.permute.xlu1 %2402  ;;  %v7856_v40 = vrot.slane %v7778_v7, %v10755_v36  ;;  %v2292_v38 = vmul.f32 %v2285_v27, %v7850_v1 }
 0x7bd   : > { %v2407_v47 = vmul.f32 %v2403_v43, %v7834_v19  ;;  %v2408_v51 = vmul.f32 %v2403_v43, %v7840_v57 }
 0x7be   : > { %2413 = vrot.lane.b32.xlu1 %v2405_v20, %s10513_s0  ;;  %v2445_v20 = vmul.f32 %v2441_v33, %v7856_v40 }
 0x7c0   : > { %2415 = vrot.lane.b32.xlu0 %v2406_v28, %s10513_s0  ;;  %v2294_v28 = vmul.f32 %v2289_v50, %v7850_v1 }
 0x7c2   : > { %2417 = vrot.lane.b32.xlu1 %v2407_v47, %s10513_s0  ;;  %v7866_v47 = vrot.slane %v7814_v55, %v10753_v52 }
 0x7c4   : > { %2419 = vrot.lane.b32.xlu0 %v2408_v51, %s10513_s0  ;;  %v2368_v43 = vmul.f32 %v2361_v12, %v7866_v47  ;;  %v2370_v27 = vmul.f32 %v2365_v58, %v7866_v47  ;;  %v10798_v51 = vmov 19   ;;  %v7880_v12 = vrot.slane %v7814_v55, %v10755_v36 }
 0x7c6   : > { %2301 = vrot.lane.b32.xlu1 %v2292_v38, %s10513_s0  ;;  %v2437_v38 = vpop.permute.xlu1 %2436  ;;  %v2446_v58 = vmul.f32 %v2441_v33, %v7880_v12 }
 0x7c7   : > { %v2443_v50 = vmul.f32 %v2437_v38, %v7856_v40 }
 0x7c8   : > { %2455 = vrot.lane.b32.xlu0 %v2445_v20, %s10513_s0  ;;  %v10799_v20 = vmov 22  }
 0x7ca   : > { %2305 = vrot.lane.b32.xlu1 %v2294_v28, %s10513_s0  ;;  %v2444_v28 = vmul.f32 %v2437_v38, %v7880_v12 }
 0x7cc   : > { %2474 = vperm.xlu0 %6149, %v7704_v23  }
 0x7ce   : > { %2377 = vrot.lane.b32.xlu1 %v2368_v43, %s10513_s0 }
 0x7d0   : > { %6152 = vset.pattern.permute.xlu0 %v10798_v51 }
 0x7d1   : > { %2516 = vperm.xlu0 %6152, %v7714_v34  }
 0x7d2   : > { %2381 = vrot.lane.b32.xlu1 %v2370_v27, %s10513_s0 }
 0x7d5   : > { %6153 = vset.pattern.permute.xlu0 %v10799_v20 }
 0x7d6   : > { %2451 = vrot.lane.b32.xlu1 %v2443_v50, %s10513_s0 }
 0x7da   : > { %2453 = vrot.lane.b32.xlu1 %v2444_v28, %s10513_s0 }
 0x7de   : > { %2457 = vrot.lane.b32.xlu1 %v2446_v58, %s10513_s0 }
 0x7e2   : > { %2478 = vperm.xlu1 %6150, %v7714_v34  }
 0x7e6   : > { %6151 = vset.pattern.permute.xlu1 %v10798_v51 }
 0x7fb   : > { %v7891_v27 = vpop.permute.xlu1 %2337 }
 0x7fc   : > { %10801 = vst [vmem:[#allocation72_spill] sm:$0xff] %v7891_v27 }
 0x81e   : > { %v7889_v43 = vpop.permute.xlu0 %2299 }
 0x81f   : > { %10800 = vst [vmem:[#allocation68_spill] sm:$0xff] %v7889_v43 }
 0x822   : > { %v7893_v36 = vpop.permute.xlu0 %2303 }
 0x823   : > { %10802 = vst [vmem:[#allocation73_spill] sm:$0xff] %v7893_v36 }
 0x826   : > { %v7897_v50 = vpop.permute.xlu0 %2379 }
 0x827   : > { %v7895_v52 = vpop.permute.xlu1 %2341  ;;  %10804 = vst [vmem:[#allocation79_spill] sm:$0xff] %v7897_v50 }
 0x828   : > { %10803 = vst [vmem:[#allocation74_spill] sm:$0xff] %v7895_v52 }
 0x82a   : > { %v7901_v28 = vpop.permute.xlu0 %2339 }
 0x82b   : > { %10806 = vst [vmem:[#allocation80_spill] sm:$0xff] %v7901_v28 }
 0x82c   : > { %v7899_v38 = vpop.permute.xlu1 %2375 }
 0x82d   : > { %10805 = vst [vmem:[#allocation78_spill] sm:$0xff] %v7899_v38  ;;  %v7923_v38 = vrot.slane %v7778_v7, %v10756_v31 }
 0x82e   : > { %v7907_v56 = vpop.permute.xlu0 %2343 }
 0x82f   : > { %10809 = vst [vmem:[#allocation86_spill] sm:$0xff] %v7907_v56 }
 0x830   : > { %v7903_v33 = vpop.permute.xlu1 %2413 }
 0x831   : > { %10807 = vst [vmem:[#allocation84_spill] sm:$0xff] %v7903_v33 }
 0x832   : > { %v7911_v43 = vpop.permute.xlu0 %2415 }
 0x833   : > { %10811 = vst [vmem:[#allocation23_spill] sm:$0xff] %v7911_v43 }
 0x834   : > { %v7905_v58 = vpop.permute.xlu1 %2417 }
 0x835   : > { %10808 = vst [vmem:[#allocation85_spill] sm:$0xff] %v7905_v58  ;;  %v7927_v58 = vrot.slane %v7814_v55, %v10756_v31 }
 0x836   : > { %v7915_v36 = vpop.permute.xlu0 %2419 }
 0x837   : > { %10813 = vst [vmem:[#allocation24_spill] sm:$0xff] %v7915_v36 }
 0x838   : > { %v7909_v51 = vpop.permute.xlu1 %2301 }
 0x839   : > { %10810 = vst [vmem:[#allocation27_spill] sm:$0xff] %v7909_v51 }
 0x83a   : > { %v7919_v50 = vpop.permute.xlu0 %2455 }
 0x83b   : > { %10815 = vst [vmem:[#allocation26_spill] sm:$0xff] %v7919_v50 }
 0x83c   : > { %v7913_v27 = vpop.permute.xlu1 %2305 }
 0x83d   : > { %10812 = vst [vmem:[#allocation36_spill] sm:$0xff] %v7913_v27 }
 0x840   : > { %v7917_v52 = vpop.permute.xlu1 %2377 }
 0x841   : > { %10814 = vst [vmem:[#allocation30_spill] sm:$0xff] %v7917_v52 }
 0x844   : > { %v7929_v56 = vpop.permute.xlu1 %2381 }
 0x845   : > { %10816 = vst [vmem:[#allocation37_spill] sm:$0xff] %v7929_v56 }
 0x848   : > { %v7935_v50 = vpop.permute.xlu1 %2451 }
 0x849   : > { %10817 = vst [vmem:[#allocation28_spill] sm:$0xff] %v7935_v50 }
 0x84b   : > { %v2475_v33 = vpop.permute.xlu0 %2474 }
 0x84c   : > { %v2481_v43 = vmul.f32 %v2475_v33, %v7923_v38  ;;  %v2482_v27 = vmul.f32 %v2475_v33, %v7927_v58  ;;  %v7937_v36 = vpop.permute.xlu1 %2453 }
 0x84d   : > { %10818 = vst [vmem:[#allocation33_spill] sm:$0xff] %v7937_v36  ;;  %v7971_v36 = vrot.slane %v7814_v55, %v10757_v13  ;;  %v7986_v13 = vrot.slane %v7778_v7, %v10760_v8 }
 0x84e   : > { %2491 = vrot.lane.b32.xlu0 %v2482_v27, %s10513_s0  ;;  %2489 = vrot.lane.b32.xlu1 %v2481_v43, %s10513_s0  ;;  %v10821_v27 = vmov 2  }
 0x84f   : > { %10827 = vst [vmem:[#allocation45_spill] sm:$0xff] %v7971_v36 }
 0x850   : > { %v7939_v52 = vpop.permute.xlu1 %2457  ;;  %v2517_v51 = vpop.permute.xlu0 %2516 }
 0x851   : > { %10819 = vst [vmem:[#allocation29_spill] sm:$0xff] %v7939_v52  ;;  %v2521_v43 = vmul.f32 %v2517_v51, %v7945_v61 }
 0x861   : > { %v2479_v28 = vpop.permute.xlu1 %2478 }
 0x862   : > { %v2483_v31 = vmul.f32 %v2479_v28, %v7923_v38  ;;  %v2484_v56 = vmul.f32 %v2479_v28, %v7927_v58  ;;  %v6339_v28 = vld [vmem:[%s10254_s5 + $0x8] sm:$0xff] }
 0x864   : > { %2495 = vrot.lane.b32.xlu0 %v2484_v56, %s10513_s0  ;;  %2493 = vrot.lane.b32.xlu1 %v2483_v31, %s10513_s0 }
 0x868   : > { %2512 = vperm.xlu1 %6151, %v7704_v23   ;;  %2531 = vrot.lane.b32.xlu0 %v2521_v43, %s10513_s0 }
 0x86c   : > { %2550 = vperm.xlu0 %6153, %v7704_v23   ;;  %6155 = vset.pattern.permute.xlu1 %v10799_v20 }
 0x870   : > { %6154 = vset.pattern.permute.xlu0 %v10821_v27 }
 0x871   : > { %1801 = vperm.xlu0 %6154, %v6339_v28  }
 0x8c0   : > { %v7958_v56 = vpop.permute.xlu0 %2491  ;;  %v7960_v31 = vpop.permute.xlu1 %2489 }
 0x8c1   : > { %10822 = vst [vmem:[#allocation31_spill] sm:$0xff] %v7958_v56  ;;  %10823 = vst [vmem:[#allocation41_spill] sm:$0xff] %v7960_v31 }
 0x8d6   : > { %v7962_v33 = vpop.permute.xlu0 %2495  ;;  %v7964_v52 = vpop.permute.xlu1 %2493 }
 0x8d7   : > { %10824 = vst [vmem:[#allocation40_spill] sm:$0xff] %v7962_v33  ;;  %10825 = vst [vmem:[#allocation46_spill] sm:$0xff] %v7964_v52 }
 0x8da   : > { %v7966_v43 = vpop.permute.xlu0 %2531 }
 0x8db   : > { %10826 = vst [vmem:[#allocation44_spill] sm:$0xff] %v7966_v43  ;;  %v2522_v43 = vmul.f32 %v2517_v51, %v7971_v36 }
 0x8e7   : > { %v2513_v50 = vpop.permute.xlu1 %2512 }
 0x8e8   : > { %v2519_v20 = vmul.f32 %v2513_v50, %v7945_v61  ;;  %v2520_v33 = vmul.f32 %v2513_v50, %v7971_v36 }
 0x8ea   : > { %2527 = vrot.lane.b32.xlu1 %v2519_v20, %s10513_s0 }
 0x8eb   : > { %v2551_v31 = vpop.permute.xlu0 %2550 }
 0x8ec   : > { %v2558_v52 = vmul.f32 %v2551_v31, %v7975_v24  ;;  %v2557_v20 = vmul.f32 %v2551_v31, %v7986_v13  ;;  %v10831_v31 = vmov 5  }
 0x8ee   : > { %2529 = vrot.lane.b32.xlu1 %v2520_v33, %s10513_s0  ;;  %2567 = vrot.lane.b32.xlu0 %v2558_v52, %s10513_s0 }
 0x8f2   : > { %2533 = vrot.lane.b32.xlu1 %v2522_v43, %s10513_s0 }
 0x8f6   : > { %2554 = vperm.xlu1 %6155, %v7714_v34  }
 0x8fa   : > { %2565 = vrot.lane.b32.xlu1 %v2557_v20, %s10513_s0  ;;  %v8006_v20 = vpop.permute.xlu0 %1801 }
 0x8fb   : > { %6156 = vset.pattern.permute.xlu1 %v10821_v27 }
 0x95c   : > { %v7992_v50 = vpop.permute.xlu1 %2527 }
 0x95d   : > { %10828 = vst [vmem:[#allocation51_spill] sm:$0xff] %v7992_v50 }
 0x960   : > { %v7994_v33 = vpop.permute.xlu1 %2529  ;;  %v8010_v8 = vpop.permute.xlu0 %2567 }
 0x961   : > { %10829 = vst [vmem:[#allocation50_spill] sm:$0xff] %v7994_v33  ;;  %10833 = vst [vmem:[#allocation56_spill] sm:$0xff] %v8010_v8 }
 0x964   : > { %v7996_v52 = vpop.permute.xlu1 %2533 }
 0x965   : > { %10830 = vst [vmem:[#allocation52_spill] sm:$0xff] %v7996_v52 }
 0x975   : > { %v2555_v51 = vpop.permute.xlu1 %2554 }
 0x976   : > { %v2559_v43 = vmul.f32 %v2555_v51, %v7986_v13  ;;  %v2560_v55 = vmul.f32 %v2555_v51, %v7975_v24 }
 0x978   : > { %2571 = vrot.lane.b32.xlu0 %v2560_v55, %s10513_s0  ;;  %2569 = vrot.lane.b32.xlu1 %v2559_v43, %s10513_s0  ;;  %s6434_s0 = smov 120  }
 0x979   : > { %v8008_v7 = vpop.permute.xlu1 %2565 }
 0x97a   : > { %10832 = vst [vmem:[#allocation58_spill] sm:$0xff] %v8008_v7 }
 0x97c   : > { %2595 = vperm.xlu0 %6154, %v7714_v34   ;;  %2591 = vperm.xlu1 %6156, %v7704_v23  }
 0x980   : > { %6157 = vset.pattern.permute.xlu0 %v10831_v31  ;;  %6158 = vset.pattern.permute.xlu1 %v10831_v31 }
 0x981   : > { %1897 = vperm.xlu0 %6157, %v6339_v28  }
 0x9ea   : > { %v8012_v51 = vpop.permute.xlu1 %2569  ;;  %v8014_v55 = vpop.permute.xlu0 %2571 }
 0x9eb   : > { %10834 = vst [vmem:[#allocation57_spill] sm:$0xff] %v8012_v51  ;;  %10835 = vst [vmem:[#allocation64_spill] sm:$0xff] %v8014_v55 }
 0x9fb   : > { %v2592_v43 = vpop.permute.xlu1 %2591  ;;  %v2596_v33 = vpop.permute.xlu0 %2595 }
 0x9fc   : > { %v2610_v52 = vmul.f32 %v2592_v43, %v7806_v11  ;;  %v2612_v50 = vmul.f32 %v2592_v43, %v6982_v3  ;;  %v2611_v28 = vmul.f32 %v2592_v43, %v7850_v1  ;;  %v2614_v7 = vmul.f32 %v2596_v33, %v7850_v1 }
 0x9fd   : > { %v2613_v51 = vmul.f32 %v2596_v33, %v7806_v11  ;;  %v2615_v55 = vmul.f32 %v2596_v33, %v6982_v3 }
 0x9fe   : > { %2626 = vrot.lane.b32.xlu0 %v2612_v50, %s6432_s19  ;;  %2622 = vrot.lane.b32.xlu1 %v2610_v52, %s6432_s19  ;;  %v10836_v50 = vmov 8  }
 0xa00   : > { %v8032_v52 = vpop.permute.xlu0 %1897 }
 0xa02   : > { %2624 = vrot.lane.b32.xlu1 %v2611_v28, %s6432_s19  ;;  %2630 = vrot.lane.b32.xlu0 %v2614_v7, %s6432_s19 }
 0xa06   : > { %2652 = vperm.xlu0 %6157, %v7704_v23   ;;  %2628 = vrot.lane.b32.xlu1 %v2613_v51, %s6432_s19 }
 0xa0a   : > { %2632 = vrot.lane.b32.xlu1 %v2615_v55, %s6432_s19  ;;  %6160 = vset.pattern.permute.xlu0 %v10836_v50 }
 0xa0e   : > { %2656 = vperm.xlu1 %6158, %v7714_v34  }
 0xa12   : > { %6159 = vset.pattern.permute.xlu1 %v10836_v50 }
 0xa70   : > { %v8034_v43 = vpop.permute.xlu1 %2622  ;;  %v8036_v7 = vpop.permute.xlu0 %2626 }
 0xa71   : > { %10837 = vst [vmem:[#allocation63_spill] sm:$0xff] %v8034_v43  ;;  %10838 = vst [vmem:[#allocation65_spill] sm:$0xff] %v8036_v7 }
 0xa74   : > { %v8038_v28 = vpop.permute.xlu1 %2624  ;;  %v8040_v8 = vpop.permute.xlu0 %2630 }
 0xa75   : > { %10839 = vst [vmem:[#allocation71_spill] sm:$0xff] %v8038_v28  ;;  %10840 = vst [vmem:[#allocation69_spill] sm:$0xff] %v8040_v8 }
 0xa78   : > { %v8042_v51 = vpop.permute.xlu1 %2628 }
 0xa79   : > { %10841 = vst [vmem:[#allocation70_spill] sm:$0xff] %v8042_v51 }
 0xa7c   : > { %v8048_v50 = vpop.permute.xlu1 %2632 }
 0xa7d   : > { %10842 = vst [vmem:[#allocation76_spill] sm:$0xff] %v8048_v50 }
 0xa85   : > { %v2653_v33 = vpop.permute.xlu0 %2652 }
 0xa86   : > { %v2671_v55 = vmul.f32 %v2653_v33, %v7786_v21  ;;  %v2672_v56 = vmul.f32 %v2653_v33, %v7825_v15  ;;  %v2673_v43 = vmul.f32 %v2653_v33, %v7014_v0 }
 0xa88   : > { %2685 = vrot.lane.b32.xlu0 %v2672_v56, %s6432_s19  ;;  %2683 = vrot.lane.b32.xlu1 %v2671_v55, %s6432_s19  ;;  %v10843_v56 = vmov 11  }
 0xa8c   : > { %2687 = vrot.lane.b32.xlu1 %v2673_v43, %s6432_s19 }
 0xa8d   : > { %v2657_v7 = vpop.permute.xlu1 %2656 }
 0xa8e   : > { %v2674_v8 = vmul.f32 %v2657_v7, %v7786_v21  ;;  %v2675_v51 = vmul.f32 %v2657_v7, %v7825_v15  ;;  %v2676_v28 = vmul.f32 %v2657_v7, %v7014_v0 }
 0xa90   : > { %2689 = vrot.lane.b32.xlu0 %v2674_v8, %s6432_s19  ;;  %2691 = vrot.lane.b32.xlu1 %v2675_v51, %s6432_s19 }
 0xa94   : > { %2693 = vrot.lane.b32.xlu0 %v2676_v28, %s6432_s19  ;;  %2712 = vperm.xlu1 %6159, %v7704_v23  }
 0xa98   : > { %2716 = vperm.xlu0 %6160, %v7714_v34   ;;  %6162 = vset.pattern.permute.xlu1 %v10843_v56 }
 0xa9c   : > { %6161 = vset.pattern.permute.xlu0 %v10843_v56 }
 0xafa   : > { %v8062_v43 = vpop.permute.xlu1 %2683  ;;  %v8064_v33 = vpop.permute.xlu0 %2685 }
 0xafb   : > { %10844 = vst [vmem:[#allocation75_spill] sm:$0xff] %v8062_v43  ;;  %10845 = vst [vmem:[#allocation77_spill] sm:$0xff] %v8064_v33 }
 0xafe   : > { %v8066_v55 = vpop.permute.xlu1 %2687 }
 0xaff   : > { %10846 = vst [vmem:[#allocation83_spill] sm:$0xff] %v8066_v55 }
 0xb02   : > { %v8068_v8 = vpop.permute.xlu0 %2689  ;;  %v8070_v51 = vpop.permute.xlu1 %2691 }
 0xb03   : > { %10847 = vst [vmem:[#allocation81_spill] sm:$0xff] %v8068_v8  ;;  %10848 = vst [vmem:[#allocation82_spill] sm:$0xff] %v8070_v51 }
 0xb06   : > { %v8072_v7 = vpop.permute.xlu0 %2693 }
 0xb07   : > { %10849 = vst [vmem:[#allocation11_spill] sm:$0xff] %v8072_v7 }
 0xb13   : > { %v2713_v28 = vpop.permute.xlu1 %2712 }
 0xb14   : > { %v2731_v50 = vmul.f32 %v2713_v28, %v7818_v6  ;;  %v2733_v15 = vmul.f32 %v2713_v28, %v7044_v37  ;;  %v2732_v43 = vmul.f32 %v2713_v28, %v7866_v47 }
 0xb16   : > { %2747 = vrot.lane.b32.xlu0 %v2733_v15, %s6432_s19  ;;  %2743 = vrot.lane.b32.xlu1 %v2731_v50, %s6432_s19  ;;  %v10850_v15 = vmov 14  }
 0xb17   : > { %v2717_v56 = vpop.permute.xlu0 %2716 }
 0xb18   : > { %v2735_v55 = vmul.f32 %v2717_v56, %v7866_v47  ;;  %v2734_v7 = vmul.f32 %v2717_v56, %v7818_v6  ;;  %v2736_v8 = vmul.f32 %v2717_v56, %v7044_v37 }
 0xb1a   : > { %2751 = vrot.lane.b32.xlu0 %v2735_v55, %s6432_s19  ;;  %2745 = vrot.lane.b32.xlu1 %v2732_v43, %s6432_s19 }
 0xb1e   : > { %2772 = vperm.xlu0 %6161, %v7704_v23   ;;  %2749 = vrot.lane.b32.xlu1 %v2734_v7, %s6432_s19 }
 0xb22   : > { %2753 = vrot.lane.b32.xlu1 %v2736_v8, %s6432_s19  ;;  %6164 = vset.pattern.permute.xlu0 %v10850_v15 }
 0xb26   : > { %2776 = vperm.xlu1 %6162, %v7714_v34  }
 0xb2a   : > { %6163 = vset.pattern.permute.xlu1 %v10850_v15 }
 0xb88   : > { %v8090_v50 = vpop.permute.xlu1 %2743  ;;  %v8092_v55 = vpop.permute.xlu0 %2747 }
 0xb89   : > { %10851 = vst [vmem:[#allocation20_spill] sm:$0xff] %v8090_v50  ;;  %10852 = vst [vmem:[#allocation87_spill] sm:$0xff] %v8092_v55 }
 0xb8c   : > { %v8094_v43 = vpop.permute.xlu1 %2745  ;;  %v8096_v28 = vpop.permute.xlu0 %2751 }
 0xb8d   : > { %10853 = vst [vmem:[#allocation88_spill] sm:$0xff] %v8094_v43  ;;  %10854 = vst [vmem:[#allocation89_spill] sm:$0xff] %v8096_v28 }
 0xb90   : > { %v8098_v51 = vpop.permute.xlu1 %2749 }
 0xb91   : > { %10855 = vst [vmem:[#allocation90_spill] sm:$0xff] %v8098_v51 }
 0xb94   : > { %v8104_v15 = vpop.permute.xlu1 %2753 }
 0xb95   : > { %10856 = vst [vmem:[#allocation91_spill] sm:$0xff] %v8104_v15 }
 0xb9d   : > { %v2773_v7 = vpop.permute.xlu0 %2772 }
 0xb9e   : > { %v2791_v56 = vmul.f32 %v2773_v7, %v7834_v19  ;;  %v2792_v8 = vmul.f32 %v2773_v7, %v7840_v57  ;;  %v2793_v50 = vmul.f32 %v2773_v7, %v10697_v30  ;;  %v10857_v7 = vmov 17  }
 0xba0   : > { %2805 = vrot.lane.b32.xlu0 %v2792_v8, %s6432_s19  ;;  %2803 = vrot.lane.b32.xlu1 %v2791_v56, %s6432_s19 }
 0xba4   : > { %2807 = vrot.lane.b32.xlu1 %v2793_v50, %s6432_s19 }
 0xba5   : > { %v2777_v55 = vpop.permute.xlu1 %2776 }
 0xba6   : > { %v2794_v43 = vmul.f32 %v2777_v55, %v7834_v19  ;;  %v2795_v51 = vmul.f32 %v2777_v55, %v7840_v57  ;;  %v2796_v28 = vmul.f32 %v2777_v55, %v10697_v30 }
 0xba8   : > { %2811 = vrot.lane.b32.xlu1 %v2795_v51, %s6432_s19  ;;  %2809 = vrot.lane.b32.xlu0 %v2794_v43, %s6432_s19 }
 0xbac   : > { %2832 = vperm.xlu1 %6163, %v7704_v23   ;;  %2813 = vrot.lane.b32.xlu0 %v2796_v28, %s6432_s19 }
 0xbb0   : > { %2836 = vperm.xlu0 %6164, %v7714_v34   ;;  %6166 = vset.pattern.permute.xlu1 %v10857_v7 }
 0xbb4   : > { %6165 = vset.pattern.permute.xlu0 %v10857_v7 }
 0xc12   : > { %v8118_v50 = vpop.permute.xlu1 %2803  ;;  %v8120_v56 = vpop.permute.xlu0 %2805 }
 0xc13   : > { %10858 = vst [vmem:[#allocation92_spill] sm:$0xff] %v8118_v50  ;;  %10859 = vst [vmem:[#allocation93_spill] sm:$0xff] %v8120_v56 }
 0xc16   : > { %v8122_v8 = vpop.permute.xlu1 %2807 }
 0xc17   : > { %10860 = vst [vmem:[#allocation94_spill] sm:$0xff] %v8122_v8 }
 0xc1a   : > { %v8124_v51 = vpop.permute.xlu0 %2809  ;;  %v8126_v43 = vpop.permute.xlu1 %2811 }
 0xc1b   : > { %10861 = vst [vmem:[#allocation95_spill] sm:$0xff] %v8124_v51  ;;  %10862 = vst [vmem:[#allocation96_spill] sm:$0xff] %v8126_v43 }
 0xc1e   : > { %v8128_v55 = vpop.permute.xlu0 %2813 }
 0xc1f   : > { %10863 = vst [vmem:[#allocation97_spill] sm:$0xff] %v8128_v55 }
 0xc2b   : > { %v2833_v15 = vpop.permute.xlu1 %2832 }
 0xc2c   : > { %v2851_v28 = vmul.f32 %v2833_v15, %v7856_v40  ;;  %v2853_v33 = vmul.f32 %v2833_v15, %v7108_v63  ;;  %v2852_v50 = vmul.f32 %v2833_v15, %v7880_v12 }
 0xc2e   : > { %2867 = vrot.lane.b32.xlu0 %v2853_v33, %s6432_s19  ;;  %2863 = vrot.lane.b32.xlu1 %v2851_v28, %s6432_s19  ;;  %v10864_v33 = vmov 20  }
 0xc2f   : > { %v2837_v7 = vpop.permute.xlu0 %2836 }
 0xc30   : > { %v2855_v8 = vmul.f32 %v2837_v7, %v7880_v12  ;;  %v2854_v56 = vmul.f32 %v2837_v7, %v7856_v40  ;;  %v2856_v55 = vmul.f32 %v2837_v7, %v7108_v63 }
 0xc32   : > { %2871 = vrot.lane.b32.xlu0 %v2855_v8, %s6432_s19  ;;  %2865 = vrot.lane.b32.xlu1 %v2852_v50, %s6432_s19 }
 0xc36   : > { %2892 = vperm.xlu0 %6165, %v7704_v23   ;;  %2869 = vrot.lane.b32.xlu1 %v2854_v56, %s6432_s19 }
 0xc3a   : > { %2873 = vrot.lane.b32.xlu1 %v2856_v55, %s6432_s19  ;;  %6168 = vset.pattern.permute.xlu0 %v10864_v33 }
 0xc3e   : > { %2896 = vperm.xlu1 %6166, %v7714_v34  }
 0xc42   : > { %6167 = vset.pattern.permute.xlu1 %v10864_v33 }
 0xca0   : > { %v8146_v15 = vpop.permute.xlu1 %2863  ;;  %v8148_v8 = vpop.permute.xlu0 %2867 }
 0xca1   : > { %10865 = vst [vmem:[#allocation98_spill] sm:$0xff] %v8146_v15  ;;  %10866 = vst [vmem:[#allocation99_spill] sm:$0xff] %v8148_v8 }
 0xca4   : > { %v8150_v50 = vpop.permute.xlu1 %2865  ;;  %v8152_v28 = vpop.permute.xlu0 %2871 }
 0xca5   : > { %10867 = vst [vmem:[#allocation100_spill] sm:$0xff] %v8150_v50  ;;  %10868 = vst [vmem:[#allocation101_spill] sm:$0xff] %v8152_v28 }
 0xca8   : > { %v8154_v51 = vpop.permute.xlu1 %2869 }
 0xca9   : > { %10869 = vst [vmem:[#allocation102_spill] sm:$0xff] %v8154_v51 }
 0xcac   : > { %v8160_v33 = vpop.permute.xlu1 %2873 }
 0xcad   : > { %10870 = vst [vmem:[#allocation103_spill] sm:$0xff] %v8160_v33 }
 0xcb5   : > { %v2893_v56 = vpop.permute.xlu0 %2892 }
 0xcb6   : > { %v2911_v7 = vmul.f32 %v2893_v56, %v7923_v38  ;;  %v2912_v55 = vmul.f32 %v2893_v56, %v7927_v58  ;;  %v2913_v15 = vmul.f32 %v2893_v56, %v7142_v39  ;;  %v10871_v56 = vmov 23  }
 0xcb8   : > { %2925 = vrot.lane.b32.xlu0 %v2912_v55, %s6432_s19  ;;  %2923 = vrot.lane.b32.xlu1 %v2911_v7, %s6432_s19 }
 0xcbc   : > { %2927 = vrot.lane.b32.xlu1 %v2913_v15, %s6432_s19 }
 0xcbd   : > { %v2897_v8 = vpop.permute.xlu1 %2896 }
 0xcbe   : > { %v2914_v50 = vmul.f32 %v2897_v8, %v7923_v38  ;;  %v2915_v51 = vmul.f32 %v2897_v8, %v7927_v58  ;;  %v2916_v28 = vmul.f32 %v2897_v8, %v7142_v39 }
 0xcc0   : > { %2931 = vrot.lane.b32.xlu1 %v2915_v51, %s6432_s19  ;;  %2929 = vrot.lane.b32.xlu0 %v2914_v50, %s6432_s19 }
 0xcc4   : > { %2952 = vperm.xlu1 %6167, %v7704_v23   ;;  %2933 = vrot.lane.b32.xlu0 %v2916_v28, %s6432_s19 }
 0xcc8   : > { %2956 = vperm.xlu0 %6168, %v7714_v34   ;;  %6171 = vset.pattern.permute.xlu1 %v10871_v56 }
 0xccc   : > { %6169 = vset.pattern.permute.xlu0 %v10871_v56 }
 0xd2a   : > { %v8174_v15 = vpop.permute.xlu1 %2923  ;;  %v8176_v7 = vpop.permute.xlu0 %2925 }
 0xd2b   : > { %10872 = vst [vmem:[#allocation104_spill] sm:$0xff] %v8174_v15  ;;  %10873 = vst [vmem:[#allocation105_spill] sm:$0xff] %v8176_v7 }
 0xd2e   : > { %v8178_v55 = vpop.permute.xlu1 %2927 }
 0xd2f   : > { %10874 = vst [vmem:[#allocation106_spill] sm:$0xff] %v8178_v55 }
 0xd32   : > { %v8180_v51 = vpop.permute.xlu0 %2929  ;;  %v8182_v50 = vpop.permute.xlu1 %2931 }
 0xd33   : > { %10875 = vst [vmem:[#allocation107_spill] sm:$0xff] %v8180_v51  ;;  %10876 = vst [vmem:[#allocation108_spill] sm:$0xff] %v8182_v50 }
 0xd36   : > { %v8184_v8 = vpop.permute.xlu0 %2933 }
 0xd37   : > { %10877 = vst [vmem:[#allocation109_spill] sm:$0xff] %v8184_v8 }
 0xd43   : > { %v2953_v33 = vpop.permute.xlu1 %2952 }
 0xd44   : > { %v2971_v28 = vmul.f32 %v2953_v33, %v7945_v61  ;;  %v2973_v43 = vmul.f32 %v2953_v33, %v7172_v5  ;;  %v2972_v15 = vmul.f32 %v2953_v33, %v7971_v36  ;;  %v2008_v33 = vld [vmem:[%s10257_s8] sm:$0xff] }
 0xd46   : > { %2987 = vrot.lane.b32.xlu0 %v2973_v43, %s6432_s19  ;;  %2983 = vrot.lane.b32.xlu1 %v2971_v28, %s6432_s19  ;;  %v1719_v43 = vld [vmem:[%s10255_s6 + $0x8] sm:$0xff]  ;;  %v10878_v28 = vmov 0  }
 0xd47   : > { %v2957_v56 = vpop.permute.xlu0 %2956 }
 0xd48   : > { %v2975_v55 = vmul.f32 %v2957_v56, %v7971_v36  ;;  %v2974_v7 = vmul.f32 %v2957_v56, %v7945_v61  ;;  %v2976_v8 = vmul.f32 %v2957_v56, %v7172_v5 }
 0xd4a   : > { %2991 = vrot.lane.b32.xlu0 %v2975_v55, %s6432_s19  ;;  %2985 = vrot.lane.b32.xlu1 %v2972_v15, %s6432_s19 }
 0xd4e   : > { %3012 = vperm.xlu0 %6169, %v7704_v23   ;;  %2989 = vrot.lane.b32.xlu1 %v2974_v7, %s6432_s19 }
 0xd52   : > { %6170 = vset.pattern.permute.xlu0 %v10878_v28  ;;  %2993 = vrot.lane.b32.xlu1 %v2976_v8, %s6432_s19 }
 0xd53   : > { %1727 = vperm.xlu0 %6170, %v1719_v43  }
 0xd56   : > { %3016 = vperm.xlu1 %6171, %v7714_v34  }
 0xd57   : > { %2012 = vperm.xlu0 %6170, %v2008_v33  }
 0xd5a   : > { %6172 = vset.pattern.permute.xlu1 %v10878_v28 }
 0xd5b   : > { %2032 = vperm.xlu0 %6170, %v7714_v34  }
 0xdb8   : > { %v8209_v23 = vpop.permute.xlu1 %2983  ;;  %v8211_v56 = vpop.permute.xlu0 %2987 }
 0xdb9   : > { %10879 = vst [vmem:[#allocation110_spill] sm:$0xff] %v8209_v23  ;;  %10880 = vst [vmem:[#allocation111_spill] sm:$0xff] %v8211_v56  ;;  %v1755_v56 = vmul.f32 %v7564_v44, %v7515_v54  ;;  %v1756_v23 = vmul.f32 %v7572_v62, %v7515_v54  ;;  %v1819_v62 = vmul.f32 %v7590_v10, %v8006_v20 }
 0xdbc   : > { %v8213_v15 = vpop.permute.xlu1 %2985  ;;  %v8215_v7 = vpop.permute.xlu0 %2991 }
 0xdbd   : > { %10881 = vst [vmem:[#allocation112_spill] sm:$0xff] %v8213_v15  ;;  %10882 = vst [vmem:[#allocation113_spill] sm:$0xff] %v8215_v7  ;;  %v1757_v15 = vmul.f32 %v7580_v17, %v7515_v54  ;;  %v1787_v7 = vmul.f32 %v7568_v46, %v7538_v25  ;;  %v1820_v54 = vmul.f32 %v7596_v14, %v8006_v20 }
 0xdbe   : > { %v1821_v46 = vmul.f32 %v7617_v4, %v8006_v20  ;;  %v1853_v14 = vmul.f32 %v7623_v59, %v7558_v18  ;;  %v1915_v59 = vmul.f32 %v7647_v53, %v8032_v52  ;;  %v1917_v53 = vmul.f32 %v7651_v48, %v8032_v52 }
 0xdc0   : > { %v8217_v55 = vpop.permute.xlu1 %2989 }
 0xdc1   : > { %10883 = vst [vmem:[#allocation114_spill] sm:$0xff] %v8217_v55 }
 0xdc4   : > { %v8230_v55 = vpop.permute.xlu1 %2993 }
 0xdc5   : > { %10884 = vst [vmem:[#allocation115_spill] sm:$0xff] %v8230_v55 }
 0xdcd   : > { %v3013_v8 = vpop.permute.xlu0 %3012 }
 0xdce   : > { %v3031_v43 = vmul.f32 %v3013_v8, %v7986_v13  ;;  %v3032_v51 = vmul.f32 %v3013_v8, %v7975_v24  ;;  %v3033_v33 = vmul.f32 %v3013_v8, %v7204_v49  ;;  %v1788_v8 = vmul.f32 %v7576_v9, %v7538_v25 }
 0xdd0   : > { %3045 = vrot.lane.b32.xlu0 %v3032_v51, %s6432_s19  ;;  %3043 = vrot.lane.b32.xlu1 %v3031_v43, %s6432_s19  ;;  %v1789_v43 = vmul.f32 %v7586_v45, %v7538_v25  ;;  %v1851_v25 = vmul.f32 %v7605_v26, %v7558_v18  ;;  %v1852_v45 = vmul.f32 %v7627_v16, %v7558_v18  ;;  %v3097_v16 = vld [vmem:[%s10259_s10] sm:$0xff] }
 0xdd1   : > { %v1884_v18 = vmul.f32 %v7643_v22, %v7612_v2  ;;  %v1916_v22 = vmul.f32 %v7655_v41, %v8032_v52  ;;  %v10889_v52 = vld [vmem:[#allocation15_spill] sm:$0xff] }
 0xdd2   : > { %v1728_v51 = vpop.permute.xlu0 %1727 }
 0xdd3   : > { %v1761_v50 = vadd.f32 %v1755_v56, %v1728_v51  ;;  %v1762_v44 = vadd.f32 %v1756_v23, %v1728_v51  ;;  %v1763_v36 = vadd.f32 %v1757_v15, %v1728_v51 }
 0xdd4   : > { %3047 = vrot.lane.b32.xlu1 %v3033_v33, %s6432_s19  ;;  %v1885_v33 = vmul.f32 %v7639_v29, %v7612_v2  ;;  %v10885_v29 = vld [vmem:[#allocation13_spill] sm:$0xff] }
 0xdd5   : > { %v1793_v17 = vadd.f32 %v1787_v7, %v1761_v50  ;;  %v1794_v9 = vadd.f32 %v1788_v8, %v1762_v44  ;;  %v1795_v55 = vadd.f32 %v1789_v43, %v1763_v36  ;;  %v3017_v61 = vpop.permute.xlu1 %3016  ;;  %v1883_v50 = vmul.f32 %v7635_v35, %v7612_v2  ;;  %v3098_v8 = vld [vmem:[%s10259_s10 + $0x8] sm:$0xff]  ;;  %v3095_v43 = vld [vmem:[%s10258_s9] sm:$0xff] }
 0xdd6   : > { %v3034_v10 = vmul.f32 %v3017_v61, %v7986_v13  ;;  %v3035_v23 = vmul.f32 %v3017_v61, %v7975_v24  ;;  %v3036_v7 = vmul.f32 %v3017_v61, %v7204_v49  ;;  %v1947_v35 = vmul.f32 %v7668_v42, %v7760_v60  ;;  %v10886_v42 = vld [vmem:[#allocation10_spill] sm:$0xff] }
 0xdd7   : > { %v1825_v56 = vadd.f32 %v1819_v62, %v1793_v17  ;;  %v1826_v15 = vadd.f32 %v1820_v54, %v1794_v9  ;;  %v1827_v4 = vadd.f32 %v1821_v46, %v1795_v55  ;;  %v1979_v44 = vmul.f32 %v10885_v29, %v7762_v32  ;;  %v10887_v46 = vld [vmem:[#allocation12_spill] sm:$0xff]  ;;  %v10900_v29 = vld [vmem:[#allocation66_spill] sm:$0xff] }
 0xdd8   : > { %3051 = vrot.lane.b32.xlu1 %v3035_v23, %s6432_s19  ;;  %3049 = vrot.lane.b32.xlu0 %v3034_v10, %s6432_s19  ;;  %v1948_v54 = vmul.f32 %v10886_v42, %v7760_v60  ;;  %v1949_v41 = vmul.f32 %v10887_v46, %v7760_v60  ;;  %v3096_v23 = vld [vmem:[%s10258_s9 + $0x8] sm:$0xff] }
 0xdd9   : > { %v1857_v36 = vadd.f32 %v1851_v25, %v1825_v56  ;;  %v1858_v20 = vadd.f32 %v1852_v45, %v1826_v15  ;;  %v1859_v26 = vadd.f32 %v1853_v14, %v1827_v4  ;;  %v1980_v25 = vmul.f32 %v10889_v52, %v7762_v32  ;;  %v10890_v45 = vld [vmem:[#allocation35_spill] sm:$0xff] }
 0xdda   : > { %v1981_v10 = vmul.f32 %v10890_v45, %v7762_v32  ;;  %v10891_v15 = vmov 1   ;;  %v10894_v32 = vmov 4  }
 0xddb   : > { %v1889_v55 = vadd.f32 %v1883_v50, %v1857_v36  ;;  %v1890_v51 = vadd.f32 %v1884_v18, %v1858_v20  ;;  %v1891_v2 = vadd.f32 %v1885_v33, %v1859_v26  ;;  %v10895_v36 = vmov 3  }
 0xddc   : > { %3053 = vrot.lane.b32.xlu0 %v3036_v7, %s6432_s19  ;;  %3101 = vperm.xlu1 %6172, %v3097_v16   ;;  %v10896_v20 = vmov 7   ;;  %v10897_v26 = vmov 6   ;;  %v2013_v16 = vpop.permute.xlu0 %2012 }
 0xddd   : > { %v1921_v61 = vadd.f32 %v1915_v59, %v1889_v55  ;;  %v1922_v17 = vadd.f32 %v1916_v22, %v1890_v51  ;;  %v1923_v9 = vadd.f32 %v1917_v53, %v1891_v2  ;;  %v10899_v51 = vld [vmem:[#allocation42_spill] sm:$0xff] }
 0xdde   : > { %v2079_v22 = vmul.f32 %v10899_v51, %v7014_v0 }
 0xddf   : > { %v1953_v62 = vadd.f32 %v1947_v35, %v1921_v61  ;;  %v1954_v14 = vadd.f32 %v1948_v54, %v1922_v17  ;;  %v1955_v56 = vadd.f32 %v1949_v41, %v1923_v9  ;;  %v10901_v54 = vld [vmem:[#allocation49_spill] sm:$0xff] }
 0xde0   : > { %3106 = vperm.xlu0 %6170, %v3098_v8   ;;  %3111 = vperm.xlu1 %6172, %v3095_v43   ;;  %v2033_v50 = vpop.permute.xlu0 %2032  ;;  %v2111_v46 = vmul.f32 %v10901_v54, %v7044_v37  ;;  %v2112_v17 = vmul.f32 %v7818_v6, %v10901_v54  ;;  %v2113_v9 = vmul.f32 %v7866_v47, %v10901_v54 }
 0xde1   : > { %v8286_v48 = vadd.f32 %v1979_v44, %v1953_v62  ;;  %v8296_v60 = vadd.f32 %v1980_v25, %v1954_v14  ;;  %v8298_v4 = vadd.f32 %v1981_v10, %v1955_v56  ;;  %v2081_v44 = vmul.f32 %v10900_v29, %v10899_v51  ;;  %v10902_v10 = vld [vmem:[#allocation39_spill] sm:$0xff] }
 0xde2   : > { %v2144_v56 = vmul.f32 %v7834_v19, %v10902_v10 }
 0xde3   : > { %10888 = vst [vmem:[#allocation13_spill] sm:$0xff] %v8286_v48  ;;  %10892 = vst [vmem:[#allocation10_spill] sm:$0xff] %v8296_v60 }
 0xde4   : > { %6173 = vset.pattern.permute.xlu0 %v10891_v15  ;;  %3116 = vperm.xlu1 %6172, %v3096_v23   ;;  %10893 = vst [vmem:[#allocation12_spill] sm:$0xff] %v8298_v4 }
 0xde5   : > { %3144 = vperm.xlu0 %6173, %v3095_v43  }
 0xde8   : > { %6174 = vset.pattern.permute.xlu1 %v10891_v15 }
 0xde9   : > { %6176 = vset.pattern.permute.xlu0 %v10821_v27  ;;  %3148 = vperm.xlu1 %6174, %v3096_v23  }
 0xdea   : > { %3180 = vperm.xlu0 %6176, %v3096_v23  }
 0xded   : > { %6175 = vset.pattern.permute.xlu1 %v10821_v27 }
 0xdee   : > { %6178 = vset.pattern.permute.xlu0 %v10894_v32  ;;  %3176 = vperm.xlu1 %6175, %v3095_v43  }
 0xdef   : > { %3240 = vperm.xlu0 %6178, %v3095_v43  }
 0xdf2   : > { %6177 = vset.pattern.permute.xlu1 %v10895_v36 }
 0xdf3   : > { %6181 = vset.pattern.permute.xlu0 %v10831_v31  ;;  %3208 = vperm.xlu1 %6177, %v3095_v43  }
 0xdf4   : > { %3276 = vperm.xlu0 %6181, %v3096_v23  }
 0xdf7   : > { %3212 = vperm.xlu1 %6177, %v3096_v23  }
 0xdf8   : > { %6183 = vset.pattern.permute.xlu0 %v10896_v20 }
 0xdf9   : > { %3336 = vperm.xlu0 %6183, %v3095_v43  }
 0xdfb   : > { %6179 = vset.pattern.permute.xlu1 %v10894_v32 }
 0xdfc   : > { %3244 = vperm.xlu1 %6179, %v3096_v23  }
 0xdfd   : > { %6184 = vset.pattern.permute.xlu0 %v10895_v36 }
 0xdfe   : > { %2064 = vperm.xlu0 %6184, %v7714_v34   ;;  %v10898_v34 = vld [vmem:[#allocation22_spill] sm:$0xff] }
 0xdff   : > { %v2047_v59 = vmul.f32 %v10898_v34, %v6982_v3  ;;  %v2048_v55 = vmul.f32 %v7806_v11, %v10898_v34  ;;  %v2049_v8 = vmul.f32 %v7850_v1, %v10898_v34 }
 0xe00   : > { %6180 = vset.pattern.permute.xlu1 %v10831_v31 }
 0xe01   : > { %3272 = vperm.xlu1 %6180, %v3095_v43   ;;  %v2053_v35 = vadd.f32 %v2047_v59, %v2013_v16  ;;  %v2054_v61 = vadd.f32 %v2048_v55, %v2013_v16  ;;  %v2055_v53 = vadd.f32 %v2049_v8, %v2013_v16  ;;  %v2145_v16 = vmul.f32 %v7840_v57, %v10902_v10  ;;  %v10903_v8 = vld [vmem:[#allocation53_spill] sm:$0xff] }
 0xe03   : > { %v2085_v62 = vadd.f32 %v2079_v22, %v2053_v35  ;;  %v2087_v41 = vadd.f32 %v2081_v44, %v2055_v53  ;;  %v2175_v35 = vmul.f32 %v10903_v8, %v7108_v63  ;;  %v2177_v22 = vmul.f32 %v7880_v12, %v10903_v8  ;;  %v10904_v44 = vld [vmem:[#allocation55_spill] sm:$0xff] }
 0xe05   : > { %6182 = vset.pattern.permute.xlu1 %v10897_v26  ;;  %v2117_v52 = vadd.f32 %v2111_v46, %v2085_v62  ;;  %v2119_v14 = vadd.f32 %v2113_v9, %v2087_v41  ;;  %v2207_v62 = vmul.f32 %v10904_v44, %v7142_v39  ;;  %v2208_v46 = vmul.f32 %v7923_v38, %v10904_v44 }
 0xe06   : > { %3304 = vperm.xlu1 %6182, %v3095_v43   ;;  %v2080_v43 = vmul.f32 %v7786_v21, %v10899_v51  ;;  %v2176_v51 = vmul.f32 %v7856_v40, %v10903_v8  ;;  %v2209_v41 = vmul.f32 %v7927_v58, %v10904_v44 }
 0xe08   : > { %v2086_v42 = vadd.f32 %v2080_v43, %v2054_v61  ;;  %v2151_v61 = vadd.f32 %v2145_v16, %v2119_v14  ;;  %v10907_v16 = vld [vmem:[#allocation45_spill] sm:$0xff] }
 0xe0a   : > { %3308 = vperm.xlu1 %6182, %v3096_v23   ;;  %v2118_v45 = vadd.f32 %v2112_v17, %v2086_v42  ;;  %v2183_v42 = vadd.f32 %v2177_v22, %v2151_v61 }
 0xe0c   : > { %v2150_v59 = vadd.f32 %v2144_v56, %v2118_v45 }
 0xe0e   : > { %6185 = vset.pattern.permute.xlu1 %v10896_v20  ;;  %v2182_v43 = vadd.f32 %v2176_v51, %v2150_v59 }
 0xe0f   : > { %3340 = vperm.xlu1 %6185, %v3096_v23   ;;  %v2143_v23 = vmul.f32 %v10902_v10, %v10697_v30  ;;  %v2215_v10 = vadd.f32 %v2209_v41, %v2183_v42  ;;  %v2050_v42 = vmul.f32 %v2033_v50, %v6982_v3  ;;  %v2052_v41 = vmul.f32 %v7850_v1, %v2033_v50 }
 0xe10   : > { %v2214_v9 = vadd.f32 %v2208_v46, %v2182_v43  ;;  %v2051_v46 = vmul.f32 %v7806_v11, %v2033_v50 }
 0xe11   : > { %v2149_v34 = vadd.f32 %v2143_v23, %v2117_v52  ;;  %v10905_v52 = vld [vmem:[#allocation43_spill] sm:$0xff]  ;;  %v10906_v23 = vld [vmem:[#allocation38_spill] sm:$0xff] }
 0xe12   : > { %v2239_v45 = vmul.f32 %v10905_v52, %v7172_v5  ;;  %v2240_v14 = vmul.f32 %v10906_v23, %v10905_v52 }
 0xe13   : > { %6186 = vset.pattern.permute.xlu1 %v10878_v28  ;;  %v2181_v53 = vadd.f32 %v2175_v35, %v2149_v34  ;;  %v2241_v34 = vmul.f32 %v10907_v16, %v10905_v52  ;;  %v10908_v35 = vld [vmem:[#allocation62_spill] sm:$0xff]  ;;  %v10910_v52 = vld [vmem:[#allocation68_spill] sm:$0xff] }
 0xe14   : > { %v2246_v8 = vadd.f32 %v2240_v14, %v2214_v9  ;;  %v2271_v61 = vmul.f32 %v10908_v35, %v7204_v49  ;;  %v2272_v22 = vmul.f32 %v7986_v13, %v10908_v35  ;;  %v10909_v9 = vld [vmem:[#allocation27_spill] sm:$0xff] }
 0xe15   : > { %v2213_v17 = vadd.f32 %v2207_v62, %v2181_v53  ;;  %v2247_v51 = vadd.f32 %v2241_v34, %v2215_v10  ;;  %v2273_v53 = vmul.f32 %v7975_v24, %v10908_v35  ;;  %v10911_v34 = vld [vmem:[#allocation25_spill] sm:$0xff] }
 0xe16   : > { %v2278_v62 = vadd.f32 %v2272_v22, %v2246_v8  ;;  %v2056_v35 = vadd.f32 %v2050_v42, %v10911_v34  ;;  %v2058_v8 = vadd.f32 %v2052_v41, %v10911_v34  ;;  %v10913_v42 = vld [vmem:[#allocation80_spill] sm:$0xff] }
 0xe17   : > { %v2245_v59 = vadd.f32 %v2239_v45, %v2213_v17  ;;  %v2279_v17 = vadd.f32 %v2273_v53, %v2247_v51  ;;  %v2307_v45 = vsel %vm1255_vm2, %v10910_v52, %v10909_v9  ;;  %v10912_v51 = vld [vmem:[#allocation61_spill] sm:$0xff] }
 0xe18   : > { %v2316_v14 = vadd.f32 %v2307_v45, %v2278_v62  ;;  %v2114_v53 = vmul.f32 %v10912_v51, %v7044_v37  ;;  %v2116_v62 = vmul.f32 %v7866_v47, %v10912_v51 }
 0xe19   : > { %v2277_v43 = vadd.f32 %v2271_v61, %v2245_v59  ;;  %v2057_v59 = vadd.f32 %v2051_v46, %v10911_v34  ;;  %v2317_v22 = vadd.f32 %v10909_v9, %v2279_v17  ;;  %v10914_v46 = vld [vmem:[#allocation72_spill] sm:$0xff] }
 0xe1a   : > { %v2345_v41 = vsel %vm1255_vm2, %v10914_v46, %v10913_v42 }
 0xe1b   : > { %v2315_v10 = vadd.f32 %v10910_v52, %v2277_v43  ;;  %v2115_v43 = vmul.f32 %v7818_v6, %v10912_v51  ;;  %v2355_v47 = vadd.f32 %v10913_v42, %v2317_v22 }
 0xe1d   : > { %v2353_v17 = vadd.f32 %v10914_v46, %v2315_v10  ;;  %v10916_v10 = vld [vmem:[#allocation32_spill] sm:$0xff] }
 0xe42   : > { %v8314_v7 = vpop.permute.xlu0 %3045 }
 0xe4a   : > { %v8316_v18 = vpop.permute.xlu0 %3049 }
 0xe4e   : > { %v8322_v33 = vpop.permute.xlu0 %3053 }
 0xe5f   : > { %v8330_v2 = vpop.permute.xlu0 %3106 }
 0xe64   : > { %v8340_v25 = vpop.permute.xlu0 %3144 }
 0xe69   : > { %v8348_v55 = vpop.permute.xlu0 %3180 }
 0xe6e   : > { %v8358_v54 = vpop.permute.xlu0 %3240 }
 0xe73   : > { %v8368_v56 = vpop.permute.xlu0 %3276 }
 0xe78   : > { %v8378_v44 = vpop.permute.xlu0 %3336 }
 0xe7d   : > { %v2065_v61 = vpop.permute.xlu0 %2064 }
 0xe7e   : > { %v2082_v11 = vmul.f32 %v2065_v61, %v7014_v0  ;;  %v2083_v1 = vmul.f32 %v7786_v21, %v2065_v61  ;;  %v2084_v50 = vmul.f32 %v10900_v29, %v2065_v61  ;;  %v10915_v29 = vld [vmem:[#allocation54_spill] sm:$0xff]  ;;  %v2354_v61 = vadd.f32 %v2345_v41, %v2316_v14 }
 0xe7f   : > { %v2146_v45 = vmul.f32 %v10915_v29, %v10697_v30  ;;  %v2147_v34 = vmul.f32 %v7834_v19, %v10915_v29  ;;  %v2148_v6 = vmul.f32 %v7840_v57, %v10915_v29  ;;  %v10918_v19 = vld [vmem:[#allocation78_spill] sm:$0xff] }
 0xe80   : > { %v2088_v9 = vadd.f32 %v2082_v11, %v2056_v35  ;;  %v2089_v52 = vadd.f32 %v2083_v1, %v2057_v59  ;;  %v2090_v21 = vadd.f32 %v2084_v50, %v2058_v8  ;;  %v2178_v35 = vmul.f32 %v10916_v10, %v7108_v63  ;;  %v10917_v11 = vld [vmem:[#allocation30_spill] sm:$0xff] }
 0xe81   : > { %v2179_v59 = vmul.f32 %v7856_v40, %v10916_v10  ;;  %v2180_v8 = vmul.f32 %v7880_v12, %v10916_v10  ;;  %v2383_v1 = vsel %vm1255_vm2, %v10918_v19, %v10917_v11  ;;  %v2391_v57 = vadd.f32 %v10918_v19, %v2353_v17  ;;  %v10920_v17 = vld [vmem:[#allocation60_spill] sm:$0xff] }
 0xe82   : > { %v2120_v51 = vadd.f32 %v2114_v53, %v2088_v9  ;;  %v2121_v60 = vadd.f32 %v2115_v43, %v2089_v52  ;;  %v2122_v4 = vadd.f32 %v2116_v62, %v2090_v21  ;;  %v10919_v53 = vld [vmem:[#allocation59_spill] sm:$0xff]  ;;  %v2392_v42 = vadd.f32 %v2383_v1, %v2354_v61  ;;  %v10923_v61 = vld [vmem:[#allocation48_spill] sm:$0xff] }
 0xe83   : > { %v2210_v43 = vmul.f32 %v10919_v53, %v7142_v39  ;;  %v2211_v62 = vmul.f32 %v7923_v38, %v10919_v53  ;;  %v2212_v40 = vmul.f32 %v7927_v58, %v10919_v53  ;;  %v2393_v12 = vadd.f32 %v10917_v11, %v2355_v47  ;;  %v10921_v21 = vld [vmem:[#allocation23_spill] sm:$0xff]  ;;  %v10922_v38 = vld [vmem:[#allocation84_spill] sm:$0xff]  ;;  %v10924_v11 = vld [vmem:[#allocation33_spill] sm:$0xff] }
 0xe84   : > { %v2152_v14 = vadd.f32 %v2146_v45, %v2120_v51  ;;  %v2153_v22 = vadd.f32 %v2147_v34, %v2121_v60  ;;  %v2154_v50 = vadd.f32 %v2148_v6, %v2122_v4  ;;  %v2242_v52 = vmul.f32 %v10920_v17, %v7172_v5  ;;  %v10925_v19 = vld [vmem:[#allocation28_spill] sm:$0xff] }
 0xe85   : > { %v2243_v60 = vmul.f32 %v10906_v23, %v10920_v17  ;;  %v2244_v4 = vmul.f32 %v10907_v16, %v10920_v17  ;;  %v2421_v29 = vsel %vm1255_vm2, %v10922_v38, %v10921_v21  ;;  %v2429_v58 = vadd.f32 %v10922_v38, %v2391_v57  ;;  %v10926_v53 = vld [vmem:[#allocation36_spill] sm:$0xff]  ;;  %v10930_v17 = vld [vmem:[#allocation31_spill] sm:$0xff] }
 0xe86   : > { %v2184_v46 = vadd.f32 %v2178_v35, %v2152_v14  ;;  %v2185_v41 = vadd.f32 %v2179_v59, %v2153_v22  ;;  %v2186_v9 = vadd.f32 %v2180_v8, %v2154_v50  ;;  %v2274_v47 = vmul.f32 %v10923_v61, %v7204_v49 }
 0xe87   : > { %v2275_v51 = vmul.f32 %v7986_v13, %v10923_v61  ;;  %v2276_v23 = vmul.f32 %v7975_v24, %v10923_v61  ;;  %v2430_v10 = vadd.f32 %v2421_v29, %v2392_v42  ;;  %v2431_v16 = vadd.f32 %v10921_v21, %v2393_v12  ;;  %v10927_v13 = vld [vmem:[#allocation73_spill] sm:$0xff] }
 0xe88   : > { %v2216_v45 = vadd.f32 %v2210_v43, %v2184_v46  ;;  %v2217_v34 = vadd.f32 %v2211_v62, %v2185_v41  ;;  %v2218_v6 = vadd.f32 %v2212_v40, %v2186_v9  ;;  %v2459_v1 = vsel %vm1255_vm2, %v10925_v19, %v10924_v11  ;;  %v10928_v46 = vld [vmem:[#allocation86_spill] sm:$0xff] }
 0xe89   : > { %v2467_v57 = vadd.f32 %v10925_v19, %v2429_v58  ;;  %v2308_v43 = vsel %vm1255_vm2, %v10927_v13, %v10926_v53  ;;  %v2468_v24 = vadd.f32 %v2459_v1, %v2430_v10  ;;  %v2469_v62 = vadd.f32 %v10924_v11, %v2431_v16  ;;  %v10929_v41 = vld [vmem:[#allocation74_spill] sm:$0xff]  ;;  %v10932_v58 = vld [vmem:[#allocation37_spill] sm:$0xff]  ;;  %v10934_v10 = vld [vmem:[#allocation24_spill] sm:$0xff] }
 0xe8a   : > { %v2248_v35 = vadd.f32 %v2242_v52, %v2216_v45  ;;  %v2249_v59 = vadd.f32 %v2243_v60, %v2217_v34  ;;  %v2250_v8 = vadd.f32 %v2244_v4, %v2218_v6  ;;  %v2346_v9 = vsel %vm1255_vm2, %v10929_v41, %v10928_v46  ;;  %v10931_v52 = vld [vmem:[#allocation41_spill] sm:$0xff]  ;;  %v10933_v45 = vld [vmem:[#allocation79_spill] sm:$0xff] }
 0xe8b   : > { %v2497_v60 = vsel %vm1255_vm2, %v10931_v52, %v10930_v17  ;;  %v2505_v4 = vadd.f32 %v10931_v52, %v2467_v57  ;;  %v2384_v34 = vsel %vm1255_vm2, %v10933_v45, %v10932_v58  ;;  %v2507_v61 = vadd.f32 %v10930_v17, %v2469_v62  ;;  %v10935_v16 = vld [vmem:[#allocation85_spill] sm:$0xff]  ;;  %v10943_v17 = vld [vmem:[#allocation58_spill] sm:$0xff] }
 0xe8c   : > { %v2280_v14 = vadd.f32 %v2274_v47, %v2248_v35  ;;  %v2281_v22 = vadd.f32 %v2275_v51, %v2249_v59  ;;  %v2282_v50 = vadd.f32 %v2276_v23, %v2250_v8  ;;  %v2506_v6 = vadd.f32 %v2497_v60, %v2468_v24  ;;  %v10936_v59 = vld [vmem:[#allocation50_spill] sm:$0xff]  ;;  %v10937_v8 = vld [vmem:[#allocation51_spill] sm:$0xff] }
 0xe8d   : > { %v2422_v35 = vsel %vm1255_vm2, %v10935_v16, %v10934_v10  ;;  %v2535_v11 = vsel %vm1255_vm2, %v10937_v8, %v10936_v59  ;;  %v2543_v19 = vadd.f32 %v10937_v8, %v2505_v4  ;;  %v2545_v24 = vadd.f32 %v10936_v59, %v2507_v61  ;;  %v10949_v59 = vld [vmem:[#allocation63_spill] sm:$0xff] }
 0xe8e   : > { %v2318_v40 = vadd.f32 %v10927_v13, %v2280_v14  ;;  %v2319_v42 = vadd.f32 %v2308_v43, %v2281_v22  ;;  %v2320_v12 = vadd.f32 %v10926_v53, %v2282_v50  ;;  %v10938_v22 = vld [vmem:[#allocation29_spill] sm:$0xff]  ;;  %v10939_v50 = vld [vmem:[#allocation26_spill] sm:$0xff]  ;;  %v2544_v13 = vadd.f32 %v2535_v11, %v2506_v6  ;;  %v8482_v43 = vpop.permute.xlu1 %3043 }
 0xe8f   : > { %v2460_v53 = vsel %vm1255_vm2, %v10939_v50, %v10938_v22  ;;  %v2581_v60 = vadd.f32 %v10943_v17, %v2543_v19 }
 0xe90   : > { %v2356_v21 = vadd.f32 %v10929_v41, %v2318_v40  ;;  %v2357_v38 = vadd.f32 %v2346_v9, %v2319_v42  ;;  %v2358_v29 = vadd.f32 %v10928_v46, %v2320_v12  ;;  %v10940_v12 = vld [vmem:[#allocation40_spill] sm:$0xff]  ;;  %v10941_v46 = vld [vmem:[#allocation46_spill] sm:$0xff] }
 0xe91   : > { %v2498_v41 = vsel %vm1255_vm2, %v10941_v46, %v10940_v12  ;;  %v10942_v9 = vld [vmem:[#allocation56_spill] sm:$0xff]  ;;  %v2645_v19 = vadd.f32 %v10949_v59, %v2581_v60 }
 0xe92   : > { %v2394_v47 = vadd.f32 %v10933_v45, %v2356_v21  ;;  %v2395_v51 = vadd.f32 %v2384_v34, %v2357_v38  ;;  %v2396_v23 = vadd.f32 %v10932_v58, %v2358_v29  ;;  %v2573_v52 = vsel %vm1255_vm2, %v10943_v17, %v10942_v9  ;;  %v10944_v29 = vld [vmem:[#allocation52_spill] sm:$0xff]  ;;  %v8508_v11 = vpop.permute.xlu1 %3047  ;;  %v10954_v17 = vld [vmem:[#allocation77_spill] sm:$0xff] }
 0xe93   : > { %v10945_v58 = vld [vmem:[#allocation44_spill] sm:$0xff]  ;;  %v2582_v34 = vadd.f32 %v2573_v52, %v2544_v13  ;;  %v2583_v6 = vadd.f32 %v10942_v9, %v2545_v24  ;;  %v10952_v13 = vld [vmem:[#allocation70_spill] sm:$0xff]  ;;  %v10955_v52 = vld [vmem:[#allocation75_spill] sm:$0xff] }
 0xe94   : > { %v2432_v1 = vadd.f32 %v10935_v16, %v2394_v47  ;;  %v2433_v57 = vadd.f32 %v2422_v35, %v2395_v51  ;;  %v2434_v14 = vadd.f32 %v10934_v10, %v2396_v23  ;;  %v2536_v45 = vsel %vm1255_vm2, %v10945_v58, %v10944_v29  ;;  %v10946_v23 = vld [vmem:[#allocation64_spill] sm:$0xff]  ;;  %v10947_v10 = vld [vmem:[#allocation57_spill] sm:$0xff]  ;;  %v10948_v35 = vld [vmem:[#allocation71_spill] sm:$0xff] }
 0xe95   : > { %v2574_v16 = vsel %vm1255_vm2, %v10947_v10, %v10946_v23  ;;  %v2635_v8 = vsel %vm2634_vm4, %v10949_v59, %v10948_v35  ;;  %v2695_v60 = vsel %vm2634_vm4, %v10955_v52, %v10954_v17 }
 0xe96   : > { %v2470_v62 = vadd.f32 %v10939_v50, %v2432_v1  ;;  %v2471_v40 = vadd.f32 %v2460_v53, %v2433_v57  ;;  %v2472_v42 = vadd.f32 %v10938_v22, %v2434_v14  ;;  %v10950_v22 = vld [vmem:[#allocation65_spill] sm:$0xff] }
 0xe97   : > { %v2636_v50 = vsel %vm2634_vm4, %v10948_v35, %v10950_v22  ;;  %v10951_v53 = vld [vmem:[#allocation69_spill] sm:$0xff]  ;;  %v10962_v35 = vld [vmem:[#allocation91_spill] sm:$0xff] }
 0xe98   : > { %v2508_v4 = vadd.f32 %v10941_v46, %v2470_v62  ;;  %v2509_v21 = vadd.f32 %v2498_v41, %v2471_v40  ;;  %v2510_v38 = vadd.f32 %v10940_v12, %v2472_v42  ;;  %v2637_v24 = vsel %vm2634_vm4, %v10952_v13, %v10951_v53  ;;  %v10953_v62 = vld [vmem:[#allocation76_spill] sm:$0xff] }
 0xe99   : > { %v2638_v40 = vsel %vm2634_vm4, %v10951_v53, %v10953_v62  ;;  %v2646_v42 = vadd.f32 %v2635_v8, %v2582_v34  ;;  %v2647_v12 = vadd.f32 %v2636_v50, %v2583_v6  ;;  %v10963_v50 = vld [vmem:[#allocation88_spill] sm:$0xff]  ;;  %v10966_v62 = vld [vmem:[#allocation95_spill] sm:$0xff] }
 0xe9a   : > { %v2546_v61 = vadd.f32 %v10945_v58, %v2508_v4  ;;  %v2547_v47 = vadd.f32 %v2536_v45, %v2509_v21  ;;  %v2548_v51 = vadd.f32 %v10944_v29, %v2510_v38  ;;  %v10956_v4 = vld [vmem:[#allocation82_spill] sm:$0xff]  ;;  %v10957_v21 = vld [vmem:[#allocation81_spill] sm:$0xff]  ;;  %v10958_v29 = vld [vmem:[#allocation11_spill] sm:$0xff]  ;;  %v2705_v45 = vadd.f32 %v10955_v52, %v2645_v19 }
 0xe9b   : > { %v2697_v38 = vsel %vm2634_vm4, %v10957_v21, %v10956_v4  ;;  %v2698_v58 = vsel %vm2634_vm4, %v10956_v4, %v10958_v29  ;;  %v2706_v8 = vadd.f32 %v2695_v60, %v2646_v42  ;;  %v10964_v53 = vld [vmem:[#allocation20_spill] sm:$0xff]  ;;  %v10968_v52 = vld [vmem:[#allocation87_spill] sm:$0xff]  ;;  %v10969_v4 = vld [vmem:[#allocation101_spill] sm:$0xff] }
 0xe9c   : > { %v2584_v1 = vadd.f32 %v10947_v10, %v2546_v61  ;;  %v2585_v57 = vadd.f32 %v2574_v16, %v2547_v47  ;;  %v2586_v14 = vadd.f32 %v10946_v23, %v2548_v51  ;;  %v10959_v47 = vld [vmem:[#allocation83_spill] sm:$0xff]  ;;  %v10960_v23 = vld [vmem:[#allocation89_spill] sm:$0xff]  ;;  %v10961_v10 = vld [vmem:[#allocation90_spill] sm:$0xff]  ;;  %v2765_v42 = vadd.f32 %v10964_v53, %v2705_v45 }
 0xe9d   : > { %v2696_v51 = vsel %vm2634_vm4, %v10954_v17, %v10959_v47  ;;  %v2757_v16 = vsel %vm2634_vm4, %v10961_v10, %v10960_v23  ;;  %v2758_v59 = vsel %vm2634_vm4, %v10960_v23, %v10962_v35  ;;  %v2756_v60 = vsel %vm2634_vm4, %v10963_v50, %v10968_v52  ;;  %v10971_v29 = vld [vmem:[#allocation103_spill] sm:$0xff]  ;;  %v10972_v23 = vld [vmem:[#allocation93_spill] sm:$0xff]  ;;  %v10974_v35 = vld [vmem:[#allocation108_spill] sm:$0xff] }
 0xe9e   : > { %v2648_v46 = vadd.f32 %v10952_v13, %v2584_v1  ;;  %v2649_v41 = vadd.f32 %v2637_v24, %v2585_v57  ;;  %v2650_v9 = vadd.f32 %v2638_v40, %v2586_v14  ;;  %v3052_v1 = vpop.permute.xlu1 %3051  ;;  %v2707_v57 = vadd.f32 %v2696_v51, %v2647_v12  ;;  %v10965_v24 = vld [vmem:[#allocation96_spill] sm:$0xff] }
 0xe9f   : > { %v2755_v13 = vsel %vm2634_vm4, %v10964_v53, %v10963_v50  ;;  %v2817_v40 = vsel %vm2634_vm4, %v10966_v62, %v10965_v24 }
 0xea0   : > { %v2708_v34 = vadd.f32 %v10957_v21, %v2648_v46  ;;  %v2709_v6 = vadd.f32 %v2697_v38, %v2649_v41  ;;  %v2710_v61 = vadd.f32 %v2698_v58, %v2650_v9  ;;  %v10967_v46 = vld [vmem:[#allocation97_spill] sm:$0xff]  ;;  %v10970_v21 = vld [vmem:[#allocation102_spill] sm:$0xff]  ;;  %v2878_v58 = vsel %vm2634_vm4, %v10969_v4, %v10971_v29 }
 0xea1   : > { %v2818_v41 = vsel %vm2634_vm4, %v10965_v24, %v10967_v46  ;;  %v2877_v38 = vsel %vm2634_vm4, %v10970_v21, %v10969_v4  ;;  %v2767_v45 = vadd.f32 %v2756_v60, %v2707_v57  ;;  %v10981_v4 = vld [vmem:[#allocation100_spill] sm:$0xff]  ;;  %v3057_v29 = vsel %vm2634_vm4, %v8316_v18, %v3052_v1 }
 0xea2   : > { %v2768_v19 = vadd.f32 %v10961_v10, %v2708_v34  ;;  %v2769_v14 = vadd.f32 %v2757_v16, %v2709_v6  ;;  %v2770_v22 = vadd.f32 %v2758_v59, %v2710_v61  ;;  %v2766_v34 = vadd.f32 %v2755_v13, %v2706_v8  ;;  %v8564_v6 = vpop.permute.xlu1 %3101  ;;  %v10973_v10 = vld [vmem:[#allocation92_spill] sm:$0xff]  ;;  %v10975_v59 = vld [vmem:[#allocation107_spill] sm:$0xff]  ;;  %v10977_v13 = vld [vmem:[#allocation94_spill] sm:$0xff] }
 0xea3   : > { %v2815_v16 = vsel %vm2634_vm4, %v10973_v10, %v10972_v23  ;;  %v2825_v8 = vadd.f32 %v10973_v10, %v2765_v42  ;;  %v2816_v24 = vsel %vm2634_vm4, %v10972_v23, %v10977_v13  ;;  %v10983_v23 = vld [vmem:[#allocation99_spill] sm:$0xff] }
 0xea4   : > { %v2828_v12 = vadd.f32 %v10966_v62, %v2768_v19  ;;  %v2829_v9 = vadd.f32 %v2817_v40, %v2769_v14  ;;  %v2830_v17 = vadd.f32 %v2818_v41, %v2770_v22  ;;  %v2937_v19 = vsel %vm2634_vm4, %v10975_v59, %v10974_v35  ;;  %v10976_v14 = vld [vmem:[#allocation109_spill] sm:$0xff]  ;;  %v10979_v40 = vld [vmem:[#allocation114_spill] sm:$0xff]  ;;  %v10980_v41 = vld [vmem:[#allocation115_spill] sm:$0xff] }
 0xea5   : > { %v2938_v22 = vsel %vm2634_vm4, %v10974_v35, %v10976_v14  ;;  %v10978_v62 = vld [vmem:[#allocation113_spill] sm:$0xff]  ;;  %v2876_v10 = vsel %vm2634_vm4, %v10981_v4, %v10983_v23 }
 0xea6   : > { %v2888_v61 = vadd.f32 %v10970_v21, %v2828_v12  ;;  %v2889_v47 = vadd.f32 %v2877_v38, %v2829_v9  ;;  %v2890_v51 = vadd.f32 %v2878_v58, %v2830_v17  ;;  %v2997_v46 = vsel %vm2634_vm4, %v10979_v40, %v10978_v62  ;;  %v10982_v21 = vld [vmem:[#allocation98_spill] sm:$0xff] }
 0xea7   : > { %v2998_v12 = vsel %vm2634_vm4, %v10978_v62, %v10980_v41  ;;  %v2826_v9 = vadd.f32 %v2815_v16, %v2766_v34  ;;  %v2827_v17 = vadd.f32 %v2816_v24, %v2767_v45  ;;  %v2875_v38 = vsel %vm2634_vm4, %v10982_v21, %v10981_v4  ;;  %v10987_v24 = vld [vmem:[#allocation112_spill] sm:$0xff]  ;;  %v10988_v62 = vld [vmem:[#allocation110_spill] sm:$0xff] }
 0xea8   : > { %v2948_v57 = vadd.f32 %v10975_v59, %v2888_v61  ;;  %v2949_v50 = vadd.f32 %v2937_v19, %v2889_v47  ;;  %v2950_v53 = vadd.f32 %v2938_v22, %v2890_v51  ;;  %v3058_v58 = vsel %vm2634_vm4, %v3052_v1, %v8322_v33  ;;  %v8595_v61 = vpop.permute.xlu1 %3111  ;;  %v10984_v22 = vld [vmem:[#allocation105_spill] sm:$0xff] }
 0xea9   : > { %v2885_v47 = vadd.f32 %v10982_v21, %v2825_v8  ;;  %v2886_v16 = vadd.f32 %v2875_v38, %v2826_v9  ;;  %v2887_v35 = vadd.f32 %v2876_v10, %v2827_v17  ;;  %v10986_v8 = vld [vmem:[#allocation106_spill] sm:$0xff]  ;;  %v3055_v41 = vsel %vm2634_vm4, %v8482_v43, %v8314_v7 }
 0xeaa   : > { %v3008_v42 = vadd.f32 %v10979_v40, %v2948_v57  ;;  %v3009_v52 = vadd.f32 %v2997_v46, %v2949_v50  ;;  %v3010_v60 = vadd.f32 %v2998_v12, %v2950_v53  ;;  %v10985_v57 = vld [vmem:[#allocation104_spill] sm:$0xff]  ;;  %v2995_v40 = vsel %vm2634_vm4, %v10988_v62, %v10987_v24  ;;  %v10989_v12 = vld [vmem:[#allocation111_spill] sm:$0xff] }
 0xeab   : > { %v2935_v33 = vsel %vm2634_vm4, %v10985_v57, %v10984_v22  ;;  %v2945_v1 = vadd.f32 %v10985_v57, %v2885_v47  ;;  %v2996_v9 = vsel %vm2634_vm4, %v10987_v24, %v10989_v12  ;;  %v10992_v12 = vld [vmem:[#allocation14_spill] sm:$0xff] }
 0xeac   : > { %v3068_v34 = vadd.f32 %v8316_v18, %v3008_v42  ;;  %v3069_v45 = vadd.f32 %v3057_v29, %v3009_v52  ;;  %v3070_v51 = vadd.f32 %v3058_v58, %v3010_v60  ;;  %v2936_v18 = vsel %vm2634_vm4, %v10984_v22, %v10986_v8  ;;  %v3117_v53 = vpop.permute.xlu1 %3116 }
 0xead   : > { %v2946_v50 = vadd.f32 %v2935_v33, %v2886_v16  ;;  %v2947_v13 = vadd.f32 %v2936_v18, %v2887_v35  ;;  %v3005_v46 = vadd.f32 %v10988_v62, %v2945_v1  ;;  %v3056_v42 = vsel %vm2634_vm4, %v8314_v7, %v8508_v11  ;;  %v10990_v33 = vld [vmem:[#allocation8_spill] sm:$0xff]  ;;  %v10991_v18 = vld [vmem:[#allocation9_spill] sm:$0xff] }
 0xeae   : > { %v5969_v59 = vmul.f32 -1.442695, %v3068_v34  ;;  %v5970_v19 = vmul.f32 -1.442695, %v3069_v45  ;;  %v5971_v14 = vmul.f32 -1.442695, %v3070_v51 }
 0xeaf   : > { %v3006_v17 = vadd.f32 %v2995_v40, %v2946_v50  ;;  %v3065_v52 = vadd.f32 %v8482_v43, %v3005_v46  ;;  %v3007_v60 = vadd.f32 %v2996_v9, %v2947_v13 }
 0xeb0   : > { %6303 = vpow2.f32 %v5969_v59  ;;  %v3149_v21 = vpop.permute.xlu1 %3148 }
 0xeb1   : > { %6305 = vpow2.f32 %v5970_v19  ;;  %v3066_v4 = vadd.f32 %v3055_v41, %v3006_v17  ;;  %v3067_v38 = vadd.f32 %v3056_v42, %v3007_v60 }
 0xeb2   : > { %6307 = vpow2.f32 %v5971_v14 }
 0xeb3   : > { %6309 = vtanh.f32 %v3065_v52 }
 0xeb4   : > { %6311 = vtanh.f32 %v3066_v4  ;;  %v3177_v23 = vpop.permute.xlu1 %3176 }
 0xeb5   : > { %6313 = vtanh.f32 %v3067_v38 }
 0xeb8   : > { %v8623_v7 = vpop.permute.xlu1 %3208 }
 0xeba   : > { %v6304_v29 = vpop.eup %6303 }
 0xebb   : > { %v6306_v58 = vpop.eup %6305  ;;  %v3083_v47 = vadd.f32 1.0, %v6304_v29 }
 0xebc   : > { %v6308_v34 = vpop.eup %6307  ;;  %v3084_v45 = vadd.f32 1.0, %v6306_v58  ;;  %v8629_v22 = vpop.permute.xlu1 %3212 }
 0xebd   : > { %v3085_v51 = vadd.f32 1.0, %v6308_v34  ;;  %6315 = vrcp.f32 %v3083_v47  ;;  %v6310_v43 = vpop.eup %6309 }
 0xebe   : > { %6317 = vrcp.f32 %v3084_v45  ;;  %v6312_v11 = vpop.eup %6311 }
 0xebf   : > { %6319 = vrcp.f32 %v3085_v51  ;;  %v6314_v10 = vpop.eup %6313 }
 0xec0   : > { %v8657_v34 = vpop.permute.xlu1 %3244 }
 0xec7   : > { %v6316_v16 = vpop.eup %6315 }
 0xec8   : > { %v6318_v35 = vpop.eup %6317  ;;  %v8625_v59 = vmul.f32 %v6316_v16, %v6310_v43 }
 0xec9   : > { %v6320_v19 = vpop.eup %6319  ;;  %v8627_v14 = vmul.f32 %v6318_v35, %v6312_v11  ;;  %v10993_v35 = vld [vmem:[#allocation16_spill] sm:$0xff] }
 0xeca   : > { %v8631_v57 = vmul.f32 %v6320_v19, %v6314_v10  ;;  %v3122_v1 = vrot.slane %v8625_v59, %v10990_v33  ;;  %v3154_v50 = vrot.slane %v8625_v59, %v10991_v18  ;;  %v3186_v9 = vrot.slane %v8625_v59, %v10992_v12 }
 0xecb   : > { %v3126_v8 = vrot.slane %v8627_v14, %v10990_v33  ;;  %v3158_v13 = vrot.slane %v8627_v14, %v10991_v18  ;;  %v3190_v17 = vrot.slane %v8627_v14, %v10992_v12  ;;  %v3218_v19 = vrot.slane %v8625_v59, %v10993_v35 }
 0xecc   : > { %v3130_v24 = vrot.slane %v8631_v57, %v10990_v33  ;;  %v3131_v62 = vmul.f32 %v3122_v1, %v8595_v61  ;;  %v3134_v40 = vmul.f32 %v3122_v1, %v3117_v53  ;;  %v3162_v46 = vrot.slane %v8631_v57, %v10991_v18 }
 0xecd   : > { %v3132_v41 = vmul.f32 %v3126_v8, %v8595_v61  ;;  %v3135_v60 = vmul.f32 %v3126_v8, %v3117_v53  ;;  %v3163_v58 = vmul.f32 %v3154_v50, %v8340_v25  ;;  %v3164_v47 = vmul.f32 %v3158_v13, %v8340_v25 }
 0xece   : > { %v3133_v42 = vmul.f32 %v3130_v24, %v8595_v61  ;;  %v3137_v52 = vadd.f32 %v3131_v62, %v8564_v6  ;;  %v3136_v4 = vmul.f32 %v3130_v24, %v3117_v53  ;;  %v3140_v29 = vadd.f32 %v3134_v40, %v8330_v2 }
 0xecf   : > { %v3138_v38 = vadd.f32 %v3132_v41, %v8564_v6  ;;  %v3165_v51 = vmul.f32 %v3162_v46, %v8340_v25  ;;  %v3166_v43 = vmul.f32 %v3154_v50, %v3149_v21  ;;  %v3194_v53 = vrot.slane %v8631_v57, %v10992_v12 }
 0xed0   : > { %v3139_v45 = vadd.f32 %v3133_v42, %v8564_v6  ;;  %v3169_v61 = vadd.f32 %v3163_v58, %v3137_v52  ;;  %v3141_v10 = vadd.f32 %v3135_v60, %v8330_v2  ;;  %v3142_v16 = vadd.f32 %v3136_v4, %v8330_v2  ;;  %v3273_v60 = vpop.permute.xlu1 %3272 }
 0xed1   : > { %v3170_v11 = vadd.f32 %v3164_v47, %v3138_v38  ;;  %v3172_v1 = vadd.f32 %v3166_v43, %v3140_v29  ;;  %v3195_v24 = vmul.f32 %v3186_v9, %v3177_v23  ;;  %v3196_v62 = vmul.f32 %v3190_v17, %v3177_v23  ;;  %v10994_v47 = vld [vmem:[#allocation17_spill] sm:$0xff] }
 0xed2   : > { %v3171_v8 = vadd.f32 %v3165_v51, %v3139_v45  ;;  %v3167_v6 = vmul.f32 %v3158_v13, %v3149_v21  ;;  %v3168_v40 = vmul.f32 %v3162_v46, %v3149_v21  ;;  %v3198_v25 = vmul.f32 %v3186_v9, %v8348_v55 }
 0xed3   : > { %v3222_v50 = vrot.slane %v8627_v14, %v10993_v35  ;;  %v3197_v41 = vmul.f32 %v3194_v53, %v3177_v23  ;;  %v3201_v42 = vadd.f32 %v3195_v24, %v3169_v61  ;;  %v3202_v52 = vadd.f32 %v3196_v62, %v3170_v11  ;;  %v10995_v62 = vld [vmem:[#allocation21_spill] sm:$0xff] }
 0xed4   : > { %v3226_v2 = vrot.slane %v8631_v57, %v10993_v35  ;;  %v3227_v4 = vmul.f32 %v3218_v19, %v8623_v7  ;;  %v3173_v29 = vadd.f32 %v3167_v6, %v3141_v10  ;;  %v3174_v58 = vadd.f32 %v3168_v40, %v3142_v16 }
 0xed5   : > { %v3228_v38 = vmul.f32 %v3222_v50, %v8623_v7  ;;  %v3203_v13 = vadd.f32 %v3197_v41, %v3171_v8  ;;  %v3204_v21 = vadd.f32 %v3198_v25, %v3172_v1  ;;  %v3250_v45 = vrot.slane %v8625_v59, %v10994_v47 }
 0xed6   : > { %v3233_v46 = vadd.f32 %v3227_v4, %v3201_v42  ;;  %v3254_v23 = vrot.slane %v8627_v14, %v10994_v47  ;;  %v3199_v51 = vmul.f32 %v3190_v17, %v8348_v55  ;;  %v3229_v43 = vmul.f32 %v3226_v2, %v8623_v7  ;;  %v3305_v7 = vpop.permute.xlu1 %3304 }
 0xed7   : > { %v3234_v9 = vadd.f32 %v3228_v38, %v3202_v52  ;;  %v3258_v61 = vrot.slane %v8631_v57, %v10994_v47  ;;  %v3200_v11 = vmul.f32 %v3194_v53, %v8348_v55  ;;  %v3230_v10 = vmul.f32 %v3218_v19, %v8629_v22 }
 0xed8   : > { %v3259_v16 = vmul.f32 %v3250_v45, %v8358_v54  ;;  %v3260_v1 = vmul.f32 %v3254_v23, %v8358_v54  ;;  %v3235_v8 = vadd.f32 %v3229_v43, %v3203_v13  ;;  %v3205_v24 = vadd.f32 %v3199_v51, %v3173_v29  ;;  %v10996_v13 = vld [vmem:[#allocation18_spill] sm:$0xff] }
 0xed9   : > { %v3282_v6 = vrot.slane %v8625_v59, %v10995_v62  ;;  %v3286_v17 = vrot.slane %v8627_v14, %v10995_v62  ;;  %v3206_v40 = vadd.f32 %v3200_v11, %v3174_v58  ;;  %v3236_v25 = vadd.f32 %v3230_v10, %v3204_v21 }
 0xeda   : > { %v3265_v41 = vadd.f32 %v3259_v16, %v3233_v46  ;;  %v3266_v42 = vadd.f32 %v3260_v1, %v3234_v9  ;;  %v3231_v55 = vmul.f32 %v3222_v50, %v8629_v22  ;;  %v3232_v53 = vmul.f32 %v3226_v2, %v8629_v22  ;;  %v3309_v10 = vpop.permute.xlu1 %3308 }
 0xedb   : > { %v3261_v19 = vmul.f32 %v3258_v61, %v8358_v54  ;;  %v3290_v52 = vrot.slane %v8631_v57, %v10995_v62  ;;  %v3262_v4 = vmul.f32 %v3250_v45, %v8657_v34  ;;  %v3291_v38 = vmul.f32 %v3282_v6, %v3273_v60 }
 0xedc   : > { %v3292_v29 = vmul.f32 %v3286_v17, %v3273_v60  ;;  %v3314_v51 = vrot.slane %v8625_v59, %v10996_v13  ;;  %v3237_v58 = vadd.f32 %v3231_v55, %v3205_v24  ;;  %v3318_v46 = vrot.slane %v8627_v14, %v10996_v13 }
 0xedd   : > { %v3267_v21 = vadd.f32 %v3261_v19, %v3235_v8  ;;  %v3238_v50 = vadd.f32 %v3232_v53, %v3206_v40  ;;  %v3268_v9 = vadd.f32 %v3262_v4, %v3236_v25  ;;  %v3297_v22 = vadd.f32 %v3291_v38, %v3265_v41  ;;  %v10997_v40 = vld [vmem:[#allocation34_spill] sm:$0xff] }
 0xede   : > { %v3298_v2 = vadd.f32 %v3292_v29, %v3266_v42  ;;  %v3263_v54 = vmul.f32 %v3254_v23, %v8657_v34  ;;  %v3293_v43 = vmul.f32 %v3290_v52, %v3273_v60  ;;  %v3322_v45 = vrot.slane %v8631_v57, %v10996_v13 }
 0xedf   : > { %v3323_v11 = vmul.f32 %v3314_v51, %v3305_v7  ;;  %v3264_v16 = vmul.f32 %v3258_v61, %v8657_v34  ;;  %v3294_v1 = vmul.f32 %v3282_v6, %v8368_v56  ;;  %v3324_v8 = vmul.f32 %v3318_v46, %v3305_v7 }
 0xee0   : > { %v3269_v24 = vadd.f32 %v3263_v54, %v3237_v58  ;;  %v3299_v55 = vadd.f32 %v3293_v43, %v3267_v21  ;;  %v3346_v25 = vrot.slane %v8625_v59, %v10997_v40  ;;  %v3350_v60 = vrot.slane %v8627_v14, %v10997_v40  ;;  %v3341_v21 = vpop.permute.xlu1 %3340 }
 0xee1   : > { %v3329_v19 = vadd.f32 %v3323_v11, %v3297_v22  ;;  %v3270_v41 = vadd.f32 %v3264_v16, %v3238_v50  ;;  %v3330_v42 = vadd.f32 %v3324_v8, %v3298_v2  ;;  %v3300_v23 = vadd.f32 %v3294_v1, %v3268_v9 }
 0xee2   : > { %v3295_v53 = vmul.f32 %v3286_v17, %v8368_v56  ;;  %v3325_v4 = vmul.f32 %v3322_v45, %v3305_v7  ;;  %v3354_v34 = vrot.slane %v8631_v57, %v10997_v40  ;;  %v3355_v61 = vmul.f32 %v3346_v25, %v8378_v44 }
 0xee3   : > { %v3296_v6 = vmul.f32 %v3290_v52, %v8368_v56  ;;  %v3326_v38 = vmul.f32 %v3314_v51, %v3309_v10  ;;  %v3356_v29 = vmul.f32 %v3350_v60, %v8378_v44  ;;  %v3327_v2 = vmul.f32 %v3318_v46, %v3309_v10 }
 0xee4   : > { %v3331_v59 = vadd.f32 %v3325_v4, %v3299_v55  ;;  %v3301_v58 = vadd.f32 %v3295_v53, %v3269_v24  ;;  %v3361_v50 = vadd.f32 %v3355_v61, %v3329_v19  ;;  %v3357_v57 = vmul.f32 %v3354_v34, %v8378_v44  ;;  %v3404_v44 = vld [vmem:[%s10261_s12] sm:$0xff] }
 0xee5   : > { %v3302_v9 = vadd.f32 %v3296_v6, %v3270_v41  ;;  %v3332_v22 = vadd.f32 %v3326_v38, %v3300_v23  ;;  %v3362_v14 = vadd.f32 %v3356_v29, %v3330_v42  ;;  %v3328_v17 = vmul.f32 %v3322_v45, %v3309_v10  ;;  %v8728_v45 = vld [vmem:[%s10260_s11] sm:$0xff]  ;;  %v8734_v10 = vld [vmem:[%s10260_s11 + $0x8] sm:$0xff] }
 0xee6   : > { %3370 = vrot.lane.b32.xlu1 %v3361_v50, %s10512_s24  ;;  %v3358_v7 = vmul.f32 %v3346_v25, %v3341_v21  ;;  %v3333_v56 = vadd.f32 %v3327_v2, %v3301_v58  ;;  %v3363_v52 = vadd.f32 %v3357_v57, %v3331_v59  ;;  %v3359_v43 = vmul.f32 %v3350_v60, %v3341_v21  ;;  %v11009_v57 = vld [vmem:[#allocation67_spill] sm:$0xff] }
 0xee7   : > { %3372 = vrot.lane.b32.xlu0 %v3362_v14, %s10512_s24  ;;  %v3334_v51 = vadd.f32 %v3328_v17, %v3302_v9  ;;  %v3360_v11 = vmul.f32 %v3354_v34, %v3341_v21  ;;  %v10998_v1 = vmov 12   ;;  %v10999_v8 = vmov 15  }
 0xee8   : > { %v3364_v54 = vadd.f32 %v3358_v7, %v3332_v22  ;;  %v3365_v46 = vadd.f32 %v3359_v43, %v3333_v56  ;;  %v11000_v24 = vmov 21   ;;  %v11001_v55 = vmov 9   ;;  %v11007_v22 = vld [vmem:[#allocation47_spill] sm:$0xff] }
 0xee9   : > { %v3366_v16 = vadd.f32 %v3360_v11, %v3334_v51  ;;  %v11002_v19 = vmov 18  }
 0xeea   : > { %3374 = vrot.lane.b32.xlu1 %v3363_v52, %s10512_s24  ;;  %v11011_v52 = vld [vmem:[#allocation19_spill] sm:$0xff]  ;;  %s541_s24 = sand.u32 1, %s6394_s27  }
 0xeeb   : > { %3388 = vrot.lane.b32.xlu0 %v3364_v54, %s6431_s2 }
 0xeee   : > { %3390 = vrot.lane.b32.xlu1 %v3365_v46, %s6431_s2 }
 0xeef   : > { %3392 = vrot.lane.b32.xlu0 %v3366_v16, %s6431_s2 }
 0xef2   : > { %3408 = vperm.xlu1 %6186, %v3404_v44  }
 0xef3   : > { %3456 = vperm.xlu0 %6184, %v8728_v45  }
 0xef6   : > { %3423 = vperm.xlu1 %6186, %v8728_v45  }
 0xef7   : > { %6189 = vset.pattern.permute.xlu0 %v10897_v26 }
 0xef8   : > { %3492 = vperm.xlu0 %6189, %v8734_v10  }
 0xefa   : > { %3428 = vperm.xlu1 %6186, %v8734_v10  }
 0xefc   : > { %6191 = vset.pattern.permute.xlu0 %v10998_v1 }
 0xefd   : > { %3552 = vperm.xlu0 %6191, %v8728_v45  }
 0xefe   : > { %6187 = vset.pattern.permute.xlu1 %v10895_v36 }
 0xeff   : > { %3460 = vperm.xlu1 %6187, %v8734_v10  }
 0xf01   : > { %6194 = vset.pattern.permute.xlu0 %v10999_v8 }
 0xf02   : > { %3588 = vperm.xlu0 %6194, %v8734_v10  }
 0xf03   : > { %6188 = vset.pattern.permute.xlu1 %v10897_v26 }
 0xf04   : > { %3488 = vperm.xlu1 %6188, %v8728_v45  }
 0xf06   : > { %6196 = vset.pattern.permute.xlu0 %v11000_v24 }
 0xf07   : > { %3648 = vperm.xlu0 %6196, %v8728_v45  }
 0xf08   : > { %6190 = vset.pattern.permute.xlu1 %v11001_v55 }
 0xf09   : > { %3520 = vperm.xlu1 %6190, %v8728_v45  }
 0xf0b   : > { %6199 = vset.pattern.permute.xlu0 %v10891_v15 }
 0xf0c   : > { %3684 = vperm.xlu0 %6199, %v8734_v10  }
 0xf0d   : > { %3524 = vperm.xlu1 %6190, %v8734_v10  }
 0xf10   : > { %6200 = vset.pattern.permute.xlu0 %v10894_v32 }
 0xf11   : > { %3718 = vperm.xlu0 %6200, %v8728_v45   ;;  %6192 = vset.pattern.permute.xlu1 %v10998_v1 }
 0xf12   : > { %3556 = vperm.xlu1 %6192, %v8734_v10  }
 0xf15   : > { %6203 = vset.pattern.permute.xlu0 %v10896_v20 }
 0xf16   : > { %6193 = vset.pattern.permute.xlu1 %v10999_v8 }
 0xf17   : > { %3584 = vperm.xlu1 %6193, %v8728_v45  }
 0xf1b   : > { %6195 = vset.pattern.permute.xlu1 %v11002_v19 }
 0xf1c   : > { %3616 = vperm.xlu1 %6195, %v8728_v45  }
 0xf20   : > { %3620 = vperm.xlu1 %6195, %v8734_v10  }
 0xf24   : > { %6197 = vset.pattern.permute.xlu1 %v11000_v24 }
 0xf25   : > { %3652 = vperm.xlu1 %6197, %v8734_v10  }
 0xf29   : > { %6198 = vset.pattern.permute.xlu1 %v10891_v15 }
 0xf2a   : > { %3680 = vperm.xlu1 %6198, %v8728_v45  }
 0xf2e   : > { %6201 = vset.pattern.permute.xlu1 %v10894_v32 }
 0xf58   : > { %v3371_v25 = vpop.permute.xlu1 %3370 }
 0xf59   : > { %v3373_v41 = vpop.permute.xlu0 %3372 }
 0xf5a   : > { %v3377_v21 = vsel %vm3376_vm5, %v3371_v25, %v3373_v41 }
 0xf5b   : > { %v8797_v14 = vadd.f32 %v3377_v21, %v11007_v22 }
 0xf5c   : > { %v3375_v42 = vpop.permute.xlu1 %3374 }
 0xf5d   : > { %v8770_v23 = vpop.permute.xlu0 %3388  ;;  %v3378_v9 = vsel %vm3376_vm5, %v3373_v41, %v3375_v42  ;;  %v8806_v56 = vrot.slane %v8797_v14, %v10990_v33  ;;  %v8843_v55 = vrot.slane %v8797_v14, %v10991_v18 }
 0xf5e   : > { %11003 = vst [vmem:[#allocation15_spill] sm:$0xff] %v8770_v23  ;;  %v3382_v17 = vadd.f32 %v3378_v9, %v11009_v57 }
 0xf60   : > { %v8772_v60 = vpop.permute.xlu1 %3390  ;;  %v8809_v51 = vmul.f32 %v11011_v52, %v3382_v17 }
 0xf61   : > { %11004 = vst [vmem:[#allocation35_spill] sm:$0xff] %v8772_v60  ;;  %v8774_v53 = vpop.permute.xlu0 %3392 }
 0xf62   : > { %11005 = vst [vmem:[#allocation22_spill] sm:$0xff] %v8774_v53  ;;  %v8817_v46 = vrot.slane %v8809_v51, %v10991_v18  ;;  %v8834_v17 = vrot.slane %v8809_v51, %v10990_v33  ;;  %v11019_v33 = vmov 13  }
 0xf71   : > { %v8776_v4 = vpop.permute.xlu1 %3408 }
 0xf72   : > { %v8778_v34 = vpop.permute.xlu0 %3456 }
 0xf75   : > { %v8780_v61 = vpop.permute.xlu1 %3423 }
 0xf77   : > { %v8782_v6 = vpop.permute.xlu0 %3492 }
 0xf79   : > { %v8784_v38 = vpop.permute.xlu1 %3428 }
 0xf7c   : > { %v8786_v29 = vpop.permute.xlu0 %3552 }
 0xf7d   : > { %11006 = vst [vmem:[#allocation42_spill] sm:$0xff] %v8786_v29 }
 0xf7e   : > { %v8788_v59 = vpop.permute.xlu1 %3460 }
 0xf81   : > { %v8790_v58 = vpop.permute.xlu0 %3588 }
 0xf83   : > { %v8793_v50 = vpop.permute.xlu1 %3488 }
 0xf86   : > { %v8799_v2 = vpop.permute.xlu0 %3648 }
 0xf87   : > { %11008 = vst [vmem:[#allocation66_spill] sm:$0xff] %v8799_v2 }
 0xf88   : > { %v8802_v7 = vpop.permute.xlu1 %3520 }
 0xf89   : > { %11010 = vst [vmem:[#allocation49_spill] sm:$0xff] %v8802_v7 }
 0xf8b   : > { %v3685_v54 = vpop.permute.xlu0 %3684 }
 0xf8c   : > { %v3689_v43 = vmul.f32 %v3685_v54, %v8806_v56  ;;  %v8812_v11 = vpop.permute.xlu1 %3524 }
 0xf8e   : > { %3699 = vrot.lane.b32.xlu0 %v3689_v43, %s6432_s19 }
 0xf90   : > { %v3719_v16 = vpop.permute.xlu0 %3718 }
 0xf91   : > { %v3726_v44 = vmul.f32 %v3719_v16, %v8817_v46  ;;  %v8820_v25 = vpop.permute.xlu1 %3556  ;;  %v3725_v19 = vmul.f32 %v3719_v16, %v8843_v55 }
 0xf93   : > { %3735 = vrot.lane.b32.xlu0 %v3726_v44, %s6432_s19  ;;  %v3690_v44 = vmul.f32 %v3685_v54, %v8834_v17 }
 0xf96   : > { %v8823_v41 = vpop.permute.xlu1 %3584 }
 0xf97   : > { %11012 = vst [vmem:[#allocation39_spill] sm:$0xff] %v8823_v41 }
 0xf9b   : > { %v8825_v42 = vpop.permute.xlu1 %3616 }
 0xf9c   : > { %11013 = vst [vmem:[#allocation53_spill] sm:$0xff] %v8825_v42  ;;  %v11025_v42 = vmov 19  }
 0xf9f   : > { %v8827_v21 = vpop.permute.xlu1 %3620 }
 0xfa4   : > { %v8829_v9 = vpop.permute.xlu1 %3652 }
 0xfa9   : > { %v3681_v22 = vpop.permute.xlu1 %3680 }
 0xfaa   : > { %v3687_v57 = vmul.f32 %v3681_v22, %v8806_v56  ;;  %v3688_v43 = vmul.f32 %v3681_v22, %v8834_v17 }
 0xfac   : > { %3695 = vrot.lane.b32.xlu1 %v3687_v57, %s6432_s19 }
 0xfb0   : > { %3697 = vrot.lane.b32.xlu1 %v3688_v43, %s6432_s19 }
 0xfb4   : > { %3701 = vrot.lane.b32.xlu1 %v3690_v44, %s6432_s19 }
 0xfb8   : > { %3722 = vperm.xlu1 %6201, %v8734_v10  }
 0xfbc   : > { %3733 = vrot.lane.b32.xlu1 %v3725_v19, %s6432_s19  ;;  %v11016_v19 = vmov 10  }
 0xfbd   : > { %6202 = vset.pattern.permute.xlu1 %v10896_v20 }
0x1000   : > { %v8863_v16 = vpop.permute.xlu0 %3699 }
0x1005   : > { %v8865_v24 = vpop.permute.xlu0 %3735 }
0x1006   : > { %11017 = vst [vmem:[#allocation38_spill] sm:$0xff] %v8865_v24 }
0x101e   : > { %v8849_v57 = vpop.permute.xlu1 %3695 }
0x101f   : > { %11014 = vst [vmem:[#allocation55_spill] sm:$0xff] %v8849_v57 }
0x1022   : > { %v8851_v22 = vpop.permute.xlu1 %3697 }
0x1023   : > { %11015 = vst [vmem:[#allocation43_spill] sm:$0xff] %v8851_v22 }
0x1026   : > { %v8853_v43 = vpop.permute.xlu1 %3701 }
0x1037   : > { %v3723_v54 = vpop.permute.xlu1 %3722 }
0x1038   : > { %v3727_v44 = vmul.f32 %v3723_v54, %v8843_v55  ;;  %v3728_v1 = vmul.f32 %v3723_v54, %v8817_v46 }
0x103a   : > { %3739 = vrot.lane.b32.xlu0 %v3728_v1, %s6432_s19  ;;  %3737 = vrot.lane.b32.xlu1 %v3727_v44, %s6432_s19  ;;  %v8875_v1 = vrot.slane %v8797_v14, %v10992_v12 }
0x103b   : > { %v8867_v23 = vpop.permute.xlu1 %3733 }
0x103c   : > { %11018 = vst [vmem:[#allocation45_spill] sm:$0xff] %v8867_v23 }
0x103e   : > { %3760 = vperm.xlu0 %6203, %v8734_v10   ;;  %3756 = vperm.xlu1 %6202, %v8728_v45  }
0x1042   : > { %6204 = vset.pattern.permute.xlu0 %v11016_v19  ;;  %6205 = vset.pattern.permute.xlu1 %v11016_v19  ;;  %v8881_v19 = vrot.slane %v8809_v51, %v10992_v12 }
0x10ac   : > { %v8869_v48 = vpop.permute.xlu0 %3739  ;;  %v8871_v54 = vpop.permute.xlu1 %3737 }
0x10bd   : > { %v3761_v44 = vpop.permute.xlu0 %3760  ;;  %v3757_v60 = vpop.permute.xlu1 %3756 }
0x10be   : > { %v3765_v53 = vmul.f32 %v3761_v44, %v8875_v1  ;;  %v3763_v8 = vmul.f32 %v3757_v60, %v8875_v1  ;;  %v3764_v52 = vmul.f32 %v3757_v60, %v8881_v19  ;;  %v3766_v18 = vmul.f32 %v3761_v44, %v8881_v19 }
0x10bf   : > { %v8901_v60 = vrot.slane %v8797_v14, %v10993_v35 }
0x10c0   : > { %3775 = vrot.lane.b32.xlu0 %v3765_v53, %s6432_s19  ;;  %3771 = vrot.lane.b32.xlu1 %v3763_v8, %s6432_s19 }
0x10c4   : > { %3794 = vperm.xlu0 %6204, %v8728_v45   ;;  %3773 = vrot.lane.b32.xlu1 %v3764_v52, %s6432_s19  ;;  %v8905_v52 = vrot.slane %v8809_v51, %v10993_v35 }
0x10c8   : > { %3777 = vrot.lane.b32.xlu1 %v3766_v18, %s6432_s19  ;;  %6207 = vset.pattern.permute.xlu0 %v11019_v33 }
0x10cc   : > { %3798 = vperm.xlu1 %6205, %v8734_v10  }
0x10d0   : > { %6206 = vset.pattern.permute.xlu1 %v11019_v33 }
0x1132   : > { %v8893_v12 = vpop.permute.xlu1 %3771  ;;  %v8895_v53 = vpop.permute.xlu0 %3775 }
0x1133   : > { %11020 = vst [vmem:[#allocation62_spill] sm:$0xff] %v8893_v12 }
0x1136   : > { %v8897_v8 = vpop.permute.xlu1 %3773 }
0x1137   : > { %11021 = vst [vmem:[#allocation27_spill] sm:$0xff] %v8897_v8 }
0x113a   : > { %v8911_v33 = vpop.permute.xlu1 %3777 }
0x1143   : > { %v3795_v18 = vpop.permute.xlu0 %3794 }
0x1144   : > { %v3801_v44 = vmul.f32 %v3795_v18, %v8901_v60  ;;  %v3802_v23 = vmul.f32 %v3795_v18, %v8905_v52  ;;  %v11022_v18 = vmov 16  }
0x1146   : > { %3811 = vrot.lane.b32.xlu0 %v3802_v23, %s6432_s19  ;;  %3809 = vrot.lane.b32.xlu1 %v3801_v44, %s6432_s19 }
0x114b   : > { %v3799_v8 = vpop.permute.xlu1 %3798 }
0x114c   : > { %v3803_v12 = vmul.f32 %v3799_v8, %v8901_v60  ;;  %v3804_v24 = vmul.f32 %v3799_v8, %v8905_v52 }
0x114e   : > { %3815 = vrot.lane.b32.xlu0 %v3804_v24, %s6432_s19  ;;  %3813 = vrot.lane.b32.xlu1 %v3803_v12, %s6432_s19  ;;  %v8931_v24 = vrot.slane %v8797_v14, %v10994_v47 }
0x1152   : > { %3836 = vperm.xlu0 %6207, %v8734_v10   ;;  %3832 = vperm.xlu1 %6206, %v8728_v45  }
0x1156   : > { %6208 = vset.pattern.permute.xlu0 %v11022_v18  ;;  %6209 = vset.pattern.permute.xlu1 %v11022_v18  ;;  %v8937_v18 = vrot.slane %v8809_v51, %v10994_v47 }
0x11b8   : > { %v8921_v23 = vpop.permute.xlu0 %3811  ;;  %v8923_v44 = vpop.permute.xlu1 %3809 }
0x11b9   : > { %11023 = vst [vmem:[#allocation68_spill] sm:$0xff] %v8921_v23  ;;  %11024 = vst [vmem:[#allocation25_spill] sm:$0xff] %v8923_v44 }
0x11c0   : > { %v8925_v35 = vpop.permute.xlu0 %3815  ;;  %v8927_v57 = vpop.permute.xlu1 %3813 }
0x11d1   : > { %v3837_v12 = vpop.permute.xlu0 %3836  ;;  %v3833_v8 = vpop.permute.xlu1 %3832 }
0x11d2   : > { %v3841_v22 = vmul.f32 %v3837_v12, %v8931_v24  ;;  %v3839_v2 = vmul.f32 %v3833_v8, %v8931_v24  ;;  %v3840_v44 = vmul.f32 %v3833_v8, %v8937_v18  ;;  %v3842_v23 = vmul.f32 %v3837_v12, %v8937_v18 }
0x11d3   : > { %v8957_v8 = vrot.slane %v8797_v14, %v10995_v62 }
0x11d4   : > { %3851 = vrot.lane.b32.xlu0 %v3841_v22, %s6432_s19  ;;  %3847 = vrot.lane.b32.xlu1 %v3839_v2, %s6432_s19 }
0x11d8   : > { %3870 = vperm.xlu0 %6208, %v8728_v45   ;;  %3849 = vrot.lane.b32.xlu1 %v3840_v44, %s6432_s19  ;;  %v8961_v44 = vrot.slane %v8809_v51, %v10995_v62 }
0x11dc   : > { %3853 = vrot.lane.b32.xlu1 %v3842_v23, %s6432_s19  ;;  %6211 = vset.pattern.permute.xlu0 %v11025_v42 }
0x11e0   : > { %3874 = vperm.xlu1 %6209, %v8734_v10  }
0x11e4   : > { %6210 = vset.pattern.permute.xlu1 %v11025_v42 }
0x1246   : > { %v8949_v47 = vpop.permute.xlu1 %3847  ;;  %v8951_v22 = vpop.permute.xlu0 %3851 }
0x1247   : > { %11026 = vst [vmem:[#allocation61_spill] sm:$0xff] %v8949_v47  ;;  %11027 = vst [vmem:[#allocation80_spill] sm:$0xff] %v8951_v22 }
0x124a   : > { %v8953_v2 = vpop.permute.xlu1 %3849 }
0x124b   : > { %11028 = vst [vmem:[#allocation72_spill] sm:$0xff] %v8953_v2 }
0x124e   : > { %v8967_v42 = vpop.permute.xlu1 %3853 }
0x124f   : > { %11029 = vst [vmem:[#allocation54_spill] sm:$0xff] %v8967_v42 }
0x1257   : > { %v3871_v23 = vpop.permute.xlu0 %3870 }
0x1258   : > { %v3877_v12 = vmul.f32 %v3871_v23, %v8957_v8  ;;  %v3878_v41 = vmul.f32 %v3871_v23, %v8961_v44  ;;  %v11030_v23 = vmov 22  }
0x125a   : > { %3887 = vrot.lane.b32.xlu0 %v3878_v41, %s6432_s19  ;;  %3885 = vrot.lane.b32.xlu1 %v3877_v12, %s6432_s19 }
0x125f   : > { %v3875_v2 = vpop.permute.xlu1 %3874 }
0x1260   : > { %v3879_v47 = vmul.f32 %v3875_v2, %v8957_v8  ;;  %v3880_v29 = vmul.f32 %v3875_v2, %v8961_v44 }
0x1262   : > { %3891 = vrot.lane.b32.xlu0 %v3880_v29, %s6432_s19  ;;  %3889 = vrot.lane.b32.xlu1 %v3879_v47, %s6432_s19  ;;  %v8987_v29 = vrot.slane %v8797_v14, %v10996_v13 }
0x1266   : > { %3912 = vperm.xlu0 %6211, %v8734_v10   ;;  %3908 = vperm.xlu1 %6210, %v8728_v45  }
0x126a   : > { %6212 = vset.pattern.permute.xlu0 %v11030_v23  ;;  %6213 = vset.pattern.permute.xlu1 %v11030_v23  ;;  %v8993_v23 = vrot.slane %v8809_v51, %v10996_v13 }
0x12cc   : > { %v8977_v41 = vpop.permute.xlu0 %3887  ;;  %v8979_v12 = vpop.permute.xlu1 %3885 }
0x12cd   : > { %11031 = vst [vmem:[#allocation32_spill] sm:$0xff] %v8977_v41  ;;  %11032 = vst [vmem:[#allocation30_spill] sm:$0xff] %v8979_v12 }
0x12d4   : > { %v8981_v62 = vpop.permute.xlu0 %3891  ;;  %v8983_v42 = vpop.permute.xlu1 %3889 }
0x12d5   : > { %11033 = vst [vmem:[#allocation78_spill] sm:$0xff] %v8981_v62  ;;  %11034 = vst [vmem:[#allocation59_spill] sm:$0xff] %v8983_v42 }
0x12e5   : > { %v3913_v47 = vpop.permute.xlu0 %3912  ;;  %v3909_v2 = vpop.permute.xlu1 %3908 }
0x12e6   : > { %v3917_v22 = vmul.f32 %v3913_v47, %v8987_v29  ;;  %v3915_v7 = vmul.f32 %v3909_v2, %v8987_v29  ;;  %v3916_v41 = vmul.f32 %v3909_v2, %v8993_v23  ;;  %v3918_v12 = vmul.f32 %v3913_v47, %v8993_v23 }
0x12e7   : > { %v9013_v2 = vrot.slane %v8797_v14, %v10997_v40 }
0x12e8   : > { %3927 = vrot.lane.b32.xlu0 %v3917_v22, %s6432_s19  ;;  %3923 = vrot.lane.b32.xlu1 %v3915_v7, %s6432_s19 }
0x12ec   : > { %3946 = vperm.xlu0 %6212, %v8728_v45   ;;  %3925 = vrot.lane.b32.xlu1 %v3916_v41, %s6432_s19  ;;  %v9017_v41 = vrot.slane %v8809_v51, %v10997_v40 }
0x12f0   : > { %3929 = vrot.lane.b32.xlu1 %v3918_v12, %s6432_s19  ;;  %6215 = vset.pattern.permute.xlu0 %v10821_v27 }
0x12f4   : > { %3950 = vperm.xlu1 %6213, %v8734_v10  }
0x12f8   : > { %6214 = vset.pattern.permute.xlu1 %v10821_v27 }
0x135a   : > { %v9005_v13 = vpop.permute.xlu1 %3923  ;;  %v9007_v22 = vpop.permute.xlu0 %3927 }
0x135b   : > { %11035 = vst [vmem:[#allocation60_spill] sm:$0xff] %v9005_v13  ;;  %11036 = vst [vmem:[#allocation23_spill] sm:$0xff] %v9007_v22 }
0x135e   : > { %v9009_v7 = vpop.permute.xlu1 %3925 }
0x135f   : > { %11037 = vst [vmem:[#allocation84_spill] sm:$0xff] %v9009_v7 }
0x1362   : > { %v9023_v13 = vpop.permute.xlu1 %3929 }
0x1363   : > { %11038 = vst [vmem:[#allocation48_spill] sm:$0xff] %v9023_v13 }
0x136b   : > { %v3947_v12 = vpop.permute.xlu0 %3946 }
0x136c   : > { %v3953_v47 = vmul.f32 %v3947_v12, %v9013_v2  ;;  %v3954_v62 = vmul.f32 %v3947_v12, %v9017_v41 }
0x136e   : > { %3963 = vrot.lane.b32.xlu0 %v3954_v62, %s6432_s19  ;;  %3961 = vrot.lane.b32.xlu1 %v3953_v47, %s6432_s19 }
0x1373   : > { %v3951_v7 = vpop.permute.xlu1 %3950 }
0x1374   : > { %v3955_v22 = vmul.f32 %v3951_v7, %v9013_v2  ;;  %v3956_v14 = vmul.f32 %v3951_v7, %v9017_v41 }
0x1376   : > { %3967 = vrot.lane.b32.xlu0 %v3956_v14, %s6432_s19  ;;  %3965 = vrot.lane.b32.xlu1 %v3955_v22, %s6432_s19 }
0x137a   : > { %3991 = vperm.xlu0 %6215, %v8734_v10   ;;  %3987 = vperm.xlu1 %6214, %v8728_v45  }
0x137e   : > { %6216 = vset.pattern.permute.xlu0 %v10831_v31  ;;  %6217 = vset.pattern.permute.xlu1 %v10831_v31 }
0x13e0   : > { %v9033_v62 = vpop.permute.xlu1 %3961  ;;  %v9035_v51 = vpop.permute.xlu0 %3963 }
0x13e1   : > { %11039 = vst [vmem:[#allocation33_spill] sm:$0xff] %v9033_v62  ;;  %11040 = vst [vmem:[#allocation28_spill] sm:$0xff] %v9035_v51 }
0x13e8   : > { %v9037_v12 = vpop.permute.xlu1 %3965  ;;  %v9039_v47 = vpop.permute.xlu0 %3967 }
0x13e9   : > { %11041 = vst [vmem:[#allocation36_spill] sm:$0xff] %v9037_v12  ;;  %11042 = vst [vmem:[#allocation73_spill] sm:$0xff] %v9039_v47 }
0x13f9   : > { %v3988_v7 = vpop.permute.xlu1 %3987  ;;  %v3992_v40 = vpop.permute.xlu0 %3991 }
0x13fa   : > { %v4006_v14 = vmul.f32 %v3988_v7, %v8806_v56  ;;  %v4008_v22 = vmul.f32 %v3988_v7, %v6982_v3  ;;  %v4007_v13 = vmul.f32 %v3988_v7, %v8834_v17  ;;  %v4010_v62 = vmul.f32 %v3992_v40, %v8834_v17 }
0x13fb   : > { %v4009_v51 = vmul.f32 %v3992_v40, %v8806_v56  ;;  %v4011_v47 = vmul.f32 %v3992_v40, %v6982_v3 }
0x13fc   : > { %4018 = vrot.lane.b32.xlu1 %v4006_v14, %s6434_s0  ;;  %4022 = vrot.lane.b32.xlu0 %v4008_v22, %s6434_s0  ;;  %v11043_v14 = vmov 8  }
0x1400   : > { %4020 = vrot.lane.b32.xlu1 %v4007_v13, %s6434_s0  ;;  %4026 = vrot.lane.b32.xlu0 %v4010_v62, %s6434_s0 }
0x1404   : > { %4024 = vrot.lane.b32.xlu1 %v4009_v51, %s6434_s0  ;;  %4048 = vperm.xlu0 %6216, %v8728_v45  }
0x1408   : > { %4028 = vrot.lane.b32.xlu1 %v4011_v47, %s6434_s0  ;;  %6219 = vset.pattern.permute.xlu0 %v11043_v14 }
0x140c   : > { %4052 = vperm.xlu1 %6217, %v8734_v10  }
0x1410   : > { %6218 = vset.pattern.permute.xlu1 %v11043_v14 }
0x146e   : > { %v9057_v7 = vpop.permute.xlu1 %4018  ;;  %v9059_v13 = vpop.permute.xlu0 %4022 }
0x146f   : > { %11044 = vst [vmem:[#allocation86_spill] sm:$0xff] %v9057_v7  ;;  %11045 = vst [vmem:[#allocation74_spill] sm:$0xff] %v9059_v13 }
0x1472   : > { %v9061_v62 = vpop.permute.xlu1 %4020  ;;  %v9063_v22 = vpop.permute.xlu0 %4026 }
0x1473   : > { %11046 = vst [vmem:[#allocation31_spill] sm:$0xff] %v9061_v62  ;;  %11047 = vst [vmem:[#allocation41_spill] sm:$0xff] %v9063_v22 }
0x1476   : > { %v9065_v51 = vpop.permute.xlu1 %4024 }
0x1477   : > { %11048 = vst [vmem:[#allocation37_spill] sm:$0xff] %v9065_v51 }
0x147a   : > { %v9069_v42 = vpop.permute.xlu1 %4028 }
0x147b   : > { %11049 = vst [vmem:[#allocation79_spill] sm:$0xff] %v9069_v42 }
0x1483   : > { %v4049_v12 = vpop.permute.xlu0 %4048 }
0x1484   : > { %v4067_v40 = vmul.f32 %v4049_v12, %v8843_v55  ;;  %v4068_v47 = vmul.f32 %v4049_v12, %v8817_v46  ;;  %v4069_v14 = vmul.f32 %v4049_v12, %v7014_v0  ;;  %v11050_v12 = vmov 11  }
0x1486   : > { %4081 = vrot.lane.b32.xlu0 %v4068_v47, %s6434_s0  ;;  %4079 = vrot.lane.b32.xlu1 %v4067_v40, %s6434_s0 }
0x148a   : > { %4083 = vrot.lane.b32.xlu1 %v4069_v14, %s6434_s0  ;;  %v11051_v14 = vmov 14  }
0x148b   : > { %v4053_v13 = vpop.permute.xlu1 %4052 }
0x148c   : > { %v4070_v62 = vmul.f32 %v4053_v13, %v8843_v55  ;;  %v4071_v7 = vmul.f32 %v4053_v13, %v8817_v46  ;;  %v4072_v22 = vmul.f32 %v4053_v13, %v7014_v0 }
0x148e   : > { %4085 = vrot.lane.b32.xlu0 %v4070_v62, %s6434_s0  ;;  %4087 = vrot.lane.b32.xlu1 %v4071_v7, %s6434_s0 }
0x1492   : > { %4089 = vrot.lane.b32.xlu0 %v4072_v22, %s6434_s0  ;;  %4108 = vperm.xlu1 %6218, %v8728_v45  }
0x1496   : > { %4112 = vperm.xlu0 %6219, %v8734_v10   ;;  %6220 = vset.pattern.permute.xlu1 %v11050_v12 }
0x149a   : > { %6221 = vset.pattern.permute.xlu0 %v11051_v14 }
0x14f8   : > { %v9085_v40 = vpop.permute.xlu1 %4079  ;;  %v9096_v51 = vpop.permute.xlu0 %4081 }
0x14f9   : > { %11052 = vst [vmem:[#allocation24_spill] sm:$0xff] %v9085_v40  ;;  %11055 = vst [vmem:[#allocation51_spill] sm:$0xff] %v9096_v51  ;;  %v11057_v40 = vmov 23  }
0x14fc   : > { %v9087_v47 = vpop.permute.xlu1 %4083 }
0x14fd   : > { %11053 = vst [vmem:[#allocation85_spill] sm:$0xff] %v9087_v47 }
0x1500   : > { %v9089_v42 = vpop.permute.xlu1 %4087  ;;  %v9100_v47 = vpop.permute.xlu0 %4085 }
0x1501   : > { %11054 = vst [vmem:[#allocation50_spill] sm:$0xff] %v9089_v42  ;;  %11056 = vst [vmem:[#allocation29_spill] sm:$0xff] %v9100_v47  ;;  %v11058_v42 = vmov 17  }
0x1511   : > { %v4109_v62 = vpop.permute.xlu1 %4108 }
0x1512   : > { %v4127_v7 = vmul.f32 %v4109_v62, %v8875_v1  ;;  %v4129_v13 = vmul.f32 %v4109_v62, %v7044_v37  ;;  %v4128_v22 = vmul.f32 %v4109_v62, %v8881_v19  ;;  %v9108_v62 = vpop.permute.xlu0 %4089 }
0x1513   : > { %11059 = vst [vmem:[#allocation26_spill] sm:$0xff] %v9108_v62 }
0x1514   : > { %4143 = vrot.lane.b32.xlu0 %v4129_v13, %s6434_s0  ;;  %4139 = vrot.lane.b32.xlu1 %v4127_v7, %s6434_s0  ;;  %v3405_v7 = vld [vmem:[%s10261_s12 + $0x8] sm:$0xff]  ;;  %v11060_v13 = vmov 20  }
0x1518   : > { %4232 = vperm.xlu0 %6221, %v8734_v10   ;;  %4141 = vrot.lane.b32.xlu1 %v4128_v22, %s6434_s0  ;;  %v4113_v22 = vpop.permute.xlu0 %4112 }
0x1519   : > { %v4132_v51 = vmul.f32 %v4113_v22, %v7044_v37 }
0x151c   : > { %6224 = vset.pattern.permute.xlu0 %v11057_v40  ;;  %4172 = vperm.xlu1 %6220, %v8734_v10  }
0x151d   : > { %4412 = vperm.xlu0 %6224, %v8734_v10  }
0x1520   : > { %6222 = vset.pattern.permute.xlu1 %v11058_v42 }
0x1521   : > { %6227 = vset.pattern.permute.xlu0 %v11058_v42  ;;  %4292 = vperm.xlu1 %6222, %v8734_v10   ;;  %v4130_v42 = vmul.f32 %v4113_v22, %v8875_v1 }
0x1522   : > { %4288 = vperm.xlu0 %6227, %v8728_v45  }
0x1525   : > { %6223 = vset.pattern.permute.xlu1 %v11060_v13 }
0x1526   : > { %6228 = vset.pattern.permute.xlu0 %v10878_v28  ;;  %4352 = vperm.xlu1 %6223, %v8734_v10   ;;  %v4131_v10 = vmul.f32 %v4113_v22, %v8881_v19 }
0x1527   : > { %3413 = vperm.xlu0 %6228, %v3405_v7  }
0x152a   : > { %6225 = vset.pattern.permute.xlu1 %v11050_v12 }
0x152b   : > { %4145 = vrot.lane.b32.xlu0 %v4130_v42, %s6434_s0  ;;  %4168 = vperm.xlu1 %6225, %v8728_v45  }
0x152f   : > { %6226 = vset.pattern.permute.xlu1 %v11051_v14  ;;  %4149 = vrot.lane.b32.xlu0 %v4132_v51, %s6434_s0 }
0x1530   : > { %4228 = vperm.xlu1 %6226, %v8728_v45  }
0x1534   : > { %6229 = vset.pattern.permute.xlu1 %v11060_v13 }
0x1535   : > { %4348 = vperm.xlu1 %6229, %v8728_v45  }
0x1539   : > { %6230 = vset.pattern.permute.xlu1 %v11057_v40 }
0x153a   : > { %4408 = vperm.xlu1 %6230, %v8728_v45  }
0x153e   : > { %4147 = vrot.lane.b32.xlu1 %v4131_v10, %s6434_s0 }
0x153f   : > { %6231 = vset.pattern.permute.xlu1 %v10878_v28 }
0x1586   : > { %v9132_v42 = vpop.permute.xlu1 %4139  ;;  %v9146_v47 = vpop.permute.xlu0 %4143 }
0x1587   : > { %11061 = vst [vmem:[#allocation40_spill] sm:$0xff] %v9132_v42 }
0x158a   : > { %v9134_v7 = vpop.permute.xlu1 %4141 }
0x158b   : > { %11062 = vst [vmem:[#allocation46_spill] sm:$0xff] %v9134_v7 }
0x159b   : > { %v4173_v51 = vpop.permute.xlu1 %4172 }
0x159c   : > { %v4190_v22 = vmul.f32 %v4173_v51, %v8901_v60  ;;  %v4191_v10 = vmul.f32 %v4173_v51, %v8905_v52  ;;  %v4192_v7 = vmul.f32 %v4173_v51, %v10697_v30 }
0x15a0   : > { %v4293_v14 = vpop.permute.xlu1 %4292 }
0x15a5   : > { %v4353_v12 = vpop.permute.xlu1 %4352 }
0x15aa   : > { %v4169_v13 = vpop.permute.xlu1 %4168 }
0x15ab   : > { %v4187_v62 = vmul.f32 %v4169_v13, %v8901_v60  ;;  %v4188_v40 = vmul.f32 %v4169_v13, %v8905_v52  ;;  %v4189_v45 = vmul.f32 %v4169_v13, %v10697_v30  ;;  %v4233_v13 = vpop.permute.xlu0 %4232 }
0x15ac   : > { %v4250_v51 = vmul.f32 %v4233_v13, %v8931_v24 }
0x15ad   : > { %4199 = vrot.lane.b32.xlu1 %v4187_v62, %s6434_s0  ;;  %4201 = vrot.lane.b32.xlu0 %v4188_v40, %s6434_s0 }
0x15af   : > { %v4229_v42 = vpop.permute.xlu1 %4228 }
0x15b0   : > { %v4247_v40 = vmul.f32 %v4229_v42, %v8931_v24  ;;  %v4248_v62 = vmul.f32 %v4229_v42, %v8937_v18 }
0x15b1   : > { %4203 = vrot.lane.b32.xlu1 %v4189_v45, %s6434_s0  ;;  %4205 = vrot.lane.b32.xlu0 %v4190_v22, %s6434_s0  ;;  %v4249_v45 = vmul.f32 %v4229_v42, %v7108_v63  ;;  %v4252_v22 = vmul.f32 %v4233_v13, %v7108_v63  ;;  %v4312_v42 = vmul.f32 %v4293_v14, %v7142_v39 }
0x15b5   : > { %4207 = vrot.lane.b32.xlu1 %v4191_v10, %s6434_s0  ;;  %4209 = vrot.lane.b32.xlu0 %v4192_v7, %s6434_s0  ;;  %v4251_v7 = vmul.f32 %v4233_v13, %v8937_v18  ;;  %v4310_v10 = vmul.f32 %v4293_v14, %v8957_v8  ;;  %v4413_v13 = vpop.permute.xlu0 %4412 }
0x15b9   : > { %4259 = vrot.lane.b32.xlu1 %v4247_v40, %s6434_s0  ;;  %4261 = vrot.lane.b32.xlu0 %v4248_v62, %s6434_s0  ;;  %v4311_v40 = vmul.f32 %v4293_v14, %v8961_v44  ;;  %v4370_v62 = vmul.f32 %v4353_v12, %v8987_v29  ;;  %v4289_v14 = vpop.permute.xlu0 %4288 }
0x15bd   : > { %4263 = vrot.lane.b32.xlu1 %v4249_v45, %s6434_s0  ;;  %4265 = vrot.lane.b32.xlu0 %v4250_v51, %s6434_s0  ;;  %v4371_v45 = vmul.f32 %v4353_v12, %v8993_v23  ;;  %v4372_v51 = vmul.f32 %v4353_v12, %v7172_v5  ;;  %v4309_v12 = vmul.f32 %v4289_v14, %v7142_v39 }
0x15c1   : > { %4267 = vrot.lane.b32.xlu1 %v4251_v7, %s6434_s0  ;;  %4269 = vrot.lane.b32.xlu0 %v4252_v22, %s6434_s0  ;;  %v4430_v22 = vmul.f32 %v4413_v13, %v9013_v2  ;;  %v4431_v7 = vmul.f32 %v4413_v13, %v9017_v41 }
0x15c5   : > { %4325 = vrot.lane.b32.xlu1 %v4310_v10, %s6434_s0  ;;  %4327 = vrot.lane.b32.xlu0 %v4311_v40, %s6434_s0  ;;  %v4432_v10 = vmul.f32 %v4413_v13, %v7204_v49  ;;  %v4307_v40 = vmul.f32 %v4289_v14, %v8957_v8 }
0x15c9   : > { %4329 = vrot.lane.b32.xlu1 %v4312_v42, %s6434_s0  ;;  %4385 = vrot.lane.b32.xlu0 %v4370_v62, %s6434_s0  ;;  %v4308_v42 = vmul.f32 %v4289_v14, %v8961_v44  ;;  %v4349_v62 = vpop.permute.xlu1 %4348 }
0x15cd   : > { %4387 = vrot.lane.b32.xlu1 %v4371_v45, %s6434_s0  ;;  %4389 = vrot.lane.b32.xlu0 %v4372_v51, %s6434_s0  ;;  %v4367_v45 = vmul.f32 %v4349_v62, %v8987_v29  ;;  %v4368_v51 = vmul.f32 %v4349_v62, %v8993_v23  ;;  %v4409_v13 = vpop.permute.xlu1 %4408 }
0x15ce   : > { %v4429_v14 = vmul.f32 %v4409_v13, %v7204_v49 }
0x15d1   : > { %4445 = vrot.lane.b32.xlu1 %v4430_v22, %s6434_s0  ;;  %4447 = vrot.lane.b32.xlu0 %v4431_v7, %s6434_s0  ;;  %v4369_v22 = vmul.f32 %v4349_v62, %v7172_v5  ;;  %v4427_v7 = vmul.f32 %v4409_v13, %v9013_v2  ;;  %v3446_v62 = vmul.f32 %v8784_v38, %v6982_v3 }
0x15d5   : > { %4449 = vrot.lane.b32.xlu1 %v4432_v10, %s6434_s0  ;;  %4319 = vrot.lane.b32.xlu0 %v4307_v40, %s6434_s0  ;;  %v4428_v10 = vmul.f32 %v4409_v13, %v9017_v41  ;;  %v4491_v40 = vld [vmem:[%s10262_s13] sm:$0xff]  ;;  %v3478_v13 = vmul.f32 %v8788_v59, %v7014_v0 }
0x15d9   : > { %4321 = vrot.lane.b32.xlu1 %v4308_v42, %s6434_s0  ;;  %4323 = vrot.lane.b32.xlu0 %v4309_v12, %s6434_s0  ;;  %v4492_v12 = vld [vmem:[%s10263_s14] sm:$0xff]  ;;  %v3414_v42 = vpop.permute.xlu0 %3413 }
0x15dd   : > { %4379 = vrot.lane.b32.xlu1 %v4367_v45, %s6434_s0  ;;  %4381 = vrot.lane.b32.xlu0 %v4368_v51, %s6434_s0  ;;  %v3447_v45 = vmul.f32 %v8806_v56, %v8784_v38  ;;  %v3452_v51 = vadd.f32 %v3446_v62, %v3414_v42  ;;  %v3510_v62 = vmul.f32 %v8782_v6, %v7044_v37 }
0x15e1   : > { %4383 = vrot.lane.b32.xlu1 %v4369_v22, %s6434_s0  ;;  %4439 = vrot.lane.b32.xlu0 %v4427_v7, %s6434_s0  ;;  %v3453_v22 = vadd.f32 %v3447_v45, %v3414_v42  ;;  %v3448_v7 = vmul.f32 %v8834_v17, %v8784_v38  ;;  %v3480_v45 = vmul.f32 %v8817_v46, %v8788_v59 }
0x15e2   : > { %v3511_v38 = vmul.f32 %v8875_v1, %v8782_v6 }
0x15e5   : > { %4441 = vrot.lane.b32.xlu1 %v4428_v10, %s6434_s0  ;;  %4443 = vrot.lane.b32.xlu0 %v4429_v14, %s6434_s0  ;;  %v3479_v14 = vmul.f32 %v8843_v55, %v8788_v59  ;;  %v3484_v10 = vadd.f32 %v3478_v13, %v3452_v51  ;;  %v3512_v13 = vmul.f32 %v8881_v19, %v8782_v6  ;;  %s6435_s0 = smov 3  }
0x15e9   : > { %4500 = vperm.xlu1 %6231, %v4491_v40   ;;  %4495 = vperm.xlu0 %6228, %v4492_v12   ;;  %v3454_v12 = vadd.f32 %v3448_v7, %v3414_v42  ;;  %v3542_v42 = vmul.f32 %v8812_v11, %v10697_v30 }
0x15ed   : > { %6232 = vset.pattern.permute.xlu1 %v10891_v15  ;;  %6234 = vset.pattern.permute.xlu0 %v10895_v36  ;;  %v3485_v36 = vadd.f32 %v3479_v14, %v3453_v22  ;;  %v3486_v15 = vadd.f32 %v3480_v45, %v3454_v12  ;;  %v3543_v22 = vmul.f32 %v8901_v60, %v8812_v11 }
0x15ee   : > { %4522 = vperm.xlu1 %6232, %v4491_v40   ;;  %4566 = vperm.xlu0 %6234, %v4491_v40   ;;  %v3574_v14 = vmul.f32 %v8820_v25, %v7108_v63  ;;  %v3544_v12 = vmul.f32 %v8905_v52, %v8812_v11  ;;  %v3607_v45 = vmul.f32 %v8957_v8, %v8790_v58 }
0x15ef   : > { %v3517_v51 = vadd.f32 %v3511_v38, %v3485_v36  ;;  %v3518_v59 = vadd.f32 %v3512_v13, %v3486_v15  ;;  %v3576_v15 = vmul.f32 %v8937_v18, %v8820_v25  ;;  %v3639_v13 = vmul.f32 %v8987_v29, %v8827_v21 }
0x15f1   : > { %v3550_v6 = vadd.f32 %v3544_v12, %v3518_v59 }
0x15f2   : > { %6233 = vset.pattern.permute.xlu1 %v10821_v27  ;;  %6237 = vset.pattern.permute.xlu0 %v10897_v26  ;;  %v3516_v27 = vadd.f32 %v3510_v62, %v3484_v10  ;;  %v3549_v10 = vadd.f32 %v3543_v22, %v3517_v51  ;;  %v3606_v62 = vmul.f32 %v8790_v58, %v7142_v39 }
0x15f3   : > { %4544 = vperm.xlu1 %6233, %v4491_v40   ;;  %4632 = vperm.xlu0 %6237, %v4491_v40   ;;  %v3582_v11 = vadd.f32 %v3576_v15, %v3550_v6  ;;  %v3704_v6 = vsel %vm2634_vm4, %v8863_v16, %v8853_v43 }
0x15f4   : > { %v3548_v7 = vadd.f32 %v3542_v42, %v3516_v27  ;;  %v3638_v42 = vmul.f32 %v8827_v21, %v7172_v5 }
0x15f6   : > { %v3580_v36 = vadd.f32 %v3574_v14, %v3548_v7  ;;  %v3671_v14 = vmul.f32 %v9013_v2, %v8829_v9 }
0x15f7   : > { %6235 = vset.pattern.permute.xlu1 %v10894_v32  ;;  %6245 = vset.pattern.permute.xlu0 %v10831_v31 }
0x15f8   : > { %4588 = vperm.xlu1 %6235, %v4491_v40   ;;  %v3612_v38 = vadd.f32 %v3606_v62, %v3580_v36 }
0x15fa   : > { %v3644_v22 = vadd.f32 %v3638_v42, %v3612_v38  ;;  %v9270_v38 = vpop.permute.xlu0 %4145 }
0x15fc   : > { %6236 = vset.pattern.permute.xlu1 %v10831_v31  ;;  %v3575_v31 = vmul.f32 %v8931_v24, %v8820_v25  ;;  %v3670_v25 = vmul.f32 %v8829_v9, %v7204_v49 }
0x15fd   : > { %4610 = vperm.xlu1 %6236, %v4491_v40  }
0x15fe   : > { %v3581_v27 = vadd.f32 %v3575_v31, %v3549_v10  ;;  %v3676_v10 = vadd.f32 %v3670_v25, %v3644_v22  ;;  %v3444_v22 = vmul.f32 %v8806_v56, %v8780_v61 }
0x1600   : > { %v3613_v51 = vadd.f32 %v3607_v45, %v3581_v27  ;;  %v3714_v36 = vadd.f32 %v8863_v16, %v3676_v10  ;;  %v3780_v16 = vsel %vm2634_vm4, %v8895_v53, %v8911_v33 }
0x1601   : > { %6238 = vset.pattern.permute.xlu1 %v10896_v20 }
0x1602   : > { %4654 = vperm.xlu1 %6238, %v4491_v40   ;;  %v3608_v40 = vmul.f32 %v8961_v44, %v8790_v58  ;;  %v3645_v59 = vadd.f32 %v3639_v13, %v3613_v51  ;;  %v3672_v58 = vmul.f32 %v9017_v41, %v8829_v9  ;;  %v3752_v15 = vadd.f32 %v8871_v54, %v3714_v36 }
0x1603   : > { %v3445_v9 = vmul.f32 %v8834_v17, %v8780_v61  ;;  %v3508_v36 = vmul.f32 %v8875_v1, %v8793_v50 }
0x1604   : > { %v3614_v7 = vadd.f32 %v3608_v40, %v3582_v11  ;;  %v3677_v31 = vadd.f32 %v3671_v14, %v3645_v59  ;;  %v3790_v42 = vadd.f32 %v8895_v53, %v3752_v15  ;;  %v9279_v40 = vpop.permute.xlu1 %4147  ;;  %v3818_v53 = vsel %vm2634_vm4, %v8927_v57, %v8925_v35 }
0x1605   : > { %v3451_v17 = vadd.f32 %v3445_v9, %v8776_v4  ;;  %v3475_v14 = vmul.f32 %v8778_v34, %v7014_v0 }
0x1606   : > { %6244 = vset.pattern.permute.xlu1 %v10878_v28  ;;  %v3640_v28 = vmul.f32 %v8993_v23, %v8827_v21  ;;  %v3715_v27 = vadd.f32 %v3704_v6, %v3677_v31  ;;  %v3742_v21 = vsel %vm2634_vm4, %v8871_v54, %v8869_v48  ;;  %v3443_v54 = vmul.f32 %v8780_v61, %v6982_v3  ;;  %v11064_v31 = vld [vmem:[#allocation80_spill] sm:$0xff]  ;;  %v11065_v6 = vld [vmem:[#allocation54_spill] sm:$0xff] }
0x1607   : > { %v3477_v3 = vmul.f32 %v8817_v46, %v8778_v34  ;;  %v3509_v61 = vmul.f32 %v8881_v19, %v8793_v50  ;;  %v3476_v19 = vmul.f32 %v8843_v55, %v8778_v34  ;;  %v3856_v0 = vsel %vm2634_vm4, %v11064_v31, %v11065_v6 }
0x1608   : > { %v3646_v12 = vadd.f32 %v3640_v28, %v3614_v7  ;;  %v3753_v11 = vadd.f32 %v3742_v21, %v3715_v27  ;;  %v3828_v7 = vadd.f32 %v8927_v57, %v3790_v42  ;;  %v3449_v59 = vadd.f32 %v3443_v54, %v8776_v4 }
0x1609   : > { %v3450_v57 = vadd.f32 %v3444_v22, %v8776_v4  ;;  %v3483_v10 = vadd.f32 %v3477_v3, %v3451_v17 }
0x160a   : > { %v3678_v62 = vadd.f32 %v3672_v58, %v3646_v12  ;;  %v3791_v13 = vadd.f32 %v3780_v16, %v3753_v11  ;;  %v11063_v12 = vld [vmem:[#allocation49_spill] sm:$0xff]  ;;  %v3866_v58 = vadd.f32 %v11064_v31, %v3828_v7 }
0x160b   : > { %v3541_v46 = vmul.f32 %v8905_v52, %v11063_v12  ;;  %v3515_v27 = vadd.f32 %v3509_v61, %v3483_v10  ;;  %v3539_v52 = vmul.f32 %v11063_v12, %v10697_v30  ;;  %v3482_v55 = vadd.f32 %v3476_v19, %v3450_v57  ;;  %v11068_v30 = vld [vmem:[#allocation42_spill] sm:$0xff]  ;;  %v11072_v10 = vld [vmem:[#allocation48_spill] sm:$0xff] }
0x160c   : > { %v3716_v45 = vadd.f32 %v8853_v43, %v3678_v62  ;;  %v9283_v43 = vpop.permute.xlu0 %4149  ;;  %v3829_v56 = vadd.f32 %v3818_v53, %v3791_v13  ;;  %v3540_v34 = vmul.f32 %v8901_v60, %v11063_v12  ;;  %v3571_v54 = vmul.f32 %v11068_v30, %v7108_v63  ;;  %v11069_v53 = vld [vmem:[#allocation39_spill] sm:$0xff] }
0x160d   : > { %v3547_v1 = vadd.f32 %v3541_v46, %v3515_v27  ;;  %v3514_v9 = vadd.f32 %v3508_v36, %v3482_v55  ;;  %v3573_v13 = vmul.f32 %v8937_v18, %v11068_v30  ;;  %v3572_v3 = vmul.f32 %v8931_v24, %v11068_v30  ;;  %v11073_v36 = vld [vmem:[#allocation36_spill] sm:$0xff] }
0x160e   : > { %v3754_v51 = vadd.f32 %v8869_v48, %v3716_v45  ;;  %v3867_v15 = vadd.f32 %v3856_v0, %v3829_v56  ;;  %v11066_v45 = vld [vmem:[#allocation59_spill] sm:$0xff]  ;;  %v3603_v61 = vmul.f32 %v11069_v53, %v7142_v39  ;;  %v3604_v18 = vmul.f32 %v8957_v8, %v11069_v53 }
0x160f   : > { %v3904_v11 = vadd.f32 %v11066_v45, %v3866_v58  ;;  %v3546_v7 = vadd.f32 %v3540_v34, %v3514_v9  ;;  %v11070_v56 = vld [vmem:[#allocation23_spill] sm:$0xff] }
0x1610   : > { %v3792_v48 = vadd.f32 %v8911_v33, %v3754_v51  ;;  %v3507_v33 = vmul.f32 %v8793_v50, %v7044_v37  ;;  %v3481_v37 = vadd.f32 %v3475_v14, %v3449_v59  ;;  %v3579_v59 = vadd.f32 %v3573_v13, %v3547_v1  ;;  %v11071_v14 = vld [vmem:[#allocation53_spill] sm:$0xff] }
0x1611   : > { %v3942_v63 = vadd.f32 %v11070_v56, %v3904_v11  ;;  %v3637_v57 = vmul.f32 %v8993_v23, %v11071_v14  ;;  %v3635_v39 = vmul.f32 %v11071_v14, %v7172_v5  ;;  %v3578_v58 = vadd.f32 %v3572_v3, %v3546_v7  ;;  %v11076_v11 = vld [vmem:[#allocation37_spill] sm:$0xff] }
0x1612   : > { %v3830_v4 = vadd.f32 %v8925_v35, %v3792_v48  ;;  %v3513_v50 = vadd.f32 %v3507_v33, %v3481_v37  ;;  %v11067_v35 = vld [vmem:[#allocation78_spill] sm:$0xff]  ;;  %v3605_v48 = vmul.f32 %v8961_v44, %v11069_v53  ;;  %v3932_v33 = vsel %vm2634_vm4, %v11070_v56, %v11072_v10  ;;  %v11074_v37 = vld [vmem:[#allocation73_spill] sm:$0xff] }
0x1613   : > { %v3894_v42 = vsel %vm2634_vm4, %v11066_v45, %v11067_v35  ;;  %v3636_v23 = vmul.f32 %v8987_v29, %v11071_v14  ;;  %v3610_v0 = vadd.f32 %v3604_v18, %v3578_v58  ;;  %v3970_v27 = vsel %vm2634_vm4, %v11073_v36, %v11074_v37  ;;  %v11083_v14 = vld [vmem:[#allocation29_spill] sm:$0xff] }
0x1614   : > { %v3868_v16 = vadd.f32 %v11065_v6, %v3830_v4  ;;  %v3545_v60 = vadd.f32 %v3539_v52, %v3513_v50  ;;  %v3905_v22 = vadd.f32 %v3894_v42, %v3867_v15  ;;  %v3611_v8 = vadd.f32 %v3605_v48, %v3579_v59  ;;  %v11075_v15 = vld [vmem:[#allocation66_spill] sm:$0xff] }
0x1615   : > { %v3980_v6 = vadd.f32 %v11073_v36, %v3942_v63  ;;  %v3667_v55 = vmul.f32 %v11075_v15, %v7204_v49  ;;  %v3669_v29 = vmul.f32 %v9017_v41, %v11075_v15  ;;  %v3642_v45 = vadd.f32 %v3636_v23, %v3610_v0  ;;  %v11080_v59 = vld [vmem:[#allocation38_spill] sm:$0xff]  ;;  %v11082_v63 = vld [vmem:[#allocation79_spill] sm:$0xff] }
0x1616   : > { %v3906_v44 = vadd.f32 %v11067_v35, %v3868_v16  ;;  %v3577_v24 = vadd.f32 %v3571_v54, %v3545_v60  ;;  %v3943_v46 = vadd.f32 %v3932_v33, %v3905_v22  ;;  %v3643_v4 = vadd.f32 %v3637_v57, %v3611_v8  ;;  %v11077_v16 = vld [vmem:[#allocation41_spill] sm:$0xff]  ;;  %v11078_v60 = vld [vmem:[#allocation43_spill] sm:$0xff]  ;;  %v11084_v33 = vld [vmem:[#allocation50_spill] sm:$0xff] }
0x1617   : > { %v4044_v9 = vadd.f32 %v11076_v11, %v3980_v6  ;;  %v3668_v35 = vmul.f32 %v9013_v2, %v11075_v15  ;;  %v4033_v30 = vsel %vm4030_vm6, %v11076_v11, %v11077_v16  ;;  %v11079_v22 = vld [vmem:[#allocation55_spill] sm:$0xff]  ;;  %v4034_v18 = vsel %vm4030_vm6, %v11077_v16, %v11082_v63  ;;  %v11085_v36 = vld [vmem:[#allocation62_spill] sm:$0xff]  ;;  %v11089_v11 = vld [vmem:[#allocation25_spill] sm:$0xff] }
0x1618   : > { %v3609_v19 = vadd.f32 %v3603_v61, %v3577_v24  ;;  %v3944_v52 = vadd.f32 %v11072_v10, %v3906_v44  ;;  %v3981_v50 = vadd.f32 %v3970_v27, %v3943_v46  ;;  %v3675_v42 = vadd.f32 %v3669_v29, %v3643_v4  ;;  %v11081_v61 = vld [vmem:[#allocation45_spill] sm:$0xff]  ;;  %v11086_v0 = vld [vmem:[#allocation27_spill] sm:$0xff] }
0x1619   : > { %v3703_v41 = vsel %vm2634_vm4, %v11079_v22, %v11078_v60  ;;  %v3674_v48 = vadd.f32 %v3668_v35, %v3642_v45  ;;  %v3741_v56 = vsel %vm2634_vm4, %v11081_v61, %v11080_v59  ;;  %v4104_v57 = vadd.f32 %v11083_v14, %v4044_v9  ;;  %v11088_v45 = vld [vmem:[#allocation68_spill] sm:$0xff] }
0x161a   : > { %v3641_v34 = vadd.f32 %v3635_v39, %v3609_v19  ;;  %v3982_v49 = vadd.f32 %v11074_v37, %v3944_v52  ;;  %v4045_v7 = vadd.f32 %v4033_v30, %v3981_v50  ;;  %v3713_v3 = vadd.f32 %v11078_v60, %v3675_v42  ;;  %v11087_v37 = vld [vmem:[#allocation26_spill] sm:$0xff] }
0x161b   : > { %v3712_v10 = vadd.f32 %v3703_v41, %v3674_v48  ;;  %v4093_v44 = vsel %vm4030_vm6, %v11083_v14, %v11084_v33  ;;  %v3779_v4 = vsel %vm2634_vm4, %v11085_v36, %v11086_v0  ;;  %v4094_v27 = vsel %vm4030_vm6, %v11084_v33, %v11087_v37  ;;  %v11093_v33 = vld [vmem:[#allocation32_spill] sm:$0xff] }
0x161c   : > { %v3673_v13 = vadd.f32 %v3667_v55, %v3641_v34  ;;  %v4046_v24 = vadd.f32 %v4034_v18, %v3982_v49  ;;  %v4105_v58 = vadd.f32 %v4093_v44, %v4045_v7  ;;  %v3751_v19 = vadd.f32 %v11080_v59, %v3713_v3 }
0x161d   : > { %v3750_v23 = vadd.f32 %v3741_v56, %v3712_v10  ;;  %v4164_v52 = vadd.f32 %v9270_v38, %v4104_v57  ;;  %v4153_v34 = vsel %vm4030_vm6, %v9270_v38, %v9279_v40  ;;  %v3817_v9 = vsel %vm2634_vm4, %v11089_v11, %v11088_v45  ;;  %v11091_v56 = vld [vmem:[#allocation72_spill] sm:$0xff] }
0x161e   : > { %v3711_v2 = vadd.f32 %v11079_v22, %v3673_v13  ;;  %v3789_v15 = vadd.f32 %v11086_v0, %v3751_v19  ;;  %v4106_v55 = vadd.f32 %v4094_v27, %v4046_v24  ;;  %v4165_v35 = vadd.f32 %v4153_v34, %v4105_v58 }
0x161f   : > { %v9293_v25 = vpop.permute.xlu1 %4199  ;;  %v9300_v28 = vpop.permute.xlu0 %4201  ;;  %v3788_v30 = vadd.f32 %v3779_v4, %v3750_v23  ;;  %v4154_v60 = vsel %vm4030_vm6, %v9279_v40, %v9283_v43 }
0x1620   : > { %v3749_v46 = vadd.f32 %v11081_v61, %v3711_v2  ;;  %v3827_v49 = vadd.f32 %v11088_v45, %v3789_v15  ;;  %v4166_v2 = vadd.f32 %v4154_v60, %v4106_v55  ;;  %v11096_v55 = vld [vmem:[#allocation33_spill] sm:$0xff] }
0x1621   : > { %v3826_v48 = vadd.f32 %v3817_v9, %v3788_v30 }
0x1622   : > { %v3787_v6 = vadd.f32 %v11085_v36, %v3749_v46 }
0x1623   : > { %v9318_v62 = vpop.permute.xlu1 %4203  ;;  %v9322_v21 = vpop.permute.xlu0 %4205 }
0x1624   : > { %v4224_v42 = vadd.f32 %v9322_v21, %v4164_v52  ;;  %v3825_v13 = vadd.f32 %v11089_v11, %v3787_v6  ;;  %v11095_v6 = vld [vmem:[#allocation84_spill] sm:$0xff] }
0x1627   : > { %v9331_v51 = vpop.permute.xlu1 %4207  ;;  %v9337_v17 = vpop.permute.xlu0 %4209 }
0x1628   : > { %v4213_v50 = vsel %vm4030_vm6, %v9322_v21, %v9331_v51  ;;  %v4214_v22 = vsel %vm4030_vm6, %v9331_v51, %v9337_v17  ;;  %v11090_v21 = vld [vmem:[#allocation61_spill] sm:$0xff]  ;;  %v3865_v51 = vadd.f32 %v11091_v56, %v3827_v49  ;;  %v11092_v17 = vld [vmem:[#allocation30_spill] sm:$0xff] }
0x1629   : > { %v4225_v41 = vadd.f32 %v4213_v50, %v4165_v35  ;;  %v3863_v3 = vadd.f32 %v11090_v21, %v3825_v13  ;;  %v3855_v63 = vsel %vm2634_vm4, %v11090_v21, %v11091_v56  ;;  %v4226_v57 = vadd.f32 %v4214_v22, %v4166_v2  ;;  %v11100_v21 = vld [vmem:[#allocation74_spill] sm:$0xff]  ;;  %v11101_v2 = vld [vmem:[#allocation24_spill] sm:$0xff] }
0x162a   : > { %v3893_v44 = vsel %vm2634_vm4, %v11092_v17, %v11093_v33  ;;  %v3864_v23 = vadd.f32 %v3855_v63, %v3826_v48  ;;  %v11102_v63 = vld [vmem:[#allocation51_spill] sm:$0xff] }
0x162b   : > { %v9354_v12 = vpop.permute.xlu1 %4259  ;;  %v9358_v31 = vpop.permute.xlu0 %4261 }
0x162c   : > { %v3902_v15 = vadd.f32 %v3893_v44, %v3864_v23 }
0x162f   : > { %v9367_v5 = vpop.permute.xlu1 %4263  ;;  %v4266_v1 = vpop.permute.xlu0 %4265 }
0x1630   : > { %v4284_v7 = vadd.f32 %v4266_v1, %v4224_v42 }
0x1633   : > { %v4268_v54 = vpop.permute.xlu1 %4267  ;;  %v4270_v53 = vpop.permute.xlu0 %4269 }
0x1634   : > { %v4273_v38 = vsel %vm4030_vm6, %v4266_v1, %v4268_v54  ;;  %v4274_v18 = vsel %vm4030_vm6, %v4268_v54, %v4270_v53  ;;  %v3901_v1 = vadd.f32 %v11092_v17, %v3863_v3  ;;  %v3903_v54 = vadd.f32 %v11093_v33, %v3865_v51  ;;  %v11094_v53 = vld [vmem:[#allocation60_spill] sm:$0xff]  ;;  %v11105_v33 = vld [vmem:[#allocation46_spill] sm:$0xff] }
0x1635   : > { %v4285_v40 = vadd.f32 %v4273_v38, %v4225_v41  ;;  %v4286_v19 = vadd.f32 %v4274_v18, %v4226_v57  ;;  %v3931_v0 = vsel %vm2634_vm4, %v11094_v53, %v11095_v6  ;;  %v11099_v38 = vld [vmem:[#allocation31_spill] sm:$0xff]  ;;  %v4091_v18 = vsel %vm4030_vm6, %v11101_v2, %v11102_v63  ;;  %v11104_v51 = vld [vmem:[#allocation40_spill] sm:$0xff] }
0x1636   : > { %v3940_v35 = vadd.f32 %v3931_v0, %v3902_v15  ;;  %v3941_v42 = vadd.f32 %v11095_v6, %v3903_v54  ;;  %v4032_v3 = vsel %vm4030_vm6, %v11099_v38, %v11100_v21  ;;  %v4151_v44 = vsel %vm4030_vm6, %v11104_v51, %v11105_v33 }
0x1637   : > { %v4326_v39 = vpop.permute.xlu1 %4325  ;;  %v4328_v8 = vpop.permute.xlu0 %4327 }
0x1638   : > { %v4333_v59 = vsel %vm4030_vm6, %v4326_v39, %v4328_v8  ;;  %v4344_v43 = vadd.f32 %v4326_v39, %v4284_v7  ;;  %v3939_v39 = vadd.f32 %v11094_v53, %v3901_v1  ;;  %v4211_v53 = vsel %vm4030_vm6, %v9293_v25, %v9300_v28 }
0x1639   : > { %v4345_v24 = vadd.f32 %v4333_v59, %v4285_v40 }
0x163a   : > { %v3977_v34 = vadd.f32 %v11096_v55, %v3939_v39 }
0x163b   : > { %v4330_v29 = vpop.permute.xlu1 %4329  ;;  %v4386_v16 = vpop.permute.xlu0 %4385 }
0x163c   : > { %v4404_v46 = vadd.f32 %v4386_v16, %v4344_v43  ;;  %v4334_v58 = vsel %vm4030_vm6, %v4328_v8, %v4330_v29  ;;  %v11097_v29 = vld [vmem:[#allocation28_spill] sm:$0xff]  ;;  %v11103_v43 = vld [vmem:[#allocation85_spill] sm:$0xff] }
0x163d   : > { %v4346_v8 = vadd.f32 %v4334_v58, %v4286_v19  ;;  %v3969_v45 = vsel %vm2634_vm4, %v11096_v55, %v11097_v29  ;;  %v3979_v56 = vadd.f32 %v11097_v29, %v3941_v42  ;;  %v4152_v58 = vsel %vm4030_vm6, %v11105_v33, %v9146_v47 }
0x163e   : > { %v3978_v48 = vadd.f32 %v3969_v45, %v3940_v35  ;;  %v4212_v19 = vsel %vm4030_vm6, %v9300_v28, %v9318_v62  ;;  %v4271_v47 = vsel %vm4030_vm6, %v9354_v12, %v9358_v31 }
0x163f   : > { %v4388_v61 = vpop.permute.xlu1 %4387  ;;  %v4390_v14 = vpop.permute.xlu0 %4389 }
0x1640   : > { %v4393_v10 = vsel %vm4030_vm6, %v4386_v16, %v4388_v61  ;;  %v4394_v4 = vsel %vm4030_vm6, %v4388_v61, %v4390_v14  ;;  %v11098_v16 = vld [vmem:[#allocation86_spill] sm:$0xff]  ;;  %v4092_v14 = vsel %vm4030_vm6, %v11102_v63, %v11103_v43 }
0x1641   : > { %v4405_v37 = vadd.f32 %v4393_v10, %v4345_v24  ;;  %v4041_v30 = vadd.f32 %v11098_v16, %v3977_v34  ;;  %v4406_v49 = vadd.f32 %v4394_v4, %v4346_v8  ;;  %v4031_v60 = vsel %vm4030_vm6, %v11098_v16, %v11099_v38 }
0x1642   : > { %v4042_v40 = vadd.f32 %v4031_v60, %v3978_v48  ;;  %v4043_v10 = vadd.f32 %v4032_v3, %v3979_v56 }
0x1643   : > { %v4446_v36 = vpop.permute.xlu1 %4445  ;;  %v4448_v27 = vpop.permute.xlu0 %4447  ;;  %v4101_v59 = vadd.f32 %v11101_v2, %v4041_v30 }
0x1644   : > { %v4464_v52 = vadd.f32 %v4446_v36, %v4404_v46  ;;  %v4453_v50 = vsel %vm4030_vm6, %v4446_v36, %v4448_v27  ;;  %v4102_v46 = vadd.f32 %v4091_v18, %v4042_v40  ;;  %v4103_v54 = vadd.f32 %v4092_v14, %v4043_v10  ;;  %v11106_v14 = vld [vmem:[#allocation8_spill] sm:$0xff]  ;;  %v11107_v10 = vld [vmem:[#allocation9_spill] sm:$0xff] }
0x1645   : > { %v4465_v11 = vadd.f32 %v4453_v50, %v4405_v37  ;;  %v4161_v17 = vadd.f32 %v11104_v51, %v4101_v59 }
0x1646   : > { %v5972_v9 = vmul.f32 -1.442695, %v4464_v52  ;;  %v4162_v39 = vadd.f32 %v4151_v44, %v4102_v46  ;;  %v4163_v0 = vadd.f32 %v4152_v58, %v4103_v54 }
0x1647   : > { %v4450_v13 = vpop.permute.xlu1 %4449  ;;  %v5973_v22 = vmul.f32 -1.442695, %v4465_v11  ;;  %v4320_v41 = vpop.permute.xlu0 %4319  ;;  %v4221_v23 = vadd.f32 %v9293_v25, %v4161_v17 }
0x1648   : > { %6321 = vpow2.f32 %v5972_v9  ;;  %v4454_v7 = vsel %vm4030_vm6, %v4448_v27, %v4450_v13  ;;  %v4222_v37 = vadd.f32 %v4211_v53, %v4162_v39  ;;  %v4272_v27 = vsel %vm4030_vm6, %v9358_v31, %v9367_v5 }
0x1649   : > { %v4466_v61 = vadd.f32 %v4454_v7, %v4406_v49  ;;  %6323 = vpow2.f32 %v5973_v22  ;;  %v4281_v36 = vadd.f32 %v9354_v12, %v4221_v23  ;;  %v4223_v15 = vadd.f32 %v4212_v19, %v4163_v0  ;;  %v11108_v0 = vld [vmem:[#allocation14_spill] sm:$0xff] }
0x164a   : > { %v4282_v28 = vadd.f32 %v4271_v47, %v4222_v37 }
0x164b   : > { %v5974_v1 = vmul.f32 -1.442695, %v4466_v61  ;;  %v4322_v57 = vpop.permute.xlu1 %4321  ;;  %v4324_v24 = vpop.permute.xlu0 %4323  ;;  %v4341_v25 = vadd.f32 %v4320_v41, %v4281_v36  ;;  %v4283_v45 = vadd.f32 %v4272_v27, %v4223_v15 }
0x164c   : > { %v4331_v55 = vsel %vm4030_vm6, %v4320_v41, %v4322_v57  ;;  %v4332_v34 = vsel %vm4030_vm6, %v4322_v57, %v4324_v24 }
0x164d   : > { %6325 = vpow2.f32 %v5974_v1  ;;  %v4342_v35 = vadd.f32 %v4331_v55, %v4282_v28  ;;  %v4343_v5 = vadd.f32 %v4332_v34, %v4283_v45 }
0x164f   : > { %v4380_v6 = vpop.permute.xlu1 %4379  ;;  %v4382_v4 = vpop.permute.xlu0 %4381 }
0x1650   : > { %v4401_v8 = vadd.f32 %v4380_v6, %v4341_v25  ;;  %v4391_v12 = vsel %vm4030_vm6, %v4380_v6, %v4382_v4 }
0x1651   : > { %v4402_v30 = vadd.f32 %v4391_v12, %v4342_v35 }
0x1652   : > { %v6322_v52 = vpop.eup %6321 }
0x1653   : > { %v4479_v62 = vadd.f32 1.0, %v6322_v52  ;;  %v4384_v50 = vpop.permute.xlu1 %4383  ;;  %v6324_v29 = vpop.eup %6323 }
0x1654   : > { %v4440_v11 = vpop.permute.xlu0 %4439  ;;  %v4480_v9 = vadd.f32 1.0, %v6324_v29  ;;  %v4392_v31 = vsel %vm4030_vm6, %v4382_v4, %v4384_v50 }
0x1655   : > { %v4461_v42 = vadd.f32 %v4440_v11, %v4401_v8  ;;  %6327 = vrcp.f32 %v4479_v62  ;;  %v4403_v38 = vadd.f32 %v4392_v31, %v4343_v5  ;;  %v11109_v8 = vld [vmem:[#allocation16_spill] sm:$0xff]  ;;  %v11110_v31 = vld [vmem:[#allocation17_spill] sm:$0xff] }
0x1656   : > { %6329 = vrcp.f32 %v4480_v9 }
0x1657   : > { %v6326_v16 = vpop.eup %6325  ;;  %v4442_v49 = vpop.permute.xlu1 %4441  ;;  %6331 = vtanh.f32 %v4461_v42 }
0x1658   : > { %v4481_v13 = vadd.f32 1.0, %v6326_v16  ;;  %v4444_v60 = vpop.permute.xlu0 %4443  ;;  %v4451_v22 = vsel %vm4030_vm6, %v4440_v11, %v4442_v49 }
0x1659   : > { %v4452_v41 = vsel %vm4030_vm6, %v4442_v49, %v4444_v60  ;;  %v4462_v7 = vadd.f32 %v4451_v22, %v4402_v30 }
0x165a   : > { %6333 = vrcp.f32 %v4481_v13  ;;  %v4463_v48 = vadd.f32 %v4452_v41, %v4403_v38 }
0x165b   : > { %6335 = vtanh.f32 %v4462_v7 }
0x165c   : > { %6337 = vtanh.f32 %v4463_v48 }
0x165f   : > { %v6328_v21 = vpop.eup %6327 }
0x1660   : > { %v6330_v3 = vpop.eup %6329 }
0x1661   : > { %v6332_v2 = vpop.eup %6331 }
0x1662   : > { %v9493_v63 = vmul.f32 %v6332_v2, %v6328_v21 }
0x1664   : > { %v6334_v59 = vpop.eup %6333  ;;  %v4506_v17 = vrot.slane %v9493_v63, %v11106_v14  ;;  %v4528_v33 = vrot.slane %v9493_v63, %v11107_v10  ;;  %v4550_v47 = vrot.slane %v9493_v63, %v11108_v0  ;;  %v4572_v50 = vrot.slane %v9493_v63, %v11109_v8 }
0x1665   : > { %v6336_v61 = vpop.eup %6335  ;;  %v4594_v5 = vrot.slane %v9493_v63, %v11110_v31 }
0x1666   : > { %v6338_v56 = vpop.eup %6337  ;;  %v9495_v18 = vmul.f32 %v6336_v61, %v6330_v3  ;;  %v11111_v3 = vld [vmem:[#allocation21_spill] sm:$0xff] }
0x1667   : > { %v9497_v40 = vmul.f32 %v6338_v56, %v6334_v59  ;;  %v4616_v2 = vrot.slane %v9493_v63, %v11111_v3 }
0x1668   : > { %v4501_v43 = vpop.permute.xlu1 %4500  ;;  %v4510_v51 = vrot.slane %v9495_v18, %v11106_v14  ;;  %v4496_v44 = vpop.permute.xlu0 %4495  ;;  %v4532_v46 = vrot.slane %v9495_v18, %v11107_v10  ;;  %v4554_v4 = vrot.slane %v9495_v18, %v11108_v0  ;;  %v4576_v45 = vrot.slane %v9495_v18, %v11109_v8 }
0x1669   : > { %v4514_v1 = vrot.slane %v9497_v40, %v11106_v14  ;;  %v4515_v57 = vmul.f32 %v4506_v17, %v4501_v43  ;;  %v4536_v54 = vrot.slane %v9497_v40, %v11107_v10  ;;  %v4558_v37 = vrot.slane %v9497_v40, %v11108_v0 }
0x166a   : > { %v4516_v24 = vmul.f32 %v4510_v51, %v4501_v43  ;;  %v4580_v9 = vrot.slane %v9497_v40, %v11109_v8  ;;  %v4598_v30 = vrot.slane %v9495_v18, %v11110_v31  ;;  %v4602_v60 = vrot.slane %v9497_v40, %v11110_v31  ;;  %v11114_v8 = vld [vmem:[#allocation19_spill] sm:$0xff] }
0x166b   : > { %v4517_v23 = vmul.f32 %v4514_v1, %v4501_v43  ;;  %v4518_v19 = vadd.f32 %v4515_v57, %v4496_v44  ;;  %v4620_v59 = vrot.slane %v9495_v18, %v11111_v3  ;;  %v4624_v61 = vrot.slane %v9497_v40, %v11111_v3  ;;  %v11112_v43 = vld [vmem:[#allocation18_spill] sm:$0xff] }
0x166c   : > { %v4519_v6 = vadd.f32 %v4516_v24, %v4496_v44  ;;  %v4638_v51 = vrot.slane %v9493_v63, %v11112_v43  ;;  %v4642_v17 = vrot.slane %v9495_v18, %v11112_v43  ;;  %v11119_v31 = vmov 1  }
0x166d   : > { %v4523_v58 = vpop.permute.xlu1 %4522  ;;  %v4520_v27 = vadd.f32 %v4517_v23, %v4496_v44  ;;  %v4567_v15 = vpop.permute.xlu0 %4566 }
0x166e   : > { %v4537_v53 = vmul.f32 %v4528_v33, %v4523_v58  ;;  %v4538_v39 = vmul.f32 %v4532_v46, %v4523_v58  ;;  %v4539_v36 = vmul.f32 %v4536_v54, %v4523_v58  ;;  %v4581_v35 = vmul.f32 %v4572_v50, %v4567_v15 }
0x166f   : > { %v4582_v16 = vmul.f32 %v4576_v45, %v4567_v15  ;;  %v4583_v13 = vmul.f32 %v4580_v9, %v4567_v15  ;;  %v11116_v45 = vmov 20   ;;  %v11118_v9 = vmov 15  }
0x1670   : > { %v4540_v25 = vadd.f32 %v4537_v53, %v4518_v19  ;;  %v4541_v55 = vadd.f32 %v4538_v39, %v4519_v6  ;;  %v4542_v29 = vadd.f32 %v4539_v36, %v4520_v27  ;;  %v4646_v39 = vrot.slane %v9497_v40, %v11112_v43  ;;  %v11113_v36 = vld [vmem:[#allocation34_spill] sm:$0xff] }
0x1671   : > { %v4660_v6 = vrot.slane %v9493_v63, %v11113_v36  ;;  %v4664_v0 = vrot.slane %v9495_v18, %v11113_v36  ;;  %v6436_v63 = vmov 1.0  }
0x1672   : > { %v4545_v52 = vpop.permute.xlu1 %4544  ;;  %v4633_v56 = vpop.permute.xlu0 %4632  ;;  %v6239_v50 = vpack.i.bf16 %v11114_v8, %v6436_v63  ;;  %v11129_v63 = vmov 2   ;;  %v11130_v8 = vmov 12  }
0x1673   : > { %v4559_v28 = vmul.f32 %v4550_v47, %v4545_v52  ;;  %v4560_v62 = vmul.f32 %v4554_v4, %v4545_v52  ;;  %v4561_v34 = vmul.f32 %v4558_v37, %v4545_v52  ;;  %v4647_v58 = vmul.f32 %v4638_v51, %v4633_v56 }
0x1674   : > { %v4648_v23 = vmul.f32 %v4642_v17, %v4633_v56  ;;  %v4649_v27 = vmul.f32 %v4646_v39, %v4633_v56 }
0x1675   : > { %v4562_v12 = vadd.f32 %v4559_v28, %v4540_v25  ;;  %v4563_v11 = vadd.f32 %v4560_v62, %v4541_v55  ;;  %v4564_v42 = vadd.f32 %v4561_v34, %v4542_v29  ;;  %v4668_v25 = vrot.slane %v9497_v40, %v11113_v36  ;;  %v4707_v29 = vld [vmem:[#allocation3] sm:$0x1] }
0x1676   : > { %v9552_v40 = vld [vmem:[%s10264_s15] sm:$0x1] }
0x1677   : > { %v4589_v49 = vpop.permute.xlu1 %4588  ;;  %v4584_v38 = vadd.f32 %v4581_v35, %v4562_v12  ;;  %v4585_v41 = vadd.f32 %v4582_v16, %v4563_v11  ;;  %v4586_v48 = vadd.f32 %v4583_v13, %v4564_v42  ;;  %v11117_v12 = vmov 10  }
0x1678   : > { %v4603_v22 = vmul.f32 %v4594_v5, %v4589_v49  ;;  %v4604_v7 = vmul.f32 %v4598_v30, %v4589_v49  ;;  %v4605_v21 = vmul.f32 %v4602_v60, %v4589_v49  ;;  %v6437_v11 = vmov 35   ;;  %v11121_v49 = vld [vmem:[#allocation22_spill] sm:$0xff]  ;;  %v11124_v60 = vld [vmem:[#allocation15_spill] sm:$0xff] }
0x1679   : > { %v6438_v35 = vmov 25   ;;  %v6439_v42 = vmov 30   ;;  %v11120_v5 = vmov 11  }
0x167a   : > { %v4606_v1 = vadd.f32 %v4603_v22, %v4584_v38  ;;  %v4607_v10 = vadd.f32 %v4604_v7, %v4585_v41  ;;  %v4608_v46 = vadd.f32 %v4605_v21, %v4586_v48  ;;  %v11123_v38 = vld [vmem:[#allocation13_spill] sm:$0xff]  ;;  %v11125_v41 = vld [vmem:[#allocation12_spill] sm:$0xff] }
0x167b   : > { %v3399_v22 = vadd.f32 %v11124_v60, %v11123_v38 }
0x167c   : > { %v4611_v57 = vpop.permute.xlu1 %4610 }
0x167d   : > { %v4625_v33 = vmul.f32 %v4616_v2, %v4611_v57  ;;  %v4626_v44 = vmul.f32 %v4620_v59, %v4611_v57  ;;  %v4627_v24 = vmul.f32 %v4624_v61, %v4611_v57 }
0x167f   : > { %v4628_v54 = vadd.f32 %v4625_v33, %v4606_v1  ;;  %v4629_v53 = vadd.f32 %v4626_v44, %v4607_v10  ;;  %v4630_v19 = vadd.f32 %v4627_v24, %v4608_v46 }
0x1681   : > { %v4655_v47 = vpop.permute.xlu1 %4654  ;;  %v4651_v4 = vadd.f32 %v4648_v23, %v4629_v53  ;;  %v4650_v37 = vadd.f32 %v4647_v58, %v4628_v54  ;;  %v4652_v34 = vadd.f32 %v4649_v27, %v4630_v19 }
0x1682   : > { %v4669_v52 = vmul.f32 %v4660_v6, %v4655_v47  ;;  %v4670_v15 = vmul.f32 %v4664_v0, %v4655_v47  ;;  %v4671_v55 = vmul.f32 %v4668_v25, %v4655_v47  ;;  %v11127_v25 = vmov 16  }
0x1684   : > { %v4673_v28 = vadd.f32 %v4670_v15, %v4651_v4  ;;  %v4672_v62 = vadd.f32 %v4669_v52, %v4650_v37  ;;  %v4674_v18 = vadd.f32 %v4671_v55, %v4652_v34  ;;  %v11126_v4 = vld [vmem:[#allocation10_spill] sm:$0xff]  ;;  %v11128_v55 = vmov 21  }
0x1685   : > { %v6442_v34 = vmov 31  }
0x1686   : > { %4680 = vrot.lane.b32.xlu0 %v4673_v28, %s6435_s0  ;;  %4678 = vrot.lane.b32.xlu1 %v4672_v62, %s6435_s0  ;;  %v6440_v28 = vmov 26   ;;  %v6441_v62 = vmov 36  }
0x168a   : > { %6240 = vrot.lane.b32.xlu0 %v6239_v50, %s11115_s25  ;;  %4682 = vrot.lane.b32.xlu1 %v4674_v18, %s6435_s0  ;;  %v11131_v50 = vmov 17   ;;  %v6443_v18 = vmov 27   ;;  %s5962_s0 = sshll.u32 %s541_s24, 1 }
0x168b   : > { %s543_s18 = scalar_lea.vmem [#allocation4], %s5962_s0  ;;  %s6455_s0 = smov [#allocation4]  }
0x168c   : > { %s5899_s22 = sshll.u32 %s543_s18, 4  ;;  %s6344_s4 = sshll.u32 %s6455_s0, 4  ;;  %s10208_s22 = int_to_ptr.vmem [resolvable:$true] %s5899_s22  ;;  %s6345_s4 = int_to_ptr.vmem [resolvable:$false] %s6344_s4 }
0x168d   : > { %p6347_p0 = scmp.lt.s32.totalorder %s10208_s22, %s6345_s4 }
0x168e   : > { %4710 = vperm.xlu1 %6244, %v4707_v29   ;;  %4751 = vperm.xlu0 %6245, %v9552_v40   ;;  %v6444_v29 = vmov 32  }
0x1692   : > { %4737 = vperm.xlu1 %6244, %v9552_v40   ;;  %6248 = vset.pattern.permute.xlu0 %v11116_v45  ;;  %v11132_v45 = vmov 3  }
0x1693   : > { %4820 = vperm.xlu0 %6248, %v9552_v40  }
0x1696   : > { %6246 = vset.pattern.permute.xlu1 %v11117_v12  ;;  %v11133_v12 = vmov 8  }
0x1697   : > { %4774 = vperm.xlu1 %6246, %v9552_v40   ;;  %6251 = vset.pattern.permute.xlu0 %v6437_v11  ;;  %v11134_v11 = vmov 18  }
0x1698   : > { %4889 = vperm.xlu0 %6251, %v9552_v40  }
0x169b   : > { %6247 = vset.pattern.permute.xlu1 %v11118_v9  ;;  %v11135_v9 = vmov 23  }
0x169c   : > { %4797 = vperm.xlu1 %6247, %v9552_v40   ;;  %6253 = vset.pattern.permute.xlu0 %v10897_v26  ;;  %v11122_v26 = vld [vmem:[#allocation35_spill] sm:$0xff] }
0x169d   : > { %4940 = vperm.xlu0 %6253, %v9552_v40   ;;  %v3395_v13 = vsel %vm1997_vm3, %v11122_v26, %v11121_v49  ;;  %v3394_v0 = vsel %vm1997_vm3, %v11124_v60, %v11122_v26  ;;  %v6449_v49 = vmov 39  }
0x169e   : > { %v3401_v7 = vadd.f32 %v3395_v13, %v11125_v41  ;;  %v3400_v37 = vadd.f32 %v3394_v0, %v11126_v4  ;;  %v11138_v4 = vmov 22  }
0x16a0   : > { %6249 = vset.pattern.permute.xlu1 %v6438_v35  ;;  %v6445_v35 = vmov 33  }
0x16a1   : > { %4843 = vperm.xlu1 %6249, %v9552_v40   ;;  %6258 = vset.pattern.permute.xlu0 %v6442_v34 }
0x16a5   : > { %6250 = vset.pattern.permute.xlu1 %v6439_v42  ;;  %v6446_v42 = vmov 38  }
0x16a6   : > { %4866 = vperm.xlu1 %6250, %v9552_v40  }
0x16aa   : > { %6252 = vset.pattern.permute.xlu1 %v11119_v31  ;;  %v11136_v31 = vmov 9  }
0x16ab   : > { %4912 = vperm.xlu1 %6252, %v9552_v40  }
0x16af   : > { %6254 = vset.pattern.permute.xlu1 %v11120_v5  ;;  %v11137_v5 = vmov 14  }
0x16f8   : > { %v4681_v16 = vpop.permute.xlu0 %4680  ;;  %v4679_v30 = vpop.permute.xlu1 %4678 }
0x16f9   : > { %v4690_v3 = vadd.f32 %v4679_v30, %v3399_v22  ;;  %v4685_v47 = vsel %vm4684_vm7, %v4679_v30, %v4681_v16  ;;  %v6448_v30 = vmov 29  }
0x16fa   : > { %v4691_v52 = vadd.f32 %v4685_v47, %v3400_v37  ;;  %v6450_v37 = vmov 37  }
0x16fc   : > { %v6241_v48 = vpop.permute.xlu0 %6240  ;;  %v4683_v21 = vpop.permute.xlu1 %4682 }
0x16fd   : > { %v6243_v2 = vunpack.i.h.bf16 %v6241_v48  ;;  %v6242_v59 = vunpack.i.l.bf16 %v6241_v48  ;;  %v4686_v61 = vsel %vm4684_vm7, %v4681_v16, %v4683_v21  ;;  %v6447_v16 = vmov 24  }
0x16fe   : > { %v4692_v56 = vadd.f32 %v4686_v61, %v3401_v7 }
0x16ff   : > { %v9577_v43 = vmul.f32 %v6242_v59, %v4690_v3  ;;  %v4699_v27 = vsel %vm927_vm1, %v6242_v59, %v6243_v2 }
0x1700   : > { %v9579_v51 = vmul.f32 %v6243_v2, %v4692_v56  ;;  %v4704_v15 = vmul.f32 %v4699_v27, %v4691_v52  ;;  %v11139_v27 = vmov 13   ;;  %v6452_v52 = vmov 34  }
0x170d   : > { %v9581_v17 = vpop.permute.xlu1 %4710  ;;  %v9585_v57 = vpop.permute.xlu0 %4751 }
0x1711   : > { %v9583_v1 = vpop.permute.xlu1 %4737 }
0x1712   : > { %v9589_v33 = vpop.permute.xlu0 %4820 }
0x1716   : > { %v9587_v10 = vpop.permute.xlu1 %4774 }
0x1717   : > { %v9593_v24 = vpop.permute.xlu0 %4889 }
0x171b   : > { %v9591_v44 = vpop.permute.xlu1 %4797 }
0x171c   : > { %v4941_v58 = vpop.permute.xlu0 %4940 }
0x171d   : > { %v9600_v54 = vrot.slane %v4941_v58, %v11106_v14 }
0x171f   : > { %v4947_v19 = vmul.f32 0.0, %v9600_v54 }
0x1720   : > { %v9595_v46 = vpop.permute.xlu1 %4843 }
0x1721   : > { %v4953_v6 = vrot.slane %v4947_v19, 1 }
0x1725   : > { %v9597_v23 = vpop.permute.xlu1 %4866 }
0x172a   : > { %v4913_v53 = vpop.permute.xlu1 %4912 }
0x172b   : > { %v9603_v39 = vrot.slane %v4913_v53, %v11106_v14 }
0x172d   : > { %v4919_v36 = vmul.f32 0.0, %v9603_v39 }
0x172f   : > { %4925 = vrot.lane.b32.xlu1 %v4919_v36, %s11115_s25 }
0x1733   : > { %4956 = vrot.lane.b32.xlu1 %v4953_v6, %s11115_s25 }
0x1737   : > { %4971 = vperm.xlu1 %6254, %v9552_v40  }
0x173b   : > { %6255 = vset.pattern.permute.xlu1 %v11127_v25  ;;  %v6451_v25 = vmov 28  }
0x173c   : > { %5002 = vperm.xlu1 %6255, %v9552_v40  }
0x1740   : > { %4722 = vrot.lane.b32.xlu1 %v4704_v15, %s6431_s2 }
0x1741   : > { %6256 = vset.pattern.permute.xlu1 %v11128_v55 }
0x1744   : > { %5033 = vperm.xlu1 %6256, %v9552_v40  }
0x1748   : > { %6257 = vset.pattern.permute.xlu1 %v6440_v28 }
0x1749   : > { %5064 = vperm.xlu1 %6257, %v9552_v40  }
0x174d   : > { %6259 = vset.pattern.permute.xlu1 %v6441_v62 }
0x174e   : > { %5126 = vperm.xlu1 %6259, %v9552_v40  }
0x1752   : > { %6260 = vset.pattern.permute.xlu1 %v11129_v63 }
0x1753   : > { %5157 = vperm.xlu1 %6260, %v9552_v40  }
0x1757   : > { %6262 = vset.pattern.permute.xlu1 %v11130_v8 }
0x1758   : > { %5205 = vperm.xlu1 %6262, %v9552_v40  }
0x175c   : > { %6263 = vset.pattern.permute.xlu1 %v11131_v50 }
0x175d   : > { %5230 = vperm.xlu1 %6263, %v9552_v40  }
0x1761   : > { %6265 = vset.pattern.permute.xlu1 %v6443_v18 }
0x1762   : > { %5280 = vperm.xlu1 %6265, %v9552_v40  }
0x1766   : > { %6266 = vset.pattern.permute.xlu1 %v6444_v29 }
0x1767   : > { %5305 = vperm.xlu1 %6266, %v9552_v40  }
0x176b   : > { %6268 = vset.pattern.permute.xlu1 %v11132_v45 }
0x176c   : > { %5358 = vperm.xlu1 %6268, %v9552_v40  }
0x1770   : > { %6269 = vset.pattern.permute.xlu1 %v11133_v12 }
0x1771   : > { %5387 = vperm.xlu1 %6269, %v9552_v40  }
0x1775   : > { %6271 = vset.pattern.permute.xlu1 %v11134_v11 }
0x1776   : > { %5449 = vperm.xlu1 %6271, %v9552_v40  }
0x177a   : > { %6272 = vset.pattern.permute.xlu1 %v11135_v9 }
0x177b   : > { %5480 = vperm.xlu1 %6272, %v9552_v40  }
0x177f   : > { %6274 = vset.pattern.permute.xlu1 %v6445_v35 }
0x1780   : > { %5542 = vperm.xlu1 %6274, %v9552_v40  }
0x1784   : > { %6275 = vset.pattern.permute.xlu1 %v6446_v42 }
0x1785   : > { %5573 = vperm.xlu1 %6275, %v9552_v40  }
0x1789   : > { %6277 = vset.pattern.permute.xlu1 %v11136_v31 }
0x178a   : > { %5632 = vperm.xlu1 %6277, %v9552_v40  }
0x178e   : > { %6278 = vset.pattern.permute.xlu1 %v11137_v5 }
0x178f   : > { %5663 = vperm.xlu1 %6278, %v9552_v40  }
0x1793   : > { %6280 = vset.pattern.permute.xlu1 %v6447_v16 }
0x1794   : > { %5725 = vperm.xlu1 %6280, %v9552_v40  }
0x1798   : > { %6281 = vset.pattern.permute.xlu1 %v6448_v30 }
0x1799   : > { %5756 = vperm.xlu1 %6281, %v9552_v40  }
0x179d   : > { %6283 = vset.pattern.permute.xlu1 %v6449_v49 }
0x179e   : > { %5818 = vperm.xlu1 %6283, %v9552_v40  }
0x17a1   : > { %v9648_v26 = vpop.permute.xlu1 %4925 }
0x17a5   : > { %v9650_v13 = vpop.permute.xlu1 %4956 }
0x17b6   : > { %v4972_v38 = vpop.permute.xlu1 %4971 }
0x17b7   : > { %v9653_v60 = vrot.slane %v4972_v38, %v11106_v14 }
0x17b9   : > { %v4978_v22 = vmul.f32 0.0, %v9653_v60 }
0x17bb   : > { %v4984_v41 = vrot.slane %v4978_v22, 2  ;;  %v5003_v7 = vpop.permute.xlu1 %5002 }
0x17bc   : > { %v9658_v48 = vrot.slane %v5003_v7, %v11106_v14 }
0x17bd   : > { %4987 = vrot.lane.b32.xlu0 %v4984_v41, %s11115_s25 }
0x17be   : > { %v5009_v3 = vmul.f32 0.0, %v9658_v48 }
0x17bf   : > { %v4723_v21 = vpop.permute.xlu1 %4722 }
0x17c0   : > { %v5015_v56 = vrot.slane %v5009_v3, 3 }
0x17c1   : > { %4720 = vrot.lane.b32.xlu0 %v9577_v43, %s6431_s2 }
0x17c3   : > { %v5034_v2 = vpop.permute.xlu1 %5033 }
0x17c4   : > { %v9664_v59 = vrot.slane %v5034_v2, %v11106_v14 }
0x17c5   : > { %4724 = vrot.lane.b32.xlu0 %v9579_v51, %s6431_s2  ;;  %s11141_s2 = smov 126  }
0x17c6   : > { %v5040_v61 = vmul.f32 0.0, %v9664_v59 }
0x17c8   : > { %v5065_v58 = vpop.permute.xlu1 %5064  ;;  %v5046_v53 = vrot.slane %v5040_v61, 4 }
0x17c9   : > { %5018 = vrot.lane.b32.xlu0 %v5015_v56, %s11115_s25  ;;  %v9671_v19 = vrot.slane %v5065_v58, %v11106_v14 }
0x17cb   : > { %v5071_v43 = vmul.f32 0.0, %v9671_v19 }
0x17cd   : > { %5049 = vrot.lane.b32.xlu0 %v5046_v53, %s11115_s25  ;;  %v5077_v36 = vrot.slane %v5071_v43, 5  ;;  %v5127_v6 = vpop.permute.xlu1 %5126 }
0x17ce   : > { %v9676_v0 = vrot.slane %v5127_v6, %v11106_v14 }
0x17cf   : > { %5080 = vrot.lane.b32.xlu1 %v5077_v36, %s11115_s25 }
0x17d0   : > { %v5133_v51 = vmul.f32 0.0, %v9676_v0 }
0x17d1   : > { %5095 = vperm.xlu0 %6258, %v9552_v40  }
0x17d2   : > { %v5139_v47 = vrot.slane %v5133_v51, 7  ;;  %v5158_v63 = vpop.permute.xlu1 %5157 }
0x17d3   : > { %v5163_v50 = vrot.slane %v5158_v63, %v11106_v14 }
0x17d4   : > { %5142 = vrot.lane.b32.xlu1 %v5139_v47, %s11115_s25 }
0x17d5   : > { %6261 = vset.pattern.permute.xlu0 %v10896_v20  ;;  %v11140_v20 = vmov 19  }
0x17d6   : > { %5180 = vperm.xlu0 %6261, %v9552_v40  }
0x17d7   : > { %v5206_v5 = vpop.permute.xlu1 %5205 }
0x17da   : > { %6264 = vset.pattern.permute.xlu0 %v11138_v4 }
0x17db   : > { %5255 = vperm.xlu0 %6264, %v9552_v40  }
0x17dc   : > { %v5231_v7 = vpop.permute.xlu1 %5230 }
0x17df   : > { %6267 = vset.pattern.permute.xlu0 %v6450_v37  ;;  %v5211_v37 = vrot.slane %v5206_v5, %v11106_v14 }
0x17e0   : > { %5330 = vperm.xlu0 %6267, %v9552_v40  }
0x17e4   : > { %6270 = vset.pattern.permute.xlu0 %v11139_v27 }
0x17e5   : > { %5418 = vperm.xlu0 %6270, %v9552_v40  }
0x17e9   : > { %6273 = vset.pattern.permute.xlu0 %v6451_v25 }
0x17ea   : > { %5511 = vperm.xlu0 %6273, %v9552_v40  }
0x17ee   : > { %6276 = vset.pattern.permute.xlu0 %v10894_v32 }
0x17ef   : > { %5604 = vperm.xlu0 %6276, %v9552_v40  }
0x17f3   : > { %6279 = vset.pattern.permute.xlu0 %v11140_v20 }
0x17f4   : > { %5694 = vperm.xlu0 %6279, %v9552_v40  }
0x17f8   : > { %6282 = vset.pattern.permute.xlu0 %v6452_v52 }
0x17f9   : > { %5787 = vperm.xlu0 %6282, %v9552_v40  }
0x17fd   : > { %6284 = vset.pattern.permute.xlu0 %v6449_v49 }
0x182f   : > { %v9695_v15 = vpop.permute.xlu0 %4987 }
0x1833   : > { %v4721_v55 = vpop.permute.xlu0 %4720 }
0x1834   : > { %v9705_v8 = vsel %vm1997_vm3, %v4721_v55, %v4723_v21 }
0x1835   : > { %v4948_v40 = vmul.f32 %v9600_v54, %v9705_v8  ;;  %v4979_v45 = vmul.f32 %v9653_v60, %v9705_v8  ;;  %v5010_v9 = vmul.f32 %v9658_v48, %v9705_v8  ;;  %v5041_v16 = vmul.f32 %v9664_v59, %v9705_v8 }
0x1836   : > { %v4920_v41 = vmul.f32 %v9603_v39, %v9705_v8  ;;  %v5164_v2 = vmul.f32 %v5163_v50, %v9705_v8  ;;  %v5134_v5 = vmul.f32 %v9676_v0, %v9705_v8 }
0x1837   : > { %v4725_v28 = vpop.permute.xlu0 %4724  ;;  %v4954_v12 = vrot.slane %v4948_v40, 1  ;;  %v4985_v35 = vrot.slane %v4979_v45, 2  ;;  %v5016_v30 = vrot.slane %v5010_v9, 3  ;;  %v5047_v38 = vrot.slane %v5041_v16, 4 }
0x1838   : > { %v9698_v62 = vsel %vm1997_vm3, %v4723_v21, %v4725_v28  ;;  %v5236_v28 = vrot.slane %v5231_v7, %v11106_v14  ;;  %v5072_v40 = vmul.f32 %v9671_v19, %v9705_v8  ;;  %v5140_v7 = vrot.slane %v5134_v5, 7 }
0x1839   : > { %v4921_v32 = vmul.f32 %v9603_v39, %v9698_v62  ;;  %v5165_v18 = vmul.f32 %v5163_v50, %v9698_v62  ;;  %v5073_v22 = vmul.f32 %v9671_v19, %v9698_v62  ;;  %v4949_v61 = vmul.f32 %v9600_v54, %v9698_v62  ;;  %v5281_v39 = vpop.permute.xlu1 %5280 }
0x183a   : > { %v5135_v53 = vmul.f32 %v9676_v0, %v9698_v62  ;;  %v4980_v36 = vmul.f32 %v9653_v60, %v9698_v62  ;;  %v5011_v47 = vmul.f32 %v9658_v48, %v9698_v62  ;;  %v5213_v60 = vmul.f32 %v5211_v37, %v9698_v62 }
0x183b   : > { %v9702_v34 = vpop.permute.xlu0 %5018  ;;  %4929 = vrot.lane.b32.xlu1 %v4921_v32, %s11115_s25  ;;  %v5079_v3 = vrot.slane %v5073_v22, 5  ;;  %v4955_v6 = vrot.slane %v4949_v61, 1  ;;  %v5042_v20 = vmul.f32 %v9664_v59, %v9698_v62  ;;  %v5238_v32 = vmul.f32 %v5236_v28, %v9698_v62 }
0x183c   : > { %v5141_v54 = vrot.slane %v5135_v53, 7  ;;  %v4986_v4 = vrot.slane %v4980_v36, 2  ;;  %v5017_v52 = vrot.slane %v5011_v47, 3  ;;  %v5217_v63 = vrot.slane %v5213_v60, 2 }
0x183d   : > { %v5306_v27 = vpop.permute.xlu1 %5305  ;;  %v5242_v59 = vrot.slane %v5238_v32, 3  ;;  %v5286_v9 = vrot.slane %v5281_v39, %v11106_v14  ;;  %v5237_v53 = vmul.f32 %v5236_v28, %v9705_v8 }
0x183f   : > { %v9712_v29 = vpop.permute.xlu0 %5049  ;;  %5170 = vrot.lane.b32.xlu1 %v5165_v18, %s11141_s2  ;;  %v5048_v18 = vrot.slane %v5042_v20, 4  ;;  %v5288_v19 = vmul.f32 %v5286_v9, %v9698_v62  ;;  %v5241_v47 = vrot.slane %v5237_v53, 3  ;;  %v5287_v20 = vmul.f32 %v5286_v9, %v9705_v8 }
0x1840   : > { %v9869_v53 = vrot.slane %v9591_v44, %v11106_v14 }
0x1841   : > { %v5359_v48 = vpop.permute.xlu1 %5358  ;;  %v5292_v22 = vrot.slane %v5288_v19, 5  ;;  %v9827_v19 = vrot.slane %v9583_v1, %v11106_v14 }
0x1842   : > { %v5364_v36 = vrot.slane %v5359_v48, %v11106_v14 }
0x1843   : > { %4958 = vrot.lane.b32.xlu1 %v4954_v12, %s11115_s25  ;;  %v5078_v12 = vrot.slane %v5072_v40, 5 }
0x1847   : > { %4989 = vrot.lane.b32.xlu1 %v4985_v35, %s11115_s25  ;;  %v5388_v35 = vpop.permute.xlu1 %5387 }
0x184b   : > { %5020 = vrot.lane.b32.xlu1 %v5016_v30, %s11115_s25 }
0x184f   : > { %5051 = vrot.lane.b32.xlu1 %v5047_v38, %s11115_s25 }
0x1850   : > { %v5096_v11 = vpop.permute.xlu0 %5095 }
0x1851   : > { %v5101_v42 = vrot.slane %v5096_v11, %v11106_v14 }
0x1853   : > { %v5102_v31 = vmul.f32 0.0, %v5101_v42  ;;  %v5103_v21 = vmul.f32 %v5101_v42, %v9705_v8  ;;  %5084 = vrot.lane.b32.xlu1 %v5079_v3, %s11115_s25  ;;  %v5104_v11 = vmul.f32 %v5101_v42, %v9698_v62  ;;  %v5450_v42 = vpop.permute.xlu1 %5449 }
0x1854   : > { %v9806_v48 = vrot.slane %v5450_v42, %v11106_v14  ;;  %v4746_v42 = vmul.f32 %v9827_v19, %v9698_v62 }
0x1855   : > { %v5108_v49 = vrot.slane %v5102_v31, 6  ;;  %v5181_v56 = vpop.permute.xlu0 %5180  ;;  %v5109_v58 = vrot.slane %v5103_v21, 6  ;;  %v5110_v16 = vrot.slane %v5104_v11, 6 }
0x1856   : > { %v5186_v43 = vrot.slane %v5181_v56, %v11106_v14  ;;  %v5458_v11 = vmul.f32 0.0, %v9806_v48 }
0x1857   : > { %5111 = vrot.lane.b32.xlu0 %v5108_v49, %s11115_s25  ;;  %5113 = vrot.lane.b32.xlu1 %v5109_v58, %s11115_s25  ;;  %v5311_v49 = vrot.slane %v5306_v27, %v11106_v14  ;;  %v5481_v56 = vpop.permute.xlu1 %5480  ;;  %v9784_v58 = vrot.slane %v5388_v35, %v11106_v14  ;;  %v9823_v35 = vrot.slane %v9585_v57, %v11106_v14 }
0x1858   : > { %v5188_v51 = vmul.f32 %v5186_v43, %v9698_v62  ;;  %v5187_v21 = vmul.f32 %v5186_v43, %v9705_v8 }
0x1859   : > { %v5313_v38 = vmul.f32 %v5311_v49, %v9698_v62  ;;  %v5396_v27 = vmul.f32 0.0, %v9784_v58  ;;  %v4760_v57 = vmul.f32 %v9823_v35, %v9698_v62 }
0x185a   : > { %v5192_v25 = vrot.slane %v5188_v51, 1  ;;  %v5256_v55 = vpop.permute.xlu0 %5255  ;;  %v5191_v61 = vrot.slane %v5187_v21, 1  ;;  %v5366_v51 = vmul.f32 %v5364_v36, %v9698_v62 }
0x185b   : > { %4927 = vrot.lane.b32.xlu0 %v4920_v41, %s11115_s25  ;;  %5146 = vrot.lane.b32.xlu1 %v5141_v54, %s11115_s25  ;;  %v5261_v50 = vrot.slane %v5256_v55, %v11106_v14  ;;  %v5317_v0 = vrot.slane %v5313_v38, 6  ;;  %v5394_v54 = vmul.f32 %v9784_v58, %v9705_v8  ;;  %v5402_v55 = vrot.slane %v5396_v27, 1 }
0x185c   : > { %v9885_v27 = vrot.slane %v9589_v33, %v11106_v14  ;;  %v9899_v33 = vrot.slane %v9595_v46, %v11106_v14 }
0x185d   : > { %v5263_v45 = vmul.f32 %v5261_v50, %v9698_v62  ;;  %v5400_v60 = vrot.slane %v5394_v54, 1 }
0x185f   : > { %5168 = vrot.lane.b32.xlu0 %v5164_v2, %s11141_s2  ;;  %5195 = vrot.lane.b32.xlu1 %v5192_v25, %s11141_s2  ;;  %v5267_v31 = vrot.slane %v5263_v45, 4  ;;  %v5331_v30 = vpop.permute.xlu0 %5330  ;;  %v5212_v2 = vmul.f32 %v5211_v37, %v9705_v8 }
0x1860   : > { %v5336_v41 = vrot.slane %v5331_v30, %v11106_v14  ;;  %v9830_v30 = vrot.slane %v5481_v56, %v11106_v14 }
0x1861   : > { %v5216_v43 = vrot.slane %v5212_v2, 2 }
0x1862   : > { %v5338_v3 = vmul.f32 %v5336_v41, %v9698_v62  ;;  %v5488_v1 = vmul.f32 %v9830_v30, %v9698_v62 }
0x1863   : > { %4960 = vrot.lane.b32.xlu0 %v4955_v6, %s11115_s25  ;;  %5220 = vrot.lane.b32.xlu1 %v5217_v63, %s11141_s2  ;;  %v9790_v6 = vpop.permute.xlu1 %5542  ;;  %v5312_v63 = vmul.f32 %v5311_v49, %v9705_v8 }
0x1864   : > { %v5342_v39 = vrot.slane %v5338_v3, 7  ;;  %v5419_v37 = vpop.permute.xlu0 %5418  ;;  %v5494_v2 = vrot.slane %v5488_v1, 4 }
0x1865   : > { %v9800_v25 = vrot.slane %v5419_v37, %v11106_v14  ;;  %v5316_v45 = vrot.slane %v5312_v63, 6 }
0x1867   : > { %4991 = vrot.lane.b32.xlu0 %v4986_v4, %s11115_s25  ;;  %5245 = vrot.lane.b32.xlu1 %v5242_v59, %s11141_s2  ;;  %v5262_v4 = vmul.f32 %v5261_v50, %v9705_v8  ;;  %v5574_v28 = vpop.permute.xlu1 %5573  ;;  %v5426_v32 = vmul.f32 %v9800_v25, %v9698_v62  ;;  %v5291_v50 = vrot.slane %v5287_v20, 5 }
0x1868   : > { %v9889_v20 = vrot.slane %v5574_v28, %v11106_v14 }
0x1869   : > { %v5432_v59 = vrot.slane %v5426_v32, 2  ;;  %v5512_v5 = vpop.permute.xlu0 %5511  ;;  %v5427_v32 = vmul.f32 0.0, %v9800_v25 }
0x186a   : > { %v9843_v38 = vrot.slane %v5512_v5, %v11106_v14  ;;  %v5582_v46 = vmul.f32 0.0, %v9889_v20 }
0x186b   : > { %5022 = vrot.lane.b32.xlu0 %v5017_v52, %s11115_s25  ;;  %5270 = vrot.lane.b32.xlu1 %v5267_v31, %s11141_s2  ;;  %v5266_v52 = vrot.slane %v5262_v4, 4  ;;  %v9813_v40 = vpop.permute.xlu1 %5632  ;;  %v9878_v4 = vrot.slane %v9790_v6, %v11106_v14  ;;  %v4829_v6 = vmul.f32 %v9885_v27, %v9698_v62 }
0x186f   : > { %5053 = vrot.lane.b32.xlu0 %v5048_v18, %s11115_s25  ;;  %5295 = vrot.lane.b32.xlu1 %v5292_v22, %s11141_s2  ;;  %v5456_v18 = vmul.f32 %v9806_v48, %v9705_v8  ;;  %v9832_v49 = vpop.permute.xlu1 %5663  ;;  %v9847_v22 = vrot.slane %v9581_v17, %v11106_v14  ;;  %v5518_v17 = vmul.f32 %v9843_v38, %v9705_v8 }
0x1871   : > { %v5462_v9 = vrot.slane %v5456_v18, 3  ;;  %v4749_v21 = vadd.f32 %v4746_v42, %v9847_v22  ;;  %v5524_v54 = vrot.slane %v5518_v17, 5  ;;  %v5580_v18 = vmul.f32 %v9889_v20, %v9705_v8 }
0x1872   : > { %v5487_v42 = vmul.f32 %v9830_v30, %v9705_v8 }
0x1873   : > { %5082 = vrot.lane.b32.xlu0 %v5078_v12, %s11115_s25  ;;  %5320 = vrot.lane.b32.xlu1 %v5317_v0, %s11141_s2  ;;  %v5337_v12 = vmul.f32 %v5336_v41, %v9705_v8  ;;  %v5365_v41 = vmul.f32 %v5364_v36, %v9705_v8  ;;  %v4766_v0 = vrot.slane %v4760_v57, 1  ;;  %v9857_v3 = vpop.permute.xlu1 %5725  ;;  %v5586_v5 = vrot.slane %v5580_v18, 7 }
0x1875   : > { %v5341_v31 = vrot.slane %v5337_v12, 7  ;;  %v4835_v12 = vrot.slane %v4829_v6, 4 }
0x1877   : > { %5115 = vrot.lane.b32.xlu0 %v5110_v16, %s11115_s25  ;;  %5345 = vrot.lane.b32.xlu1 %v5342_v39, %s11141_s2  ;;  %v5464_v16 = vrot.slane %v5458_v11, 3  ;;  %v5395_v39 = vmul.f32 %v9784_v58, %v9698_v62  ;;  %v5425_v58 = vmul.f32 %v9800_v25, %v9705_v8  ;;  %v9880_v37 = vpop.permute.xlu1 %5756  ;;  %v5457_v25 = vmul.f32 %v9806_v48, %v9698_v62 }
0x1878   : > { %v5433_v11 = vrot.slane %v5427_v32, 2 }
0x1879   : > { %v5431_v63 = vrot.slane %v5425_v58, 2  ;;  %v5463_v1 = vrot.slane %v5457_v25, 3 }
0x187b   : > { %5144 = vrot.lane.b32.xlu0 %v5140_v7, %s11115_s25  ;;  %5373 = vrot.lane.b32.xlu1 %v5366_v51, %s6453_s23  ;;  %v9853_v7 = vrot.slane %v9587_v10, %v11106_v14  ;;  %v5520_v10 = vmul.f32 0.0, %v9843_v38  ;;  %v9902_v28 = vpop.permute.xlu1 %5818  ;;  %s5981_s25 = sshll.u32 %s6570_s16, 5  ;;  %s5885_s16 = scalar_lea.sflag [#allocation5], %s541_s24 }
0x187c   : > { %s10206_s3 = scalar_lea.hbm %s10266_s17, %s5981_s25 }
0x187d   : > { %v4783_v56 = vmul.f32 %v9853_v7, %v9698_v62  ;;  %v5526_v44 = vrot.slane %v5520_v10, 5  ;;  %v4782_v25 = vmul.f32 %v9853_v7, %v9705_v8 }
0x187f   : > { %5193 = vrot.lane.b32.xlu0 %v5191_v61, %s11141_s2  ;;  %5403 = vrot.lane.b32.xlu1 %v5400_v60, %s6453_s23  ;;  %v5367_v61 = vmul.f32 0.0, %v5364_v36  ;;  %v4806_v36 = vmul.f32 %v9869_v53, %v9698_v62  ;;  %v4789_v51 = vrot.slane %v4783_v56, 2  ;;  %v5493_v56 = vrot.slane %v5487_v42, 4 }
0x1883   : > { %5218 = vrot.lane.b32.xlu0 %v5216_v43, %s11141_s2  ;;  %5407 = vrot.lane.b32.xlu1 %v5402_v55, %s6453_s23  ;;  %v4772_v43 = vadd.f32 %v4766_v0, %v4749_v21  ;;  %v4812_v55 = vrot.slane %v4806_v36, 3  ;;  %v5588_v21 = vrot.slane %v5582_v46, 7  ;;  %v4759_v36 = vmul.f32 %v9823_v35, %v9705_v8 }
0x1885   : > { %v4795_v60 = vadd.f32 %v4789_v51, %v4772_v43  ;;  %v4744_v43 = vmul.f32 0.0, %v9827_v19  ;;  %v4781_v51 = vmul.f32 0.0, %v9853_v7 }
0x1887   : > { %5243 = vrot.lane.b32.xlu0 %v5241_v47, %s11141_s2  ;;  %5436 = vrot.lane.b32.xlu1 %v5432_v59, %s6453_s23  ;;  %v5401_v47 = vrot.slane %v5395_v39, 1  ;;  %v4747_v6 = vadd.f32 %v4744_v43, %v9847_v22  ;;  %v4787_v18 = vrot.slane %v4781_v51, 2  ;;  %v4828_v51 = vmul.f32 %v9885_v27, %v9705_v8 }
0x188b   : > { %5268 = vrot.lane.b32.xlu0 %v5266_v52, %s11141_s2  ;;  %5465 = vrot.lane.b32.xlu1 %v5462_v9, %s6453_s23  ;;  %v5550_v52 = vmul.f32 %v9878_v4, %v9698_v62  ;;  %v9914_v9 = vrot.slane %v9597_v23, %v11106_v14  ;;  %v9926_v23 = vrot.slane %v9593_v24, %v11106_v14  ;;  %v4758_v24 = vmul.f32 0.0, %v9823_v35 }
0x188c   : > { %v4804_v35 = vmul.f32 0.0, %v9869_v53 }
0x188d   : > { %v5556_v59 = vrot.slane %v5550_v52, 6  ;;  %v4875_v48 = vmul.f32 %v9914_v9, %v9698_v62  ;;  %v4898_v10 = vmul.f32 %v9926_v23, %v9698_v62 }
0x188f   : > { %5293 = vrot.lane.b32.xlu0 %v5291_v50, %s11141_s2  ;;  %5469 = vrot.lane.b32.xlu1 %v5464_v16, %s6453_s23  ;;  %v4818_v50 = vadd.f32 %v4812_v55, %v4795_v60  ;;  %v9917_v16 = vpop.permute.xlu1 %5080  ;;  %v4881_v39 = vrot.slane %v4875_v48, 6  ;;  %v5519_v60 = vmul.f32 %v9843_v38, %v9698_v62  ;;  %v4904_v52 = vrot.slane %v4898_v10, 7 }
0x1890   : > { %v9974_v48 = vrot.slane %v9832_v49, %v11106_v14  ;;  %v4805_v49 = vmul.f32 %v9869_v53, %v9705_v8 }
0x1893   : > { %5318 = vrot.lane.b32.xlu0 %v5316_v45, %s11141_s2  ;;  %5498 = vrot.lane.b32.xlu1 %v5494_v2, %s6453_s23  ;;  %v4852_v45 = vmul.f32 %v9899_v33, %v9698_v62  ;;  %v9931_v2 = vrot.slane %v9813_v40, %v11106_v14  ;;  %v4745_v40 = vmul.f32 %v9827_v19, %v9705_v8  ;;  %v4764_v19 = vrot.slane %v4758_v24, 1 }
0x1894   : > { %v4850_v24 = vmul.f32 0.0, %v9899_v33 }
0x1895   : > { %v4858_v57 = vrot.slane %v4852_v45, 5  ;;  %v5641_v55 = vmul.f32 0.0, %v9931_v2  ;;  %v4748_v32 = vadd.f32 %v4745_v40, %v9847_v22  ;;  %v4873_v40 = vmul.f32 0.0, %v9914_v9 }
0x1897   : > { %5343 = vrot.lane.b32.xlu0 %v5341_v31, %s11141_s2  ;;  %5527 = vrot.lane.b32.xlu1 %v5524_v54, %s6453_s23  ;;  %v4841_v31 = vadd.f32 %v4835_v12, %v4818_v50  ;;  %v9942_v54 = vpop.permute.xlu1 %5142  ;;  %v5549_v12 = vmul.f32 %v9878_v4, %v9705_v8  ;;  %v5647_v42 = vrot.slane %v5641_v55, 1  ;;  %s6346_s2 = scalar_lea.vmem %s6345_s4, 64 }
0x1899   : > { %v4864_v0 = vadd.f32 %v4858_v57, %v4841_v31  ;;  %v4770_v31 = vadd.f32 %v4764_v19, %v4747_v6  ;;  %v4879_v6 = vrot.slane %v4873_v40, 6 }
0x189b   : > { %5371 = vrot.lane.b32.xlu0 %v5365_v41, %s6453_s23  ;;  %5531 = vrot.lane.b32.xlu1 %v5526_v44, %s6453_s23  ;;  %v5605_v41 = vpop.permute.xlu0 %5604  ;;  %v4793_v7 = vadd.f32 %v4787_v18, %v4770_v31  ;;  %v10010_v18 = vrot.slane %v9857_v3, %v11106_v14  ;;  %v4874_v3 = vmul.f32 %v9914_v9, %v9705_v8 }
0x189c   : > { %v9934_v17 = vrot.slane %v5605_v41, %v11106_v14  ;;  %v4897_v9 = vmul.f32 %v9926_v23, %v9705_v8 }
0x189e   : > { %v5612_v58 = vmul.f32 %v9934_v17, %v9698_v62 }
0x189f   : > { %5375 = vrot.lane.b32.xlu0 %v5367_v61, %s6453_s23  ;;  %5560 = vrot.lane.b32.xlu1 %v5556_v59, %s6453_s23  ;;  %v5489_v61 = vmul.f32 0.0, %v9830_v30  ;;  %v4887_v30 = vadd.f32 %v4881_v39, %v4864_v0  ;;  %v4827_v59 = vmul.f32 0.0, %v9885_v27  ;;  %v5695_v46 = vpop.permute.xlu0 %5694  ;;  %v5551_v0 = vmul.f32 0.0, %v9878_v4 }
0x18a0   : > { %v9981_v41 = vrot.slane %v5695_v46, %v11106_v14  ;;  %v4851_v27 = vmul.f32 %v9899_v33, %v9705_v8  ;;  %v5733_v33 = vmul.f32 %v10010_v18, %v9698_v62 }
0x18a1   : > { %v5495_v44 = vrot.slane %v5489_v61, 4  ;;  %v4910_v50 = vadd.f32 %v4904_v52, %v4887_v30  ;;  %v4788_v61 = vrot.slane %v4782_v25, 2  ;;  %v4833_v10 = vrot.slane %v4827_v59, 4 }
0x18a2   : > { %v5701_v4 = vmul.f32 %v9981_v41, %v9705_v8  ;;  %v5557_v53 = vrot.slane %v5551_v0, 6  ;;  %v5703_v52 = vmul.f32 0.0, %v9981_v41 }
0x18a3   : > { %5405 = vrot.lane.b32.xlu0 %v5401_v47, %s6453_s23  ;;  %5589 = vrot.lane.b32.xlu1 %v5586_v5, %s6453_s23  ;;  %v5639_v47 = vmul.f32 %v9931_v2, %v9705_v8  ;;  %v4810_v5 = vrot.slane %v4804_v35, 3  ;;  %v4896_v35 = vmul.f32 0.0, %v9926_v23 }
0x18a4   : > { %v5707_v55 = vrot.slane %v5701_v4, 3  ;;  %v5709_v59 = vrot.slane %v5703_v52, 3 }
0x18a5   : > { %v5645_v38 = vrot.slane %v5639_v47, 1  ;;  %v4816_v39 = vadd.f32 %v4810_v5, %v4793_v7  ;;  %v4811_v47 = vrot.slane %v4805_v49, 3  ;;  %v4902_v31 = vrot.slane %v4896_v35, 7 }
0x18a6   : > { %v4857_v5 = vrot.slane %v4851_v27, 5  ;;  %v10069_v35 = vrot.slane %v9902_v28, %v11106_v14 }
0x18a7   : > { %5434 = vrot.lane.b32.xlu0 %v5431_v63, %s6453_s23  ;;  %5593 = vrot.lane.b32.xlu1 %v5588_v21, %s6453_s23  ;;  %v4765_v63 = vrot.slane %v4759_v36, 1 }
0x18a9   : > { %v4771_v57 = vadd.f32 %v4765_v63, %v4748_v32  ;;  %v4834_v63 = vrot.slane %v4828_v51, 4 }
0x18ab   : > { %5438 = vrot.lane.b32.xlu0 %v5433_v11, %s6453_s23  ;;  %5619 = vrot.lane.b32.xlu1 %v5612_v58, %s6432_s19  ;;  %v5525_v11 = vrot.slane %v5519_v60, 5  ;;  %v4794_v43 = vadd.f32 %v4788_v61, %v4771_v57  ;;  %v5581_v58 = vmul.f32 %v9889_v20, %v9698_v62  ;;  %v4856_v60 = vrot.slane %v4850_v24, 5 }
0x18ac   : > { %v4880_v61 = vrot.slane %v4874_v3, 6 }
0x18ad   : > { %v9963_v45 = vpop.permute.xlu1 %4929  ;;  %v4817_v19 = vadd.f32 %v4811_v47, %v4794_v43  ;;  %v5587_v20 = vrot.slane %v5581_v58, 7 }
0x18ae   : > { %v9970_v22 = vadd.f32 %v9963_v45, %v4910_v50  ;;  %v5788_v50 = vpop.permute.xlu0 %5787 }
0x18af   : > { %5467 = vrot.lane.b32.xlu0 %v5463_v1, %s6453_s23  ;;  %5648 = vrot.lane.b32.xlu1 %v5645_v38, %s6432_s19  ;;  %v5671_v1 = vmul.f32 %v9974_v48, %v9698_v62  ;;  %v4840_v25 = vadd.f32 %v4834_v63, %v4817_v19 }
0x18b1   : > { %v9983_v21 = vpop.permute.xlu1 %5170  ;;  %v5677_v36 = vrot.slane %v5671_v1, 2  ;;  %v4863_v7 = vadd.f32 %v4857_v5, %v4840_v25  ;;  %v5739_v1 = vrot.slane %v5733_v33, 4  ;;  %v5825_v33 = vmul.f32 %v10069_v35, %v9705_v8 }
0x18b3   : > { %5496 = vrot.lane.b32.xlu0 %v5493_v56, %s6453_s23  ;;  %v5555_v56 = vrot.slane %v5549_v12, 6  ;;  %5652 = vrot.lane.b32.xlu1 %v5647_v42, %s6432_s19  ;;  %v10016_v12 = vrot.slane %v9880_v37, %v11106_v14  ;;  %v5611_v42 = vmul.f32 %v9934_v17, %v9705_v8  ;;  %v4886_v40 = vadd.f32 %v4880_v61, %v4863_v7 }
0x18b4   : > { %v5831_v7 = vrot.slane %v5825_v33, 7 }
0x18b5   : > { %v9994_v30 = vpop.permute.xlu1 %4958  ;;  %v5763_v37 = vmul.f32 %v10016_v12, %v9705_v8  ;;  %v5765_v23 = vmul.f32 0.0, %v10016_v12 }
0x18b7   : > { %5500 = vrot.lane.b32.xlu0 %v5495_v44, %s6453_s23  ;;  %v4839_v44 = vadd.f32 %v4833_v10, %v4816_v39  ;;  %5681 = vrot.lane.b32.xlu1 %v5677_v36, %s6432_s19  ;;  %v5613_v39 = vmul.f32 0.0, %v9934_v17  ;;  %v5769_v4 = vrot.slane %v5763_v37, 5  ;;  %v4962_v17 = vsel %vm927_vm1, %v9650_v13, %v9994_v30 }
0x18b9   : > { %v10004_v32 = vpop.permute.xlu1 %4989  ;;  %v4862_v38 = vadd.f32 %v4856_v60, %v4839_v44  ;;  %v5672_v60 = vmul.f32 0.0, %v9974_v48 }
0x18ba   : > { %v4993_v44 = vsel %vm927_vm1, %v9695_v15, %v10004_v32 }
0x18bb   : > { %5529 = vrot.lane.b32.xlu0 %v5525_v11, %s6453_s23  ;;  %5710 = vrot.lane.b32.xlu1 %v5707_v55, %s6432_s19  ;;  %v4885_v46 = vadd.f32 %v4879_v6, %v4862_v38  ;;  %v5771_v6 = vrot.slane %v5765_v23, 5  ;;  %v5678_v3 = vrot.slane %v5672_v60, 2 }
0x18bd   : > { %v10020_v11 = vpop.permute.xlu1 %5020  ;;  %v4908_v49 = vadd.f32 %v4902_v31, %v4885_v46 }
0x18be   : > { %v5024_v55 = vsel %vm927_vm1, %v9702_v34, %v10020_v11 }
0x18bf   : > { %5558 = vrot.lane.b32.xlu0 %v5555_v56, %s6453_s23  ;;  %5714 = vrot.lane.b32.xlu1 %v5709_v59, %s6432_s19  ;;  %v5640_v56 = vmul.f32 %v9931_v2, %v9698_v62  ;;  %v10045_v2 = vrot.slane %v5788_v50, %v11106_v14 }
0x18c1   : > { %v10030_v0 = vpop.permute.xlu1 %5051  ;;  %v5646_v51 = vrot.slane %v5640_v56, 1  ;;  %v5795_v15 = vmul.f32 %v10045_v2, %v9698_v62 }
0x18c2   : > { %v5055_v38 = vsel %vm927_vm1, %v9712_v29, %v10030_v0  ;;  %v5702_v29 = vmul.f32 %v9981_v41, %v9698_v62 }
0x18c3   : > { %5562 = vrot.lane.b32.xlu0 %v5557_v53, %s6453_s23  ;;  %5743 = vrot.lane.b32.xlu1 %v5739_v1, %s6432_s19  ;;  %v5801_v46 = vrot.slane %v5795_v15, 6  ;;  %v5732_v1 = vmul.f32 %v10010_v18, %v9705_v8 }
0x18c5   : > { %v10050_v53 = vpop.permute.xlu1 %5084 }
0x18c7   : > { %5591 = vrot.lane.b32.xlu0 %v5587_v20, %s6453_s23  ;;  %5772 = vrot.lane.b32.xlu1 %v5769_v4, %s6432_s19 }
0x18c9   : > { %v5112_v57 = vpop.permute.xlu0 %5111  ;;  %v5114_v27 = vpop.permute.xlu1 %5113 }
0x18cb   : > { %5617 = vrot.lane.b32.xlu0 %v5611_v42, %s6432_s19  ;;  %5776 = vrot.lane.b32.xlu1 %v5771_v6, %s6432_s19 }
0x18cd   : > { %v4928_v10 = vpop.permute.xlu0 %4927  ;;  %v5147_v31 = vpop.permute.xlu1 %5146 }
0x18ce   : > { %v4931_v24 = vsel %vm927_vm1, %v9648_v26, %v4928_v10  ;;  %v4932_v43 = vsel %vm927_vm1, %v4928_v10, %v9963_v45  ;;  %v5670_v26 = vmul.f32 %v9974_v48, %v9705_v8  ;;  %v4903_v45 = vrot.slane %v4897_v9, 7 }
0x18cf   : > { %v4936_v36 = vadd.f32 %v4931_v24, %v4908_v49  ;;  %5621 = vrot.lane.b32.xlu0 %v5613_v39, %s6432_s19  ;;  %v5117_v48 = vsel %vm927_vm1, %v5112_v57, %v5114_v27  ;;  %5805 = vrot.lane.b32.xlu1 %v5801_v46, %s6432_s19  ;;  %v5827_v57 = vmul.f32 0.0, %v10069_v35  ;;  %v5708_v49 = vrot.slane %v5702_v29, 3 }
0x18d0   : > { %v4909_v52 = vadd.f32 %v4903_v45, %v4886_v40  ;;  %v5676_v63 = vrot.slane %v5670_v26, 2  ;;  %v5734_v10 = vmul.f32 0.0, %v10010_v18  ;;  %v5738_v24 = vrot.slane %v5732_v1, 4 }
0x18d1   : > { %v4967_v47 = vadd.f32 %v4962_v17, %v4936_v36  ;;  %v10054_v58 = vpop.permute.xlu0 %5168  ;;  %v5196_v37 = vpop.permute.xlu1 %5195  ;;  %v5833_v56 = vrot.slane %v5827_v57, 7  ;;  %v5764_v26 = vmul.f32 %v10016_v12, %v9698_v62 }
0x18d2   : > { %v10063_v13 = vsel %vm1255_vm2, %v10054_v58, %v9983_v21  ;;  %v4937_v20 = vadd.f32 %v4932_v43, %v4909_v52  ;;  %v5740_v17 = vrot.slane %v5734_v10, 4  ;;  %v5794_v52 = vmul.f32 %v10045_v2, %v9705_v8 }
0x18d3   : > { %v4998_v19 = vadd.f32 %v4993_v44, %v4967_v47  ;;  %5650 = vrot.lane.b32.xlu0 %v5646_v51, %s6432_s19  ;;  %5834 = vrot.lane.b32.xlu1 %v5831_v7, %s6432_s19  ;;  %v5770_v60 = vrot.slane %v5764_v26, 5 }
0x18d5   : > { %v4961_v50 = vpop.permute.xlu0 %4960  ;;  %v5029_v59 = vadd.f32 %v5024_v55, %v4998_v19  ;;  %v5221_v39 = vpop.permute.xlu1 %5220 }
0x18d6   : > { %v4963_v14 = vsel %vm927_vm1, %v9994_v30, %v4961_v50  ;;  %v4969_v28 = vadd.f32 %v4961_v50, %v9970_v22 }
0x18d7   : > { %v4968_v25 = vadd.f32 %v4963_v14, %v4937_v20  ;;  %5679 = vrot.lane.b32.xlu0 %v5676_v63, %s6432_s19  ;;  %v5060_v34 = vadd.f32 %v5055_v38, %v5029_v59  ;;  %5838 = vrot.lane.b32.xlu1 %v5833_v56, %s6432_s19  ;;  %v5800_v20 = vrot.slane %v5794_v52, 6 }
0x18d9   : > { %v4992_v5 = vpop.permute.xlu0 %4991 }
0x18da   : > { %v4994_v30 = vsel %vm927_vm1, %v10004_v32, %v4992_v5  ;;  %v5000_v22 = vadd.f32 %v4992_v5, %v4969_v28 }
0x18db   : > { %v4999_v42 = vadd.f32 %v4994_v30, %v4968_v25  ;;  %5683 = vrot.lane.b32.xlu0 %v5678_v3, %s6432_s19  ;;  %v5826_v25 = vmul.f32 %v10069_v35, %v9698_v62 }
0x18dd   : > { %v5023_v9 = vpop.permute.xlu0 %5022  ;;  %v5832_v30 = vrot.slane %v5826_v25, 7 }
0x18de   : > { %v5025_v41 = vsel %vm927_vm1, %v10020_v11, %v5023_v9  ;;  %v5031_v61 = vadd.f32 %v5023_v9, %v5000_v22  ;;  %v5246_v11 = vpop.permute.xlu1 %5245 }
0x18df   : > { %v5030_v32 = vadd.f32 %v5025_v41, %v4999_v42  ;;  %5712 = vrot.lane.b32.xlu0 %v5708_v49, %s6432_s19 }
0x18e1   : > { %v5054_v43 = vpop.permute.xlu0 %5053 }
0x18e2   : > { %v5056_v40 = vsel %vm927_vm1, %v10030_v0, %v5054_v43  ;;  %v5062_v36 = vadd.f32 %v5054_v43, %v5031_v61  ;;  %v5271_v44 = vpop.permute.xlu1 %5270 }
0x18e3   : > { %v5061_v23 = vadd.f32 %v5056_v40, %v5030_v32  ;;  %5741 = vrot.lane.b32.xlu0 %v5738_v24, %s6432_s19 }
0x18e4   : > { %v5093_v4 = vadd.f32 %v10050_v53, %v5062_v36 }
0x18e5   : > { %v5083_v45 = vpop.permute.xlu0 %5082 }
0x18e6   : > { %v5086_v18 = vsel %vm927_vm1, %v9917_v16, %v5083_v45  ;;  %v5087_v51 = vsel %vm927_vm1, %v5083_v45, %v10050_v53  ;;  %v5296_v16 = vpop.permute.xlu1 %5295  ;;  %v5796_v53 = vmul.f32 0.0, %v10045_v2 }
0x18e7   : > { %v5091_v47 = vadd.f32 %v5086_v18, %v5060_v34  ;;  %v5092_v0 = vadd.f32 %v5087_v51, %v5061_v23  ;;  %5745 = vrot.lane.b32.xlu0 %v5740_v17, %s6432_s19 }
0x18e8   : > { %v5802_v34 = vrot.slane %v5796_v53, 6 }
0x18e9   : > { %v5116_v19 = vpop.permute.xlu0 %5115  ;;  %v5122_v6 = vadd.f32 %v5117_v48, %v5091_v47 }
0x18ea   : > { %v5118_v12 = vsel %vm927_vm1, %v5114_v27, %v5116_v19  ;;  %v5124_v15 = vadd.f32 %v5116_v19, %v5093_v4  ;;  %v5321_v27 = vpop.permute.xlu1 %5320 }
0x18eb   : > { %v5123_v55 = vadd.f32 %v5118_v12, %v5092_v0  ;;  %5774 = vrot.lane.b32.xlu0 %v5770_v60, %s6432_s19 }
0x18ec   : > { %v5155_v63 = vadd.f32 %v5147_v31, %v5124_v15 }
0x18ed   : > { %v5145_v50 = vpop.permute.xlu0 %5144 }
0x18ee   : > { %v5178_v59 = vadd.f32 %v9983_v21, %v5155_v63  ;;  %v5148_v38 = vsel %vm927_vm1, %v9942_v54, %v5145_v50  ;;  %v5149_v8 = vsel %vm927_vm1, %v5145_v50, %v5147_v31  ;;  %v5346_v5 = vpop.permute.xlu1 %5345 }
0x18ef   : > { %v5153_v48 = vadd.f32 %v5148_v38, %v5122_v6  ;;  %v5154_v14 = vadd.f32 %v5149_v8, %v5123_v55  ;;  %5803 = vrot.lane.b32.xlu0 %v5800_v20, %s6432_s19 }
0x18f0   : > { %v5203_v28 = vadd.f32 %v5196_v37, %v5178_v59 }
0x18f1   : > { %v5194_v2 = vpop.permute.xlu0 %5193  ;;  %v5176_v33 = vadd.f32 %v10054_v58, %v5153_v48  ;;  %v5177_v21 = vadd.f32 %v10063_v13, %v5154_v14 }
0x18f2   : > { %v5228_v46 = vadd.f32 %v5221_v39, %v5203_v28  ;;  %v5197_v54 = vsel %vm1255_vm2, %v5194_v2, %v5196_v37  ;;  %v10131_v13 = vpop.permute.xlu1 %5373 }
0x18f3   : > { %v5201_v3 = vadd.f32 %v5194_v2, %v5176_v33  ;;  %v5202_v31 = vadd.f32 %v5197_v54, %v5177_v21  ;;  %5807 = vrot.lane.b32.xlu0 %v5802_v34, %s6432_s19 }
0x18f4   : > { %v5253_v29 = vadd.f32 %v5246_v11, %v5228_v46 }
0x18f5   : > { %v5219_v22 = vpop.permute.xlu0 %5218 }
0x18f6   : > { %v5278_v42 = vadd.f32 %v5271_v44, %v5253_v29  ;;  %v5222_v62 = vsel %vm1255_vm2, %v5219_v22, %v5221_v39  ;;  %v5226_v35 = vadd.f32 %v5219_v22, %v5201_v3  ;;  %v5404_v61 = vpop.permute.xlu1 %5403 }
0x18f7   : > { %v5227_v57 = vadd.f32 %v5222_v62, %v5202_v31  ;;  %5836 = vrot.lane.b32.xlu0 %v5832_v30, %s6432_s19  ;;  %s11143_s19 = smov 2  }
0x18f8   : > { %v5303_v58 = vadd.f32 %v5296_v16, %v5278_v42 }
0x18f9   : > { %v5244_v7 = vpop.permute.xlu0 %5243 }
0x18fa   : > { %v5328_v37 = vadd.f32 %v5321_v27, %v5303_v58  ;;  %v5247_v1 = vsel %vm1255_vm2, %v5244_v7, %v5246_v11  ;;  %v5251_v49 = vadd.f32 %v5244_v7, %v5226_v35  ;;  %v5408_v24 = vpop.permute.xlu1 %5407 }
0x18fb   : > { %v5252_v9 = vadd.f32 %v5247_v1, %v5227_v57 }
0x18fc   : > { %v5353_v41 = vadd.f32 %v5346_v5, %v5328_v37 }
0x18fd   : > { %v5269_v32 = vpop.permute.xlu0 %5268 }
0x18fe   : > { %v5272_v56 = vsel %vm1255_vm2, %v5269_v32, %v5271_v44  ;;  %v5276_v10 = vadd.f32 %v5269_v32, %v5251_v49  ;;  %v5437_v4 = vpop.permute.xlu1 %5436 }
0x18ff   : > { %v5277_v39 = vadd.f32 %v5272_v56, %v5252_v9 }
0x1901   : > { %v5294_v43 = vpop.permute.xlu0 %5293 }
0x1902   : > { %v5297_v40 = vsel %vm1255_vm2, %v5294_v43, %v5296_v16  ;;  %v5301_v36 = vadd.f32 %v5294_v43, %v5276_v10  ;;  %v5466_v18 = vpop.permute.xlu1 %5465 }
0x1903   : > { %v5302_v23 = vadd.f32 %v5297_v40, %v5277_v39 }
0x1905   : > { %v5319_v17 = vpop.permute.xlu0 %5318 }
0x1906   : > { %v5322_v26 = vsel %vm1255_vm2, %v5319_v17, %v5321_v27  ;;  %v5326_v11 = vadd.f32 %v5319_v17, %v5301_v36  ;;  %v5470_v60 = vpop.permute.xlu1 %5469 }
0x1907   : > { %v5327_v45 = vadd.f32 %v5322_v26, %v5302_v23 }
0x1909   : > { %v5344_v51 = vpop.permute.xlu0 %5343 }
0x190a   : > { %v5347_v47 = vsel %vm1255_vm2, %v5344_v51, %v5346_v5  ;;  %v5351_v0 = vadd.f32 %v5344_v51, %v5326_v11  ;;  %v5499_v19 = vpop.permute.xlu1 %5498 }
0x190b   : > { %v5352_v44 = vadd.f32 %v5347_v47, %v5327_v45 }
0x190d   : > { %v5372_v52 = vpop.permute.xlu0 %5371 }
0x190e   : > { %v5528_v12 = vpop.permute.xlu1 %5527  ;;  %v5383_v21 = vadd.f32 %v5372_v52, %v5351_v0  ;;  %v5378_v35 = vsel %vm5377_vm8, %v5372_v52, %v10131_v13 }
0x190f   : > { %v5384_v1 = vadd.f32 %v5378_v35, %v5352_v44 }
0x1910   : > { %v5414_v3 = vadd.f32 %v5404_v61, %v5383_v21 }
0x1911   : > { %v5376_v6 = vpop.permute.xlu0 %5375 }
0x1912   : > { %v5532_v55 = vpop.permute.xlu1 %5531  ;;  %v5379_v57 = vsel %vm5377_vm8, %v10131_v13, %v5376_v6 }
0x1913   : > { %v5385_v49 = vadd.f32 %v5379_v57, %v5353_v41 }
0x1915   : > { %v5406_v15 = vpop.permute.xlu0 %5405 }
0x1916   : > { %v5561_v63 = vpop.permute.xlu1 %5560  ;;  %v5409_v7 = vsel %vm5377_vm8, %v5404_v61, %v5406_v15  ;;  %v5410_v37 = vsel %vm5377_vm8, %v5406_v15, %v5408_v24 }
0x1917   : > { %v5415_v39 = vadd.f32 %v5409_v7, %v5384_v1  ;;  %v5416_v43 = vadd.f32 %v5410_v37, %v5385_v49 }
0x1919   : > { %v5435_v16 = vpop.permute.xlu0 %5434 }
0x191a   : > { %v5590_v20 = vpop.permute.xlu1 %5589  ;;  %v5445_v29 = vadd.f32 %v5435_v16, %v5414_v3  ;;  %v5440_v56 = vsel %vm5377_vm8, %v5435_v16, %v5437_v4 }
0x191b   : > { %v5446_v23 = vadd.f32 %v5440_v56, %v5415_v39 }
0x191c   : > { %v5476_v22 = vadd.f32 %v5466_v18, %v5445_v29 }
0x191d   : > { %v5439_v53 = vpop.permute.xlu0 %5438 }
0x191e   : > { %v5594_v59 = vpop.permute.xlu1 %5593  ;;  %v5441_v10 = vsel %vm5377_vm8, %v5437_v4, %v5439_v53 }
0x191f   : > { %v5447_v17 = vadd.f32 %v5441_v10, %v5416_v43 }
0x1921   : > { %v5468_v50 = vpop.permute.xlu0 %5467 }
0x1922   : > { %v10138_v8 = vpop.permute.xlu1 %5619  ;;  %v5471_v36 = vsel %vm5377_vm8, %v5466_v18, %v5468_v50  ;;  %v5472_v13 = vsel %vm5377_vm8, %v5468_v50, %v5470_v60 }
0x1923   : > { %v5477_v11 = vadd.f32 %v5471_v36, %v5446_v23  ;;  %v5478_v45 = vadd.f32 %v5472_v13, %v5447_v17 }
0x1925   : > { %v5497_v38 = vpop.permute.xlu0 %5496 }
0x1926   : > { %v10140_v14 = vpop.permute.xlu1 %5648  ;;  %v5507_v42 = vadd.f32 %v5497_v38, %v5476_v22  ;;  %v5502_v24 = vsel %vm5377_vm8, %v5497_v38, %v5499_v19 }
0x1927   : > { %v5508_v0 = vadd.f32 %v5502_v24, %v5477_v11 }
0x1928   : > { %v5538_v9 = vadd.f32 %v5528_v12, %v5507_v42 }
0x1929   : > { %v5501_v48 = vpop.permute.xlu0 %5500 }
0x192a   : > { %v10142_v25 = vpop.permute.xlu1 %5652  ;;  %v5503_v41 = vsel %vm5377_vm8, %v5499_v19, %v5501_v48 }
0x192b   : > { %v5509_v44 = vadd.f32 %v5503_v41, %v5478_v45 }
0x192d   : > { %v5530_v27 = vpop.permute.xlu0 %5529 }
0x192e   : > { %v10144_v2 = vpop.permute.xlu1 %5681  ;;  %v5533_v4 = vsel %vm5377_vm8, %v5528_v12, %v5530_v27  ;;  %v5534_v47 = vsel %vm5377_vm8, %v5530_v27, %v5532_v55 }
0x192f   : > { %v5539_v15 = vadd.f32 %v5533_v4, %v5508_v0  ;;  %v5540_v16 = vadd.f32 %v5534_v47, %v5509_v44  ;;  %v11142_v47 = vld [vmem:[#allocation7_spill] sm:$0xff] }
0x1931   : > { %v5559_v28 = vpop.permute.xlu0 %5558 }
0x1932   : > { %v10146_v54 = vpop.permute.xlu1 %5710  ;;  %v5569_v40 = vadd.f32 %v5559_v28, %v5538_v9  ;;  %v5564_v60 = vsel %vm5377_vm8, %v5559_v28, %v5561_v63 }
0x1933   : > { %v5570_v38 = vadd.f32 %v5564_v60, %v5539_v15 }
0x1934   : > { %v5600_v51 = vadd.f32 %v5590_v20, %v5569_v40 }
0x1935   : > { %v5563_v34 = vpop.permute.xlu0 %5562 }
0x1936   : > { %v10148_v5 = vpop.permute.xlu1 %5714  ;;  %v5565_v6 = vsel %vm5377_vm8, %v5561_v63, %v5563_v34 }
0x1937   : > { %v5571_v48 = vadd.f32 %v5565_v6, %v5540_v16 }
0x1939   : > { %v5592_v33 = vpop.permute.xlu0 %5591 }
0x193a   : > { %v10154_v58 = vpop.permute.xlu1 %5743  ;;  %v5595_v19 = vsel %vm5377_vm8, %v5590_v20, %v5592_v33  ;;  %v5596_v50 = vsel %vm5377_vm8, %v5592_v33, %v5594_v59 }
0x193b   : > { %v5601_v21 = vadd.f32 %v5595_v19, %v5570_v38  ;;  %v5602_v63 = vadd.f32 %v5596_v50, %v5571_v48  ;;  %v11144_v50 = vlaneseq }
0x193d   : > { %v5618_v46 = vpop.permute.xlu0 %5617  ;;  %vm5881_vm9 = vcmp.lt.s32.totalorder %v11144_v50, 256 }
0x193e   : > { %v5773_v61 = vpop.permute.xlu1 %5772  ;;  %v5628_v18 = vadd.f32 %v5618_v46, %v5600_v51  ;;  %v5623_v27 = vsel %vm2634_vm4, %v5618_v46, %v10138_v8 }
0x193f   : > { %v5629_v59 = vadd.f32 %v5623_v27, %v5601_v21 }
0x1940   : > { %v5659_v12 = vadd.f32 %v10140_v14, %v5628_v18 }
0x1941   : > { %v5622_v31 = vpop.permute.xlu0 %5621 }
0x1942   : > { %v5777_v53 = vpop.permute.xlu1 %5776  ;;  %v5624_v28 = vsel %vm2634_vm4, %v10138_v8, %v5622_v31 }
0x1943   : > { %v5630_v33 = vadd.f32 %v5624_v28, %v5602_v63 }
0x1945   : > { %v5651_v30 = vpop.permute.xlu0 %5650 }
0x1946   : > { %v5654_v3 = vsel %vm2634_vm4, %v10140_v14, %v5651_v30  ;;  %v5655_v20 = vsel %vm2634_vm4, %v5651_v30, %v10142_v25  ;;  %v5806_v29 = vpop.permute.xlu1 %5805 }
0x1947   : > { %v5660_v8 = vadd.f32 %v5654_v3, %v5629_v59  ;;  %v5661_v31 = vadd.f32 %v5655_v20, %v5630_v33 }
0x1949   : > { %v5680_v62 = vpop.permute.xlu0 %5679 }
0x194a   : > { %v5690_v34 = vadd.f32 %v5680_v62, %v5659_v12  ;;  %v5685_v42 = vsel %vm2634_vm4, %v5680_v62, %v10144_v2  ;;  %v5835_v1 = vpop.permute.xlu1 %5834 }
0x194b   : > { %v5691_v30 = vadd.f32 %v5685_v42, %v5660_v8 }
0x194c   : > { %v5721_v35 = vadd.f32 %v10146_v54, %v5690_v34 }
0x194d   : > { %v5684_v32 = vpop.permute.xlu0 %5683 }
0x194e   : > { %v5686_v46 = vsel %vm2634_vm4, %v10144_v2, %v5684_v32  ;;  %v6454_v32 = vmov 1966171168   ;;  %v5839_v24 = vpop.permute.xlu1 %5838 }
0x194f   : > { %v5692_v57 = vadd.f32 %v5686_v46, %v5661_v31  ;;  %v5853_v56 = vunpack.c.l.s4 %v6454_v32 }
0x1951   : > { %v5713_v26 = vpop.permute.xlu0 %5712 }
0x1952   : > { %v5716_v14 = vsel %vm2634_vm4, %v10146_v54, %v5713_v26  ;;  %v5717_v25 = vsel %vm2634_vm4, %v5713_v26, %v10148_v5  ;;  %v5854_v26 = vunpack.c.0.s8 %v5853_v56 }
0x1953   : > { %v5722_v49 = vadd.f32 %v5716_v14, %v5691_v30  ;;  %v5723_v9 = vadd.f32 %v5717_v25, %v5692_v57 }
0x1954   : > { %v5857_v0 = vsub.s32 %v5854_v26, %v11142_v47 }
0x1955   : > { %v5742_v52 = vpop.permute.xlu0 %5741 }
0x1956   : > { %v5752_v7 = vadd.f32 %v5742_v52, %v5721_v35  ;;  %v5747_v62 = vsel %vm2634_vm4, %v5742_v52, %v10154_v58 }
0x1957   : > { %v5753_v5 = vadd.f32 %v5747_v62, %v5722_v49 }
0x1958   : > { %v5783_v43 = vadd.f32 %v5773_v61, %v5752_v7 }
0x1959   : > { %v5746_v55 = vpop.permute.xlu0 %5745 }
0x195a   : > { %v5748_v2 = vsel %vm2634_vm4, %v10154_v58, %v5746_v55 }
0x195b   : > { %v5754_v39 = vadd.f32 %v5748_v2, %v5723_v9 }
0x195d   : > { %v5775_v22 = vpop.permute.xlu0 %5774 }
0x195e   : > { %v5778_v54 = vsel %vm2634_vm4, %v5773_v61, %v5775_v22  ;;  %v5779_v10 = vsel %vm2634_vm4, %v5775_v22, %v5777_v53 }
0x195f   : > { %v5784_v23 = vadd.f32 %v5778_v54, %v5753_v5  ;;  %v5785_v17 = vadd.f32 %v5779_v10, %v5754_v39 }
0x1961   : > { %v5804_v37 = vpop.permute.xlu0 %5803 }
0x1962   : > { %v5809_v36 = vsel %vm2634_vm4, %v5804_v37, %v5806_v29  ;;  %v5814_v58 = vadd.f32 %v5804_v37, %v5783_v43 }
0x1963   : > { %v5815_v41 = vadd.f32 %v5809_v36, %v5784_v23 }
0x1964   : > { %v5845_v61 = vadd.f32 %v5835_v1, %v5814_v58 }
0x1965   : > { %v5808_v40 = vpop.permute.xlu0 %5807 }
0x1966   : > { %v5810_v13 = vsel %vm2634_vm4, %v5806_v29, %v5808_v40 }
0x1967   : > { %v5816_v11 = vadd.f32 %v5810_v13, %v5785_v17 }
0x1969   : > { %v5837_v45 = vpop.permute.xlu0 %5836 }
0x196a   : > { %v5840_v51 = vsel %vm2634_vm4, %v5835_v1, %v5837_v45  ;;  %v5841_v4 = vsel %vm2634_vm4, %v5837_v45, %v5839_v24 }
0x196b   : > { %v5846_v44 = vadd.f32 %v5840_v51, %v5815_v41  ;;  %v5847_v18 = vadd.f32 %v5841_v4, %v5816_v11 }
0x196d   : > { %v5851_v52 = vcombine.low %v5845_v61, %v5846_v44  ;;  %v5865_v6 = vrot.slane %v5847_v18, %v5857_v0 }
0x196f   : > { %v5858_v60 = vrot.slane %v5851_v52, %v5857_v0 }
0x1971   : > { %v5866_v15 = vcombine.low %v5858_v60, %v5865_v6 }
0x1973   : > { %v5873_v16 = vrot.slane %v5866_v15, %v5857_v0 }
0x1975   : > { %5874 = vrot.lane.b32.xlu0 %v5873_v16, %s11143_s19  ;;  %s6340_s19 = scalar_lea.vmem %s10208_s22, 32 }
0x1976   : > { %p6341_p11 = scmp.ne.s32.totalorder %s10208_s22, %s6340_s19  ;;  %p6348_p1 = scmp.lt.s32.totalorder %s6346_s2, %s6340_s19 }
0x1978   : > { %p6342_p12 = pnand %p6341_p11, %p6587_p5  ;;  %p6349_p2 = por %p6348_p1, %p6347_p0 }
0x197a   : > { %p6343_p13 = pneg %p6342_p12 }
0x197c   : > { %p6350_p3 = pnand %p6349_p2, %p6343_p13 }
0x19e7   : > { %v5875_v53 = vpop.permute.xlu0 %5874 }
0x19e8   : > { %v5876_v19 = vrot.slane %v5875_v53, 1 }
0x19ea   : > { %v5877_v38 = vsel %vm3376_vm5, %v5875_v53, %v5876_v19 }
0x19eb   : > { %5883 = vst.msk [vmem:[%s543_s18] sm:$0x3] %vm5881_vm9, %v5877_v38 }
0x19ec   : > { %6353 = shalt.err (!%p6350_p3)
}
0x19ed   : > { %s6354_s24 = scalar_lea.hbm %s10206_s3, 32  ;;  %s6358_s23 = scalar_lea.hbm %s10266_s17, 64 }
0x19ee   : > { %p6355_p4 = scmp.ne.s32.totalorder %s10206_s3, %s6354_s24  ;;  %p6359_p9 = scmp.lt.u32.totalorder %s10206_s3, %s10266_s17 }
0x19ef   : > { %p6360_p10 = scmp.lt.u32.totalorder %s6358_s23, %s6354_s24  ;;  %p6362_p12 = scmp.lt.u32.totalorder %s6354_s24, %s10206_s3 }
0x19f0   : > { %p6356_p7 = pnand %p6355_p4, %p6587_p5 }
0x19f1   : > { %p6361_p11 = por %p6360_p10, %p6359_p9 }
0x19f2   : > { %p6357_p8 = pneg %p6356_p7 }
0x19f3   : > { %p6363_p13 = por %p6362_p12, %p6361_p11 }
0x19f5   : > { %p6364_p0 = pnand %p6363_p13, %p6357_p8 }
0x19f7   : > { %6367 = shalt.err (!%p6364_p0)
}
0x19f8   : > { %5982 = dma.vmem_to_hbm [thread:$0]  (%p6587_p5), %s10208_s22, 32, %s10206_s3, %s5885_s16  }
0x19f9 PF: > { %p5988_p1 = scmp.ge.s32.totalorder %s6402_s29, 2  ;;  %s5911_s19 = sand.u32 1, %s6390_s26  }
0x19fa   : > { %s5912_s2 = scalar_lea.sflag [#allocation5], %s5911_s19 }
0x19fb   : > { %p5985_p2 = pnand %p5988_p1, %p6591_p6 }
0x19fd   : > { %6385 = dma.done.wait (!%p5985_p2), %s5912_s2, 32  }
0x19fe   : > { %6387 = vsyncadd (!%p5985_p2), %s5912_s2, 4294967264  ;;  %p29_p3 = scmp.ge.s32.totalorder %s6574_s30, 4   ;;  %s11145_s26 = smov %s6394_s27 }
0x19ff   : > { %s11146_s27 = smov %s6398_s28  ;;  %s11147_s28 = smov %s6585_s1 }
0x1a00   : > { %s11148_s29 = smov %s6574_s30  ;;  %31 = sbr.rel (!%p29_p3) target bundleno = 9 (0x9), region = 123 }
0x1a07   :  { %5917 = vsyncpa [#allocation5], 1 }
0x1a08   :  { %5919 = vsyncpa [#allocation5 + $0x1], 1 }

</bundles_post_ra>
